<compile_context>
chip_gen: v6e
topology: v6e:2x2x1
jax: 0.10.0
libtpu: 0.0.40
codegen_flags: <defaults>
</compile_context>

<pallas_src>
import functools

import jax
import jax.numpy as jnp
from jax.experimental import pallas as pl
from jax.experimental.pallas import tpu as pltpu

_HIGHEST = jax.lax.Precision.HIGHEST
# 48 MiB: generous on v5e/v6e (128 MiB physical) and still safe on v7x (64 MiB physical).
_VMEM_LIMIT = 48 * 1024 * 1024


def _round_up(x, m):
    return (x + m - 1) // m * m


def _pick_divisor_tile(n, candidates, prefer_multi=True):
    """Largest candidate dividing n (preferring >=2 blocks for megacore); fallback n."""
    if prefer_multi:
        for c in candidates:
            if n % c == 0 and n // c >= 2:
                return c
    for c in candidates:
        if n % c == 0:
            return c
    return n


# ----------------------------------------------------------------------------
# Plain GEMM (+bias, +optional fused residual): full-K, full-N, M-tiled, bf16 out
# ----------------------------------------------------------------------------

def _gemm_kernel(a_ref, w_ref, b_ref, o_ref):
    acc = jnp.dot(a_ref[...], w_ref[...], preferred_element_type=jnp.float32)
    o_ref[...] = (acc + b_ref[...]).astype(o_ref.dtype)


def _gemm_res_kernel(a_ref, w_ref, b_ref, r_ref, o_ref):
    acc = jnp.dot(a_ref[...], w_ref[...], preferred_element_type=jnp.float32)
    acc = acc + b_ref[...] + r_ref[...].astype(jnp.float32)
    o_ref[...] = acc.astype(o_ref.dtype)


def matmul_bias(a, w, b2, residual=None):
    """out = a @ w + b (+ residual).  a:[M,K] bf16, w:[K,N] bf16, b2:[1,N] f32 -> bf16."""
    m, k = a.shape
    n = w.shape[1]
    tm = _pick_divisor_tile(m, (512, 256, 128, 64, 32, 16, 8))

    operands = [a.astype(jnp.bfloat16), w, b2]
    in_specs = [pl.BlockSpec((tm, k), lambda i: (i, 0)),
                pl.BlockSpec((k, n), lambda i: (0, 0)),
                pl.BlockSpec((1, n), lambda i: (0, 0))]
    kernel = _gemm_kernel
    if residual is not None:
        operands.append(residual.astype(jnp.bfloat16))
        in_specs.append(pl.BlockSpec((tm, n), lambda i: (i, 0)))
        kernel = _gemm_res_kernel

    return pl.pallas_call(
        kernel,
        out_shape=jax.ShapeDtypeStruct((m, n), jnp.bfloat16),
        grid=(m // tm,),
        in_specs=in_specs,
        out_specs=pl.BlockSpec((tm, n), lambda i: (i, 0)),
        compiler_params=pltpu.CompilerParams(
            dimension_semantics=("parallel",),
            vmem_limit_bytes=_VMEM_LIMIT),
    )(*operands)


def _qkv_kernel(a_ref, w_ref, b_ref, o_ref):
    acc = jnp.dot(a_ref[...], w_ref[0], preferred_element_type=jnp.float32)
    o_ref[0] = (acc + b_ref[0]).astype(o_ref.dtype)


def qkv_projection(x2, w3, b3):
    """x2:[M,C] bf16, w3:[3,C,C] bf16, b3:[3,1,C] f32 -> stacked q/k/v [3,M,C] bf16."""
    m, c = x2.shape
    tm = _pick_divisor_tile(m, (512, 256, 128, 64, 32, 16, 8))
    return pl.pallas_call(
        _qkv_kernel,
        out_shape=jax.ShapeDtypeStruct((3, m, c), jnp.bfloat16),
        grid=(3, m // tm),
        in_specs=[pl.BlockSpec((tm, c), lambda j, i: (i, 0)),
                  pl.BlockSpec((1, c, c), lambda j, i: (j, 0, 0)),
                  pl.BlockSpec((1, 1, c), lambda j, i: (j, 0, 0))],
        out_specs=pl.BlockSpec((1, tm, c), lambda j, i: (j, i, 0)),
        compiler_params=pltpu.CompilerParams(
            dimension_semantics=("parallel", "parallel"),
            vmem_limit_bytes=_VMEM_LIMIT),
    )(x2.astype(jnp.bfloat16), w3, b3)


# ----------------------------------------------------------------------------
# Tap-fused Conv3d kernels (kd = grid tap axis, kh = in-kernel row slices, kw folded
# into the contraction dim).  f32 VMEM accumulator, bias/residual fused, bf16 store.
# ----------------------------------------------------------------------------

def _conv_tap_kernel(x_ref, w_ref, b_ref, o_ref, acc_ref, *, n_kh, row_step, m_rows):
    kd = pl.program_id(2)

    @pl.when(kd == 0)
    def _():
        acc_ref[...] = jnp.zeros_like(acc_ref)

    part = None
    for kh in range(n_kh):
        a = x_ref[0, 0, kh * row_step:kh * row_step + m_rows, :]
        d = jnp.dot(a, w_ref[0, kh], preferred_element_type=jnp.float32)
        part = d if part is None else part + d
    acc_ref[...] += part

    @pl.when(kd == pl.num_programs(2) - 1)
    def _():
        o_ref[0, 0] = (acc_ref[...] + b_ref[...]).astype(o_ref.dtype)


def _conv_tap_res_kernel(x_ref, w_ref, b_ref, r_ref, o_ref, acc_ref, *,
                         n_kh, row_step, m_rows):
    kd = pl.program_id(2)

    @pl.when(kd == 0)
    def _():
        acc_ref[...] = jnp.zeros_like(acc_ref)

    part = None
    for kh in range(n_kh):
        a = x_ref[0, 0, kh * row_step:kh * row_step + m_rows, :]
        d = jnp.dot(a, w_ref[0, kh], preferred_element_type=jnp.float32)
        part = d if part is None else part + d
    acc_ref[...] += part

    @pl.when(kd == pl.num_programs(2) - 1)
    def _():
        out = acc_ref[...] + b_ref[...] + r_ref[0, 0].astype(jnp.float32)
        o_ref[0, 0] = out.astype(o_ref.dtype)


def conv3d_s1_p1(x, wg, b2, residual=None):
    """Conv3d(k=3, s=1, p=1).  x:[B,D,H,W,Cin] bf16, wg:[3,3,3*Cin,Cout] bf16, b2:[1,Cout]."""
    bsz, d, h, w, cin = x.shape
    cout = wg.shape[-1]
    w8 = _round_up(w, 8)                      # keep in-kernel kh row offsets 8-aligned
    dp, hp = d + 2, h + 2
    m_rows = h * w8

    xp = jnp.pad(x, ((0, 0), (1, 1), (1, 1), (1, 1), (0, 0)))
    # fold kw taps into channels (kw-major): [B, D+2, H+2, W, 3*Cin]
    xw = jnp.concatenate([xp[:, :, :, kw:kw + w, :] for kw in range(3)], axis=-1)
    if w8 != w:
        xw = jnp.pad(xw, ((0, 0), (0, 0), (0, 0), (0, w8 - w), (0, 0)))
    x2 = xw.reshape(bsz, dp, hp * w8, 3 * cin)

    operands = [x2, wg, b2]
    in_specs = [
        pl.BlockSpec((1, 1, hp * w8, 3 * cin), lambda bi, di, kd: (bi, di + kd, 0, 0)),
        pl.BlockSpec((1, 3, 3 * cin, cout), lambda bi, di, kd: (kd, 0, 0, 0)),
        pl.BlockSpec((1, cout), lambda bi, di, kd: (0, 0)),
    ]
    if residual is not None:
        r2 = residual.astype(jnp.bfloat16)
        if w8 != w:
            r2 = jnp.pad(r2, ((0, 0), (0, 0), (0, 0), (0, w8 - w), (0, 0)))
        r2 = r2.reshape(bsz, d, m_rows, cout)
        operands.append(r2)
        in_specs.append(pl.BlockSpec((1, 1, m_rows, cout),
                                     lambda bi, di, kd: (bi, di, 0, 0)))
        kernel = functools.partial(_conv_tap_res_kernel, n_kh=3, row_step=w8,
                                   m_rows=m_rows)
    else:
        kernel = functools.partial(_conv_tap_kernel, n_kh=3, row_step=w8,
                                   m_rows=m_rows)

    y = pl.pallas_call(
        kernel,
        out_shape=jax.ShapeDtypeStruct((bsz, d, m_rows, cout), jnp.bfloat16),
        grid=(bsz, d, 3),
        in_specs=in_specs,
        out_specs=pl.BlockSpec((1, 1, m_rows, cout), lambda bi, di, kd: (bi, di, 0, 0)),
        scratch_shapes=[pltpu.VMEM((m_rows, cout), jnp.float32)],
        compiler_params=pltpu.CompilerParams(
            dimension_semantics=("parallel", "parallel", "arbitrary"),
            vmem_limit_bytes=_VMEM_LIMIT),
    )(*operands)
    y = y.reshape(bsz, d, h, w8, cout)
    if w8 != w:
        y = y[:, :, :, :w, :]
    return y


def conv3d_downsample(x, wg, b2):
    """DownSample: right-pad with -1, Conv3d(k=3, s=2, valid).  wg:[3,1,9*Cin,Cout] bf16."""
    bsz, d, h, w, cin = x.shape
    cout = wg.shape[-1]
    xp = jnp.pad(x, ((0, 0), (0, 1), (0, 1), (0, 1), (0, 0)), constant_values=-1.0)
    dp, hp, wp = d + 1, h + 1, w + 1
    do, ho, wo = (dp - 3) // 2 + 1, (hp - 3) // 2 + 1, (wp - 3) // 2 + 1
    # fold (kh, kw) taps into channels on the strided output grid ((kh,kw)-major)
    parts = [xp[:, :, kh:kh + 2 * (ho - 1) + 1:2, kw:kw + 2 * (wo - 1) + 1:2, :]
             for kh in range(3) for kw in range(3)]
    x9 = jnp.concatenate(parts, axis=-1).reshape(bsz, dp, ho * wo, 9 * cin)
    m_rows = ho * wo

    kernel = functools.partial(_conv_tap_kernel, n_kh=1, row_step=0, m_rows=m_rows)
    y = pl.pallas_call(
        kernel,
        out_shape=jax.ShapeDtypeStruct((bsz, do, m_rows, cout), jnp.bfloat16),
        grid=(bsz, do, 3),
        in_specs=[
            pl.BlockSpec((1, 1, m_rows, 9 * cin),
                         lambda bi, di, kd: (bi, 2 * di + kd, 0, 0)),
            pl.BlockSpec((1, 1, 9 * cin, cout), lambda bi, di, kd: (kd, 0, 0, 0)),
            pl.BlockSpec((1, cout), lambda bi, di, kd: (0, 0)),
        ],
        out_specs=pl.BlockSpec((1, 1, m_rows, cout), lambda bi, di, kd: (bi, di, 0, 0)),
        scratch_shapes=[pltpu.VMEM((m_rows, cout), jnp.float32)],
        compiler_params=pltpu.CompilerParams(
            dimension_semantics=("parallel", "parallel", "arbitrary"),
            vmem_limit_bytes=_VMEM_LIMIT),
    )(x9, wg, b2)
    return y.reshape(bsz, do, ho, wo, cout)


# ----------------------------------------------------------------------------
# GroupNorm (+fused swish): two S-tiled passes, bf16 in / bf16 out, f32 math
# ----------------------------------------------------------------------------

def _gn_stats_kernel(x_ref, sum_ref, sq_ref):
    @pl.when(pl.program_id(1) == 0)
    def _():
        sum_ref[...] = jnp.zeros_like(sum_ref)
        sq_ref[...] = jnp.zeros_like(sq_ref)

    x = x_ref[0].astype(jnp.float32)                      # (ts, C)
    sum_ref[...] += jnp.sum(x, axis=0, keepdims=True)[None]
    sq_ref[...] += jnp.sum(x * x, axis=0, keepdims=True)[None]


def _gn_norm_kernel(x_ref, mu_ref, inv_ref, g_ref, b_ref, o_ref, *, apply_swish):
    x = x_ref[0].astype(jnp.float32)                      # (ts, C)
    y = (x - mu_ref[0]) * inv_ref[0] * g_ref[0] + b_ref[0]
    if apply_swish:
        y = y * jax.nn.sigmoid(y)                         # swish(x) = x * sigmoid(x)
    o_ref[0] = y.astype(o_ref.dtype)


def group_norm(x, gamma2, beta2, *, apply_swish=False, num_groups=8, eps=1e-6):
    """GroupNorm(8, eps=1e-6) over channels-last bf16 x: [B,D,H,W,C] -> bf16."""
    b, d, h, w, c = x.shape
    s = d * h * w
    g = num_groups
    gsize = c // g

    xr = x.reshape(b, s, c)
    s_pad = _round_up(s, 16)
    if s_pad != s:
        xr = jnp.pad(xr, ((0, 0), (0, s_pad - s), (0, 0)))   # zero rows: sums unaffected
    ts = _pick_divisor_tile(s_pad, (2048, 1024, 512, 256, 128, 64, 32, 16))

    sums, sqs = pl.pallas_call(
        _gn_stats_kernel,
        out_shape=(jax.ShapeDtypeStruct((b, 1, c), jnp.float32),
                   jax.ShapeDtypeStruct((b, 1, c), jnp.float32)),
        grid=(b, s_pad // ts),
        in_specs=[pl.BlockSpec((1, ts, c), lambda i, j: (i, j, 0))],
        out_specs=(pl.BlockSpec((1, 1, c), lambda i, j: (i, 0, 0)),
                   pl.BlockSpec((1, 1, c), lambda i, j: (i, 0, 0))),
        compiler_params=pltpu.CompilerParams(
            dimension_semantics=("parallel", "arbitrary"),
            vmem_limit_bytes=_VMEM_LIMIT),
    )(xr)

    cnt = float(s * gsize)
    gsum = sums.reshape(b, g, gsize).sum(-1)
    gsq = sqs.reshape(b, g, gsize).sum(-1)
    mean = gsum / cnt
    var = jnp.maximum(gsq / cnt - mean * mean, 0.0)        # clamp cancellation to >= 0
    inv = jax.lax.rsqrt(var + eps)
    mean_c = jnp.repeat(mean, gsize, axis=-1).reshape(b, 1, c)
    inv_c = jnp.repeat(inv, gsize, axis=-1).reshape(b, 1, c)

    kern = functools.partial(_gn_norm_kernel, apply_swish=apply_swish)
    y = pl.pallas_call(
        kern,
        out_shape=jax.ShapeDtypeStruct((b, s_pad, c), jnp.bfloat16),
        grid=(b, s_pad // ts),
        in_specs=[pl.BlockSpec((1, ts, c), lambda i, j: (i, j, 0)),
                  pl.BlockSpec((1, 1, c), lambda i, j: (i, 0, 0)),
                  pl.BlockSpec((1, 1, c), lambda i, j: (i, 0, 0)),
                  pl.BlockSpec((1, 1, c), lambda i, j: (0, 0, 0)),
                  pl.BlockSpec((1, 1, c), lambda i, j: (0, 0, 0))],
        out_specs=pl.BlockSpec((1, ts, c), lambda i, j: (i, j, 0)),
        compiler_params=pltpu.CompilerParams(
            dimension_semantics=("parallel", "parallel"),
            vmem_limit_bytes=_VMEM_LIMIT),
    )(xr, mean_c, inv_c, gamma2, beta2)
    if s_pad != s:
        y = y[:, :s, :]
    return y.reshape(b, d, h, w, c)


# ----------------------------------------------------------------------------
# Flash-style attention (online softmax), reading q/k/v blocks from stacked [3,B,N,C]
# ----------------------------------------------------------------------------

def _flash_attn_kernel(q_ref, k_ref, v_ref, o_ref, m_sc, l_sc, acc_sc, *, scale):
    kv = pl.program_id(2)

    @pl.when(kv == 0)
    def _():
        m_sc[...] = jnp.full_like(m_sc, -jnp.inf)
        l_sc[...] = jnp.zeros_like(l_sc)
        acc_sc[...] = jnp.zeros_like(acc_sc)

    q = q_ref[0, 0]                                       # (tq, C) bf16
    k = k_ref[0, 0]
    v = v_ref[0, 0]
    s = jax.lax.dot_general(q, k, (((1,), (1,)), ((), ())),
                            preferred_element_type=jnp.float32) * scale
    m_prev = m_sc[...]
    m_new = jnp.maximum(m_prev, jnp.max(s, axis=-1, keepdims=True))
    alpha = jnp.exp(m_prev - m_new)
    p = jnp.exp(s - m_new)
    l_sc[...] = alpha * l_sc[...] + jnp.sum(p, axis=-1, keepdims=True)
    acc_sc[...] = alpha * acc_sc[...] + jnp.dot(p.astype(v.dtype), v,
                                                preferred_element_type=jnp.float32)
    m_sc[...] = m_new

    @pl.when(kv == pl.num_programs(2) - 1)
    def _():
        o_ref[0] = (acc_sc[...] / l_sc[...]).astype(o_ref.dtype)


def flash_attention(qkv3, scale):
    """qkv3: stacked [3, B, N, C] bf16 -> softmax(q k^T * scale) v, [B, N, C] bf16."""
    _, bsz, n, c = qkv3.shape
    # large tq/tk (ideally == N for the mid block) keeps K/V VMEM-resident per batch
    tq = _pick_divisor_tile(n, (512, 256, 128, 64, 32, 16), prefer_multi=False)
    tk = tq
    kern = functools.partial(_flash_attn_kernel, scale=scale)
    return pl.pallas_call(
        kern,
        out_shape=jax.ShapeDtypeStruct((bsz, n, c), jnp.bfloat16),
        grid=(bsz, n // tq, n // tk),
        in_specs=[pl.BlockSpec((1, 1, tq, c), lambda b, i, j: (0, b, i, 0)),
                  pl.BlockSpec((1, 1, tk, c), lambda b, i, j: (1, b, j, 0)),
                  pl.BlockSpec((1, 1, tk, c), lambda b, i, j: (2, b, j, 0))],
        out_specs=pl.BlockSpec((1, tq, c), lambda b, i, j: (b, i, 0)),
        scratch_shapes=[pltpu.VMEM((tq, 1), jnp.float32),
                        pltpu.VMEM((tq, 1), jnp.float32),
                        pltpu.VMEM((tq, c), jnp.float32)],
        compiler_params=pltpu.CompilerParams(
            dimension_semantics=("parallel", "parallel", "arbitrary"),
            vmem_limit_bytes=_VMEM_LIMIT),
    )(qkv3, qkv3, qkv3)


# ----------------------------------------------------------------------------
# Module forward passes (Pallas path)
# ----------------------------------------------------------------------------

def resnet_block(x, p):
    h = group_norm(x, p['norm1_g'], p['norm1_b'], apply_swish=True)
    h = conv3d_s1_p1(h, p['conv1_w'], p['conv1_b'])
    h = group_norm(h, p['norm2_g'], p['norm2_b'], apply_swish=True)
    # dropout: identity (eval / p=0.0)
    if 'nin_w' in p:
        bsz, d, hh, ww, cin = x.shape
        cout = p['nin_w'].shape[1]
        shortcut = matmul_bias(x.reshape(-1, cin), p['nin_w'], p['nin_b']
                               ).reshape(bsz, d, hh, ww, cout)
    else:
        shortcut = x
    # conv2 with the residual add fused into the GEMM epilogue
    return conv3d_s1_p1(h, p['conv2_w'], p['conv2_b'], residual=shortcut)


def attention_block(x, p):
    bsz, d, h, w, c = x.shape
    n = d * h * w
    xn = group_norm(x, p['norm_g'], p['norm_b'], apply_swish=False)
    qkv = qkv_projection(xn.reshape(bsz * n, c), p['qkv_w'], p['qkv_b'])
    qkv3 = qkv.reshape(3, bsz, n, c)
    out = flash_attention(qkv3, float(c) ** -0.5)
    # proj_out 1x1 conv with "x + out" residual fused into its GEMM epilogue
    y = matmul_bias(out.reshape(bsz * n, c), p['proj_w'], p['proj_b'],
                    residual=x.reshape(bsz * n, c))
    return y.reshape(bsz, d, h, w, c)


def encoder3d_forward(x_ncdhw, params):
    # NCDHW (PyTorch) -> channels-last NDHWC, bf16 activations in HBM.
    x = jnp.transpose(x_ncdhw, (0, 2, 3, 4, 1)).astype(jnp.bfloat16)
    x = conv3d_s1_p1(x, params['conv_in_w'], params['conv_in_b'])
    for blk in params['down']:
        for rp in blk['resnet']:
            x = resnet_block(x, rp)
        if 'down_w' in blk:
            x = conv3d_downsample(x, blk['down_w'], blk['down_b'])
    x = resnet_block(x, params['mid_res1'])
    x = attention_block(x, params['mid_attn'])
    x = resnet_block(x, params['mid_res2'])
    x = group_norm(x, params['norm_out_g'], params['norm_out_b'], apply_swish=True)
    x = conv3d_s1_p1(x, params['conv_out_w'], params['conv_out_b'])
    return jnp.transpose(x, (0, 4, 1, 2, 3)).astype(jnp.float32)   # back to NCDHW


# ----------------------------------------------------------------------------
# Pure-JAX f32 reference (uses the same prepared params)
# ----------------------------------------------------------------------------

def _conv3_ref(x, wg, b2):
    cout = wg.shape[-1]
    cin = wg.shape[2] // 3
    w_dhwio = wg.astype(jnp.float32).reshape(3, 3, 3, cin, cout)
    return jax.lax.conv_general_dilated(
        x, w_dhwio, (1, 1, 1), [(1, 1)] * 3,
        dimension_numbers=('NDHWC', 'DHWIO', 'NDHWC'),
        precision=_HIGHEST) + b2.reshape(-1)


def _down_ref(x, wg, b2):
    cout = wg.shape[-1]
    cin = wg.shape[2] // 9
    w_dhwio = wg.astype(jnp.float32).reshape(3, 3, 3, cin, cout)
    xp = jnp.pad(x, ((0, 0), (0, 1), (0, 1), (0, 1), (0, 0)), constant_values=-1.0)
    return jax.lax.conv_general_dilated(
        xp, w_dhwio, (2, 2, 2), 'VALID',
        dimension_numbers=('NDHWC', 'DHWIO', 'NDHWC'),
        precision=_HIGHEST) + b2.reshape(-1)


def _conv1_ref(x, wg, b2, residual=None):
    y = jnp.einsum('bdhwc,co->bdhwo', x, wg.astype(jnp.float32),
                   precision=_HIGHEST) + b2.reshape(-1)
    if residual is not None:
        y = y + residual
    return y


def _gn_ref(x, gamma2, beta2, *, apply_swish, num_groups=8, eps=1e-6):
    b, d, h, w, c = x.shape
    gsize = c // num_groups
    xr = x.reshape(b, d, h, w, num_groups, gsize)
    mean = jnp.mean(xr, axis=(1, 2, 3, 5), keepdims=True)
    var = jnp.mean((xr - mean) ** 2, axis=(1, 2, 3, 5), keepdims=True)
    y = ((xr - mean) * jax.lax.rsqrt(var + eps)).reshape(b, d, h, w, c)
    y = y * gamma2.reshape(-1) + beta2.reshape(-1)
    if apply_swish:
        y = y * jax.nn.sigmoid(y)
    return y


def _resnet_ref(x, p):
    h = _gn_ref(x, p['norm1_g'], p['norm1_b'], apply_swish=True)
    h = _conv3_ref(h, p['conv1_w'], p['conv1_b'])
    h = _gn_ref(h, p['norm2_g'], p['norm2_b'], apply_swish=True)
    if 'nin_w' in p:
        shortcut = _conv1_ref(x, p['nin_w'], p['nin_b'])
    else:
        shortcut = x
    return _conv3_ref(h, p['conv2_w'], p['conv2_b']) + shortcut


def _attn_ref(x, p):
    b, d, h, w, c = x.shape
    n = d * h * w
    xn = _gn_ref(x, p['norm_g'], p['norm_b'], apply_swish=False).reshape(b, n, c)
    w3 = p['qkv_w'].astype(jnp.float32)
    b3 = p['qkv_b'].astype(jnp.float32)
    q = xn @ w3[0] + b3[0]
    k = xn @ w3[1] + b3[1]
    v = xn @ w3[2] + b3[2]
    attn = jnp.einsum('bic,bjc->bij', q, k, precision=_HIGHEST) * (float(c) ** -0.5)
    attn = jax.nn.softmax(attn, axis=-1)
    out = jnp.einsum('bij,bjc->bic', attn, v, precision=_HIGHEST)
    out = out.reshape(b, d, h, w, c)
    return _conv1_ref(out, p['proj_w'], p['proj_b'], residual=x)


def encoder3d_forward_ref(x_ncdhw, params):
    x = jnp.transpose(x_ncdhw, (0, 2, 3, 4, 1)).astype(jnp.float32)
    x = _conv3_ref(x, params['conv_in_w'], params['conv_in_b'])
    for blk in params['down']:
        for rp in blk['resnet']:
            x = _resnet_ref(x, rp)
        if 'down_w' in blk:
            x = _down_ref(x, blk['down_w'], blk['down_b'])
    x = _resnet_ref(x, params['mid_res1'])
    x = _attn_ref(x, params['mid_attn'])
    x = _resnet_ref(x, params['mid_res2'])
    x = _gn_ref(x, params['norm_out_g'], params['norm_out_b'], apply_swish=True)
    x = _conv3_ref(x, params['conv_out_w'], params['conv_out_b'])
    return jnp.transpose(x, (0, 4, 1, 2, 3))


# ----------------------------------------------------------------------------
# One-time parameter preprocessing (weight re-layout / bf16 cast hoisted out of forward)
# ----------------------------------------------------------------------------

def prepare_params(p):
    def c3(w):       # [Cout,Cin,3,3,3] -> [3(kd), 3(kh), 3*Cin (kw-major), Cout] bf16
        co, ci = w.shape[0], w.shape[1]
        return jnp.transpose(w, (2, 3, 4, 1, 0)).reshape(3, 3, 3 * ci, co).astype(jnp.bfloat16)

    def cds(w):      # [Cout,Cin,3,3,3] -> [3(kd), 1, 9*Cin ((kh,kw)-major), Cout] bf16
        co, ci = w.shape[0], w.shape[1]
        return jnp.transpose(w, (2, 3, 4, 1, 0)).reshape(3, 1, 9 * ci, co).astype(jnp.bfloat16)

    def c1(w):       # [Cout,Cin,1,1,1] -> [Cin, Cout] bf16
        return jnp.transpose(w.reshape(w.shape[0], w.shape[1])).astype(jnp.bfloat16)

    def bias(b):
        return b.astype(jnp.float32).reshape(1, -1)

    def norm(v):
        return v.astype(jnp.float32).reshape(1, 1, -1)

    def res(rp):
        out = {'norm1_g': norm(rp['norm1_g']), 'norm1_b': norm(rp['norm1_b']),
               'conv1_w': c3(rp['conv1_w']), 'conv1_b': bias(rp['conv1_b']),
               'norm2_g': norm(rp['norm2_g']), 'norm2_b': norm(rp['norm2_b']),
               'conv2_w': c3(rp['conv2_w']), 'conv2_b': bias(rp['conv2_b'])}
        if 'nin_w' in rp:
            out['nin_w'] = c1(rp['nin_w'])
            out['nin_b'] = bias(rp['nin_b'])
        return out

    ap = p['mid_attn']
    attn = {'norm_g': norm(ap['norm_g']), 'norm_b': norm(ap['norm_b']),
            'qkv_w': jnp.stack([c1(ap['q_w']), c1(ap['k_w']), c1(ap['v_w'])], axis=0),
            'qkv_b': jnp.stack([bias(ap['q_b']), bias(ap['k_b']), bias(ap['v_b'])], axis=0),
            'proj_w': c1(ap['proj_w']), 'proj_b': bias(ap['proj_b'])}

    out = {'conv_in_w': c3(p['conv_in_w']), 'conv_in_b': bias(p['conv_in_b']),
           'conv_out_w': c3(p['conv_out_w']), 'conv_out_b': bias(p['conv_out_b']),
           'norm_out_g': norm(p['norm_out_g']), 'norm_out_b': norm(p['norm_out_b']),
           'mid_res1': res(p['mid_res1']), 'mid_res2': res(p['mid_res2']),
           'mid_attn': attn, 'down': []}
    for blk in p['down']:
        nb = {'resnet': [res(rp) for rp in blk['resnet']]}
        if 'down_w' in blk:
            nb['down_w'] = cds(blk['down_w'])
            nb['down_b'] = bias(blk['down_b'])
        out['down'].append(nb)
    return out


# ----------------------------------------------------------------------------
# Deterministic parameter initialization (shapes follow the torch module)
# ----------------------------------------------------------------------------

def _init_conv(key, cout, cin, k):
    kw, kb = jax.random.split(key)
    fan = cin * k ** 3
    w = jax.random.normal(kw, (cout, cin, k, k, k), jnp.float32) / (float(fan) ** 0.5)
    b = 0.01 * jax.random.normal(kb, (cout,), jnp.float32)
    return w, b


def _init_norm(key, c):
    kg, kb = jax.random.split(key)
    g = 1.0 + 0.1 * jax.random.normal(kg, (c,), jnp.float32)
    b = 0.1 * jax.random.normal(kb, (c,), jnp.float32)
    return g, b


def _init_resnet(key, cin, cout):
    keys = jax.random.split(key, 5)
    p = {}
    p['norm1_g'], p['norm1_b'] = _init_norm(keys[0], cin)
    p['conv1_w'], p['conv1_b'] = _init_conv(keys[1], cout, cin, 3)
    p['norm2_g'], p['norm2_b'] = _init_norm(keys[2], cout)
    p['conv2_w'], p['conv2_b'] = _init_conv(keys[3], cout, cout, 3)
    if cin != cout:
        p['nin_w'], p['nin_b'] = _init_conv(keys[4], cout, cin, 1)
    return p


def build_params(key, *, embedding_dim, channels, multipliers,
                 n_resnet_blocks, z_channels):
    keys = iter(jax.random.split(key, 64))
    p = {}
    p['conv_in_w'], p['conv_in_b'] = _init_conv(next(keys), channels, embedding_dim, 3)
    sizes = [m * channels for m in [1] + multipliers]
    down = []
    for i in range(len(multipliers)):
        cin, cout = sizes[i], sizes[i + 1]
        blk = {'resnet': [_init_resnet(next(keys), cin, cout)]}
        for _ in range(n_resnet_blocks - 1):
            blk['resnet'].append(_init_resnet(next(keys), cout, cout))
        if i + 1 < len(multipliers):
            blk['down_w'], blk['down_b'] = _init_conv(next(keys), cout, cout, 3)
        down.append(blk)
    p['down'] = down
    last = sizes[-1]
    p['mid_res1'] = _init_resnet(next(keys), last, last)
    attn = {}
    attn['norm_g'], attn['norm_b'] = _init_norm(next(keys), last)
    for name in ('q', 'k', 'v', 'proj'):
        attn[f'{name}_w'], attn[f'{name}_b'] = _init_conv(next(keys), last, last, 1)
    p['mid_attn'] = attn
    p['mid_res2'] = _init_resnet(next(keys), last, last)
    p['norm_out_g'], p['norm_out_b'] = _init_norm(next(keys), last)
    p['conv_out_w'], p['conv_out_b'] = _init_conv(next(keys), z_channels, last, 3)
    return p


if __name__ == "__main__":
    key = jax.random.PRNGKey(0)
    kx, kp = jax.random.split(key)

    # Small config: embedding_dim=4, channels=8, multipliers=[1,2], n_resnet_blocks=1,
    # z_channels=4 (channels*mult divisible by 8 as required by GroupNorm(num_groups=8)).
    B, E, D, H, W = 2, 4, 8, 8, 8
    channels, multipliers, n_res, z_ch = 8, [1, 2], 1, 4

    x = jax.random.normal(kx, (B, E, D, H, W), jnp.float32)   # NCDHW input
    raw = build_params(kp, embedding_dim=E, channels=channels,
                       multipliers=multipliers, n_resnet_blocks=n_res,
                       z_channels=z_ch)
    params = prepare_params(raw)

    fwd = jax.jit(encoder3d_forward)
    ref_fwd = jax.jit(encoder3d_forward_ref)

    out = jax.block_until_ready(fwd(x, params))
    ref = jax.block_until_ready(ref_fwd(x, params))

    assert out.shape == (B, z_ch, 4, 4, 4), out.shape          # one stride-2 downsample
    assert bool(jnp.all(jnp.isfinite(out)))
    err = float(jnp.max(jnp.abs(out - ref)) / (jnp.max(jnp.abs(ref)) + 1e-6))
    assert err < 2e-1, f"mismatch vs f32/XLA reference: rel-max err {err}"
    print("KERNEL_OK")
</pallas_src>

<mosaic_0001>
module attributes {stable_mosaic.version = 11 : i64} {
  func.func @_conv_tap_kernel(%arg0: i32, %arg1: i32, %arg2: i32, %arg3: memref<1x1x80x12xbf16, #tpu.memory_space<vmem>>, %arg4: memref<1x3x12x8xbf16, #tpu.memory_space<vmem>>, %arg5: memref<1x8xf32, #tpu.memory_space<vmem>>, %arg6: memref<1x1x64x8xbf16, #tpu.memory_space<vmem>>, %arg7: memref<64x8xf32, #tpu.memory_space<vmem>>) attributes {dimension_semantics = [#tpu.dimension_semantics<parallel>, #tpu.dimension_semantics<parallel>, #tpu.dimension_semantics<arbitrary>], iteration_bounds = array<i64: 2, 8, 3>, scalar_prefetch = 0 : i64, scratch_operands = 1 : i64, tpu.core_type = #tpu.core_type<tc>, window_params = [{transform_indices = @transform_0, window_bounds = array<i64: 1, 1, 80, 12>}, {transform_indices = @transform_1, window_bounds = array<i64: 1, 3, 12, 8>}, {pipeline_mode = #tpu.pipeline_mode<synchronous>, transform_indices = @transform_2, window_bounds = array<i64: 1, 8>}, {transform_indices = @transform_3, window_bounds = array<i64: 1, 1, 64, 8>}]} {
    %c0_i32 = arith.constant 0 : i32
    %0 = arith.cmpi eq, %arg2, %c0_i32 : i32
    %1 = arith.extui %0 : i1 to i32
    %c0_i32_0 = arith.constant 0 : i32
    %2 = arith.cmpi ne, %1, %c0_i32_0 : i32
    scf.if %2 {
      %cst_27 = arith.constant 0.000000e+00 : f32
      %26 = vector.broadcast %cst_27 : f32 to vector<64x8xf32>
      %c0_28 = arith.constant 0 : index
      %c0_29 = arith.constant 0 : index
      %27 = vector.load %arg7[%c0_28, %c0_29] : memref<64x8xf32, #tpu.memory_space<vmem>>, vector<64x8xf32>
      tpu.vector_store %arg7[%c0_28, %c0_29], %26 {strides = array<i32>} : memref<64x8xf32, #tpu.memory_space<vmem>>, vector<64x8xf32>,
    } else {
    }
    %c0 = arith.constant 0 : index
    %c0_1 = arith.constant 0 : index
    %c0_2 = arith.constant 0 : index
    %c0_3 = arith.constant 0 : index
    %3 = vector.load %arg3[%c0, %c0_1, %c0_2, %c0_3] : memref<1x1x80x12xbf16, #tpu.memory_space<vmem>>, vector<1x1x64x12xbf16>
    %4 = vector.shape_cast %3 : vector<1x1x64x12xbf16> to vector<64x12xbf16>
    %c0_4 = arith.constant 0 : index
    %c0_5 = arith.constant 0 : index
    %c0_6 = arith.constant 0 : index
    %c0_7 = arith.constant 0 : index
    %5 = vector.load %arg4[%c0_4, %c0_5, %c0_6, %c0_7] : memref<1x3x12x8xbf16, #tpu.memory_space<vmem>>, vector<1x1x12x8xbf16>
    %6 = vector.shape_cast %5 : vector<1x1x12x8xbf16> to vector<12x8xbf16>
    %cst = arith.constant dense<0.000000e+00> : vector<64x8xf32>
    %7 = tpu.matmul %4, %6, %cst {dimension_numbers = #tpu.dot_dimension_numbers<[1], [0], [0], [1], [0, 0, 1, 1], [], []>} : vector<64x12xbf16>, vector<12x8xbf16>, vector<64x8xf32> -> vector<64x8xf32>
    %c0_8 = arith.constant 0 : index
    %c0_9 = arith.constant 0 : index
    %c8 = arith.constant 8 : index
    %c0_10 = arith.constant 0 : index
    %8 = vector.load %arg3[%c0_8, %c0_9, %c8, %c0_10] : memref<1x1x80x12xbf16, #tpu.memory_space<vmem>>, vector<1x1x64x12xbf16>
    %9 = vector.shape_cast %8 : vector<1x1x64x12xbf16> to vector<64x12xbf16>
    %c0_11 = arith.constant 0 : index
    %c1 = arith.constant 1 : index
    %c0_12 = arith.constant 0 : index
    %c0_13 = arith.constant 0 : index
    %10 = vector.load %arg4[%c0_11, %c1, %c0_12, %c0_13] : memref<1x3x12x8xbf16, #tpu.memory_space<vmem>>, vector<1x1x12x8xbf16>
    %11 = vector.shape_cast %10 : vector<1x1x12x8xbf16> to vector<12x8xbf16>
    %cst_14 = arith.constant dense<0.000000e+00> : vector<64x8xf32>
    %12 = tpu.matmul %9, %11, %cst_14 {dimension_numbers = #tpu.dot_dimension_numbers<[1], [0], [0], [1], [0, 0, 1, 1], [], []>} : vector<64x12xbf16>, vector<12x8xbf16>, vector<64x8xf32> -> vector<64x8xf32>
    %13 = arith.addf %7, %12 : vector<64x8xf32>
    %c0_15 = arith.constant 0 : index
    %c0_16 = arith.constant 0 : index
    %c16 = arith.constant 16 : index
    %c0_17 = arith.constant 0 : index
    %14 = vector.load %arg3[%c0_15, %c0_16, %c16, %c0_17] : memref<1x1x80x12xbf16, #tpu.memory_space<vmem>>, vector<1x1x64x12xbf16>
    %15 = vector.shape_cast %14 : vector<1x1x64x12xbf16> to vector<64x12xbf16>
    %c0_18 = arith.constant 0 : index
    %c2 = arith.constant 2 : index
    %c0_19 = arith.constant 0 : index
    %c0_20 = arith.constant 0 : index
    %16 = vector.load %arg4[%c0_18, %c2, %c0_19, %c0_20] : memref<1x3x12x8xbf16, #tpu.memory_space<vmem>>, vector<1x1x12x8xbf16>
    %17 = vector.shape_cast %16 : vector<1x1x12x8xbf16> to vector<12x8xbf16>
    %cst_21 = arith.constant dense<0.000000e+00> : vector<64x8xf32>
    %18 = tpu.matmul %15, %17, %cst_21 {dimension_numbers = #tpu.dot_dimension_numbers<[1], [0], [0], [1], [0, 0, 1, 1], [], []>} : vector<64x12xbf16>, vector<12x8xbf16>, vector<64x8xf32> -> vector<64x8xf32>
    %19 = arith.addf %13, %18 : vector<64x8xf32>
    %c0_22 = arith.constant 0 : index
    %c0_23 = arith.constant 0 : index
    %20 = vector.load %arg7[%c0_22, %c0_23] : memref<64x8xf32, #tpu.memory_space<vmem>>, vector<64x8xf32>
    %21 = arith.addf %20, %19 : vector<64x8xf32>
    %c0_24 = arith.constant 0 : index
    %c0_25 = arith.constant 0 : index
    %22 = vector.load %arg7[%c0_24, %c0_25] : memref<64x8xf32, #tpu.memory_space<vmem>>, vector<64x8xf32>
    tpu.vector_store %arg7[%c0_24, %c0_25], %21 {strides = array<i32>} : memref<64x8xf32, #tpu.memory_space<vmem>>, vector<64x8xf32>,
    %c2_i32 = arith.constant 2 : i32
    %23 = arith.cmpi eq, %arg2, %c2_i32 : i32
    %24 = arith.extui %23 : i1 to i32
    %c0_i32_26 = arith.constant 0 : i32
    %25 = arith.cmpi ne, %24, %c0_i32_26 : i32
    scf.if %25 {
      %c0_27 = arith.constant 0 : index
      %c0_28 = arith.constant 0 : index
      %26 = vector.load %arg7[%c0_27, %c0_28] : memref<64x8xf32, #tpu.memory_space<vmem>>, vector<64x8xf32>
      %c0_29 = arith.constant 0 : index
      %c0_30 = arith.constant 0 : index
      %27 = vector.load %arg5[%c0_29, %c0_30] : memref<1x8xf32, #tpu.memory_space<vmem>>, vector<1x8xf32>
      %28 = vector.broadcast %27 : vector<1x8xf32> to vector<64x8xf32>
      %29 = arith.addf %26, %28 : vector<64x8xf32>
      %30 = arith.truncf %29 : vector<64x8xf32> to vector<64x8xbf16>
      %c0_31 = arith.constant 0 : index
      %c0_32 = arith.constant 0 : index
      %c0_33 = arith.constant 0 : index
      %c0_34 = arith.constant 0 : index
      %31 = vector.load %arg6[%c0_31, %c0_32, %c0_33, %c0_34] : memref<1x1x64x8xbf16, #tpu.memory_space<vmem>>, vector<1x1x64x8xbf16>
      %32 = vector.shape_cast %31 : vector<1x1x64x8xbf16> to vector<64x8xbf16>
      %33 = vector.shape_cast %30 : vector<64x8xbf16> to vector<1x1x64x8xbf16>
      tpu.vector_store %arg6[%c0_31, %c0_32, %c0_33, %c0_34], %33 {strides = array<i32>} : memref<1x1x64x8xbf16, #tpu.memory_space<vmem>>, vector<1x1x64x8xbf16>,
    } else {
    }
    return
  }
  func.func @transform_0(%arg0: i32, %arg1: i32, %arg2: i32) -> (i32, i32, i32, i32) {
    %0 = arith.addi %arg1, %arg2 : i32
    %c0_i32 = arith.constant 0 : i32
    %c0_i32_0 = arith.constant 0 : i32
    %c0_i32_1 = arith.constant 0 : i32
    return %arg0, %0, %c0_i32, %c0_i32_0 : i32, i32, i32, i32
  }
  func.func @transform_1(%arg0: i32, %arg1: i32, %arg2: i32) -> (i32, i32, i32, i32) {
    %c0_i32 = arith.constant 0 : i32
    %c0_i32_0 = arith.constant 0 : i32
    %c0_i32_1 = arith.constant 0 : i32
    %c0_i32_2 = arith.constant 0 : i32
    return %arg2, %c0_i32, %c0_i32_0, %c0_i32_1 : i32, i32, i32, i32
  }
  func.func @transform_2(%arg0: i32, %arg1: i32, %arg2: i32) -> (i32, i32) {
    %c0_i32 = arith.constant 0 : i32
    %c0_i32_0 = arith.constant 0 : i32
    %c0_i32_1 = arith.constant 0 : i32
    return %c0_i32, %c0_i32_0 : i32, i32
  }
  func.func @transform_3(%arg0: i32, %arg1: i32, %arg2: i32) -> (i32, i32, i32, i32) {
    %c0_i32 = arith.constant 0 : i32
    %c0_i32_0 = arith.constant 0 : i32
    %c0_i32_1 = arith.constant 0 : i32
    return %arg0, %arg1, %c0_i32, %c0_i32_0 : i32, i32, i32, i32
  }
}

module attributes {stable_mosaic.version = 11 : i64} {
  func.func @_gn_stats_kernel(%arg0: i32, %arg1: i32, %arg2: memref<1x256x8xbf16, #tpu.memory_space<vmem>>, %arg3: memref<1x1x8xf32, #tpu.memory_space<vmem>>, %arg4: memref<1x1x8xf32, #tpu.memory_space<vmem>>) attributes {dimension_semantics = [#tpu.dimension_semantics<parallel>, #tpu.dimension_semantics<arbitrary>], iteration_bounds = array<i64: 2, 2>, scalar_prefetch = 0 : i64, scratch_operands = 0 : i64, tpu.core_type = #tpu.core_type<tc>, window_params = [{transform_indices = @transform_0, window_bounds = array<i64: 1, 256, 8>}, {transform_indices = @transform_1, window_bounds = array<i64: 1, 1, 8>}, {transform_indices = @transform_2, window_bounds = array<i64: 1, 1, 8>}]} {
    %c0_i32 = arith.constant 0 : i32
    %0 = arith.cmpi eq, %arg1, %c0_i32 : i32
    %1 = arith.extui %0 : i1 to i32
    %c0_i32_0 = arith.constant 0 : i32
    %2 = arith.cmpi ne, %1, %c0_i32_0 : i32
    scf.if %2 {
      %cst_16 = arith.constant 0.000000e+00 : f32
      %19 = vector.broadcast %cst_16 : f32 to vector<1x1x8xf32>
      %c0_17 = arith.constant 0 : index
      %c0_18 = arith.constant 0 : index
      %c0_19 = arith.constant 0 : index
      %20 = vector.load %arg3[%c0_17, %c0_18, %c0_19] : memref<1x1x8xf32, #tpu.memory_space<vmem>>, vector<1x1x8xf32>
      tpu.vector_store %arg3[%c0_17, %c0_18, %c0_19], %19 {strides = array<i32>} : memref<1x1x8xf32, #tpu.memory_space<vmem>>, vector<1x1x8xf32>,
      %cst_20 = arith.constant 0.000000e+00 : f32
      %21 = vector.broadcast %cst_20 : f32 to vector<1x1x8xf32>
      %c0_21 = arith.constant 0 : index
      %c0_22 = arith.constant 0 : index
      %c0_23 = arith.constant 0 : index
      %22 = vector.load %arg4[%c0_21, %c0_22, %c0_23] : memref<1x1x8xf32, #tpu.memory_space<vmem>>, vector<1x1x8xf32>
      tpu.vector_store %arg4[%c0_21, %c0_22, %c0_23], %21 {strides = array<i32>} : memref<1x1x8xf32, #tpu.memory_space<vmem>>, vector<1x1x8xf32>,
    } else {
    }
    %c0 = arith.constant 0 : index
    %c0_1 = arith.constant 0 : index
    %c0_2 = arith.constant 0 : index
    %3 = vector.load %arg2[%c0, %c0_1, %c0_2] : memref<1x256x8xbf16, #tpu.memory_space<vmem>>, vector<1x256x8xbf16>
    %4 = vector.shape_cast %3 : vector<1x256x8xbf16> to vector<256x8xbf16>
    %5 = arith.extf %4 : vector<256x8xbf16> to vector<256x8xf32>
    %c0_3 = arith.constant 0 : index
    %c0_4 = arith.constant 0 : index
    %c0_5 = arith.constant 0 : index
    %6 = vector.load %arg3[%c0_3, %c0_4, %c0_5] : memref<1x1x8xf32, #tpu.memory_space<vmem>>, vector<1x1x8xf32>
    %cst = arith.constant dense<0.000000e+00> : vector<8xf32>
    %7 = vector.multi_reduction <add>, %5, %cst [0] : vector<256x8xf32> to vector<8xf32>
    %8 = vector.shape_cast %7 : vector<8xf32> to vector<1x8xf32>
    %9 = vector.shape_cast %8 : vector<1x8xf32> to vector<1x1x8xf32>
    %10 = arith.addf %6, %9 : vector<1x1x8xf32>
    %c0_6 = arith.constant 0 : index
    %c0_7 = arith.constant 0 : index
    %c0_8 = arith.constant 0 : index
    %11 = vector.load %arg3[%c0_6, %c0_7, %c0_8] : memref<1x1x8xf32, #tpu.memory_space<vmem>>, vector<1x1x8xf32>
    tpu.vector_store %arg3[%c0_6, %c0_7, %c0_8], %10 {strides = array<i32>} : memref<1x1x8xf32, #tpu.memory_space<vmem>>, vector<1x1x8xf32>,
    %c0_9 = arith.constant 0 : index
    %c0_10 = arith.constant 0 : index
    %c0_11 = arith.constant 0 : index
    %12 = vector.load %arg4[%c0_9, %c0_10, %c0_11] : memref<1x1x8xf32, #tpu.memory_space<vmem>>, vector<1x1x8xf32>
    %13 = arith.mulf %5, %5 : vector<256x8xf32>
    %cst_12 = arith.constant dense<0.000000e+00> : vector<8xf32>
    %14 = vector.multi_reduction <add>, %13, %cst_12 [0] : vector<256x8xf32> to vector<8xf32>
    %15 = vector.shape_cast %14 : vector<8xf32> to vector<1x8xf32>
    %16 = vector.shape_cast %15 : vector<1x8xf32> to vector<1x1x8xf32>
    %17 = arith.addf %12, %16 : vector<1x1x8xf32>
    %c0_13 = arith.constant 0 : index
    %c0_14 = arith.constant 0 : index
    %c0_15 = arith.constant 0 : index
    %18 = vector.load %arg4[%c0_13, %c0_14, %c0_15] : memref<1x1x8xf32, #tpu.memory_space<vmem>>, vector<1x1x8xf32>
    tpu.vector_store %arg4[%c0_13, %c0_14, %c0_15], %17 {strides = array<i32>} : memref<1x1x8xf32, #tpu.memory_space<vmem>>, vector<1x1x8xf32>,
    return
  }
  func.func @transform_0(%arg0: i32, %arg1: i32) -> (i32, i32, i32) {
    %c0_i32 = arith.constant 0 : i32
    %c0_i32_0 = arith.constant 0 : i32
    return %arg0, %arg1, %c0_i32 : i32, i32, i32
  }
  func.func @transform_1(%arg0: i32, %arg1: i32) -> (i32, i32, i32) {
    %c0_i32 = arith.constant 0 : i32
    %c0_i32_0 = arith.constant 0 : i32
    %c0_i32_1 = arith.constant 0 : i32
    return %arg0, %c0_i32, %c0_i32_0 : i32, i32, i32
  }
  func.func @transform_2(%arg0: i32, %arg1: i32) -> (i32, i32, i32) {
    %c0_i32 = arith.constant 0 : i32
    %c0_i32_0 = arith.constant 0 : i32
    %c0_i32_1 = arith.constant 0 : i32
    return %arg0, %c0_i32, %c0_i32_0 : i32, i32, i32
  }
}

module attributes {stable_mosaic.version = 11 : i64} {
  func.func @_gn_norm_kernel(%arg0: i32, %arg1: i32, %arg2: memref<1x256x8xbf16, #tpu.memory_space<vmem>>, %arg3: memref<1x1x8xf32, #tpu.memory_space<vmem>>, %arg4: memref<1x1x8xf32, #tpu.memory_space<vmem>>, %arg5: memref<1x1x8xf32, #tpu.memory_space<vmem>>, %arg6: memref<1x1x8xf32, #tpu.memory_space<vmem>>, %arg7: memref<1x256x8xbf16, #tpu.memory_space<vmem>>) attributes {dimension_semantics = [#tpu.dimension_semantics<parallel>, #tpu.dimension_semantics<parallel>], iteration_bounds = array<i64: 2, 2>, scalar_prefetch = 0 : i64, scratch_operands = 0 : i64, tpu.core_type = #tpu.core_type<tc>, window_params = [{transform_indices = @transform_0, window_bounds = array<i64: 1, 256, 8>}, {transform_indices = @transform_1, window_bounds = array<i64: 1, 1, 8>}, {transform_indices = @transform_2, window_bounds = array<i64: 1, 1, 8>}, {pipeline_mode = #tpu.pipeline_mode<synchronous>, transform_indices = @transform_3, window_bounds = array<i64: 1, 1, 8>}, {pipeline_mode = #tpu.pipeline_mode<synchronous>, transform_indices = @transform_4, window_bounds = array<i64: 1, 1, 8>}, {transform_indices = @transform_5, window_bounds = array<i64: 1, 256, 8>}]} {
    %c0 = arith.constant 0 : index
    %c0_0 = arith.constant 0 : index
    %c0_1 = arith.constant 0 : index
    %0 = vector.load %arg2[%c0, %c0_0, %c0_1] : memref<1x256x8xbf16, #tpu.memory_space<vmem>>, vector<1x256x8xbf16>
    %1 = vector.shape_cast %0 : vector<1x256x8xbf16> to vector<256x8xbf16>
    %2 = arith.extf %1 : vector<256x8xbf16> to vector<256x8xf32>
    %c0_2 = arith.constant 0 : index
    %c0_3 = arith.constant 0 : index
    %c0_4 = arith.constant 0 : index
    %3 = vector.load %arg3[%c0_2, %c0_3, %c0_4] : memref<1x1x8xf32, #tpu.memory_space<vmem>>, vector<1x1x8xf32>
    %4 = vector.shape_cast %3 : vector<1x1x8xf32> to vector<1x8xf32>
    %5 = vector.broadcast %4 : vector<1x8xf32> to vector<256x8xf32>
    %6 = arith.subf %2, %5 : vector<256x8xf32>
    %c0_5 = arith.constant 0 : index
    %c0_6 = arith.constant 0 : index
    %c0_7 = arith.constant 0 : index
    %7 = vector.load %arg4[%c0_5, %c0_6, %c0_7] : memref<1x1x8xf32, #tpu.memory_space<vmem>>, vector<1x1x8xf32>
    %8 = vector.shape_cast %7 : vector<1x1x8xf32> to vector<1x8xf32>
    %9 = vector.broadcast %8 : vector<1x8xf32> to vector<256x8xf32>
    %10 = arith.mulf %6, %9 : vector<256x8xf32>
    %c0_8 = arith.constant 0 : index
    %c0_9 = arith.constant 0 : index
    %c0_10 = arith.constant 0 : index
    %11 = vector.load %arg5[%c0_8, %c0_9, %c0_10] : memref<1x1x8xf32, #tpu.memory_space<vmem>>, vector<1x1x8xf32>
    %12 = vector.shape_cast %11 : vector<1x1x8xf32> to vector<1x8xf32>
    %13 = vector.broadcast %12 : vector<1x8xf32> to vector<256x8xf32>
    %14 = arith.mulf %10, %13 : vector<256x8xf32>
    %c0_11 = arith.constant 0 : index
    %c0_12 = arith.constant 0 : index
    %c0_13 = arith.constant 0 : index
    %15 = vector.load %arg6[%c0_11, %c0_12, %c0_13] : memref<1x1x8xf32, #tpu.memory_space<vmem>>, vector<1x1x8xf32>
    %16 = vector.shape_cast %15 : vector<1x1x8xf32> to vector<1x8xf32>
    %17 = vector.broadcast %16 : vector<1x8xf32> to vector<256x8xf32>
    %18 = arith.addf %14, %17 : vector<256x8xf32>
    %19 = arith.negf %18 : vector<256x8xf32>
    %20 = math.exp %19 : vector<256x8xf32>
    %cst = arith.constant 1.000000e+00 : f32
    %21 = vector.broadcast %cst : f32 to vector<256x8xf32>
    %22 = arith.addf %21, %20 : vector<256x8xf32>
    %23 = arith.divf %21, %22 : vector<256x8xf32>
    %24 = arith.mulf %18, %23 : vector<256x8xf32>
    %25 = arith.truncf %24 : vector<256x8xf32> to vector<256x8xbf16>
    %c0_14 = arith.constant 0 : index
    %c0_15 = arith.constant 0 : index
    %c0_16 = arith.constant 0 : index
    %26 = vector.load %arg7[%c0_14, %c0_15, %c0_16] : memref<1x256x8xbf16, #tpu.memory_space<vmem>>, vector<1x256x8xbf16>
    %27 = vector.shape_cast %26 : vector<1x256x8xbf16> to vector<256x8xbf16>
    %28 = vector.shape_cast %25 : vector<256x8xbf16> to vector<1x256x8xbf16>
    tpu.vector_store %arg7[%c0_14, %c0_15, %c0_16], %28 {strides = array<i32>} : memref<1x256x8xbf16, #tpu.memory_space<vmem>>, vector<1x256x8xbf16>,
    return
  }
  func.func @transform_0(%arg0: i32, %arg1: i32) -> (i32, i32, i32) {
    %c0_i32 = arith.constant 0 : i32
    %c0_i32_0 = arith.constant 0 : i32
    return %arg0, %arg1, %c0_i32 : i32, i32, i32
  }
  func.func @transform_1(%arg0: i32, %arg1: i32) -> (i32, i32, i32) {
    %c0_i32 = arith.constant 0 : i32
    %c0_i32_0 = arith.constant 0 : i32
    %c0_i32_1 = arith.constant 0 : i32
    return %arg0, %c0_i32, %c0_i32_0 : i32, i32, i32
  }
  func.func @transform_2(%arg0: i32, %arg1: i32) -> (i32, i32, i32) {
    %c0_i32 = arith.constant 0 : i32
    %c0_i32_0 = arith.constant 0 : i32
    %c0_i32_1 = arith.constant 0 : i32
    return %arg0, %c0_i32, %c0_i32_0 : i32, i32, i32
  }
  func.func @transform_3(%arg0: i32, %arg1: i32) -> (i32, i32, i32) {
    %c0_i32 = arith.constant 0 : i32
    %c0_i32_0 = arith.constant 0 : i32
    %c0_i32_1 = arith.constant 0 : i32
    %c0_i32_2 = arith.constant 0 : i32
    return %c0_i32, %c0_i32_0, %c0_i32_1 : i32, i32, i32
  }
  func.func @transform_4(%arg0: i32, %arg1: i32) -> (i32, i32, i32) {
    %c0_i32 = arith.constant 0 : i32
    %c0_i32_0 = arith.constant 0 : i32
    %c0_i32_1 = arith.constant 0 : i32
    %c0_i32_2 = arith.constant 0 : i32
    return %c0_i32, %c0_i32_0, %c0_i32_1 : i32, i32, i32
  }
  func.func @transform_5(%arg0: i32, %arg1: i32) -> (i32, i32, i32) {
    %c0_i32 = arith.constant 0 : i32
    %c0_i32_0 = arith.constant 0 : i32
    return %arg0, %arg1, %c0_i32 : i32, i32, i32
  }
}

module attributes {stable_mosaic.version = 11 : i64} {
  func.func @_conv_tap_kernel(%arg0: i32, %arg1: i32, %arg2: i32, %arg3: memref<1x1x80x24xbf16, #tpu.memory_space<vmem>>, %arg4: memref<1x3x24x8xbf16, #tpu.memory_space<vmem>>, %arg5: memref<1x8xf32, #tpu.memory_space<vmem>>, %arg6: memref<1x1x64x8xbf16, #tpu.memory_space<vmem>>, %arg7: memref<64x8xf32, #tpu.memory_space<vmem>>) attributes {dimension_semantics = [#tpu.dimension_semantics<parallel>, #tpu.dimension_semantics<parallel>, #tpu.dimension_semantics<arbitrary>], iteration_bounds = array<i64: 2, 8, 3>, scalar_prefetch = 0 : i64, scratch_operands = 1 : i64, tpu.core_type = #tpu.core_type<tc>, window_params = [{transform_indices = @transform_0, window_bounds = array<i64: 1, 1, 80, 24>}, {transform_indices = @transform_1, window_bounds = array<i64: 1, 3, 24, 8>}, {pipeline_mode = #tpu.pipeline_mode<synchronous>, transform_indices = @transform_2, window_bounds = array<i64: 1, 8>}, {transform_indices = @transform_3, window_bounds = array<i64: 1, 1, 64, 8>}]} {
    %c0_i32 = arith.constant 0 : i32
    %0 = arith.cmpi eq, %arg2, %c0_i32 : i32
    %1 = arith.extui %0 : i1 to i32
    %c0_i32_0 = arith.constant 0 : i32
    %2 = arith.cmpi ne, %1, %c0_i32_0 : i32
    scf.if %2 {
      %cst_27 = arith.constant 0.000000e+00 : f32
      %26 = vector.broadcast %cst_27 : f32 to vector<64x8xf32>
      %c0_28 = arith.constant 0 : index
      %c0_29 = arith.constant 0 : index
      %27 = vector.load %arg7[%c0_28, %c0_29] : memref<64x8xf32, #tpu.memory_space<vmem>>, vector<64x8xf32>
      tpu.vector_store %arg7[%c0_28, %c0_29], %26 {strides = array<i32>} : memref<64x8xf32, #tpu.memory_space<vmem>>, vector<64x8xf32>,
    } else {
    }
    %c0 = arith.constant 0 : index
    %c0_1 = arith.constant 0 : index
    %c0_2 = arith.constant 0 : index
    %c0_3 = arith.constant 0 : index
    %3 = vector.load %arg3[%c0, %c0_1, %c0_2, %c0_3] : memref<1x1x80x24xbf16, #tpu.memory_space<vmem>>, vector<1x1x64x24xbf16>
    %4 = vector.shape_cast %3 : vector<1x1x64x24xbf16> to vector<64x24xbf16>
    %c0_4 = arith.constant 0 : index
    %c0_5 = arith.constant 0 : index
    %c0_6 = arith.constant 0 : index
    %c0_7 = arith.constant 0 : index
    %5 = vector.load %arg4[%c0_4, %c0_5, %c0_6, %c0_7] : memref<1x3x24x8xbf16, #tpu.memory_space<vmem>>, vector<1x1x24x8xbf16>
    %6 = vector.shape_cast %5 : vector<1x1x24x8xbf16> to vector<24x8xbf16>
    %cst = arith.constant dense<0.000000e+00> : vector<64x8xf32>
    %7 = tpu.matmul %4, %6, %cst {dimension_numbers = #tpu.dot_dimension_numbers<[1], [0], [0], [1], [0, 0, 1, 1], [], []>} : vector<64x24xbf16>, vector<24x8xbf16>, vector<64x8xf32> -> vector<64x8xf32>
    %c0_8 = arith.constant 0 : index
    %c0_9 = arith.constant 0 : index
    %c8 = arith.constant 8 : index
    %c0_10 = arith.constant 0 : index
    %8 = vector.load %arg3[%c0_8, %c0_9, %c8, %c0_10] : memref<1x1x80x24xbf16, #tpu.memory_space<vmem>>, vector<1x1x64x24xbf16>
    %9 = vector.shape_cast %8 : vector<1x1x64x24xbf16> to vector<64x24xbf16>
    %c0_11 = arith.constant 0 : index
    %c1 = arith.constant 1 : index
    %c0_12 = arith.constant 0 : index
    %c0_13 = arith.constant 0 : index
    %10 = vector.load %arg4[%c0_11, %c1, %c0_12, %c0_13] : memref<1x3x24x8xbf16, #tpu.memory_space<vmem>>, vector<1x1x24x8xbf16>
    %11 = vector.shape_cast %10 : vector<1x1x24x8xbf16> to vector<24x8xbf16>
    %cst_14 = arith.constant dense<0.000000e+00> : vector<64x8xf32>
    %12 = tpu.matmul %9, %11, %cst_14 {dimension_numbers = #tpu.dot_dimension_numbers<[1], [0], [0], [1], [0, 0, 1, 1], [], []>} : vector<64x24xbf16>, vector<24x8xbf16>, vector<64x8xf32> -> vector<64x8xf32>
    %13 = arith.addf %7, %12 : vector<64x8xf32>
    %c0_15 = arith.constant 0 : index
    %c0_16 = arith.constant 0 : index
    %c16 = arith.constant 16 : index
    %c0_17 = arith.constant 0 : index
    %14 = vector.load %arg3[%c0_15, %c0_16, %c16, %c0_17] : memref<1x1x80x24xbf16, #tpu.memory_space<vmem>>, vector<1x1x64x24xbf16>
    %15 = vector.shape_cast %14 : vector<1x1x64x24xbf16> to vector<64x24xbf16>
    %c0_18 = arith.constant 0 : index
    %c2 = arith.constant 2 : index
    %c0_19 = arith.constant 0 : index
    %c0_20 = arith.constant 0 : index
    %16 = vector.load %arg4[%c0_18, %c2, %c0_19, %c0_20] : memref<1x3x24x8xbf16, #tpu.memory_space<vmem>>, vector<1x1x24x8xbf16>
    %17 = vector.shape_cast %16 : vector<1x1x24x8xbf16> to vector<24x8xbf16>
    %cst_21 = arith.constant dense<0.000000e+00> : vector<64x8xf32>
    %18 = tpu.matmul %15, %17, %cst_21 {dimension_numbers = #tpu.dot_dimension_numbers<[1], [0], [0], [1], [0, 0, 1, 1], [], []>} : vector<64x24xbf16>, vector<24x8xbf16>, vector<64x8xf32> -> vector<64x8xf32>
    %19 = arith.addf %13, %18 : vector<64x8xf32>
    %c0_22 = arith.constant 0 : index
    %c0_23 = arith.constant 0 : index
    %20 = vector.load %arg7[%c0_22, %c0_23] : memref<64x8xf32, #tpu.memory_space<vmem>>, vector<64x8xf32>
    %21 = arith.addf %20, %19 : vector<64x8xf32>
    %c0_24 = arith.constant 0 : index
    %c0_25 = arith.constant 0 : index
    %22 = vector.load %arg7[%c0_24, %c0_25] : memref<64x8xf32, #tpu.memory_space<vmem>>, vector<64x8xf32>
    tpu.vector_store %arg7[%c0_24, %c0_25], %21 {strides = array<i32>} : memref<64x8xf32, #tpu.memory_space<vmem>>, vector<64x8xf32>,
    %c2_i32 = arith.constant 2 : i32
    %23 = arith.cmpi eq, %arg2, %c2_i32 : i32
    %24 = arith.extui %23 : i1 to i32
    %c0_i32_26 = arith.constant 0 : i32
    %25 = arith.cmpi ne, %24, %c0_i32_26 : i32
    scf.if %25 {
      %c0_27 = arith.constant 0 : index
      %c0_28 = arith.constant 0 : index
      %26 = vector.load %arg7[%c0_27, %c0_28] : memref<64x8xf32, #tpu.memory_space<vmem>>, vector<64x8xf32>
      %c0_29 = arith.constant 0 : index
      %c0_30 = arith.constant 0 : index
      %27 = vector.load %arg5[%c0_29, %c0_30] : memref<1x8xf32, #tpu.memory_space<vmem>>, vector<1x8xf32>
      %28 = vector.broadcast %27 : vector<1x8xf32> to vector<64x8xf32>
      %29 = arith.addf %26, %28 : vector<64x8xf32>
      %30 = arith.truncf %29 : vector<64x8xf32> to vector<64x8xbf16>
      %c0_31 = arith.constant 0 : index
      %c0_32 = arith.constant 0 : index
      %c0_33 = arith.constant 0 : index
      %c0_34 = arith.constant 0 : index
      %31 = vector.load %arg6[%c0_31, %c0_32, %c0_33, %c0_34] : memref<1x1x64x8xbf16, #tpu.memory_space<vmem>>, vector<1x1x64x8xbf16>
      %32 = vector.shape_cast %31 : vector<1x1x64x8xbf16> to vector<64x8xbf16>
      %33 = vector.shape_cast %30 : vector<64x8xbf16> to vector<1x1x64x8xbf16>
      tpu.vector_store %arg6[%c0_31, %c0_32, %c0_33, %c0_34], %33 {strides = array<i32>} : memref<1x1x64x8xbf16, #tpu.memory_space<vmem>>, vector<1x1x64x8xbf16>,
    } else {
    }
    return
  }
  func.func @transform_0(%arg0: i32, %arg1: i32, %arg2: i32) -> (i32, i32, i32, i32) {
    %0 = arith.addi %arg1, %arg2 : i32
    %c0_i32 = arith.constant 0 : i32
    %c0_i32_0 = arith.constant 0 : i32
    %c0_i32_1 = arith.constant 0 : i32
    return %arg0, %0, %c0_i32, %c0_i32_0 : i32, i32, i32, i32
  }
  func.func @transform_1(%arg0: i32, %arg1: i32, %arg2: i32) -> (i32, i32, i32, i32) {
    %c0_i32 = arith.constant 0 : i32
    %c0_i32_0 = arith.constant 0 : i32
    %c0_i32_1 = arith.constant 0 : i32
    %c0_i32_2 = arith.constant 0 : i32
    return %arg2, %c0_i32, %c0_i32_0, %c0_i32_1 : i32, i32, i32, i32
  }
  func.func @transform_2(%arg0: i32, %arg1: i32, %arg2: i32) -> (i32, i32) {
    %c0_i32 = arith.constant 0 : i32
    %c0_i32_0 = arith.constant 0 : i32
    %c0_i32_1 = arith.constant 0 : i32
    return %c0_i32, %c0_i32_0 : i32, i32
  }
  func.func @transform_3(%arg0: i32, %arg1: i32, %arg2: i32) -> (i32, i32, i32, i32) {
    %c0_i32 = arith.constant 0 : i32
    %c0_i32_0 = arith.constant 0 : i32
    %c0_i32_1 = arith.constant 0 : i32
    return %arg0, %arg1, %c0_i32, %c0_i32_0 : i32, i32, i32, i32
  }
}

module attributes {stable_mosaic.version = 11 : i64} {
  func.func @_conv_tap_res_kernel(%arg0: i32, %arg1: i32, %arg2: i32, %arg3: memref<1x1x80x24xbf16, #tpu.memory_space<vmem>>, %arg4: memref<1x3x24x8xbf16, #tpu.memory_space<vmem>>, %arg5: memref<1x8xf32, #tpu.memory_space<vmem>>, %arg6: memref<1x1x64x8xbf16, #tpu.memory_space<vmem>>, %arg7: memref<1x1x64x8xbf16, #tpu.memory_space<vmem>>, %arg8: memref<64x8xf32, #tpu.memory_space<vmem>>) attributes {dimension_semantics = [#tpu.dimension_semantics<parallel>, #tpu.dimension_semantics<parallel>, #tpu.dimension_semantics<arbitrary>], iteration_bounds = array<i64: 2, 8, 3>, scalar_prefetch = 0 : i64, scratch_operands = 1 : i64, tpu.core_type = #tpu.core_type<tc>, window_params = [{transform_indices = @transform_0, window_bounds = array<i64: 1, 1, 80, 24>}, {transform_indices = @transform_1, window_bounds = array<i64: 1, 3, 24, 8>}, {pipeline_mode = #tpu.pipeline_mode<synchronous>, transform_indices = @transform_2, window_bounds = array<i64: 1, 8>}, {transform_indices = @transform_3, window_bounds = array<i64: 1, 1, 64, 8>}, {transform_indices = @transform_4, window_bounds = array<i64: 1, 1, 64, 8>}]} {
    %c0_i32 = arith.constant 0 : i32
    %0 = arith.cmpi eq, %arg2, %c0_i32 : i32
    %1 = arith.extui %0 : i1 to i32
    %c0_i32_0 = arith.constant 0 : i32
    %2 = arith.cmpi ne, %1, %c0_i32_0 : i32
    scf.if %2 {
      %cst_27 = arith.constant 0.000000e+00 : f32
      %26 = vector.broadcast %cst_27 : f32 to vector<64x8xf32>
      %c0_28 = arith.constant 0 : index
      %c0_29 = arith.constant 0 : index
      %27 = vector.load %arg8[%c0_28, %c0_29] : memref<64x8xf32, #tpu.memory_space<vmem>>, vector<64x8xf32>
      tpu.vector_store %arg8[%c0_28, %c0_29], %26 {strides = array<i32>} : memref<64x8xf32, #tpu.memory_space<vmem>>, vector<64x8xf32>,
    } else {
    }
    %c0 = arith.constant 0 : index
    %c0_1 = arith.constant 0 : index
    %c0_2 = arith.constant 0 : index
    %c0_3 = arith.constant 0 : index
    %3 = vector.load %arg3[%c0, %c0_1, %c0_2, %c0_3] : memref<1x1x80x24xbf16, #tpu.memory_space<vmem>>, vector<1x1x64x24xbf16>
    %4 = vector.shape_cast %3 : vector<1x1x64x24xbf16> to vector<64x24xbf16>
    %c0_4 = arith.constant 0 : index
    %c0_5 = arith.constant 0 : index
    %c0_6 = arith.constant 0 : index
    %c0_7 = arith.constant 0 : index
    %5 = vector.load %arg4[%c0_4, %c0_5, %c0_6, %c0_7] : memref<1x3x24x8xbf16, #tpu.memory_space<vmem>>, vector<1x1x24x8xbf16>
    %6 = vector.shape_cast %5 : vector<1x1x24x8xbf16> to vector<24x8xbf16>
    %cst = arith.constant dense<0.000000e+00> : vector<64x8xf32>
    %7 = tpu.matmul %4, %6, %cst {dimension_numbers = #tpu.dot_dimension_numbers<[1], [0], [0], [1], [0, 0, 1, 1], [], []>} : vector<64x24xbf16>, vector<24x8xbf16>, vector<64x8xf32> -> vector<64x8xf32>
    %c0_8 = arith.constant 0 : index
    %c0_9 = arith.constant 0 : index
    %c8 = arith.constant 8 : index
    %c0_10 = arith.constant 0 : index
    %8 = vector.load %arg3[%c0_8, %c0_9, %c8, %c0_10] : memref<1x1x80x24xbf16, #tpu.memory_space<vmem>>, vector<1x1x64x24xbf16>
    %9 = vector.shape_cast %8 : vector<1x1x64x24xbf16> to vector<64x24xbf16>
    %c0_11 = arith.constant 0 : index
    %c1 = arith.constant 1 : index
    %c0_12 = arith.constant 0 : index
    %c0_13 = arith.constant 0 : index
    %10 = vector.load %arg4[%c0_11, %c1, %c0_12, %c0_13] : memref<1x3x24x8xbf16, #tpu.memory_space<vmem>>, vector<1x1x24x8xbf16>
    %11 = vector.shape_cast %10 : vector<1x1x24x8xbf16> to vector<24x8xbf16>
    %cst_14 = arith.constant dense<0.000000e+00> : vector<64x8xf32>
    %12 = tpu.matmul %9, %11, %cst_14 {dimension_numbers = #tpu.dot_dimension_numbers<[1], [0], [0], [1], [0, 0, 1, 1], [], []>} : vector<64x24xbf16>, vector<24x8xbf16>, vector<64x8xf32> -> vector<64x8xf32>
    %13 = arith.addf %7, %12 : vector<64x8xf32>
    %c0_15 = arith.constant 0 : index
    %c0_16 = arith.constant 0 : index
    %c16 = arith.constant 16 : index
    %c0_17 = arith.constant 0 : index
    %14 = vector.load %arg3[%c0_15, %c0_16, %c16, %c0_17] : memref<1x1x80x24xbf16, #tpu.memory_space<vmem>>, vector<1x1x64x24xbf16>
    %15 = vector.shape_cast %14 : vector<1x1x64x24xbf16> to vector<64x24xbf16>
    %c0_18 = arith.constant 0 : index
    %c2 = arith.constant 2 : index
    %c0_19 = arith.constant 0 : index
    %c0_20 = arith.constant 0 : index
    %16 = vector.load %arg4[%c0_18, %c2, %c0_19, %c0_20] : memref<1x3x24x8xbf16, #tpu.memory_space<vmem>>, vector<1x1x24x8xbf16>
    %17 = vector.shape_cast %16 : vector<1x1x24x8xbf16> to vector<24x8xbf16>
    %cst_21 = arith.constant dense<0.000000e+00> : vector<64x8xf32>
    %18 = tpu.matmul %15, %17, %cst_21 {dimension_numbers = #tpu.dot_dimension_numbers<[1], [0], [0], [1], [0, 0, 1, 1], [], []>} : vector<64x24xbf16>, vector<24x8xbf16>, vector<64x8xf32> -> vector<64x8xf32>
    %19 = arith.addf %13, %18 : vector<64x8xf32>
    %c0_22 = arith.constant 0 : index
    %c0_23 = arith.constant 0 : index
    %20 = vector.load %arg8[%c0_22, %c0_23] : memref<64x8xf32, #tpu.memory_space<vmem>>, vector<64x8xf32>
    %21 = arith.addf %20, %19 : vector<64x8xf32>
    %c0_24 = arith.constant 0 : index
    %c0_25 = arith.constant 0 : index
    %22 = vector.load %arg8[%c0_24, %c0_25] : memref<64x8xf32, #tpu.memory_space<vmem>>, vector<64x8xf32>
    tpu.vector_store %arg8[%c0_24, %c0_25], %21 {strides = array<i32>} : memref<64x8xf32, #tpu.memory_space<vmem>>, vector<64x8xf32>,
    %c2_i32 = arith.constant 2 : i32
    %23 = arith.cmpi eq, %arg2, %c2_i32 : i32
    %24 = arith.extui %23 : i1 to i32
    %c0_i32_26 = arith.constant 0 : i32
    %25 = arith.cmpi ne, %24, %c0_i32_26 : i32
    scf.if %25 {
      %c0_27 = arith.constant 0 : index
      %c0_28 = arith.constant 0 : index
      %26 = vector.load %arg8[%c0_27, %c0_28] : memref<64x8xf32, #tpu.memory_space<vmem>>, vector<64x8xf32>
      %c0_29 = arith.constant 0 : index
      %c0_30 = arith.constant 0 : index
      %27 = vector.load %arg5[%c0_29, %c0_30] : memref<1x8xf32, #tpu.memory_space<vmem>>, vector<1x8xf32>
      %28 = vector.broadcast %27 : vector<1x8xf32> to vector<64x8xf32>
      %29 = arith.addf %26, %28 : vector<64x8xf32>
      %c0_31 = arith.constant 0 : index
      %c0_32 = arith.constant 0 : index
      %c0_33 = arith.constant 0 : index
      %c0_34 = arith.constant 0 : index
      %30 = vector.load %arg6[%c0_31, %c0_32, %c0_33, %c0_34] : memref<1x1x64x8xbf16, #tpu.memory_space<vmem>>, vector<1x1x64x8xbf16>
      %31 = vector.shape_cast %30 : vector<1x1x64x8xbf16> to vector<64x8xbf16>
      %32 = arith.extf %31 : vector<64x8xbf16> to vector<64x8xf32>
      %33 = arith.addf %29, %32 : vector<64x8xf32>
      %34 = arith.truncf %33 : vector<64x8xf32> to vector<64x8xbf16>
      %c0_35 = arith.constant 0 : index
      %c0_36 = arith.constant 0 : index
      %c0_37 = arith.constant 0 : index
      %c0_38 = arith.constant 0 : index
      %35 = vector.load %arg7[%c0_35, %c0_36, %c0_37, %c0_38] : memref<1x1x64x8xbf16, #tpu.memory_space<vmem>>, vector<1x1x64x8xbf16>
      %36 = vector.shape_cast %35 : vector<1x1x64x8xbf16> to vector<64x8xbf16>
      %37 = vector.shape_cast %34 : vector<64x8xbf16> to vector<1x1x64x8xbf16>
      tpu.vector_store %arg7[%c0_35, %c0_36, %c0_37, %c0_38], %37 {strides = array<i32>} : memref<1x1x64x8xbf16, #tpu.memory_space<vmem>>, vector<1x1x64x8xbf16>,
    } else {
    }
    return
  }
  func.func @transform_0(%arg0: i32, %arg1: i32, %arg2: i32) -> (i32, i32, i32, i32) {
    %0 = arith.addi %arg1, %arg2 : i32
    %c0_i32 = arith.constant 0 : i32
    %c0_i32_0 = arith.constant 0 : i32
    %c0_i32_1 = arith.constant 0 : i32
    return %arg0, %0, %c0_i32, %c0_i32_0 : i32, i32, i32, i32
  }
  func.func @transform_1(%arg0: i32, %arg1: i32, %arg2: i32) -> (i32, i32, i32, i32) {
    %c0_i32 = arith.constant 0 : i32
    %c0_i32_0 = arith.constant 0 : i32
    %c0_i32_1 = arith.constant 0 : i32
    %c0_i32_2 = arith.constant 0 : i32
    return %arg2, %c0_i32, %c0_i32_0, %c0_i32_1 : i32, i32, i32, i32
  }
  func.func @transform_2(%arg0: i32, %arg1: i32, %arg2: i32) -> (i32, i32) {
    %c0_i32 = arith.constant 0 : i32
    %c0_i32_0 = arith.constant 0 : i32
    %c0_i32_1 = arith.constant 0 : i32
    return %c0_i32, %c0_i32_0 : i32, i32
  }
  func.func @transform_3(%arg0: i32, %arg1: i32, %arg2: i32) -> (i32, i32, i32, i32) {
    %c0_i32 = arith.constant 0 : i32
    %c0_i32_0 = arith.constant 0 : i32
    %c0_i32_1 = arith.constant 0 : i32
    return %arg0, %arg1, %c0_i32, %c0_i32_0 : i32, i32, i32, i32
  }
  func.func @transform_4(%arg0: i32, %arg1: i32, %arg2: i32) -> (i32, i32, i32, i32) {
    %c0_i32 = arith.constant 0 : i32
    %c0_i32_0 = arith.constant 0 : i32
    %c0_i32_1 = arith.constant 0 : i32
    return %arg0, %arg1, %c0_i32, %c0_i32_0 : i32, i32, i32, i32
  }
}

module attributes {stable_mosaic.version = 11 : i64} {
  func.func @_gn_stats_kernel(%arg0: i32, %arg1: i32, %arg2: memref<1x32x8xbf16, #tpu.memory_space<vmem>>, %arg3: memref<1x1x8xf32, #tpu.memory_space<vmem>>, %arg4: memref<1x1x8xf32, #tpu.memory_space<vmem>>) attributes {dimension_semantics = [#tpu.dimension_semantics<parallel>, #tpu.dimension_semantics<arbitrary>], iteration_bounds = array<i64: 2, 2>, scalar_prefetch = 0 : i64, scratch_operands = 0 : i64, tpu.core_type = #tpu.core_type<tc>, window_params = [{transform_indices = @transform_0, window_bounds = array<i64: 1, 32, 8>}, {transform_indices = @transform_1, window_bounds = array<i64: 1, 1, 8>}, {transform_indices = @transform_2, window_bounds = array<i64: 1, 1, 8>}]} {
    %c0_i32 = arith.constant 0 : i32
    %0 = arith.cmpi eq, %arg1, %c0_i32 : i32
    %1 = arith.extui %0 : i1 to i32
    %c0_i32_0 = arith.constant 0 : i32
    %2 = arith.cmpi ne, %1, %c0_i32_0 : i32
    scf.if %2 {
      %cst_16 = arith.constant 0.000000e+00 : f32
      %19 = vector.broadcast %cst_16 : f32 to vector<1x1x8xf32>
      %c0_17 = arith.constant 0 : index
      %c0_18 = arith.constant 0 : index
      %c0_19 = arith.constant 0 : index
      %20 = vector.load %arg3[%c0_17, %c0_18, %c0_19] : memref<1x1x8xf32, #tpu.memory_space<vmem>>, vector<1x1x8xf32>
      tpu.vector_store %arg3[%c0_17, %c0_18, %c0_19], %19 {strides = array<i32>} : memref<1x1x8xf32, #tpu.memory_space<vmem>>, vector<1x1x8xf32>,
      %cst_20 = arith.constant 0.000000e+00 : f32
      %21 = vector.broadcast %cst_20 : f32 to vector<1x1x8xf32>
      %c0_21 = arith.constant 0 : index
      %c0_22 = arith.constant 0 : index
      %c0_23 = arith.constant 0 : index
      %22 = vector.load %arg4[%c0_21, %c0_22, %c0_23] : memref<1x1x8xf32, #tpu.memory_space<vmem>>, vector<1x1x8xf32>
      tpu.vector_store %arg4[%c0_21, %c0_22, %c0_23], %21 {strides = array<i32>} : memref<1x1x8xf32, #tpu.memory_space<vmem>>, vector<1x1x8xf32>,
    } else {
    }
    %c0 = arith.constant 0 : index
    %c0_1 = arith.constant 0 : index
    %c0_2 = arith.constant 0 : index
    %3 = vector.load %arg2[%c0, %c0_1, %c0_2] : memref<1x32x8xbf16, #tpu.memory_space<vmem>>, vector<1x32x8xbf16>
    %4 = vector.shape_cast %3 : vector<1x32x8xbf16> to vector<32x8xbf16>
    %5 = arith.extf %4 : vector<32x8xbf16> to vector<32x8xf32>
    %c0_3 = arith.constant 0 : index
    %c0_4 = arith.constant 0 : index
    %c0_5 = arith.constant 0 : index
    %6 = vector.load %arg3[%c0_3, %c0_4, %c0_5] : memref<1x1x8xf32, #tpu.memory_space<vmem>>, vector<1x1x8xf32>
    %cst = arith.constant dense<0.000000e+00> : vector<8xf32>
    %7 = vector.multi_reduction <add>, %5, %cst [0] : vector<32x8xf32> to vector<8xf32>
    %8 = vector.shape_cast %7 : vector<8xf32> to vector<1x8xf32>
    %9 = vector.shape_cast %8 : vector<1x8xf32> to vector<1x1x8xf32>
    %10 = arith.addf %6, %9 : vector<1x1x8xf32>
    %c0_6 = arith.constant 0 : index
    %c0_7 = arith.constant 0 : index
    %c0_8 = arith.constant 0 : index
    %11 = vector.load %arg3[%c0_6, %c0_7, %c0_8] : memref<1x1x8xf32, #tpu.memory_space<vmem>>, vector<1x1x8xf32>
    tpu.vector_store %arg3[%c0_6, %c0_7, %c0_8], %10 {strides = array<i32>} : memref<1x1x8xf32, #tpu.memory_space<vmem>>, vector<1x1x8xf32>,
    %c0_9 = arith.constant 0 : index
    %c0_10 = arith.constant 0 : index
    %c0_11 = arith.constant 0 : index
    %12 = vector.load %arg4[%c0_9, %c0_10, %c0_11] : memref<1x1x8xf32, #tpu.memory_space<vmem>>, vector<1x1x8xf32>
    %13 = arith.mulf %5, %5 : vector<32x8xf32>
    %cst_12 = arith.constant dense<0.000000e+00> : vector<8xf32>
    %14 = vector.multi_reduction <add>, %13, %cst_12 [0] : vector<32x8xf32> to vector<8xf32>
    %15 = vector.shape_cast %14 : vector<8xf32> to vector<1x8xf32>
    %16 = vector.shape_cast %15 : vector<1x8xf32> to vector<1x1x8xf32>
    %17 = arith.addf %12, %16 : vector<1x1x8xf32>
    %c0_13 = arith.constant 0 : index
    %c0_14 = arith.constant 0 : index
    %c0_15 = arith.constant 0 : index
    %18 = vector.load %arg4[%c0_13, %c0_14, %c0_15] : memref<1x1x8xf32, #tpu.memory_space<vmem>>, vector<1x1x8xf32>
    tpu.vector_store %arg4[%c0_13, %c0_14, %c0_15], %17 {strides = array<i32>} : memref<1x1x8xf32, #tpu.memory_space<vmem>>, vector<1x1x8xf32>,
    return
  }
  func.func @transform_0(%arg0: i32, %arg1: i32) -> (i32, i32, i32) {
    %c0_i32 = arith.constant 0 : i32
    %c0_i32_0 = arith.constant 0 : i32
    return %arg0, %arg1, %c0_i32 : i32, i32, i32
  }
  func.func @transform_1(%arg0: i32, %arg1: i32) -> (i32, i32, i32) {
    %c0_i32 = arith.constant 0 : i32
    %c0_i32_0 = arith.constant 0 : i32
    %c0_i32_1 = arith.constant 0 : i32
    return %arg0, %c0_i32, %c0_i32_0 : i32, i32, i32
  }
  func.func @transform_2(%arg0: i32, %arg1: i32) -> (i32, i32, i32) {
    %c0_i32 = arith.constant 0 : i32
    %c0_i32_0 = arith.constant 0 : i32
    %c0_i32_1 = arith.constant 0 : i32
    return %arg0, %c0_i32, %c0_i32_0 : i32, i32, i32
  }
}

module attributes {stable_mosaic.version = 11 : i64} {
  func.func @_conv_tap_kernel(%arg0: i32, %arg1: i32, %arg2: i32, %arg3: memref<1x1x16x72xbf16, #tpu.memory_space<vmem>>, %arg4: memref<1x1x72x8xbf16, #tpu.memory_space<vmem>>, %arg5: memref<1x8xf32, #tpu.memory_space<vmem>>, %arg6: memref<1x1x16x8xbf16, #tpu.memory_space<vmem>>, %arg7: memref<16x8xf32, #tpu.memory_space<vmem>>) attributes {dimension_semantics = [#tpu.dimension_semantics<parallel>, #tpu.dimension_semantics<parallel>, #tpu.dimension_semantics<arbitrary>], iteration_bounds = array<i64: 2, 4, 3>, scalar_prefetch = 0 : i64, scratch_operands = 1 : i64, tpu.core_type = #tpu.core_type<tc>, window_params = [{transform_indices = @transform_0, window_bounds = array<i64: 1, 1, 16, 72>}, {transform_indices = @transform_1, window_bounds = array<i64: 1, 1, 72, 8>}, {pipeline_mode = #tpu.pipeline_mode<synchronous>, transform_indices = @transform_2, window_bounds = array<i64: 1, 8>}, {transform_indices = @transform_3, window_bounds = array<i64: 1, 1, 16, 8>}]} {
    %c0_i32 = arith.constant 0 : i32
    %0 = arith.cmpi eq, %arg2, %c0_i32 : i32
    %1 = arith.extui %0 : i1 to i32
    %c0_i32_0 = arith.constant 0 : i32
    %2 = arith.cmpi ne, %1, %c0_i32_0 : i32
    scf.if %2 {
      %cst_13 = arith.constant 0.000000e+00 : f32
      %14 = vector.broadcast %cst_13 : f32 to vector<16x8xf32>
      %c0_14 = arith.constant 0 : index
      %c0_15 = arith.constant 0 : index
      %15 = vector.load %arg7[%c0_14, %c0_15] : memref<16x8xf32, #tpu.memory_space<vmem>>, vector<16x8xf32>
      tpu.vector_store %arg7[%c0_14, %c0_15], %14 {strides = array<i32>} : memref<16x8xf32, #tpu.memory_space<vmem>>, vector<16x8xf32>,
    } else {
    }
    %c0 = arith.constant 0 : index
    %c0_1 = arith.constant 0 : index
    %c0_2 = arith.constant 0 : index
    %c0_3 = arith.constant 0 : index
    %3 = vector.load %arg3[%c0, %c0_1, %c0_2, %c0_3] : memref<1x1x16x72xbf16, #tpu.memory_space<vmem>>, vector<1x1x16x72xbf16>
    %4 = vector.shape_cast %3 : vector<1x1x16x72xbf16> to vector<16x72xbf16>
    %c0_4 = arith.constant 0 : index
    %c0_5 = arith.constant 0 : index
    %c0_6 = arith.constant 0 : index
    %c0_7 = arith.constant 0 : index
    %5 = vector.load %arg4[%c0_4, %c0_5, %c0_6, %c0_7] : memref<1x1x72x8xbf16, #tpu.memory_space<vmem>>, vector<1x1x72x8xbf16>
    %6 = vector.shape_cast %5 : vector<1x1x72x8xbf16> to vector<72x8xbf16>
    %cst = arith.constant dense<0.000000e+00> : vector<16x8xf32>
    %7 = tpu.matmul %4, %6, %cst {dimension_numbers = #tpu.dot_dimension_numbers<[1], [0], [0], [1], [0, 0, 1, 1], [], []>} : vector<16x72xbf16>, vector<72x8xbf16>, vector<16x8xf32> -> vector<16x8xf32>
    %c0_8 = arith.constant 0 : index
    %c0_9 = arith.constant 0 : index
    %8 = vector.load %arg7[%c0_8, %c0_9] : memref<16x8xf32, #tpu.memory_space<vmem>>, vector<16x8xf32>
    %9 = arith.addf %8, %7 : vector<16x8xf32>
    %c0_10 = arith.constant 0 : index
    %c0_11 = arith.constant 0 : index
    %10 = vector.load %arg7[%c0_10, %c0_11] : memref<16x8xf32, #tpu.memory_space<vmem>>, vector<16x8xf32>
    tpu.vector_store %arg7[%c0_10, %c0_11], %9 {strides = array<i32>} : memref<16x8xf32, #tpu.memory_space<vmem>>, vector<16x8xf32>,
    %c2_i32 = arith.constant 2 : i32
    %11 = arith.cmpi eq, %arg2, %c2_i32 : i32
    %12 = arith.extui %11 : i1 to i32
    %c0_i32_12 = arith.constant 0 : i32
    %13 = arith.cmpi ne, %12, %c0_i32_12 : i32
    scf.if %13 {
      %c0_13 = arith.constant 0 : index
      %c0_14 = arith.constant 0 : index
      %14 = vector.load %arg7[%c0_13, %c0_14] : memref<16x8xf32, #tpu.memory_space<vmem>>, vector<16x8xf32>
      %c0_15 = arith.constant 0 : index
      %c0_16 = arith.constant 0 : index
      %15 = vector.load %arg5[%c0_15, %c0_16] : memref<1x8xf32, #tpu.memory_space<vmem>>, vector<1x8xf32>
      %16 = vector.broadcast %15 : vector<1x8xf32> to vector<16x8xf32>
      %17 = arith.addf %14, %16 : vector<16x8xf32>
      %18 = arith.truncf %17 : vector<16x8xf32> to vector<16x8xbf16>
      %c0_17 = arith.constant 0 : index
      %c0_18 = arith.constant 0 : index
      %c0_19 = arith.constant 0 : index
      %c0_20 = arith.constant 0 : index
      %19 = vector.load %arg6[%c0_17, %c0_18, %c0_19, %c0_20] : memref<1x1x16x8xbf16, #tpu.memory_space<vmem>>, vector<1x1x16x8xbf16>
      %20 = vector.shape_cast %19 : vector<1x1x16x8xbf16> to vector<16x8xbf16>
      %21 = vector.shape_cast %18 : vector<16x8xbf16> to vector<1x1x16x8xbf16>
      tpu.vector_store %arg6[%c0_17, %c0_18, %c0_19, %c0_20], %21 {strides = array<i32>} : memref<1x1x16x8xbf16, #tpu.memory_space<vmem>>, vector<1x1x16x8xbf16>,
    } else {
    }
    return
  }
  func.func @transform_0(%arg0: i32, %arg1: i32, %arg2: i32) -> (i32, i32, i32, i32) {
    %c2_i32 = arith.constant 2 : i32
    %0 = arith.muli %c2_i32, %arg1 : i32
    %1 = arith.addi %0, %arg2 : i32
    %c0_i32 = arith.constant 0 : i32
    %c0_i32_0 = arith.constant 0 : i32
    %c0_i32_1 = arith.constant 0 : i32
    return %arg0, %1, %c0_i32, %c0_i32_0 : i32, i32, i32, i32
  }
  func.func @transform_1(%arg0: i32, %arg1: i32, %arg2: i32) -> (i32, i32, i32, i32) {
    %c0_i32 = arith.constant 0 : i32
    %c0_i32_0 = arith.constant 0 : i32
    %c0_i32_1 = arith.constant 0 : i32
    %c0_i32_2 = arith.constant 0 : i32
    return %arg2, %c0_i32, %c0_i32_0, %c0_i32_1 : i32, i32, i32, i32
  }
  func.func @transform_2(%arg0: i32, %arg1: i32, %arg2: i32) -> (i32, i32) {
    %c0_i32 = arith.constant 0 : i32
    %c0_i32_0 = arith.constant 0 : i32
    %c0_i32_1 = arith.constant 0 : i32
    return %c0_i32, %c0_i32_0 : i32, i32
  }
  func.func @transform_3(%arg0: i32, %arg1: i32, %arg2: i32) -> (i32, i32, i32, i32) {
    %c0_i32 = arith.constant 0 : i32
    %c0_i32_0 = arith.constant 0 : i32
    %c0_i32_1 = arith.constant 0 : i32
    return %arg0, %arg1, %c0_i32, %c0_i32_0 : i32, i32, i32, i32
  }
}

module attributes {stable_mosaic.version = 11 : i64} {
  func.func @_gn_norm_kernel(%arg0: i32, %arg1: i32, %arg2: memref<1x32x8xbf16, #tpu.memory_space<vmem>>, %arg3: memref<1x1x8xf32, #tpu.memory_space<vmem>>, %arg4: memref<1x1x8xf32, #tpu.memory_space<vmem>>, %arg5: memref<1x1x8xf32, #tpu.memory_space<vmem>>, %arg6: memref<1x1x8xf32, #tpu.memory_space<vmem>>, %arg7: memref<1x32x8xbf16, #tpu.memory_space<vmem>>) attributes {dimension_semantics = [#tpu.dimension_semantics<parallel>, #tpu.dimension_semantics<parallel>], iteration_bounds = array<i64: 2, 2>, scalar_prefetch = 0 : i64, scratch_operands = 0 : i64, tpu.core_type = #tpu.core_type<tc>, window_params = [{transform_indices = @transform_0, window_bounds = array<i64: 1, 32, 8>}, {transform_indices = @transform_1, window_bounds = array<i64: 1, 1, 8>}, {transform_indices = @transform_2, window_bounds = array<i64: 1, 1, 8>}, {pipeline_mode = #tpu.pipeline_mode<synchronous>, transform_indices = @transform_3, window_bounds = array<i64: 1, 1, 8>}, {pipeline_mode = #tpu.pipeline_mode<synchronous>, transform_indices = @transform_4, window_bounds = array<i64: 1, 1, 8>}, {transform_indices = @transform_5, window_bounds = array<i64: 1, 32, 8>}]} {
    %c0 = arith.constant 0 : index
    %c0_0 = arith.constant 0 : index
    %c0_1 = arith.constant 0 : index
    %0 = vector.load %arg2[%c0, %c0_0, %c0_1] : memref<1x32x8xbf16, #tpu.memory_space<vmem>>, vector<1x32x8xbf16>
    %1 = vector.shape_cast %0 : vector<1x32x8xbf16> to vector<32x8xbf16>
    %2 = arith.extf %1 : vector<32x8xbf16> to vector<32x8xf32>
    %c0_2 = arith.constant 0 : index
    %c0_3 = arith.constant 0 : index
    %c0_4 = arith.constant 0 : index
    %3 = vector.load %arg3[%c0_2, %c0_3, %c0_4] : memref<1x1x8xf32, #tpu.memory_space<vmem>>, vector<1x1x8xf32>
    %4 = vector.shape_cast %3 : vector<1x1x8xf32> to vector<1x8xf32>
    %5 = vector.broadcast %4 : vector<1x8xf32> to vector<32x8xf32>
    %6 = arith.subf %2, %5 : vector<32x8xf32>
    %c0_5 = arith.constant 0 : index
    %c0_6 = arith.constant 0 : index
    %c0_7 = arith.constant 0 : index
    %7 = vector.load %arg4[%c0_5, %c0_6, %c0_7] : memref<1x1x8xf32, #tpu.memory_space<vmem>>, vector<1x1x8xf32>
    %8 = vector.shape_cast %7 : vector<1x1x8xf32> to vector<1x8xf32>
    %9 = vector.broadcast %8 : vector<1x8xf32> to vector<32x8xf32>
    %10 = arith.mulf %6, %9 : vector<32x8xf32>
    %c0_8 = arith.constant 0 : index
    %c0_9 = arith.constant 0 : index
    %c0_10 = arith.constant 0 : index
    %11 = vector.load %arg5[%c0_8, %c0_9, %c0_10] : memref<1x1x8xf32, #tpu.memory_space<vmem>>, vector<1x1x8xf32>
    %12 = vector.shape_cast %11 : vector<1x1x8xf32> to vector<1x8xf32>
    %13 = vector.broadcast %12 : vector<1x8xf32> to vector<32x8xf32>
    %14 = arith.mulf %10, %13 : vector<32x8xf32>
    %c0_11 = arith.constant 0 : index
    %c0_12 = arith.constant 0 : index
    %c0_13 = arith.constant 0 : index
    %15 = vector.load %arg6[%c0_11, %c0_12, %c0_13] : memref<1x1x8xf32, #tpu.memory_space<vmem>>, vector<1x1x8xf32>
    %16 = vector.shape_cast %15 : vector<1x1x8xf32> to vector<1x8xf32>
    %17 = vector.broadcast %16 : vector<1x8xf32> to vector<32x8xf32>
    %18 = arith.addf %14, %17 : vector<32x8xf32>
    %19 = arith.negf %18 : vector<32x8xf32>
    %20 = math.exp %19 : vector<32x8xf32>
    %cst = arith.constant 1.000000e+00 : f32
    %21 = vector.broadcast %cst : f32 to vector<32x8xf32>
    %22 = arith.addf %21, %20 : vector<32x8xf32>
    %23 = arith.divf %21, %22 : vector<32x8xf32>
    %24 = arith.mulf %18, %23 : vector<32x8xf32>
    %25 = arith.truncf %24 : vector<32x8xf32> to vector<32x8xbf16>
    %c0_14 = arith.constant 0 : index
    %c0_15 = arith.constant 0 : index
    %c0_16 = arith.constant 0 : index
    %26 = vector.load %arg7[%c0_14, %c0_15, %c0_16] : memref<1x32x8xbf16, #tpu.memory_space<vmem>>, vector<1x32x8xbf16>
    %27 = vector.shape_cast %26 : vector<1x32x8xbf16> to vector<32x8xbf16>
    %28 = vector.shape_cast %25 : vector<32x8xbf16> to vector<1x32x8xbf16>
    tpu.vector_store %arg7[%c0_14, %c0_15, %c0_16], %28 {strides = array<i32>} : memref<1x32x8xbf16, #tpu.memory_space<vmem>>, vector<1x32x8xbf16>,
    return
  }
  func.func @transform_0(%arg0: i32, %arg1: i32) -> (i32, i32, i32) {
    %c0_i32 = arith.constant 0 : i32
    %c0_i32_0 = arith.constant 0 : i32
    return %arg0, %arg1, %c0_i32 : i32, i32, i32
  }
  func.func @transform_1(%arg0: i32, %arg1: i32) -> (i32, i32, i32) {
    %c0_i32 = arith.constant 0 : i32
    %c0_i32_0 = arith.constant 0 : i32
    %c0_i32_1 = arith.constant 0 : i32
    return %arg0, %c0_i32, %c0_i32_0 : i32, i32, i32
  }
  func.func @transform_2(%arg0: i32, %arg1: i32) -> (i32, i32, i32) {
    %c0_i32 = arith.constant 0 : i32
    %c0_i32_0 = arith.constant 0 : i32
    %c0_i32_1 = arith.constant 0 : i32
    return %arg0, %c0_i32, %c0_i32_0 : i32, i32, i32
  }
  func.func @transform_3(%arg0: i32, %arg1: i32) -> (i32, i32, i32) {
    %c0_i32 = arith.constant 0 : i32
    %c0_i32_0 = arith.constant 0 : i32
    %c0_i32_1 = arith.constant 0 : i32
    %c0_i32_2 = arith.constant 0 : i32
    return %c0_i32, %c0_i32_0, %c0_i32_1 : i32, i32, i32
  }
  func.func @transform_4(%arg0: i32, %arg1: i32) -> (i32, i32, i32) {
    %c0_i32 = arith.constant 0 : i32
    %c0_i32_0 = arith.constant 0 : i32
    %c0_i32_1 = arith.constant 0 : i32
    %c0_i32_2 = arith.constant 0 : i32
    return %c0_i32, %c0_i32_0, %c0_i32_1 : i32, i32, i32
  }
  func.func @transform_5(%arg0: i32, %arg1: i32) -> (i32, i32, i32) {
    %c0_i32 = arith.constant 0 : i32
    %c0_i32_0 = arith.constant 0 : i32
    return %arg0, %arg1, %c0_i32 : i32, i32, i32
  }
}

module attributes {stable_mosaic.version = 11 : i64} {
  func.func @_conv_tap_kernel(%arg0: i32, %arg1: i32, %arg2: i32, %arg3: memref<1x1x48x24xbf16, #tpu.memory_space<vmem>>, %arg4: memref<1x3x24x16xbf16, #tpu.memory_space<vmem>>, %arg5: memref<1x16xf32, #tpu.memory_space<vmem>>, %arg6: memref<1x1x32x16xbf16, #tpu.memory_space<vmem>>, %arg7: memref<32x16xf32, #tpu.memory_space<vmem>>) attributes {dimension_semantics = [#tpu.dimension_semantics<parallel>, #tpu.dimension_semantics<parallel>, #tpu.dimension_semantics<arbitrary>], iteration_bounds = array<i64: 2, 4, 3>, scalar_prefetch = 0 : i64, scratch_operands = 1 : i64, tpu.core_type = #tpu.core_type<tc>, window_params = [{transform_indices = @transform_0, window_bounds = array<i64: 1, 1, 48, 24>}, {transform_indices = @transform_1, window_bounds = array<i64: 1, 3, 24, 16>}, {pipeline_mode = #tpu.pipeline_mode<synchronous>, transform_indices = @transform_2, window_bounds = array<i64: 1, 16>}, {transform_indices = @transform_3, window_bounds = array<i64: 1, 1, 32, 16>}]} {
    %c0_i32 = arith.constant 0 : i32
    %0 = arith.cmpi eq, %arg2, %c0_i32 : i32
    %1 = arith.extui %0 : i1 to i32
    %c0_i32_0 = arith.constant 0 : i32
    %2 = arith.cmpi ne, %1, %c0_i32_0 : i32
    scf.if %2 {
      %cst_27 = arith.constant 0.000000e+00 : f32
      %26 = vector.broadcast %cst_27 : f32 to vector<32x16xf32>
      %c0_28 = arith.constant 0 : index
      %c0_29 = arith.constant 0 : index
      %27 = vector.load %arg7[%c0_28, %c0_29] : memref<32x16xf32, #tpu.memory_space<vmem>>, vector<32x16xf32>
      tpu.vector_store %arg7[%c0_28, %c0_29], %26 {strides = array<i32>} : memref<32x16xf32, #tpu.memory_space<vmem>>, vector<32x16xf32>,
    } else {
    }
    %c0 = arith.constant 0 : index
    %c0_1 = arith.constant 0 : index
    %c0_2 = arith.constant 0 : index
    %c0_3 = arith.constant 0 : index
    %3 = vector.load %arg3[%c0, %c0_1, %c0_2, %c0_3] : memref<1x1x48x24xbf16, #tpu.memory_space<vmem>>, vector<1x1x32x24xbf16>
    %4 = vector.shape_cast %3 : vector<1x1x32x24xbf16> to vector<32x24xbf16>
    %c0_4 = arith.constant 0 : index
    %c0_5 = arith.constant 0 : index
    %c0_6 = arith.constant 0 : index
    %c0_7 = arith.constant 0 : index
    %5 = vector.load %arg4[%c0_4, %c0_5, %c0_6, %c0_7] : memref<1x3x24x16xbf16, #tpu.memory_space<vmem>>, vector<1x1x24x16xbf16>
    %6 = vector.shape_cast %5 : vector<1x1x24x16xbf16> to vector<24x16xbf16>
    %cst = arith.constant dense<0.000000e+00> : vector<32x16xf32>
    %7 = tpu.matmul %4, %6, %cst {dimension_numbers = #tpu.dot_dimension_numbers<[1], [0], [0], [1], [0, 0, 1, 1], [], []>} : vector<32x24xbf16>, vector<24x16xbf16>, vector<32x16xf32> -> vector<32x16xf32>
    %c0_8 = arith.constant 0 : index
    %c0_9 = arith.constant 0 : index
    %c8 = arith.constant 8 : index
    %c0_10 = arith.constant 0 : index
    %8 = vector.load %arg3[%c0_8, %c0_9, %c8, %c0_10] : memref<1x1x48x24xbf16, #tpu.memory_space<vmem>>, vector<1x1x32x24xbf16>
    %9 = vector.shape_cast %8 : vector<1x1x32x24xbf16> to vector<32x24xbf16>
    %c0_11 = arith.constant 0 : index
    %c1 = arith.constant 1 : index
    %c0_12 = arith.constant 0 : index
    %c0_13 = arith.constant 0 : index
    %10 = vector.load %arg4[%c0_11, %c1, %c0_12, %c0_13] : memref<1x3x24x16xbf16, #tpu.memory_space<vmem>>, vector<1x1x24x16xbf16>
    %11 = vector.shape_cast %10 : vector<1x1x24x16xbf16> to vector<24x16xbf16>
    %cst_14 = arith.constant dense<0.000000e+00> : vector<32x16xf32>
    %12 = tpu.matmul %9, %11, %cst_14 {dimension_numbers = #tpu.dot_dimension_numbers<[1], [0], [0], [1], [0, 0, 1, 1], [], []>} : vector<32x24xbf16>, vector<24x16xbf16>, vector<32x16xf32> -> vector<32x16xf32>
    %13 = arith.addf %7, %12 : vector<32x16xf32>
    %c0_15 = arith.constant 0 : index
    %c0_16 = arith.constant 0 : index
    %c16 = arith.constant 16 : index
    %c0_17 = arith.constant 0 : index
    %14 = vector.load %arg3[%c0_15, %c0_16, %c16, %c0_17] : memref<1x1x48x24xbf16, #tpu.memory_space<vmem>>, vector<1x1x32x24xbf16>
    %15 = vector.shape_cast %14 : vector<1x1x32x24xbf16> to vector<32x24xbf16>
    %c0_18 = arith.constant 0 : index
    %c2 = arith.constant 2 : index
    %c0_19 = arith.constant 0 : index
    %c0_20 = arith.constant 0 : index
    %16 = vector.load %arg4[%c0_18, %c2, %c0_19, %c0_20] : memref<1x3x24x16xbf16, #tpu.memory_space<vmem>>, vector<1x1x24x16xbf16>
    %17 = vector.shape_cast %16 : vector<1x1x24x16xbf16> to vector<24x16xbf16>
    %cst_21 = arith.constant dense<0.000000e+00> : vector<32x16xf32>
    %18 = tpu.matmul %15, %17, %cst_21 {dimension_numbers = #tpu.dot_dimension_numbers<[1], [0], [0], [1], [0, 0, 1, 1], [], []>} : vector<32x24xbf16>, vector<24x16xbf16>, vector<32x16xf32> -> vector<32x16xf32>
    %19 = arith.addf %13, %18 : vector<32x16xf32>
    %c0_22 = arith.constant 0 : index
    %c0_23 = arith.constant 0 : index
    %20 = vector.load %arg7[%c0_22, %c0_23] : memref<32x16xf32, #tpu.memory_space<vmem>>, vector<32x16xf32>
    %21 = arith.addf %20, %19 : vector<32x16xf32>
    %c0_24 = arith.constant 0 : index
    %c0_25 = arith.constant 0 : index
    %22 = vector.load %arg7[%c0_24, %c0_25] : memref<32x16xf32, #tpu.memory_space<vmem>>, vector<32x16xf32>
    tpu.vector_store %arg7[%c0_24, %c0_25], %21 {strides = array<i32>} : memref<32x16xf32, #tpu.memory_space<vmem>>, vector<32x16xf32>,
    %c2_i32 = arith.constant 2 : i32
    %23 = arith.cmpi eq, %arg2, %c2_i32 : i32
    %24 = arith.extui %23 : i1 to i32
    %c0_i32_26 = arith.constant 0 : i32
    %25 = arith.cmpi ne, %24, %c0_i32_26 : i32
    scf.if %25 {
      %c0_27 = arith.constant 0 : index
      %c0_28 = arith.constant 0 : index
      %26 = vector.load %arg7[%c0_27, %c0_28] : memref<32x16xf32, #tpu.memory_space<vmem>>, vector<32x16xf32>
      %c0_29 = arith.constant 0 : index
      %c0_30 = arith.constant 0 : index
      %27 = vector.load %arg5[%c0_29, %c0_30] : memref<1x16xf32, #tpu.memory_space<vmem>>, vector<1x16xf32>
      %28 = vector.broadcast %27 : vector<1x16xf32> to vector<32x16xf32>
      %29 = arith.addf %26, %28 : vector<32x16xf32>
      %30 = arith.truncf %29 : vector<32x16xf32> to vector<32x16xbf16>
      %c0_31 = arith.constant 0 : index
      %c0_32 = arith.constant 0 : index
      %c0_33 = arith.constant 0 : index
      %c0_34 = arith.constant 0 : index
      %31 = vector.load %arg6[%c0_31, %c0_32, %c0_33, %c0_34] : memref<1x1x32x16xbf16, #tpu.memory_space<vmem>>, vector<1x1x32x16xbf16>
      %32 = vector.shape_cast %31 : vector<1x1x32x16xbf16> to vector<32x16xbf16>
      %33 = vector.shape_cast %30 : vector<32x16xbf16> to vector<1x1x32x16xbf16>
      tpu.vector_store %arg6[%c0_31, %c0_32, %c0_33, %c0_34], %33 {strides = array<i32>} : memref<1x1x32x16xbf16, #tpu.memory_space<vmem>>, vector<1x1x32x16xbf16>,
    } else {
    }
    return
  }
  func.func @transform_0(%arg0: i32, %arg1: i32, %arg2: i32) -> (i32, i32, i32, i32) {
    %0 = arith.addi %arg1, %arg2 : i32
    %c0_i32 = arith.constant 0 : i32
    %c0_i32_0 = arith.constant 0 : i32
    %c0_i32_1 = arith.constant 0 : i32
    return %arg0, %0, %c0_i32, %c0_i32_0 : i32, i32, i32, i32
  }
  func.func @transform_1(%arg0: i32, %arg1: i32, %arg2: i32) -> (i32, i32, i32, i32) {
    %c0_i32 = arith.constant 0 : i32
    %c0_i32_0 = arith.constant 0 : i32
    %c0_i32_1 = arith.constant 0 : i32
    %c0_i32_2 = arith.constant 0 : i32
    return %arg2, %c0_i32, %c0_i32_0, %c0_i32_1 : i32, i32, i32, i32
  }
  func.func @transform_2(%arg0: i32, %arg1: i32, %arg2: i32) -> (i32, i32) {
    %c0_i32 = arith.constant 0 : i32
    %c0_i32_0 = arith.constant 0 : i32
    %c0_i32_1 = arith.constant 0 : i32
    return %c0_i32, %c0_i32_0 : i32, i32
  }
  func.func @transform_3(%arg0: i32, %arg1: i32, %arg2: i32) -> (i32, i32, i32, i32) {
    %c0_i32 = arith.constant 0 : i32
    %c0_i32_0 = arith.constant 0 : i32
    %c0_i32_1 = arith.constant 0 : i32
    return %arg0, %arg1, %c0_i32, %c0_i32_0 : i32, i32, i32, i32
  }
}

module attributes {stable_mosaic.version = 11 : i64} {
  func.func @_gn_stats_kernel(%arg0: i32, %arg1: i32, %arg2: memref<1x32x16xbf16, #tpu.memory_space<vmem>>, %arg3: memref<1x1x16xf32, #tpu.memory_space<vmem>>, %arg4: memref<1x1x16xf32, #tpu.memory_space<vmem>>) attributes {dimension_semantics = [#tpu.dimension_semantics<parallel>, #tpu.dimension_semantics<arbitrary>], iteration_bounds = array<i64: 2, 2>, scalar_prefetch = 0 : i64, scratch_operands = 0 : i64, tpu.core_type = #tpu.core_type<tc>, window_params = [{transform_indices = @transform_0, window_bounds = array<i64: 1, 32, 16>}, {transform_indices = @transform_1, window_bounds = array<i64: 1, 1, 16>}, {transform_indices = @transform_2, window_bounds = array<i64: 1, 1, 16>}]} {
    %c0_i32 = arith.constant 0 : i32
    %0 = arith.cmpi eq, %arg1, %c0_i32 : i32
    %1 = arith.extui %0 : i1 to i32
    %c0_i32_0 = arith.constant 0 : i32
    %2 = arith.cmpi ne, %1, %c0_i32_0 : i32
    scf.if %2 {
      %cst_16 = arith.constant 0.000000e+00 : f32
      %19 = vector.broadcast %cst_16 : f32 to vector<1x1x16xf32>
      %c0_17 = arith.constant 0 : index
      %c0_18 = arith.constant 0 : index
      %c0_19 = arith.constant 0 : index
      %20 = vector.load %arg3[%c0_17, %c0_18, %c0_19] : memref<1x1x16xf32, #tpu.memory_space<vmem>>, vector<1x1x16xf32>
      tpu.vector_store %arg3[%c0_17, %c0_18, %c0_19], %19 {strides = array<i32>} : memref<1x1x16xf32, #tpu.memory_space<vmem>>, vector<1x1x16xf32>,
      %cst_20 = arith.constant 0.000000e+00 : f32
      %21 = vector.broadcast %cst_20 : f32 to vector<1x1x16xf32>
      %c0_21 = arith.constant 0 : index
      %c0_22 = arith.constant 0 : index
      %c0_23 = arith.constant 0 : index
      %22 = vector.load %arg4[%c0_21, %c0_22, %c0_23] : memref<1x1x16xf32, #tpu.memory_space<vmem>>, vector<1x1x16xf32>
      tpu.vector_store %arg4[%c0_21, %c0_22, %c0_23], %21 {strides = array<i32>} : memref<1x1x16xf32, #tpu.memory_space<vmem>>, vector<1x1x16xf32>,
    } else {
    }
    %c0 = arith.constant 0 : index
    %c0_1 = arith.constant 0 : index
    %c0_2 = arith.constant 0 : index
    %3 = vector.load %arg2[%c0, %c0_1, %c0_2] : memref<1x32x16xbf16, #tpu.memory_space<vmem>>, vector<1x32x16xbf16>
    %4 = vector.shape_cast %3 : vector<1x32x16xbf16> to vector<32x16xbf16>
    %5 = arith.extf %4 : vector<32x16xbf16> to vector<32x16xf32>
    %c0_3 = arith.constant 0 : index
    %c0_4 = arith.constant 0 : index
    %c0_5 = arith.constant 0 : index
    %6 = vector.load %arg3[%c0_3, %c0_4, %c0_5] : memref<1x1x16xf32, #tpu.memory_space<vmem>>, vector<1x1x16xf32>
    %cst = arith.constant dense<0.000000e+00> : vector<16xf32>
    %7 = vector.multi_reduction <add>, %5, %cst [0] : vector<32x16xf32> to vector<16xf32>
    %8 = vector.shape_cast %7 : vector<16xf32> to vector<1x16xf32>
    %9 = vector.shape_cast %8 : vector<1x16xf32> to vector<1x1x16xf32>
    %10 = arith.addf %6, %9 : vector<1x1x16xf32>
    %c0_6 = arith.constant 0 : index
    %c0_7 = arith.constant 0 : index
    %c0_8 = arith.constant 0 : index
    %11 = vector.load %arg3[%c0_6, %c0_7, %c0_8] : memref<1x1x16xf32, #tpu.memory_space<vmem>>, vector<1x1x16xf32>
    tpu.vector_store %arg3[%c0_6, %c0_7, %c0_8], %10 {strides = array<i32>} : memref<1x1x16xf32, #tpu.memory_space<vmem>>, vector<1x1x16xf32>,
    %c0_9 = arith.constant 0 : index
    %c0_10 = arith.constant 0 : index
    %c0_11 = arith.constant 0 : index
    %12 = vector.load %arg4[%c0_9, %c0_10, %c0_11] : memref<1x1x16xf32, #tpu.memory_space<vmem>>, vector<1x1x16xf32>
    %13 = arith.mulf %5, %5 : vector<32x16xf32>
    %cst_12 = arith.constant dense<0.000000e+00> : vector<16xf32>
    %14 = vector.multi_reduction <add>, %13, %cst_12 [0] : vector<32x16xf32> to vector<16xf32>
    %15 = vector.shape_cast %14 : vector<16xf32> to vector<1x16xf32>
    %16 = vector.shape_cast %15 : vector<1x16xf32> to vector<1x1x16xf32>
    %17 = arith.addf %12, %16 : vector<1x1x16xf32>
    %c0_13 = arith.constant 0 : index
    %c0_14 = arith.constant 0 : index
    %c0_15 = arith.constant 0 : index
    %18 = vector.load %arg4[%c0_13, %c0_14, %c0_15] : memref<1x1x16xf32, #tpu.memory_space<vmem>>, vector<1x1x16xf32>
    tpu.vector_store %arg4[%c0_13, %c0_14, %c0_15], %17 {strides = array<i32>} : memref<1x1x16xf32, #tpu.memory_space<vmem>>, vector<1x1x16xf32>,
    return
  }
  func.func @transform_0(%arg0: i32, %arg1: i32) -> (i32, i32, i32) {
    %c0_i32 = arith.constant 0 : i32
    %c0_i32_0 = arith.constant 0 : i32
    return %arg0, %arg1, %c0_i32 : i32, i32, i32
  }
  func.func @transform_1(%arg0: i32, %arg1: i32) -> (i32, i32, i32) {
    %c0_i32 = arith.constant 0 : i32
    %c0_i32_0 = arith.constant 0 : i32
    %c0_i32_1 = arith.constant 0 : i32
    return %arg0, %c0_i32, %c0_i32_0 : i32, i32, i32
  }
  func.func @transform_2(%arg0: i32, %arg1: i32) -> (i32, i32, i32) {
    %c0_i32 = arith.constant 0 : i32
    %c0_i32_0 = arith.constant 0 : i32
    %c0_i32_1 = arith.constant 0 : i32
    return %arg0, %c0_i32, %c0_i32_0 : i32, i32, i32
  }
}

module attributes {stable_mosaic.version = 11 : i64} {
  func.func @_gn_norm_kernel(%arg0: i32, %arg1: i32, %arg2: memref<1x32x16xbf16, #tpu.memory_space<vmem>>, %arg3: memref<1x1x16xf32, #tpu.memory_space<vmem>>, %arg4: memref<1x1x16xf32, #tpu.memory_space<vmem>>, %arg5: memref<1x1x16xf32, #tpu.memory_space<vmem>>, %arg6: memref<1x1x16xf32, #tpu.memory_space<vmem>>, %arg7: memref<1x32x16xbf16, #tpu.memory_space<vmem>>) attributes {dimension_semantics = [#tpu.dimension_semantics<parallel>, #tpu.dimension_semantics<parallel>], iteration_bounds = array<i64: 2, 2>, scalar_prefetch = 0 : i64, scratch_operands = 0 : i64, tpu.core_type = #tpu.core_type<tc>, window_params = [{transform_indices = @transform_0, window_bounds = array<i64: 1, 32, 16>}, {transform_indices = @transform_1, window_bounds = array<i64: 1, 1, 16>}, {transform_indices = @transform_2, window_bounds = array<i64: 1, 1, 16>}, {pipeline_mode = #tpu.pipeline_mode<synchronous>, transform_indices = @transform_3, window_bounds = array<i64: 1, 1, 16>}, {pipeline_mode = #tpu.pipeline_mode<synchronous>, transform_indices = @transform_4, window_bounds = array<i64: 1, 1, 16>}, {transform_indices = @transform_5, window_bounds = array<i64: 1, 32, 16>}]} {
    %c0 = arith.constant 0 : index
    %c0_0 = arith.constant 0 : index
    %c0_1 = arith.constant 0 : index
    %0 = vector.load %arg2[%c0, %c0_0, %c0_1] : memref<1x32x16xbf16, #tpu.memory_space<vmem>>, vector<1x32x16xbf16>
    %1 = vector.shape_cast %0 : vector<1x32x16xbf16> to vector<32x16xbf16>
    %2 = arith.extf %1 : vector<32x16xbf16> to vector<32x16xf32>
    %c0_2 = arith.constant 0 : index
    %c0_3 = arith.constant 0 : index
    %c0_4 = arith.constant 0 : index
    %3 = vector.load %arg3[%c0_2, %c0_3, %c0_4] : memref<1x1x16xf32, #tpu.memory_space<vmem>>, vector<1x1x16xf32>
    %4 = vector.shape_cast %3 : vector<1x1x16xf32> to vector<1x16xf32>
    %5 = vector.broadcast %4 : vector<1x16xf32> to vector<32x16xf32>
    %6 = arith.subf %2, %5 : vector<32x16xf32>
    %c0_5 = arith.constant 0 : index
    %c0_6 = arith.constant 0 : index
    %c0_7 = arith.constant 0 : index
    %7 = vector.load %arg4[%c0_5, %c0_6, %c0_7] : memref<1x1x16xf32, #tpu.memory_space<vmem>>, vector<1x1x16xf32>
    %8 = vector.shape_cast %7 : vector<1x1x16xf32> to vector<1x16xf32>
    %9 = vector.broadcast %8 : vector<1x16xf32> to vector<32x16xf32>
    %10 = arith.mulf %6, %9 : vector<32x16xf32>
    %c0_8 = arith.constant 0 : index
    %c0_9 = arith.constant 0 : index
    %c0_10 = arith.constant 0 : index
    %11 = vector.load %arg5[%c0_8, %c0_9, %c0_10] : memref<1x1x16xf32, #tpu.memory_space<vmem>>, vector<1x1x16xf32>
    %12 = vector.shape_cast %11 : vector<1x1x16xf32> to vector<1x16xf32>
    %13 = vector.broadcast %12 : vector<1x16xf32> to vector<32x16xf32>
    %14 = arith.mulf %10, %13 : vector<32x16xf32>
    %c0_11 = arith.constant 0 : index
    %c0_12 = arith.constant 0 : index
    %c0_13 = arith.constant 0 : index
    %15 = vector.load %arg6[%c0_11, %c0_12, %c0_13] : memref<1x1x16xf32, #tpu.memory_space<vmem>>, vector<1x1x16xf32>
    %16 = vector.shape_cast %15 : vector<1x1x16xf32> to vector<1x16xf32>
    %17 = vector.broadcast %16 : vector<1x16xf32> to vector<32x16xf32>
    %18 = arith.addf %14, %17 : vector<32x16xf32>
    %19 = arith.negf %18 : vector<32x16xf32>
    %20 = math.exp %19 : vector<32x16xf32>
    %cst = arith.constant 1.000000e+00 : f32
    %21 = vector.broadcast %cst : f32 to vector<32x16xf32>
    %22 = arith.addf %21, %20 : vector<32x16xf32>
    %23 = arith.divf %21, %22 : vector<32x16xf32>
    %24 = arith.mulf %18, %23 : vector<32x16xf32>
    %25 = arith.truncf %24 : vector<32x16xf32> to vector<32x16xbf16>
    %c0_14 = arith.constant 0 : index
    %c0_15 = arith.constant 0 : index
    %c0_16 = arith.constant 0 : index
    %26 = vector.load %arg7[%c0_14, %c0_15, %c0_16] : memref<1x32x16xbf16, #tpu.memory_space<vmem>>, vector<1x32x16xbf16>
    %27 = vector.shape_cast %26 : vector<1x32x16xbf16> to vector<32x16xbf16>
    %28 = vector.shape_cast %25 : vector<32x16xbf16> to vector<1x32x16xbf16>
    tpu.vector_store %arg7[%c0_14, %c0_15, %c0_16], %28 {strides = array<i32>} : memref<1x32x16xbf16, #tpu.memory_space<vmem>>, vector<1x32x16xbf16>,
    return
  }
  func.func @transform_0(%arg0: i32, %arg1: i32) -> (i32, i32, i32) {
    %c0_i32 = arith.constant 0 : i32
    %c0_i32_0 = arith.constant 0 : i32
    return %arg0, %arg1, %c0_i32 : i32, i32, i32
  }
  func.func @transform_1(%arg0: i32, %arg1: i32) -> (i32, i32, i32) {
    %c0_i32 = arith.constant 0 : i32
    %c0_i32_0 = arith.constant 0 : i32
    %c0_i32_1 = arith.constant 0 : i32
    return %arg0, %c0_i32, %c0_i32_0 : i32, i32, i32
  }
  func.func @transform_2(%arg0: i32, %arg1: i32) -> (i32, i32, i32) {
    %c0_i32 = arith.constant 0 : i32
    %c0_i32_0 = arith.constant 0 : i32
    %c0_i32_1 = arith.constant 0 : i32
    return %arg0, %c0_i32, %c0_i32_0 : i32, i32, i32
  }
  func.func @transform_3(%arg0: i32, %arg1: i32) -> (i32, i32, i32) {
    %c0_i32 = arith.constant 0 : i32
    %c0_i32_0 = arith.constant 0 : i32
    %c0_i32_1 = arith.constant 0 : i32
    %c0_i32_2 = arith.constant 0 : i32
    return %c0_i32, %c0_i32_0, %c0_i32_1 : i32, i32, i32
  }
  func.func @transform_4(%arg0: i32, %arg1: i32) -> (i32, i32, i32) {
    %c0_i32 = arith.constant 0 : i32
    %c0_i32_0 = arith.constant 0 : i32
    %c0_i32_1 = arith.constant 0 : i32
    %c0_i32_2 = arith.constant 0 : i32
    return %c0_i32, %c0_i32_0, %c0_i32_1 : i32, i32, i32
  }
  func.func @transform_5(%arg0: i32, %arg1: i32) -> (i32, i32, i32) {
    %c0_i32 = arith.constant 0 : i32
    %c0_i32_0 = arith.constant 0 : i32
    return %arg0, %arg1, %c0_i32 : i32, i32, i32
  }
}

module attributes {stable_mosaic.version = 11 : i64} {
  func.func @_gemm_kernel(%arg0: i32, %arg1: memref<64x8xbf16, #tpu.memory_space<vmem>>, %arg2: memref<8x16xbf16, #tpu.memory_space<vmem>>, %arg3: memref<1x16xf32, #tpu.memory_space<vmem>>, %arg4: memref<64x16xbf16, #tpu.memory_space<vmem>>) attributes {dimension_semantics = [#tpu.dimension_semantics<parallel>], iteration_bounds = array<i64: 2>, scalar_prefetch = 0 : i64, scratch_operands = 0 : i64, tpu.core_type = #tpu.core_type<tc>, window_params = [{transform_indices = @transform_0, window_bounds = array<i64: 64, 8>}, {pipeline_mode = #tpu.pipeline_mode<synchronous>, transform_indices = @transform_1, window_bounds = array<i64: 8, 16>}, {pipeline_mode = #tpu.pipeline_mode<synchronous>, transform_indices = @transform_2, window_bounds = array<i64: 1, 16>}, {transform_indices = @transform_3, window_bounds = array<i64: 64, 16>}]} {
    %c0 = arith.constant 0 : index
    %c0_0 = arith.constant 0 : index
    %0 = vector.load %arg1[%c0, %c0_0] : memref<64x8xbf16, #tpu.memory_space<vmem>>, vector<64x8xbf16>
    %c0_1 = arith.constant 0 : index
    %c0_2 = arith.constant 0 : index
    %1 = vector.load %arg2[%c0_1, %c0_2] : memref<8x16xbf16, #tpu.memory_space<vmem>>, vector<8x16xbf16>
    %cst = arith.constant dense<0.000000e+00> : vector<64x16xf32>
    %2 = tpu.matmul %0, %1, %cst {dimension_numbers = #tpu.dot_dimension_numbers<[1], [0], [0], [1], [0, 0, 1, 1], [], []>} : vector<64x8xbf16>, vector<8x16xbf16>, vector<64x16xf32> -> vector<64x16xf32>
    %c0_3 = arith.constant 0 : index
    %c0_4 = arith.constant 0 : index
    %3 = vector.load %arg3[%c0_3, %c0_4] : memref<1x16xf32, #tpu.memory_space<vmem>>, vector<1x16xf32>
    %4 = vector.broadcast %3 : vector<1x16xf32> to vector<64x16xf32>
    %5 = arith.addf %2, %4 : vector<64x16xf32>
    %6 = arith.truncf %5 : vector<64x16xf32> to vector<64x16xbf16>
    %c0_5 = arith.constant 0 : index
    %c0_6 = arith.constant 0 : index
    %7 = vector.load %arg4[%c0_5, %c0_6] : memref<64x16xbf16, #tpu.memory_space<vmem>>, vector<64x16xbf16>
    tpu.vector_store %arg4[%c0_5, %c0_6], %6 {strides = array<i32>} : memref<64x16xbf16, #tpu.memory_space<vmem>>, vector<64x16xbf16>,
    return
  }
  func.func @transform_0(%arg0: i32) -> (i32, i32) {
    %c0_i32 = arith.constant 0 : i32
    %c0_i32_0 = arith.constant 0 : i32
    return %arg0, %c0_i32 : i32, i32
  }
  func.func @transform_1(%arg0: i32) -> (i32, i32) {
    %c0_i32 = arith.constant 0 : i32
    %c0_i32_0 = arith.constant 0 : i32
    %c0_i32_1 = arith.constant 0 : i32
    return %c0_i32, %c0_i32_0 : i32, i32
  }
  func.func @transform_2(%arg0: i32) -> (i32, i32) {
    %c0_i32 = arith.constant 0 : i32
    %c0_i32_0 = arith.constant 0 : i32
    %c0_i32_1 = arith.constant 0 : i32
    return %c0_i32, %c0_i32_0 : i32, i32
  }
  func.func @transform_3(%arg0: i32) -> (i32, i32) {
    %c0_i32 = arith.constant 0 : i32
    %c0_i32_0 = arith.constant 0 : i32
    return %arg0, %c0_i32 : i32, i32
  }
}

module attributes {stable_mosaic.version = 11 : i64} {
  func.func @_conv_tap_res_kernel(%arg0: i32, %arg1: i32, %arg2: i32, %arg3: memref<1x1x48x48xbf16, #tpu.memory_space<vmem>>, %arg4: memref<1x3x48x16xbf16, #tpu.memory_space<vmem>>, %arg5: memref<1x16xf32, #tpu.memory_space<vmem>>, %arg6: memref<1x1x32x16xbf16, #tpu.memory_space<vmem>>, %arg7: memref<1x1x32x16xbf16, #tpu.memory_space<vmem>>, %arg8: memref<32x16xf32, #tpu.memory_space<vmem>>) attributes {dimension_semantics = [#tpu.dimension_semantics<parallel>, #tpu.dimension_semantics<parallel>, #tpu.dimension_semantics<arbitrary>], iteration_bounds = array<i64: 2, 4, 3>, scalar_prefetch = 0 : i64, scratch_operands = 1 : i64, tpu.core_type = #tpu.core_type<tc>, window_params = [{transform_indices = @transform_0, window_bounds = array<i64: 1, 1, 48, 48>}, {transform_indices = @transform_1, window_bounds = array<i64: 1, 3, 48, 16>}, {pipeline_mode = #tpu.pipeline_mode<synchronous>, transform_indices = @transform_2, window_bounds = array<i64: 1, 16>}, {transform_indices = @transform_3, window_bounds = array<i64: 1, 1, 32, 16>}, {transform_indices = @transform_4, window_bounds = array<i64: 1, 1, 32, 16>}]} {
    %c0_i32 = arith.constant 0 : i32
    %0 = arith.cmpi eq, %arg2, %c0_i32 : i32
    %1 = arith.extui %0 : i1 to i32
    %c0_i32_0 = arith.constant 0 : i32
    %2 = arith.cmpi ne, %1, %c0_i32_0 : i32
    scf.if %2 {
      %cst_27 = arith.constant 0.000000e+00 : f32
      %26 = vector.broadcast %cst_27 : f32 to vector<32x16xf32>
      %c0_28 = arith.constant 0 : index
      %c0_29 = arith.constant 0 : index
      %27 = vector.load %arg8[%c0_28, %c0_29] : memref<32x16xf32, #tpu.memory_space<vmem>>, vector<32x16xf32>
      tpu.vector_store %arg8[%c0_28, %c0_29], %26 {strides = array<i32>} : memref<32x16xf32, #tpu.memory_space<vmem>>, vector<32x16xf32>,
    } else {
    }
    %c0 = arith.constant 0 : index
    %c0_1 = arith.constant 0 : index
    %c0_2 = arith.constant 0 : index
    %c0_3 = arith.constant 0 : index
    %3 = vector.load %arg3[%c0, %c0_1, %c0_2, %c0_3] : memref<1x1x48x48xbf16, #tpu.memory_space<vmem>>, vector<1x1x32x48xbf16>
    %4 = vector.shape_cast %3 : vector<1x1x32x48xbf16> to vector<32x48xbf16>
    %c0_4 = arith.constant 0 : index
    %c0_5 = arith.constant 0 : index
    %c0_6 = arith.constant 0 : index
    %c0_7 = arith.constant 0 : index
    %5 = vector.load %arg4[%c0_4, %c0_5, %c0_6, %c0_7] : memref<1x3x48x16xbf16, #tpu.memory_space<vmem>>, vector<1x1x48x16xbf16>
    %6 = vector.shape_cast %5 : vector<1x1x48x16xbf16> to vector<48x16xbf16>
    %cst = arith.constant dense<0.000000e+00> : vector<32x16xf32>
    %7 = tpu.matmul %4, %6, %cst {dimension_numbers = #tpu.dot_dimension_numbers<[1], [0], [0], [1], [0, 0, 1, 1], [], []>} : vector<32x48xbf16>, vector<48x16xbf16>, vector<32x16xf32> -> vector<32x16xf32>
    %c0_8 = arith.constant 0 : index
    %c0_9 = arith.constant 0 : index
    %c8 = arith.constant 8 : index
    %c0_10 = arith.constant 0 : index
    %8 = vector.load %arg3[%c0_8, %c0_9, %c8, %c0_10] : memref<1x1x48x48xbf16, #tpu.memory_space<vmem>>, vector<1x1x32x48xbf16>
    %9 = vector.shape_cast %8 : vector<1x1x32x48xbf16> to vector<32x48xbf16>
    %c0_11 = arith.constant 0 : index
    %c1 = arith.constant 1 : index
    %c0_12 = arith.constant 0 : index
    %c0_13 = arith.constant 0 : index
    %10 = vector.load %arg4[%c0_11, %c1, %c0_12, %c0_13] : memref<1x3x48x16xbf16, #tpu.memory_space<vmem>>, vector<1x1x48x16xbf16>
    %11 = vector.shape_cast %10 : vector<1x1x48x16xbf16> to vector<48x16xbf16>
    %cst_14 = arith.constant dense<0.000000e+00> : vector<32x16xf32>
    %12 = tpu.matmul %9, %11, %cst_14 {dimension_numbers = #tpu.dot_dimension_numbers<[1], [0], [0], [1], [0, 0, 1, 1], [], []>} : vector<32x48xbf16>, vector<48x16xbf16>, vector<32x16xf32> -> vector<32x16xf32>
    %13 = arith.addf %7, %12 : vector<32x16xf32>
    %c0_15 = arith.constant 0 : index
    %c0_16 = arith.constant 0 : index
    %c16 = arith.constant 16 : index
    %c0_17 = arith.constant 0 : index
    %14 = vector.load %arg3[%c0_15, %c0_16, %c16, %c0_17] : memref<1x1x48x48xbf16, #tpu.memory_space<vmem>>, vector<1x1x32x48xbf16>
    %15 = vector.shape_cast %14 : vector<1x1x32x48xbf16> to vector<32x48xbf16>
    %c0_18 = arith.constant 0 : index
    %c2 = arith.constant 2 : index
    %c0_19 = arith.constant 0 : index
    %c0_20 = arith.constant 0 : index
    %16 = vector.load %arg4[%c0_18, %c2, %c0_19, %c0_20] : memref<1x3x48x16xbf16, #tpu.memory_space<vmem>>, vector<1x1x48x16xbf16>
    %17 = vector.shape_cast %16 : vector<1x1x48x16xbf16> to vector<48x16xbf16>
    %cst_21 = arith.constant dense<0.000000e+00> : vector<32x16xf32>
    %18 = tpu.matmul %15, %17, %cst_21 {dimension_numbers = #tpu.dot_dimension_numbers<[1], [0], [0], [1], [0, 0, 1, 1], [], []>} : vector<32x48xbf16>, vector<48x16xbf16>, vector<32x16xf32> -> vector<32x16xf32>
    %19 = arith.addf %13, %18 : vector<32x16xf32>
    %c0_22 = arith.constant 0 : index
    %c0_23 = arith.constant 0 : index
    %20 = vector.load %arg8[%c0_22, %c0_23] : memref<32x16xf32, #tpu.memory_space<vmem>>, vector<32x16xf32>
    %21 = arith.addf %20, %19 : vector<32x16xf32>
    %c0_24 = arith.constant 0 : index
    %c0_25 = arith.constant 0 : index
    %22 = vector.load %arg8[%c0_24, %c0_25] : memref<32x16xf32, #tpu.memory_space<vmem>>, vector<32x16xf32>
    tpu.vector_store %arg8[%c0_24, %c0_25], %21 {strides = array<i32>} : memref<32x16xf32, #tpu.memory_space<vmem>>, vector<32x16xf32>,
    %c2_i32 = arith.constant 2 : i32
    %23 = arith.cmpi eq, %arg2, %c2_i32 : i32
    %24 = arith.extui %23 : i1 to i32
    %c0_i32_26 = arith.constant 0 : i32
    %25 = arith.cmpi ne, %24, %c0_i32_26 : i32
    scf.if %25 {
      %c0_27 = arith.constant 0 : index
      %c0_28 = arith.constant 0 : index
      %26 = vector.load %arg8[%c0_27, %c0_28] : memref<32x16xf32, #tpu.memory_space<vmem>>, vector<32x16xf32>
      %c0_29 = arith.constant 0 : index
      %c0_30 = arith.constant 0 : index
      %27 = vector.load %arg5[%c0_29, %c0_30] : memref<1x16xf32, #tpu.memory_space<vmem>>, vector<1x16xf32>
      %28 = vector.broadcast %27 : vector<1x16xf32> to vector<32x16xf32>
      %29 = arith.addf %26, %28 : vector<32x16xf32>
      %c0_31 = arith.constant 0 : index
      %c0_32 = arith.constant 0 : index
      %c0_33 = arith.constant 0 : index
      %c0_34 = arith.constant 0 : index
      %30 = vector.load %arg6[%c0_31, %c0_32, %c0_33, %c0_34] : memref<1x1x32x16xbf16, #tpu.memory_space<vmem>>, vector<1x1x32x16xbf16>
      %31 = vector.shape_cast %30 : vector<1x1x32x16xbf16> to vector<32x16xbf16>
      %32 = arith.extf %31 : vector<32x16xbf16> to vector<32x16xf32>
      %33 = arith.addf %29, %32 : vector<32x16xf32>
      %34 = arith.truncf %33 : vector<32x16xf32> to vector<32x16xbf16>
      %c0_35 = arith.constant 0 : index
      %c0_36 = arith.constant 0 : index
      %c0_37 = arith.constant 0 : index
      %c0_38 = arith.constant 0 : index
      %35 = vector.load %arg7[%c0_35, %c0_36, %c0_37, %c0_38] : memref<1x1x32x16xbf16, #tpu.memory_space<vmem>>, vector<1x1x32x16xbf16>
      %36 = vector.shape_cast %35 : vector<1x1x32x16xbf16> to vector<32x16xbf16>
      %37 = vector.shape_cast %34 : vector<32x16xbf16> to vector<1x1x32x16xbf16>
      tpu.vector_store %arg7[%c0_35, %c0_36, %c0_37, %c0_38], %37 {strides = array<i32>} : memref<1x1x32x16xbf16, #tpu.memory_space<vmem>>, vector<1x1x32x16xbf16>,
    } else {
    }
    return
  }
  func.func @transform_0(%arg0: i32, %arg1: i32, %arg2: i32) -> (i32, i32, i32, i32) {
    %0 = arith.addi %arg1, %arg2 : i32
    %c0_i32 = arith.constant 0 : i32
    %c0_i32_0 = arith.constant 0 : i32
    %c0_i32_1 = arith.constant 0 : i32
    return %arg0, %0, %c0_i32, %c0_i32_0 : i32, i32, i32, i32
  }
  func.func @transform_1(%arg0: i32, %arg1: i32, %arg2: i32) -> (i32, i32, i32, i32) {
    %c0_i32 = arith.constant 0 : i32
    %c0_i32_0 = arith.constant 0 : i32
    %c0_i32_1 = arith.constant 0 : i32
    %c0_i32_2 = arith.constant 0 : i32
    return %arg2, %c0_i32, %c0_i32_0, %c0_i32_1 : i32, i32, i32, i32
  }
  func.func @transform_2(%arg0: i32, %arg1: i32, %arg2: i32) -> (i32, i32) {
    %c0_i32 = arith.constant 0 : i32
    %c0_i32_0 = arith.constant 0 : i32
    %c0_i32_1 = arith.constant 0 : i32
    return %c0_i32, %c0_i32_0 : i32, i32
  }
  func.func @transform_3(%arg0: i32, %arg1: i32, %arg2: i32) -> (i32, i32, i32, i32) {
    %c0_i32 = arith.constant 0 : i32
    %c0_i32_0 = arith.constant 0 : i32
    %c0_i32_1 = arith.constant 0 : i32
    return %arg0, %arg1, %c0_i32, %c0_i32_0 : i32, i32, i32, i32
  }
  func.func @transform_4(%arg0: i32, %arg1: i32, %arg2: i32) -> (i32, i32, i32, i32) {
    %c0_i32 = arith.constant 0 : i32
    %c0_i32_0 = arith.constant 0 : i32
    %c0_i32_1 = arith.constant 0 : i32
    return %arg0, %arg1, %c0_i32, %c0_i32_0 : i32, i32, i32, i32
  }
}

module attributes {stable_mosaic.version = 11 : i64} {
  func.func @_conv_tap_kernel(%arg0: i32, %arg1: i32, %arg2: i32, %arg3: memref<1x1x48x48xbf16, #tpu.memory_space<vmem>>, %arg4: memref<1x3x48x16xbf16, #tpu.memory_space<vmem>>, %arg5: memref<1x16xf32, #tpu.memory_space<vmem>>, %arg6: memref<1x1x32x16xbf16, #tpu.memory_space<vmem>>, %arg7: memref<32x16xf32, #tpu.memory_space<vmem>>) attributes {dimension_semantics = [#tpu.dimension_semantics<parallel>, #tpu.dimension_semantics<parallel>, #tpu.dimension_semantics<arbitrary>], iteration_bounds = array<i64: 2, 4, 3>, scalar_prefetch = 0 : i64, scratch_operands = 1 : i64, tpu.core_type = #tpu.core_type<tc>, window_params = [{transform_indices = @transform_0, window_bounds = array<i64: 1, 1, 48, 48>}, {transform_indices = @transform_1, window_bounds = array<i64: 1, 3, 48, 16>}, {pipeline_mode = #tpu.pipeline_mode<synchronous>, transform_indices = @transform_2, window_bounds = array<i64: 1, 16>}, {transform_indices = @transform_3, window_bounds = array<i64: 1, 1, 32, 16>}]} {
    %c0_i32 = arith.constant 0 : i32
    %0 = arith.cmpi eq, %arg2, %c0_i32 : i32
    %1 = arith.extui %0 : i1 to i32
    %c0_i32_0 = arith.constant 0 : i32
    %2 = arith.cmpi ne, %1, %c0_i32_0 : i32
    scf.if %2 {
      %cst_27 = arith.constant 0.000000e+00 : f32
      %26 = vector.broadcast %cst_27 : f32 to vector<32x16xf32>
      %c0_28 = arith.constant 0 : index
      %c0_29 = arith.constant 0 : index
      %27 = vector.load %arg7[%c0_28, %c0_29] : memref<32x16xf32, #tpu.memory_space<vmem>>, vector<32x16xf32>
      tpu.vector_store %arg7[%c0_28, %c0_29], %26 {strides = array<i32>} : memref<32x16xf32, #tpu.memory_space<vmem>>, vector<32x16xf32>,
    } else {
    }
    %c0 = arith.constant 0 : index
    %c0_1 = arith.constant 0 : index
    %c0_2 = arith.constant 0 : index
    %c0_3 = arith.constant 0 : index
    %3 = vector.load %arg3[%c0, %c0_1, %c0_2, %c0_3] : memref<1x1x48x48xbf16, #tpu.memory_space<vmem>>, vector<1x1x32x48xbf16>
    %4 = vector.shape_cast %3 : vector<1x1x32x48xbf16> to vector<32x48xbf16>
    %c0_4 = arith.constant 0 : index
    %c0_5 = arith.constant 0 : index
    %c0_6 = arith.constant 0 : index
    %c0_7 = arith.constant 0 : index
    %5 = vector.load %arg4[%c0_4, %c0_5, %c0_6, %c0_7] : memref<1x3x48x16xbf16, #tpu.memory_space<vmem>>, vector<1x1x48x16xbf16>
    %6 = vector.shape_cast %5 : vector<1x1x48x16xbf16> to vector<48x16xbf16>
    %cst = arith.constant dense<0.000000e+00> : vector<32x16xf32>
    %7 = tpu.matmul %4, %6, %cst {dimension_numbers = #tpu.dot_dimension_numbers<[1], [0], [0], [1], [0, 0, 1, 1], [], []>} : vector<32x48xbf16>, vector<48x16xbf16>, vector<32x16xf32> -> vector<32x16xf32>
    %c0_8 = arith.constant 0 : index
    %c0_9 = arith.constant 0 : index
    %c8 = arith.constant 8 : index
    %c0_10 = arith.constant 0 : index
    %8 = vector.load %arg3[%c0_8, %c0_9, %c8, %c0_10] : memref<1x1x48x48xbf16, #tpu.memory_space<vmem>>, vector<1x1x32x48xbf16>
    %9 = vector.shape_cast %8 : vector<1x1x32x48xbf16> to vector<32x48xbf16>
    %c0_11 = arith.constant 0 : index
    %c1 = arith.constant 1 : index
    %c0_12 = arith.constant 0 : index
    %c0_13 = arith.constant 0 : index
    %10 = vector.load %arg4[%c0_11, %c1, %c0_12, %c0_13] : memref<1x3x48x16xbf16, #tpu.memory_space<vmem>>, vector<1x1x48x16xbf16>
    %11 = vector.shape_cast %10 : vector<1x1x48x16xbf16> to vector<48x16xbf16>
    %cst_14 = arith.constant dense<0.000000e+00> : vector<32x16xf32>
    %12 = tpu.matmul %9, %11, %cst_14 {dimension_numbers = #tpu.dot_dimension_numbers<[1], [0], [0], [1], [0, 0, 1, 1], [], []>} : vector<32x48xbf16>, vector<48x16xbf16>, vector<32x16xf32> -> vector<32x16xf32>
    %13 = arith.addf %7, %12 : vector<32x16xf32>
    %c0_15 = arith.constant 0 : index
    %c0_16 = arith.constant 0 : index
    %c16 = arith.constant 16 : index
    %c0_17 = arith.constant 0 : index
    %14 = vector.load %arg3[%c0_15, %c0_16, %c16, %c0_17] : memref<1x1x48x48xbf16, #tpu.memory_space<vmem>>, vector<1x1x32x48xbf16>
    %15 = vector.shape_cast %14 : vector<1x1x32x48xbf16> to vector<32x48xbf16>
    %c0_18 = arith.constant 0 : index
    %c2 = arith.constant 2 : index
    %c0_19 = arith.constant 0 : index
    %c0_20 = arith.constant 0 : index
    %16 = vector.load %arg4[%c0_18, %c2, %c0_19, %c0_20] : memref<1x3x48x16xbf16, #tpu.memory_space<vmem>>, vector<1x1x48x16xbf16>
    %17 = vector.shape_cast %16 : vector<1x1x48x16xbf16> to vector<48x16xbf16>
    %cst_21 = arith.constant dense<0.000000e+00> : vector<32x16xf32>
    %18 = tpu.matmul %15, %17, %cst_21 {dimension_numbers = #tpu.dot_dimension_numbers<[1], [0], [0], [1], [0, 0, 1, 1], [], []>} : vector<32x48xbf16>, vector<48x16xbf16>, vector<32x16xf32> -> vector<32x16xf32>
    %19 = arith.addf %13, %18 : vector<32x16xf32>
    %c0_22 = arith.constant 0 : index
    %c0_23 = arith.constant 0 : index
    %20 = vector.load %arg7[%c0_22, %c0_23] : memref<32x16xf32, #tpu.memory_space<vmem>>, vector<32x16xf32>
    %21 = arith.addf %20, %19 : vector<32x16xf32>
    %c0_24 = arith.constant 0 : index
    %c0_25 = arith.constant 0 : index
    %22 = vector.load %arg7[%c0_24, %c0_25] : memref<32x16xf32, #tpu.memory_space<vmem>>, vector<32x16xf32>
    tpu.vector_store %arg7[%c0_24, %c0_25], %21 {strides = array<i32>} : memref<32x16xf32, #tpu.memory_space<vmem>>, vector<32x16xf32>,
    %c2_i32 = arith.constant 2 : i32
    %23 = arith.cmpi eq, %arg2, %c2_i32 : i32
    %24 = arith.extui %23 : i1 to i32
    %c0_i32_26 = arith.constant 0 : i32
    %25 = arith.cmpi ne, %24, %c0_i32_26 : i32
    scf.if %25 {
      %c0_27 = arith.constant 0 : index
      %c0_28 = arith.constant 0 : index
      %26 = vector.load %arg7[%c0_27, %c0_28] : memref<32x16xf32, #tpu.memory_space<vmem>>, vector<32x16xf32>
      %c0_29 = arith.constant 0 : index
      %c0_30 = arith.constant 0 : index
      %27 = vector.load %arg5[%c0_29, %c0_30] : memref<1x16xf32, #tpu.memory_space<vmem>>, vector<1x16xf32>
      %28 = vector.broadcast %27 : vector<1x16xf32> to vector<32x16xf32>
      %29 = arith.addf %26, %28 : vector<32x16xf32>
      %30 = arith.truncf %29 : vector<32x16xf32> to vector<32x16xbf16>
      %c0_31 = arith.constant 0 : index
      %c0_32 = arith.constant 0 : index
      %c0_33 = arith.constant 0 : index
      %c0_34 = arith.constant 0 : index
      %31 = vector.load %arg6[%c0_31, %c0_32, %c0_33, %c0_34] : memref<1x1x32x16xbf16, #tpu.memory_space<vmem>>, vector<1x1x32x16xbf16>
      %32 = vector.shape_cast %31 : vector<1x1x32x16xbf16> to vector<32x16xbf16>
      %33 = vector.shape_cast %30 : vector<32x16xbf16> to vector<1x1x32x16xbf16>
      tpu.vector_store %arg6[%c0_31, %c0_32, %c0_33, %c0_34], %33 {strides = array<i32>} : memref<1x1x32x16xbf16, #tpu.memory_space<vmem>>, vector<1x1x32x16xbf16>,
    } else {
    }
    return
  }
  func.func @transform_0(%arg0: i32, %arg1: i32, %arg2: i32) -> (i32, i32, i32, i32) {
    %0 = arith.addi %arg1, %arg2 : i32
    %c0_i32 = arith.constant 0 : i32
    %c0_i32_0 = arith.constant 0 : i32
    %c0_i32_1 = arith.constant 0 : i32
    return %arg0, %0, %c0_i32, %c0_i32_0 : i32, i32, i32, i32
  }
  func.func @transform_1(%arg0: i32, %arg1: i32, %arg2: i32) -> (i32, i32, i32, i32) {
    %c0_i32 = arith.constant 0 : i32
    %c0_i32_0 = arith.constant 0 : i32
    %c0_i32_1 = arith.constant 0 : i32
    %c0_i32_2 = arith.constant 0 : i32
    return %arg2, %c0_i32, %c0_i32_0, %c0_i32_1 : i32, i32, i32, i32
  }
  func.func @transform_2(%arg0: i32, %arg1: i32, %arg2: i32) -> (i32, i32) {
    %c0_i32 = arith.constant 0 : i32
    %c0_i32_0 = arith.constant 0 : i32
    %c0_i32_1 = arith.constant 0 : i32
    return %c0_i32, %c0_i32_0 : i32, i32
  }
  func.func @transform_3(%arg0: i32, %arg1: i32, %arg2: i32) -> (i32, i32, i32, i32) {
    %c0_i32 = arith.constant 0 : i32
    %c0_i32_0 = arith.constant 0 : i32
    %c0_i32_1 = arith.constant 0 : i32
    return %arg0, %arg1, %c0_i32, %c0_i32_0 : i32, i32, i32, i32
  }
}

module attributes {stable_mosaic.version = 11 : i64} {
  func.func @_gn_norm_kernel(%arg0: i32, %arg1: i32, %arg2: memref<1x32x16xbf16, #tpu.memory_space<vmem>>, %arg3: memref<1x1x16xf32, #tpu.memory_space<vmem>>, %arg4: memref<1x1x16xf32, #tpu.memory_space<vmem>>, %arg5: memref<1x1x16xf32, #tpu.memory_space<vmem>>, %arg6: memref<1x1x16xf32, #tpu.memory_space<vmem>>, %arg7: memref<1x32x16xbf16, #tpu.memory_space<vmem>>) attributes {dimension_semantics = [#tpu.dimension_semantics<parallel>, #tpu.dimension_semantics<parallel>], iteration_bounds = array<i64: 2, 2>, scalar_prefetch = 0 : i64, scratch_operands = 0 : i64, tpu.core_type = #tpu.core_type<tc>, window_params = [{transform_indices = @transform_0, window_bounds = array<i64: 1, 32, 16>}, {transform_indices = @transform_1, window_bounds = array<i64: 1, 1, 16>}, {transform_indices = @transform_2, window_bounds = array<i64: 1, 1, 16>}, {pipeline_mode = #tpu.pipeline_mode<synchronous>, transform_indices = @transform_3, window_bounds = array<i64: 1, 1, 16>}, {pipeline_mode = #tpu.pipeline_mode<synchronous>, transform_indices = @transform_4, window_bounds = array<i64: 1, 1, 16>}, {transform_indices = @transform_5, window_bounds = array<i64: 1, 32, 16>}]} {
    %c0 = arith.constant 0 : index
    %c0_0 = arith.constant 0 : index
    %c0_1 = arith.constant 0 : index
    %0 = vector.load %arg2[%c0, %c0_0, %c0_1] : memref<1x32x16xbf16, #tpu.memory_space<vmem>>, vector<1x32x16xbf16>
    %1 = vector.shape_cast %0 : vector<1x32x16xbf16> to vector<32x16xbf16>
    %2 = arith.extf %1 : vector<32x16xbf16> to vector<32x16xf32>
    %c0_2 = arith.constant 0 : index
    %c0_3 = arith.constant 0 : index
    %c0_4 = arith.constant 0 : index
    %3 = vector.load %arg3[%c0_2, %c0_3, %c0_4] : memref<1x1x16xf32, #tpu.memory_space<vmem>>, vector<1x1x16xf32>
    %4 = vector.shape_cast %3 : vector<1x1x16xf32> to vector<1x16xf32>
    %5 = vector.broadcast %4 : vector<1x16xf32> to vector<32x16xf32>
    %6 = arith.subf %2, %5 : vector<32x16xf32>
    %c0_5 = arith.constant 0 : index
    %c0_6 = arith.constant 0 : index
    %c0_7 = arith.constant 0 : index
    %7 = vector.load %arg4[%c0_5, %c0_6, %c0_7] : memref<1x1x16xf32, #tpu.memory_space<vmem>>, vector<1x1x16xf32>
    %8 = vector.shape_cast %7 : vector<1x1x16xf32> to vector<1x16xf32>
    %9 = vector.broadcast %8 : vector<1x16xf32> to vector<32x16xf32>
    %10 = arith.mulf %6, %9 : vector<32x16xf32>
    %c0_8 = arith.constant 0 : index
    %c0_9 = arith.constant 0 : index
    %c0_10 = arith.constant 0 : index
    %11 = vector.load %arg5[%c0_8, %c0_9, %c0_10] : memref<1x1x16xf32, #tpu.memory_space<vmem>>, vector<1x1x16xf32>
    %12 = vector.shape_cast %11 : vector<1x1x16xf32> to vector<1x16xf32>
    %13 = vector.broadcast %12 : vector<1x16xf32> to vector<32x16xf32>
    %14 = arith.mulf %10, %13 : vector<32x16xf32>
    %c0_11 = arith.constant 0 : index
    %c0_12 = arith.constant 0 : index
    %c0_13 = arith.constant 0 : index
    %15 = vector.load %arg6[%c0_11, %c0_12, %c0_13] : memref<1x1x16xf32, #tpu.memory_space<vmem>>, vector<1x1x16xf32>
    %16 = vector.shape_cast %15 : vector<1x1x16xf32> to vector<1x16xf32>
    %17 = vector.broadcast %16 : vector<1x16xf32> to vector<32x16xf32>
    %18 = arith.addf %14, %17 : vector<32x16xf32>
    %19 = arith.truncf %18 : vector<32x16xf32> to vector<32x16xbf16>
    %c0_14 = arith.constant 0 : index
    %c0_15 = arith.constant 0 : index
    %c0_16 = arith.constant 0 : index
    %20 = vector.load %arg7[%c0_14, %c0_15, %c0_16] : memref<1x32x16xbf16, #tpu.memory_space<vmem>>, vector<1x32x16xbf16>
    %21 = vector.shape_cast %20 : vector<1x32x16xbf16> to vector<32x16xbf16>
    %22 = vector.shape_cast %19 : vector<32x16xbf16> to vector<1x32x16xbf16>
    tpu.vector_store %arg7[%c0_14, %c0_15, %c0_16], %22 {strides = array<i32>} : memref<1x32x16xbf16, #tpu.memory_space<vmem>>, vector<1x32x16xbf16>,
    return
  }
  func.func @transform_0(%arg0: i32, %arg1: i32) -> (i32, i32, i32) {
    %c0_i32 = arith.constant 0 : i32
    %c0_i32_0 = arith.constant 0 : i32
    return %arg0, %arg1, %c0_i32 : i32, i32, i32
  }
  func.func @transform_1(%arg0: i32, %arg1: i32) -> (i32, i32, i32) {
    %c0_i32 = arith.constant 0 : i32
    %c0_i32_0 = arith.constant 0 : i32
    %c0_i32_1 = arith.constant 0 : i32
    return %arg0, %c0_i32, %c0_i32_0 : i32, i32, i32
  }
  func.func @transform_2(%arg0: i32, %arg1: i32) -> (i32, i32, i32) {
    %c0_i32 = arith.constant 0 : i32
    %c0_i32_0 = arith.constant 0 : i32
    %c0_i32_1 = arith.constant 0 : i32
    return %arg0, %c0_i32, %c0_i32_0 : i32, i32, i32
  }
  func.func @transform_3(%arg0: i32, %arg1: i32) -> (i32, i32, i32) {
    %c0_i32 = arith.constant 0 : i32
    %c0_i32_0 = arith.constant 0 : i32
    %c0_i32_1 = arith.constant 0 : i32
    %c0_i32_2 = arith.constant 0 : i32
    return %c0_i32, %c0_i32_0, %c0_i32_1 : i32, i32, i32
  }
  func.func @transform_4(%arg0: i32, %arg1: i32) -> (i32, i32, i32) {
    %c0_i32 = arith.constant 0 : i32
    %c0_i32_0 = arith.constant 0 : i32
    %c0_i32_1 = arith.constant 0 : i32
    %c0_i32_2 = arith.constant 0 : i32
    return %c0_i32, %c0_i32_0, %c0_i32_1 : i32, i32, i32
  }
  func.func @transform_5(%arg0: i32, %arg1: i32) -> (i32, i32, i32) {
    %c0_i32 = arith.constant 0 : i32
    %c0_i32_0 = arith.constant 0 : i32
    return %arg0, %arg1, %c0_i32 : i32, i32, i32
  }
}

module attributes {stable_mosaic.version = 11 : i64} {
  func.func @_qkv_kernel(%arg0: i32, %arg1: i32, %arg2: memref<64x16xbf16, #tpu.memory_space<vmem>>, %arg3: memref<1x16x16xbf16, #tpu.memory_space<vmem>>, %arg4: memref<1x1x16xf32, #tpu.memory_space<vmem>>, %arg5: memref<1x64x16xbf16, #tpu.memory_space<vmem>>) attributes {dimension_semantics = [#tpu.dimension_semantics<parallel>, #tpu.dimension_semantics<parallel>], iteration_bounds = array<i64: 3, 2>, scalar_prefetch = 0 : i64, scratch_operands = 0 : i64, tpu.core_type = #tpu.core_type<tc>, window_params = [{transform_indices = @transform_0, window_bounds = array<i64: 64, 16>}, {transform_indices = @transform_1, window_bounds = array<i64: 1, 16, 16>}, {transform_indices = @transform_2, window_bounds = array<i64: 1, 1, 16>}, {transform_indices = @transform_3, window_bounds = array<i64: 1, 64, 16>}]} {
    %c0 = arith.constant 0 : index
    %c0_0 = arith.constant 0 : index
    %0 = vector.load %arg2[%c0, %c0_0] : memref<64x16xbf16, #tpu.memory_space<vmem>>, vector<64x16xbf16>
    %c0_1 = arith.constant 0 : index
    %c0_2 = arith.constant 0 : index
    %c0_3 = arith.constant 0 : index
    %1 = vector.load %arg3[%c0_1, %c0_2, %c0_3] : memref<1x16x16xbf16, #tpu.memory_space<vmem>>, vector<1x16x16xbf16>
    %2 = vector.shape_cast %1 : vector<1x16x16xbf16> to vector<16x16xbf16>
    %cst = arith.constant dense<0.000000e+00> : vector<64x16xf32>
    %3 = tpu.matmul %0, %2, %cst {dimension_numbers = #tpu.dot_dimension_numbers<[1], [0], [0], [1], [0, 0, 1, 1], [], []>} : vector<64x16xbf16>, vector<16x16xbf16>, vector<64x16xf32> -> vector<64x16xf32>
    %c0_4 = arith.constant 0 : index
    %c0_5 = arith.constant 0 : index
    %c0_6 = arith.constant 0 : index
    %4 = vector.load %arg4[%c0_4, %c0_5, %c0_6] : memref<1x1x16xf32, #tpu.memory_space<vmem>>, vector<1x1x16xf32>
    %5 = vector.shape_cast %4 : vector<1x1x16xf32> to vector<1x16xf32>
    %6 = vector.broadcast %5 : vector<1x16xf32> to vector<64x16xf32>
    %7 = arith.addf %3, %6 : vector<64x16xf32>
    %8 = arith.truncf %7 : vector<64x16xf32> to vector<64x16xbf16>
    %c0_7 = arith.constant 0 : index
    %c0_8 = arith.constant 0 : index
    %c0_9 = arith.constant 0 : index
    %9 = vector.load %arg5[%c0_7, %c0_8, %c0_9] : memref<1x64x16xbf16, #tpu.memory_space<vmem>>, vector<1x64x16xbf16>
    %10 = vector.shape_cast %9 : vector<1x64x16xbf16> to vector<64x16xbf16>
    %11 = vector.shape_cast %8 : vector<64x16xbf16> to vector<1x64x16xbf16>
    tpu.vector_store %arg5[%c0_7, %c0_8, %c0_9], %11 {strides = array<i32>} : memref<1x64x16xbf16, #tpu.memory_space<vmem>>, vector<1x64x16xbf16>,
    return
  }
  func.func @transform_0(%arg0: i32, %arg1: i32) -> (i32, i32) {
    %c0_i32 = arith.constant 0 : i32
    %c0_i32_0 = arith.constant 0 : i32
    return %arg1, %c0_i32 : i32, i32
  }
  func.func @transform_1(%arg0: i32, %arg1: i32) -> (i32, i32, i32) {
    %c0_i32 = arith.constant 0 : i32
    %c0_i32_0 = arith.constant 0 : i32
    %c0_i32_1 = arith.constant 0 : i32
    return %arg0, %c0_i32, %c0_i32_0 : i32, i32, i32
  }
  func.func @transform_2(%arg0: i32, %arg1: i32) -> (i32, i32, i32) {
    %c0_i32 = arith.constant 0 : i32
    %c0_i32_0 = arith.constant 0 : i32
    %c0_i32_1 = arith.constant 0 : i32
    return %arg0, %c0_i32, %c0_i32_0 : i32, i32, i32
  }
  func.func @transform_3(%arg0: i32, %arg1: i32) -> (i32, i32, i32) {
    %c0_i32 = arith.constant 0 : i32
    %c0_i32_0 = arith.constant 0 : i32
    return %arg0, %arg1, %c0_i32 : i32, i32, i32
  }
}

module attributes {stable_mosaic.version = 11 : i64} {
  func.func @_flash_attn_kernel(%arg0: i32, %arg1: i32, %arg2: i32, %arg3: memref<1x1x64x16xbf16, #tpu.memory_space<vmem>>, %arg4: memref<1x1x64x16xbf16, #tpu.memory_space<vmem>>, %arg5: memref<1x1x64x16xbf16, #tpu.memory_space<vmem>>, %arg6: memref<1x64x16xbf16, #tpu.memory_space<vmem>>, %arg7: memref<64x1xf32, #tpu.memory_space<vmem>>, %arg8: memref<64x1xf32, #tpu.memory_space<vmem>>, %arg9: memref<64x16xf32, #tpu.memory_space<vmem>>) attributes {dimension_semantics = [#tpu.dimension_semantics<parallel>, #tpu.dimension_semantics<parallel>, #tpu.dimension_semantics<arbitrary>], iteration_bounds = array<i64: 2, 1, 1>, scalar_prefetch = 0 : i64, scratch_operands = 3 : i64, tpu.core_type = #tpu.core_type<tc>, window_params = [{transform_indices = @transform_0, window_bounds = array<i64: 1, 1, 64, 16>}, {transform_indices = @transform_1, window_bounds = array<i64: 1, 1, 64, 16>}, {transform_indices = @transform_2, window_bounds = array<i64: 1, 1, 64, 16>}, {transform_indices = @transform_3, window_bounds = array<i64: 1, 64, 16>}]} {
    %c0_i32 = arith.constant 0 : i32
    %0 = arith.cmpi eq, %arg2, %c0_i32 : i32
    %1 = arith.extui %0 : i1 to i32
    %c0_i32_0 = arith.constant 0 : i32
    %2 = arith.cmpi ne, %1, %c0_i32_0 : i32
    scf.if %2 {
      %cst_30 = arith.constant 0xFF800000 : f32
      %38 = vector.broadcast %cst_30 : f32 to vector<64x1xf32>
      %c0_31 = arith.constant 0 : index
      %c0_32 = arith.constant 0 : index
      %39 = vector.load %arg7[%c0_31, %c0_32] : memref<64x1xf32, #tpu.memory_space<vmem>>, vector<64x1xf32>
      tpu.vector_store %arg7[%c0_31, %c0_32], %38 {strides = array<i32>} : memref<64x1xf32, #tpu.memory_space<vmem>>, vector<64x1xf32>,
      %cst_33 = arith.constant 0.000000e+00 : f32
      %40 = vector.broadcast %cst_33 : f32 to vector<64x1xf32>
      %c0_34 = arith.constant 0 : index
      %c0_35 = arith.constant 0 : index
      %41 = vector.load %arg8[%c0_34, %c0_35] : memref<64x1xf32, #tpu.memory_space<vmem>>, vector<64x1xf32>
      tpu.vector_store %arg8[%c0_34, %c0_35], %40 {strides = array<i32>} : memref<64x1xf32, #tpu.memory_space<vmem>>, vector<64x1xf32>,
      %cst_36 = arith.constant 0.000000e+00 : f32
      %42 = vector.broadcast %cst_36 : f32 to vector<64x16xf32>
      %c0_37 = arith.constant 0 : index
      %c0_38 = arith.constant 0 : index
      %43 = vector.load %arg9[%c0_37, %c0_38] : memref<64x16xf32, #tpu.memory_space<vmem>>, vector<64x16xf32>
      tpu.vector_store %arg9[%c0_37, %c0_38], %42 {strides = array<i32>} : memref<64x16xf32, #tpu.memory_space<vmem>>, vector<64x16xf32>,
    } else {
    }
    %c0 = arith.constant 0 : index
    %c0_1 = arith.constant 0 : index
    %c0_2 = arith.constant 0 : index
    %c0_3 = arith.constant 0 : index
    %3 = vector.load %arg3[%c0, %c0_1, %c0_2, %c0_3] : memref<1x1x64x16xbf16, #tpu.memory_space<vmem>>, vector<1x1x64x16xbf16>
    %4 = vector.shape_cast %3 : vector<1x1x64x16xbf16> to vector<64x16xbf16>
    %c0_4 = arith.constant 0 : index
    %c0_5 = arith.constant 0 : index
    %c0_6 = arith.constant 0 : index
    %c0_7 = arith.constant 0 : index
    %5 = vector.load %arg4[%c0_4, %c0_5, %c0_6, %c0_7] : memref<1x1x64x16xbf16, #tpu.memory_space<vmem>>, vector<1x1x64x16xbf16>
    %6 = vector.shape_cast %5 : vector<1x1x64x16xbf16> to vector<64x16xbf16>
    %c0_8 = arith.constant 0 : index
    %c0_9 = arith.constant 0 : index
    %c0_10 = arith.constant 0 : index
    %c0_11 = arith.constant 0 : index
    %7 = vector.load %arg5[%c0_8, %c0_9, %c0_10, %c0_11] : memref<1x1x64x16xbf16, #tpu.memory_space<vmem>>, vector<1x1x64x16xbf16>
    %8 = vector.shape_cast %7 : vector<1x1x64x16xbf16> to vector<64x16xbf16>
    %cst = arith.constant dense<0.000000e+00> : vector<64x64xf32>
    %9 = tpu.matmul %4, %6, %cst {dimension_numbers = #tpu.dot_dimension_numbers<[1], [1], [0], [0], [0, 0, 1, 0], [], []>} : vector<64x16xbf16>, vector<64x16xbf16>, vector<64x64xf32> -> vector<64x64xf32>
    %cst_12 = arith.constant 2.500000e-01 : f32
    %10 = vector.broadcast %cst_12 : f32 to vector<64x64xf32>
    %11 = arith.mulf %9, %10 : vector<64x64xf32>
    %c0_13 = arith.constant 0 : index
    %c0_14 = arith.constant 0 : index
    %12 = vector.load %arg7[%c0_13, %c0_14] : memref<64x1xf32, #tpu.memory_space<vmem>>, vector<64x1xf32>
    %cst_15 = arith.constant dense<0xFF800000> : vector<64xf32>
    %13 = vector.multi_reduction <maximumf>, %11, %cst_15 [1] : vector<64x64xf32> to vector<64xf32>
    %14 = vector.shape_cast %13 : vector<64xf32> to vector<64x1xf32>
    %15 = arith.maximumf %12, %14 : vector<64x1xf32>
    %16 = arith.subf %12, %15 : vector<64x1xf32>
    %17 = math.exp %16 : vector<64x1xf32>
    %18 = vector.broadcast %15 : vector<64x1xf32> to vector<64x64xf32>
    %19 = arith.subf %11, %18 : vector<64x64xf32>
    %20 = math.exp %19 : vector<64x64xf32>
    %c0_16 = arith.constant 0 : index
    %c0_17 = arith.constant 0 : index
    %21 = vector.load %arg8[%c0_16, %c0_17] : memref<64x1xf32, #tpu.memory_space<vmem>>, vector<64x1xf32>
    %22 = arith.mulf %17, %21 : vector<64x1xf32>
    %cst_18 = arith.constant dense<0.000000e+00> : vector<64xf32>
    %23 = vector.multi_reduction <add>, %20, %cst_18 [1] : vector<64x64xf32> to vector<64xf32>
    %24 = vector.shape_cast %23 : vector<64xf32> to vector<64x1xf32>
    %25 = arith.addf %22, %24 : vector<64x1xf32>
    %c0_19 = arith.constant 0 : index
    %c0_20 = arith.constant 0 : index
    %26 = vector.load %arg8[%c0_19, %c0_20] : memref<64x1xf32, #tpu.memory_space<vmem>>, vector<64x1xf32>
    tpu.vector_store %arg8[%c0_19, %c0_20], %25 {strides = array<i32>} : memref<64x1xf32, #tpu.memory_space<vmem>>, vector<64x1xf32>,
    %c0_21 = arith.constant 0 : index
    %c0_22 = arith.constant 0 : index
    %27 = vector.load %arg9[%c0_21, %c0_22] : memref<64x16xf32, #tpu.memory_space<vmem>>, vector<64x16xf32>
    %28 = vector.broadcast %17 : vector<64x1xf32> to vector<64x16xf32>
    %29 = arith.mulf %28, %27 : vector<64x16xf32>
    %30 = arith.truncf %20 : vector<64x64xf32> to vector<64x64xbf16>
    %cst_23 = arith.constant dense<0.000000e+00> : vector<64x16xf32>
    %31 = tpu.matmul %30, %8, %cst_23 {dimension_numbers = #tpu.dot_dimension_numbers<[1], [0], [0], [1], [0, 0, 1, 1], [], []>} : vector<64x64xbf16>, vector<64x16xbf16>, vector<64x16xf32> -> vector<64x16xf32>
    %32 = arith.addf %29, %31 : vector<64x16xf32>
    %c0_24 = arith.constant 0 : index
    %c0_25 = arith.constant 0 : index
    %33 = vector.load %arg9[%c0_24, %c0_25] : memref<64x16xf32, #tpu.memory_space<vmem>>, vector<64x16xf32>
    tpu.vector_store %arg9[%c0_24, %c0_25], %32 {strides = array<i32>} : memref<64x16xf32, #tpu.memory_space<vmem>>, vector<64x16xf32>,
    %c0_26 = arith.constant 0 : index
    %c0_27 = arith.constant 0 : index
    %34 = vector.load %arg7[%c0_26, %c0_27] : memref<64x1xf32, #tpu.memory_space<vmem>>, vector<64x1xf32>
    tpu.vector_store %arg7[%c0_26, %c0_27], %15 {strides = array<i32>} : memref<64x1xf32, #tpu.memory_space<vmem>>, vector<64x1xf32>,
    %c0_i32_28 = arith.constant 0 : i32
    %35 = arith.cmpi eq, %arg2, %c0_i32_28 : i32
    %36 = arith.extui %35 : i1 to i32
    %c0_i32_29 = arith.constant 0 : i32
    %37 = arith.cmpi ne, %36, %c0_i32_29 : i32
    scf.if %37 {
      %c0_30 = arith.constant 0 : index
      %c0_31 = arith.constant 0 : index
      %38 = vector.load %arg9[%c0_30, %c0_31] : memref<64x16xf32, #tpu.memory_space<vmem>>, vector<64x16xf32>
      %c0_32 = arith.constant 0 : index
      %c0_33 = arith.constant 0 : index
      %39 = vector.load %arg8[%c0_32, %c0_33] : memref<64x1xf32, #tpu.memory_space<vmem>>, vector<64x1xf32>
      %40 = vector.broadcast %39 : vector<64x1xf32> to vector<64x16xf32>
      %41 = arith.divf %38, %40 : vector<64x16xf32>
      %42 = arith.truncf %41 : vector<64x16xf32> to vector<64x16xbf16>
      %c0_34 = arith.constant 0 : index
      %c0_35 = arith.constant 0 : index
      %c0_36 = arith.constant 0 : index
      %43 = vector.load %arg6[%c0_34, %c0_35, %c0_36] : memref<1x64x16xbf16, #tpu.memory_space<vmem>>, vector<1x64x16xbf16>
      %44 = vector.shape_cast %43 : vector<1x64x16xbf16> to vector<64x16xbf16>
      %45 = vector.shape_cast %42 : vector<64x16xbf16> to vector<1x64x16xbf16>
      tpu.vector_store %arg6[%c0_34, %c0_35, %c0_36], %45 {strides = array<i32>} : memref<1x64x16xbf16, #tpu.memory_space<vmem>>, vector<1x64x16xbf16>,
    } else {
    }
    return
  }
  func.func @transform_0(%arg0: i32, %arg1: i32, %arg2: i32) -> (i32, i32, i32, i32) {
    %c0_i32 = arith.constant 0 : i32
    %c0_i32_0 = arith.constant 0 : i32
    %c0_i32_1 = arith.constant 0 : i32
    return %c0_i32, %arg0, %arg1, %c0_i32_0 : i32, i32, i32, i32
  }
  func.func @transform_1(%arg0: i32, %arg1: i32, %arg2: i32) -> (i32, i32, i32, i32) {
    %c1_i32 = arith.constant 1 : i32
    %c0_i32 = arith.constant 0 : i32
    %c0_i32_0 = arith.constant 0 : i32
    return %c1_i32, %arg0, %arg2, %c0_i32 : i32, i32, i32, i32
  }
  func.func @transform_2(%arg0: i32, %arg1: i32, %arg2: i32) -> (i32, i32, i32, i32) {
    %c2_i32 = arith.constant 2 : i32
    %c0_i32 = arith.constant 0 : i32
    %c0_i32_0 = arith.constant 0 : i32
    return %c2_i32, %arg0, %arg2, %c0_i32 : i32, i32, i32, i32
  }
  func.func @transform_3(%arg0: i32, %arg1: i32, %arg2: i32) -> (i32, i32, i32) {
    %c0_i32 = arith.constant 0 : i32
    %c0_i32_0 = arith.constant 0 : i32
    return %arg0, %arg1, %c0_i32 : i32, i32, i32
  }
}

module attributes {stable_mosaic.version = 11 : i64} {
  func.func @_gemm_res_kernel(%arg0: i32, %arg1: memref<64x16xbf16, #tpu.memory_space<vmem>>, %arg2: memref<16x16xbf16, #tpu.memory_space<vmem>>, %arg3: memref<1x16xf32, #tpu.memory_space<vmem>>, %arg4: memref<64x16xbf16, #tpu.memory_space<vmem>>, %arg5: memref<64x16xbf16, #tpu.memory_space<vmem>>) attributes {dimension_semantics = [#tpu.dimension_semantics<parallel>], iteration_bounds = array<i64: 2>, scalar_prefetch = 0 : i64, scratch_operands = 0 : i64, tpu.core_type = #tpu.core_type<tc>, window_params = [{transform_indices = @transform_0, window_bounds = array<i64: 64, 16>}, {pipeline_mode = #tpu.pipeline_mode<synchronous>, transform_indices = @transform_1, window_bounds = array<i64: 16, 16>}, {pipeline_mode = #tpu.pipeline_mode<synchronous>, transform_indices = @transform_2, window_bounds = array<i64: 1, 16>}, {transform_indices = @transform_3, window_bounds = array<i64: 64, 16>}, {transform_indices = @transform_4, window_bounds = array<i64: 64, 16>}]} {
    %c0 = arith.constant 0 : index
    %c0_0 = arith.constant 0 : index
    %0 = vector.load %arg1[%c0, %c0_0] : memref<64x16xbf16, #tpu.memory_space<vmem>>, vector<64x16xbf16>
    %c0_1 = arith.constant 0 : index
    %c0_2 = arith.constant 0 : index
    %1 = vector.load %arg2[%c0_1, %c0_2] : memref<16x16xbf16, #tpu.memory_space<vmem>>, vector<16x16xbf16>
    %cst = arith.constant dense<0.000000e+00> : vector<64x16xf32>
    %2 = tpu.matmul %0, %1, %cst {dimension_numbers = #tpu.dot_dimension_numbers<[1], [0], [0], [1], [0, 0, 1, 1], [], []>} : vector<64x16xbf16>, vector<16x16xbf16>, vector<64x16xf32> -> vector<64x16xf32>
    %c0_3 = arith.constant 0 : index
    %c0_4 = arith.constant 0 : index
    %3 = vector.load %arg3[%c0_3, %c0_4] : memref<1x16xf32, #tpu.memory_space<vmem>>, vector<1x16xf32>
    %4 = vector.broadcast %3 : vector<1x16xf32> to vector<64x16xf32>
    %5 = arith.addf %2, %4 : vector<64x16xf32>
    %c0_5 = arith.constant 0 : index
    %c0_6 = arith.constant 0 : index
    %6 = vector.load %arg4[%c0_5, %c0_6] : memref<64x16xbf16, #tpu.memory_space<vmem>>, vector<64x16xbf16>
    %7 = arith.extf %6 : vector<64x16xbf16> to vector<64x16xf32>
    %8 = arith.addf %5, %7 : vector<64x16xf32>
    %9 = arith.truncf %8 : vector<64x16xf32> to vector<64x16xbf16>
    %c0_7 = arith.constant 0 : index
    %c0_8 = arith.constant 0 : index
    %10 = vector.load %arg5[%c0_7, %c0_8] : memref<64x16xbf16, #tpu.memory_space<vmem>>, vector<64x16xbf16>
    tpu.vector_store %arg5[%c0_7, %c0_8], %9 {strides = array<i32>} : memref<64x16xbf16, #tpu.memory_space<vmem>>, vector<64x16xbf16>,
    return
  }
  func.func @transform_0(%arg0: i32) -> (i32, i32) {
    %c0_i32 = arith.constant 0 : i32
    %c0_i32_0 = arith.constant 0 : i32
    return %arg0, %c0_i32 : i32, i32
  }
  func.func @transform_1(%arg0: i32) -> (i32, i32) {
    %c0_i32 = arith.constant 0 : i32
    %c0_i32_0 = arith.constant 0 : i32
    %c0_i32_1 = arith.constant 0 : i32
    return %c0_i32, %c0_i32_0 : i32, i32
  }
  func.func @transform_2(%arg0: i32) -> (i32, i32) {
    %c0_i32 = arith.constant 0 : i32
    %c0_i32_0 = arith.constant 0 : i32
    %c0_i32_1 = arith.constant 0 : i32
    return %c0_i32, %c0_i32_0 : i32, i32
  }
  func.func @transform_3(%arg0: i32) -> (i32, i32) {
    %c0_i32 = arith.constant 0 : i32
    %c0_i32_0 = arith.constant 0 : i32
    return %arg0, %c0_i32 : i32, i32
  }
  func.func @transform_4(%arg0: i32) -> (i32, i32) {
    %c0_i32 = arith.constant 0 : i32
    %c0_i32_0 = arith.constant 0 : i32
    return %arg0, %c0_i32 : i32, i32
  }
}

module attributes {stable_mosaic.version = 11 : i64} {
  func.func @_conv_tap_kernel(%arg0: i32, %arg1: i32, %arg2: i32, %arg3: memref<1x1x48x48xbf16, #tpu.memory_space<vmem>>, %arg4: memref<1x3x48x4xbf16, #tpu.memory_space<vmem>>, %arg5: memref<1x4xf32, #tpu.memory_space<vmem>>, %arg6: memref<1x1x32x4xbf16, #tpu.memory_space<vmem>>, %arg7: memref<32x4xf32, #tpu.memory_space<vmem>>) attributes {dimension_semantics = [#tpu.dimension_semantics<parallel>, #tpu.dimension_semantics<parallel>, #tpu.dimension_semantics<arbitrary>], iteration_bounds = array<i64: 2, 4, 3>, scalar_prefetch = 0 : i64, scratch_operands = 1 : i64, tpu.core_type = #tpu.core_type<tc>, window_params = [{transform_indices = @transform_0, window_bounds = array<i64: 1, 1, 48, 48>}, {transform_indices = @transform_1, window_bounds = array<i64: 1, 3, 48, 4>}, {pipeline_mode = #tpu.pipeline_mode<synchronous>, transform_indices = @transform_2, window_bounds = array<i64: 1, 4>}, {transform_indices = @transform_3, window_bounds = array<i64: 1, 1, 32, 4>}]} {
    %c0_i32 = arith.constant 0 : i32
    %0 = arith.cmpi eq, %arg2, %c0_i32 : i32
    %1 = arith.extui %0 : i1 to i32
    %c0_i32_0 = arith.constant 0 : i32
    %2 = arith.cmpi ne, %1, %c0_i32_0 : i32
    scf.if %2 {
      %cst_27 = arith.constant 0.000000e+00 : f32
      %26 = vector.broadcast %cst_27 : f32 to vector<32x4xf32>
      %c0_28 = arith.constant 0 : index
      %c0_29 = arith.constant 0 : index
      %27 = vector.load %arg7[%c0_28, %c0_29] : memref<32x4xf32, #tpu.memory_space<vmem>>, vector<32x4xf32>
      tpu.vector_store %arg7[%c0_28, %c0_29], %26 {strides = array<i32>} : memref<32x4xf32, #tpu.memory_space<vmem>>, vector<32x4xf32>,
    } else {
    }
    %c0 = arith.constant 0 : index
    %c0_1 = arith.constant 0 : index
    %c0_2 = arith.constant 0 : index
    %c0_3 = arith.constant 0 : index
    %3 = vector.load %arg3[%c0, %c0_1, %c0_2, %c0_3] : memref<1x1x48x48xbf16, #tpu.memory_space<vmem>>, vector<1x1x32x48xbf16>
    %4 = vector.shape_cast %3 : vector<1x1x32x48xbf16> to vector<32x48xbf16>
    %c0_4 = arith.constant 0 : index
    %c0_5 = arith.constant 0 : index
    %c0_6 = arith.constant 0 : index
    %c0_7 = arith.constant 0 : index
    %5 = vector.load %arg4[%c0_4, %c0_5, %c0_6, %c0_7] : memref<1x3x48x4xbf16, #tpu.memory_space<vmem>>, vector<1x1x48x4xbf16>
    %6 = vector.shape_cast %5 : vector<1x1x48x4xbf16> to vector<48x4xbf16>
    %cst = arith.constant dense<0.000000e+00> : vector<32x4xf32>
    %7 = tpu.matmul %4, %6, %cst {dimension_numbers = #tpu.dot_dimension_numbers<[1], [0], [0], [1], [0, 0, 1, 1], [], []>} : vector<32x48xbf16>, vector<48x4xbf16>, vector<32x4xf32> -> vector<32x4xf32>
    %c0_8 = arith.constant 0 : index
    %c0_9 = arith.constant 0 : index
    %c8 = arith.constant 8 : index
    %c0_10 = arith.constant 0 : index
    %8 = vector.load %arg3[%c0_8, %c0_9, %c8, %c0_10] : memref<1x1x48x48xbf16, #tpu.memory_space<vmem>>, vector<1x1x32x48xbf16>
    %9 = vector.shape_cast %8 : vector<1x1x32x48xbf16> to vector<32x48xbf16>
    %c0_11 = arith.constant 0 : index
    %c1 = arith.constant 1 : index
    %c0_12 = arith.constant 0 : index
    %c0_13 = arith.constant 0 : index
    %10 = vector.load %arg4[%c0_11, %c1, %c0_12, %c0_13] : memref<1x3x48x4xbf16, #tpu.memory_space<vmem>>, vector<1x1x48x4xbf16>
    %11 = vector.shape_cast %10 : vector<1x1x48x4xbf16> to vector<48x4xbf16>
    %cst_14 = arith.constant dense<0.000000e+00> : vector<32x4xf32>
    %12 = tpu.matmul %9, %11, %cst_14 {dimension_numbers = #tpu.dot_dimension_numbers<[1], [0], [0], [1], [0, 0, 1, 1], [], []>} : vector<32x48xbf16>, vector<48x4xbf16>, vector<32x4xf32> -> vector<32x4xf32>
    %13 = arith.addf %7, %12 : vector<32x4xf32>
    %c0_15 = arith.constant 0 : index
    %c0_16 = arith.constant 0 : index
    %c16 = arith.constant 16 : index
    %c0_17 = arith.constant 0 : index
    %14 = vector.load %arg3[%c0_15, %c0_16, %c16, %c0_17] : memref<1x1x48x48xbf16, #tpu.memory_space<vmem>>, vector<1x1x32x48xbf16>
    %15 = vector.shape_cast %14 : vector<1x1x32x48xbf16> to vector<32x48xbf16>
    %c0_18 = arith.constant 0 : index
    %c2 = arith.constant 2 : index
    %c0_19 = arith.constant 0 : index
    %c0_20 = arith.constant 0 : index
    %16 = vector.load %arg4[%c0_18, %c2, %c0_19, %c0_20] : memref<1x3x48x4xbf16, #tpu.memory_space<vmem>>, vector<1x1x48x4xbf16>
    %17 = vector.shape_cast %16 : vector<1x1x48x4xbf16> to vector<48x4xbf16>
    %cst_21 = arith.constant dense<0.000000e+00> : vector<32x4xf32>
    %18 = tpu.matmul %15, %17, %cst_21 {dimension_numbers = #tpu.dot_dimension_numbers<[1], [0], [0], [1], [0, 0, 1, 1], [], []>} : vector<32x48xbf16>, vector<48x4xbf16>, vector<32x4xf32> -> vector<32x4xf32>
    %19 = arith.addf %13, %18 : vector<32x4xf32>
    %c0_22 = arith.constant 0 : index
    %c0_23 = arith.constant 0 : index
    %20 = vector.load %arg7[%c0_22, %c0_23] : memref<32x4xf32, #tpu.memory_space<vmem>>, vector<32x4xf32>
    %21 = arith.addf %20, %19 : vector<32x4xf32>
    %c0_24 = arith.constant 0 : index
    %c0_25 = arith.constant 0 : index
    %22 = vector.load %arg7[%c0_24, %c0_25] : memref<32x4xf32, #tpu.memory_space<vmem>>, vector<32x4xf32>
    tpu.vector_store %arg7[%c0_24, %c0_25], %21 {strides = array<i32>} : memref<32x4xf32, #tpu.memory_space<vmem>>, vector<32x4xf32>,
    %c2_i32 = arith.constant 2 : i32
    %23 = arith.cmpi eq, %arg2, %c2_i32 : i32
    %24 = arith.extui %23 : i1 to i32
    %c0_i32_26 = arith.constant 0 : i32
    %25 = arith.cmpi ne, %24, %c0_i32_26 : i32
    scf.if %25 {
      %c0_27 = arith.constant 0 : index
      %c0_28 = arith.constant 0 : index
      %26 = vector.load %arg7[%c0_27, %c0_28] : memref<32x4xf32, #tpu.memory_space<vmem>>, vector<32x4xf32>
      %c0_29 = arith.constant 0 : index
      %c0_30 = arith.constant 0 : index
      %27 = vector.load %arg5[%c0_29, %c0_30] : memref<1x4xf32, #tpu.memory_space<vmem>>, vector<1x4xf32>
      %28 = vector.broadcast %27 : vector<1x4xf32> to vector<32x4xf32>
      %29 = arith.addf %26, %28 : vector<32x4xf32>
      %30 = arith.truncf %29 : vector<32x4xf32> to vector<32x4xbf16>
      %c0_31 = arith.constant 0 : index
      %c0_32 = arith.constant 0 : index
      %c0_33 = arith.constant 0 : index
      %c0_34 = arith.constant 0 : index
      %31 = vector.load %arg6[%c0_31, %c0_32, %c0_33, %c0_34] : memref<1x1x32x4xbf16, #tpu.memory_space<vmem>>, vector<1x1x32x4xbf16>
      %32 = vector.shape_cast %31 : vector<1x1x32x4xbf16> to vector<32x4xbf16>
      %33 = vector.shape_cast %30 : vector<32x4xbf16> to vector<1x1x32x4xbf16>
      tpu.vector_store %arg6[%c0_31, %c0_32, %c0_33, %c0_34], %33 {strides = array<i32>} : memref<1x1x32x4xbf16, #tpu.memory_space<vmem>>, vector<1x1x32x4xbf16>,
    } else {
    }
    return
  }
  func.func @transform_0(%arg0: i32, %arg1: i32, %arg2: i32) -> (i32, i32, i32, i32) {
    %0 = arith.addi %arg1, %arg2 : i32
    %c0_i32 = arith.constant 0 : i32
    %c0_i32_0 = arith.constant 0 : i32
    %c0_i32_1 = arith.constant 0 : i32
    return %arg0, %0, %c0_i32, %c0_i32_0 : i32, i32, i32, i32
  }
  func.func @transform_1(%arg0: i32, %arg1: i32, %arg2: i32) -> (i32, i32, i32, i32) {
    %c0_i32 = arith.constant 0 : i32
    %c0_i32_0 = arith.constant 0 : i32
    %c0_i32_1 = arith.constant 0 : i32
    %c0_i32_2 = arith.constant 0 : i32
    return %arg2, %c0_i32, %c0_i32_0, %c0_i32_1 : i32, i32, i32, i32
  }
  func.func @transform_2(%arg0: i32, %arg1: i32, %arg2: i32) -> (i32, i32) {
    %c0_i32 = arith.constant 0 : i32
    %c0_i32_0 = arith.constant 0 : i32
    %c0_i32_1 = arith.constant 0 : i32
    return %c0_i32, %c0_i32_0 : i32, i32
  }
  func.func @transform_3(%arg0: i32, %arg1: i32, %arg2: i32) -> (i32, i32, i32, i32) {
    %c0_i32 = arith.constant 0 : i32
    %c0_i32_0 = arith.constant 0 : i32
    %c0_i32_1 = arith.constant 0 : i32
    return %arg0, %arg1, %c0_i32, %c0_i32_0 : i32, i32, i32, i32
  }
}

</mosaic_0001>

<bundles_post_ra>
// kernel: encoder3d_forward.36
= control target key start
LH: loop header
LB: loop body
LE: loop exit
PB: predicated region body
PF: predicated region fallthrough
CT: control target
= control target key end

     0   :  { %s702_s9 = smov 0   ;;  %s704_s10 = smov 0   ;;  %s850_s0 = inlined_call_operand.vmem [shape: bf16[2,512,8], index: 0, kind: input, shape index: {}]   ;;  %s851_s1 = inlined_call_operand.vmem [shape: f32[2,1,8], index: 1, kind: output, shape index: {0}]   ;;  %s852_s2 = inlined_call_operand.vmem [shape: f32[2,1,8], index: 2, kind: output, shape index: {1}]  }
   0x1   :  { %s706_s11 = smov 0   ;;  %s708_s12 = smov 0  }
   0x2   :  { %s710_s13 = smov 0  }
   0x3 LB: > { %s22_s14 = sadd.s32 1, %s676_s11  ;;  %s25_s15 = sadd.s32 1, %s680_s12  ;;  %s684_s13 = sphi %s710_s13, %s13_s13   ;;  %s680_s12 = sphi %s708_s12, %s856_s12   ;;  %s676_s11 = sphi %s706_s11, %s855_s11   ;;  %s672_s10 = sphi %s704_s10, %s854_s10   ;;  %s668_s9 = sphi %s702_s9, %s853_s9  }
   0x4   : > { %p23_p0 = scmp.ge.s32.totalorder %s22_s14, 2  ;;  %p519_p1 = scmp.ge.s32.totalorder %s684_s13, 1 }
   0x5   : > { %p134_p2 = scmp.lt.s32.totalorder %s684_s13, 5 }
   0x6   : > { %s858_s14 = smov (%p23_p0, %s22_s14), 0  ;;  %s860_s15 = smov (!%p23_p0, %s25_s15), %s680_s12 }
   0x7   : > { %p135_p3 = pnand %p519_p1, %p134_p2  ;;  %p27_p4 = scmp.ge.s32.totalorder %s860_s15, 2 }
   0x8   : > { %s520_s16 = sshll.u32 (!%p135_p3), %s668_s9, 5  ;;  %p162_p5 = scmp.lt.s32.totalorder (!%p135_p3), %s672_s10, 1 }
   0x9   : > { %s862_s15 = smov (%p27_p4, %s860_s15), 0  ;;  %138 = sbr.rel (%p135_p3) target bundleno = 111 (0x6f), region = 24 }
   0xa   : > { %p164_p6 = scmp.lt.s32.totalorder (!%p135_p3), %s520_s16, 63  ;;  %p523_p7 = scmp.ne.s32.totalorder (!%p135_p3), %s668_s9, 0 }
   0xe   : > { %s864_s10 = smov (!%p162_p5, %s672_s10), 1  ;;  %s866_s16 = smov (!%p164_p6, %s520_s16), 63 }
   0xf   : > { %s521_s17 = sshll.u32 %s864_s10, 6  ;;  %s735_s20 = scalar_lea.vmem %s851_s1, %s864_s10 }
  0x10   : > { %s167_s21 = sadd.s32 %s521_s17, %s866_s16  ;;  %s740_s24 = scalar_lea.vmem %s852_s2, %s864_s10 }
  0x11   : > { %s522_s25 = sshll.u32 %s167_s21, 2  ;;  %180 = sbr.rel (%p523_p7) target bundleno = 24 (0x18), region = 28 }
  0x12   : > { %s745_s28 = scalar_lea.vmem %s850_s0, %s522_s25 }
  0x16   : > { %vm181_vm0 = vcmask 57344   ;;  %v686_v0 = vmov 0.0  }
  0x17   : > { %182 = vst.msk [vmem:[%s735_s20] sm:$0x1] %vm181_vm0, %v686_v0  ;;  %183 = vst.msk [vmem:[%s740_s24] sm:$0x1] %vm181_vm0, %v686_v0 }
  0x18 PF: > { %v527_v1 = vld [vmem:[%s745_s28] sm:$0xff]   ;;  %v590_v2 = vld [vmem:[%s745_s28 + $0x8] sm:$0xff]   ;;  %vm249_vm1 = vcmask 64512   ;;  %v591_v6 = vld [vmem:[%s745_s28 + $0x10] sm:$0xff]   ;;  %vm320_vm2 = vcmask 57344  }
  0x19   : > { %v528_v3 = vunpack.c.l.bf16 %v527_v1  ;;  %v529_v4 = vunpack.c.h.bf16 %v527_v1  ;;  %v532_v5 = vunpack.c.l.bf16 %v590_v2  ;;  %v533_v7 = vunpack.c.h.bf16 %v590_v2  ;;  %v592_v14 = vld [vmem:[%s745_s28 + $0x18] sm:$0xff]   ;;  %v593_v21 = vld [vmem:[%s745_s28 + $0x20] sm:$0xff]   ;;  %v594_v27 = vld [vmem:[%s745_s28 + $0x28] sm:$0xff]  }
  0x1a   : > { %v536_v12 = vunpack.c.l.bf16 %v591_v6  ;;  %v537_v16 = vunpack.c.h.bf16 %v591_v6  ;;  %v540_v19 = vunpack.c.l.bf16 %v592_v14  ;;  %v541_v23 = vunpack.c.h.bf16 %v592_v14  ;;  %v595_v34 = vld [vmem:[%s745_s28 + $0x30] sm:$0xff]   ;;  %v596_v50 = vld [vmem:[%s745_s28 + $0x38] sm:$0xff]   ;;  %v597_v63 = vld [vmem:[%s745_s28 + $0x40] sm:$0xff]  }
  0x1b   : > { %v250_v8 = vsel %vm249_vm1, %v528_v3, 0.0  ;;  %v251_v9 = vsel %vm249_vm1, %v529_v4, 0.0  ;;  %v253_v10 = vsel %vm249_vm1, %v532_v5, 0.0  ;;  %v255_v13 = vsel %vm249_vm1, %v533_v7, 0.0 }
  0x1c   : > { %v252_v11 = vadd.f32 %v251_v9, %v250_v8  ;;  %v257_v17 = vsel %vm249_vm1, %v536_v12, 0.0  ;;  %v259_v20 = vsel %vm249_vm1, %v537_v16, 0.0  ;;  %v261_v24 = vsel %vm249_vm1, %v540_v19, 0.0 }
  0x1d   : > { %v544_v26 = vunpack.c.l.bf16 %v593_v21  ;;  %v263_v28 = vsel %vm249_vm1, %v541_v23, 0.0  ;;  %v545_v30 = vunpack.c.h.bf16 %v593_v21  ;;  %v548_v32 = vunpack.c.l.bf16 %v594_v27 }
  0x1e   : > { %v254_v15 = vadd.f32 %v253_v10, %v252_v11  ;;  %v323_v36 = vmul.f32 %v528_v3, %v528_v3  ;;  %v324_v37 = vmul.f32 %v529_v4, %v529_v4  ;;  %v325_v38 = vmul.f32 %v532_v5, %v532_v5 }
  0x1f   : > { %v265_v31 = vsel %vm249_vm1, %v544_v26, 0.0  ;;  %v267_v35 = vsel %vm249_vm1, %v545_v30, 0.0  ;;  %v549_v39 = vunpack.c.h.bf16 %v594_v27  ;;  %v269_v41 = vsel %vm249_vm1, %v548_v32, 0.0 }
  0x20   : > { %v256_v18 = vadd.f32 %v255_v13, %v254_v15  ;;  %v326_v42 = vmul.f32 %v533_v7, %v533_v7  ;;  %v552_v43 = vunpack.c.l.bf16 %v595_v34  ;;  %v327_v46 = vmul.f32 %v536_v12, %v536_v12  ;;  %v598_v12 = vld [vmem:[%s745_s28 + $0x48] sm:$0xff]  }
  0x21   : > { %v271_v45 = vsel %vm249_vm1, %v549_v39, 0.0  ;;  %v355_v47 = vsel %vm249_vm1, %v323_v36, 0.0  ;;  %v356_v48 = vsel %vm249_vm1, %v324_v37, 0.0  ;;  %v358_v49 = vsel %vm249_vm1, %v325_v38, 0.0  ;;  %v600_v38 = vld [vmem:[%s745_s28 + $0x58] sm:$0xff]  }
  0x22   : > { %v258_v22 = vadd.f32 %v257_v17, %v256_v18  ;;  %v357_v52 = vadd.f32 %v356_v48, %v355_v47  ;;  %v553_v53 = vunpack.c.h.bf16 %v595_v34  ;;  %v273_v54 = vsel %vm249_vm1, %v552_v43, 0.0 }
  0x23   : > { %v328_v55 = vmul.f32 %v537_v16, %v537_v16  ;;  %v360_v56 = vsel %vm249_vm1, %v326_v42, 0.0  ;;  %v556_v59 = vunpack.c.l.bf16 %v596_v50  ;;  %v329_v61 = vmul.f32 %v540_v19, %v540_v19 }
  0x24   : > { %v260_v25 = vadd.f32 %v259_v20, %v258_v22  ;;  %v359_v58 = vadd.f32 %v358_v49, %v357_v52  ;;  %v275_v60 = vsel %vm249_vm1, %v553_v53, 0.0  ;;  %v362_v62 = vsel %vm249_vm1, %v327_v46, 0.0 }
  0x25   : > { %v557_v2 = vunpack.c.h.bf16 %v596_v50  ;;  %v277_v3 = vsel %vm249_vm1, %v556_v59, 0.0  ;;  %v330_v4 = vmul.f32 %v541_v23, %v541_v23  ;;  %v364_v5 = vsel %vm249_vm1, %v328_v55, 0.0 }
  0x26   : > { %v262_v29 = vadd.f32 %v261_v24, %v260_v25  ;;  %v361_v1 = vadd.f32 %v360_v56, %v359_v58  ;;  %v560_v8 = vunpack.c.l.bf16 %v597_v63  ;;  %v331_v10 = vmul.f32 %v544_v26, %v544_v26  ;;  %v599_v25 = vld [vmem:[%s745_s28 + $0x50] sm:$0xff]  }
  0x27   : > { %v279_v9 = vsel %vm249_vm1, %v557_v2, 0.0  ;;  %v366_v11 = vsel %vm249_vm1, %v329_v61, 0.0  ;;  %v561_v15 = vunpack.c.h.bf16 %v597_v63  ;;  %v332_v17 = vmul.f32 %v545_v30, %v545_v30 }
  0x28   : > { %v264_v33 = vadd.f32 %v263_v28, %v262_v29  ;;  %v363_v7 = vadd.f32 %v362_v62, %v361_v1  ;;  %v281_v16 = vsel %vm249_vm1, %v560_v8, 0.0  ;;  %v368_v18 = vsel %vm249_vm1, %v330_v4, 0.0 }
  0x29   : > { %v564_v21 = vunpack.c.l.bf16 %v598_v12  ;;  %v283_v22 = vsel %vm249_vm1, %v561_v15, 0.0  ;;  %v333_v23 = vmul.f32 %v548_v32, %v548_v32  ;;  %v370_v24 = vsel %vm249_vm1, %v331_v10, 0.0 }
  0x2a   : > { %v266_v40 = vadd.f32 %v265_v31, %v264_v33  ;;  %v365_v14 = vadd.f32 %v364_v5, %v363_v7  ;;  %v565_v28 = vunpack.c.h.bf16 %v598_v12  ;;  %v334_v31 = vmul.f32 %v549_v39, %v549_v39 }
  0x2b   : > { %v285_v29 = vsel %vm249_vm1, %v564_v21, 0.0  ;;  %v372_v30 = vsel %vm249_vm1, %v332_v17, 0.0  ;;  %v335_v37 = vmul.f32 %v552_v43, %v552_v43  ;;  %v374_v32 = vsel %vm249_vm1, %v333_v23, 0.0 }
  0x2c   : > { %v268_v44 = vadd.f32 %v267_v35, %v266_v40  ;;  %v367_v20 = vadd.f32 %v366_v11, %v365_v14  ;;  %v568_v35 = vunpack.c.l.bf16 %v599_v25  ;;  %v287_v36 = vsel %vm249_vm1, %v565_v28, 0.0 }
  0x2d   : > { %v569_v42 = vunpack.c.h.bf16 %v599_v25  ;;  %v376_v39 = vsel %vm249_vm1, %v334_v31, 0.0  ;;  %v572_v48 = vunpack.c.l.bf16 %v600_v38  ;;  %v337_v50 = vmul.f32 %v556_v59, %v556_v59 }
  0x2e   : > { %v270_v51 = vadd.f32 %v269_v41, %v268_v44  ;;  %v369_v27 = vadd.f32 %v368_v18, %v367_v20  ;;  %v289_v44 = vsel %vm249_vm1, %v568_v35, 0.0  ;;  %v378_v43 = vsel %vm249_vm1, %v335_v37, 0.0 }
  0x2f   : > { %v291_v49 = vsel %vm249_vm1, %v569_v42, 0.0  ;;  %v573_v55 = vunpack.c.h.bf16 %v600_v38  ;;  %v293_v56 = vsel %vm249_vm1, %v572_v48, 0.0  ;;  %v339_v63 = vmul.f32 %v560_v8, %v560_v8 }
  0x30   : > { %v272_v57 = vadd.f32 %v271_v45, %v270_v51  ;;  %v371_v34 = vadd.f32 %v370_v24, %v369_v27  ;;  %v336_v45 = vmul.f32 %v553_v53, %v553_v53  ;;  %v601_v51 = vld [vmem:[%s745_s28 + $0x60] sm:$0xff]   ;;  %v382_v59 = vsel %vm249_vm1, %v337_v50, 0.0 }
  0x31   : > { %v576_v61 = vunpack.c.l.bf16 %v601_v51  ;;  %v295_v62 = vsel %vm249_vm1, %v573_v55, 0.0  ;;  %v577_v4 = vunpack.c.h.bf16 %v601_v51  ;;  %v341_v12 = vmul.f32 %v564_v21, %v564_v21  ;;  %v604_v21 = vld [vmem:[%s745_s28 + $0x78] sm:$0xff]  }
  0x32   : > { %v274_v0 = vadd.f32 %v273_v54, %v272_v57  ;;  %v373_v41 = vadd.f32 %v372_v30, %v371_v34  ;;  %v338_v57 = vmul.f32 %v557_v2, %v557_v2  ;;  %v380_v53 = vsel %vm249_vm1, %v336_v45, 0.0 }
  0x33   : > { %v297_v5 = vsel %vm249_vm1, %v576_v61, 0.0  ;;  %v299_v11 = vsel %vm249_vm1, %v577_v4, 0.0  ;;  %v386_v8 = vsel %vm249_vm1, %v339_v63, 0.0  ;;  %v343_v25 = vmul.f32 %v568_v35, %v568_v35 }
  0x34   : > { %v276_v6 = vadd.f32 %v275_v60, %v274_v0  ;;  %v375_v47 = vadd.f32 %v374_v32, %v373_v41  ;;  %v602_v0 = vld [vmem:[%s745_s28 + $0x68] sm:$0xff]   ;;  %v384_v2 = vsel %vm249_vm1, %v338_v57, 0.0  ;;  %v588_v37 = vunpack.c.l.bf16 %v604_v21 }
  0x35   : > { %v580_v10 = vunpack.c.l.bf16 %v602_v0  ;;  %v581_v17 = vunpack.c.h.bf16 %v602_v0  ;;  %v345_v38 = vmul.f32 %v572_v48, %v572_v48  ;;  %v347_v50 = vmul.f32 %v576_v61, %v576_v61 }
  0x36   : > { %v278_v13 = vadd.f32 %v277_v3, %v276_v6  ;;  %v377_v54 = vadd.f32 %v376_v39, %v375_v47  ;;  %v340_v6 = vmul.f32 %v561_v15, %v561_v15  ;;  %v309_v45 = vsel %vm249_vm1, %v588_v37, 0.0 }
  0x37   : > { %v301_v18 = vsel %vm249_vm1, %v580_v10, 0.0  ;;  %v303_v24 = vsel %vm249_vm1, %v581_v17, 0.0  ;;  %v346_v39 = vmul.f32 %v573_v55, %v573_v55  ;;  %v348_v48 = vmul.f32 %v577_v4, %v577_v4 }
  0x38   : > { %v280_v19 = vadd.f32 %v279_v9, %v278_v13  ;;  %v379_v60 = vadd.f32 %v378_v43, %v377_v54  ;;  %v603_v13 = vld [vmem:[%s745_s28 + $0x70] sm:$0xff]   ;;  %v388_v15 = vsel %vm249_vm1, %v340_v6, 0.0  ;;  %v398_v43 = vsel %vm249_vm1, %v345_v38, 0.0 }
  0x39   : > { %v584_v23 = vunpack.c.l.bf16 %v603_v13  ;;  %v585_v31 = vunpack.c.h.bf16 %v603_v13  ;;  %v400_v54 = vsel %vm249_vm1, %v346_v39, 0.0  ;;  %v404_v63 = vsel %vm249_vm1, %v348_v48, 0.0 }
  0x3a   : > { %v282_v26 = vadd.f32 %v281_v16, %v280_v19  ;;  %v381_v3 = vadd.f32 %v380_v53, %v379_v60  ;;  %v342_v19 = vmul.f32 %v565_v28, %v565_v28  ;;  %v349_v53 = vmul.f32 %v580_v10, %v580_v10 }
  0x3b   : > { %v305_v30 = vsel %vm249_vm1, %v584_v23, 0.0  ;;  %v307_v32 = vsel %vm249_vm1, %v585_v31, 0.0  ;;  %v351_v0 = vmul.f32 %v584_v23, %v584_v23 }
  0x3c   : > { %v284_v33 = vadd.f32 %v283_v22, %v282_v26  ;;  %v383_v9 = vadd.f32 %v382_v59, %v381_v3  ;;  %v390_v26 = vsel %vm249_vm1, %v341_v12, 0.0  ;;  %v392_v34 = vsel %vm249_vm1, %v342_v19, 0.0 }
  0x3d   : > { %v410_v10 = vsel %vm249_vm1, %v351_v0, 0.0 }
  0x3e   : > { %v286_v40 = vadd.f32 %v285_v29, %v284_v33  ;;  %v385_v16 = vadd.f32 %v384_v2, %v383_v9  ;;  %v344_v33 = vmul.f32 %v569_v42, %v569_v42  ;;  %v353_v9 = vmul.f32 %v588_v37, %v588_v37 }
  0x40   : > { %v288_v46 = vadd.f32 %v287_v36, %v286_v40  ;;  %v387_v22 = vadd.f32 %v386_v8, %v385_v16  ;;  %v394_v40 = vsel %vm249_vm1, %v343_v25, 0.0  ;;  %v248_v8 = vld [vmem:[%s735_s20] sm:$0x1] }
  0x42   : > { %v290_v52 = vadd.f32 %v289_v44, %v288_v46  ;;  %v389_v29 = vadd.f32 %v388_v15, %v387_v22  ;;  %v589_v44 = vunpack.c.h.bf16 %v604_v21  ;;  %v396_v46 = vsel %vm249_vm1, %v344_v33, 0.0 }
  0x44   : > { %v292_v58 = vadd.f32 %v291_v49, %v290_v52  ;;  %v391_v36 = vadd.f32 %v390_v26, %v389_v29  ;;  %v311_v49 = vsel %vm249_vm1, %v589_v44, 0.0  ;;  %v354_v13 = vmul.f32 %v589_v44, %v589_v44  ;;  %v322_v29 = vld [vmem:[%s740_s24] sm:$0x1] }
  0x46   : > { %v294_v1 = vadd.f32 %v293_v56, %v292_v58  ;;  %v393_v41 = vadd.f32 %v392_v34, %v391_v36  ;;  %v402_v58 = vsel %vm249_vm1, %v347_v50, 0.0 }
  0x48   : > { %v296_v7 = vadd.f32 %v295_v62, %v294_v1  ;;  %v395_v42 = vadd.f32 %v394_v40, %v393_v41  ;;  %v350_v62 = vmul.f32 %v581_v17, %v581_v17  ;;  %v406_v1 = vsel %vm249_vm1, %v349_v53, 0.0 }
  0x4a   : > { %v298_v14 = vadd.f32 %v297_v5, %v296_v7  ;;  %v397_v52 = vadd.f32 %v396_v46, %v395_v42  ;;  %v352_v5 = vmul.f32 %v585_v31, %v585_v31  ;;  %v408_v6 = vsel %vm249_vm1, %v350_v62, 0.0 }
  0x4c   : > { %v300_v20 = vadd.f32 %v299_v11, %v298_v14  ;;  %v399_v57 = vadd.f32 %v398_v43, %v397_v52  ;;  %v412_v14 = vsel %vm249_vm1, %v352_v5, 0.0 }
  0x4e   : > { %v302_v27 = vadd.f32 %v301_v18, %v300_v20  ;;  %v401_v60 = vadd.f32 %v400_v54, %v399_v57  ;;  %v414_v18 = vsel %vm249_vm1, %v353_v9, 0.0  ;;  %v416_v20 = vsel %vm249_vm1, %v354_v13, 0.0 }
  0x50   : > { %v304_v28 = vadd.f32 %v303_v24, %v302_v27  ;;  %v403_v61 = vadd.f32 %v402_v58, %v401_v60 }
  0x52   : > { %v306_v35 = vadd.f32 %v305_v30, %v304_v28  ;;  %v405_v4 = vadd.f32 %v404_v63, %v403_v61 }
  0x54   : > { %v308_v47 = vadd.f32 %v307_v32, %v306_v35  ;;  %v407_v7 = vadd.f32 %v406_v1, %v405_v4 }
  0x56   : > { %v310_v51 = vadd.f32 %v309_v45, %v308_v47  ;;  %v409_v12 = vadd.f32 %v408_v6, %v407_v7 }
  0x58   : > { %v312_v56 = vadd.f32 %v311_v49, %v310_v51  ;;  %v411_v17 = vadd.f32 %v410_v10, %v409_v12 }
  0x5a   : > { %v313_v55 = vrot.slane %v312_v56, 4  ;;  %v413_v15 = vadd.f32 %v412_v14, %v411_v17 }
  0x5c   : > { %v314_v59 = vadd.f32 %v313_v55, %v312_v56  ;;  %v415_v22 = vadd.f32 %v414_v18, %v413_v15 }
  0x5e   : > { %v315_v3 = vrot.slane %v314_v59, 2  ;;  %v417_v23 = vadd.f32 %v416_v20, %v415_v22 }
  0x60   : > { %v316_v2 = vadd.f32 %v315_v3, %v314_v59  ;;  %v418_v24 = vrot.slane %v417_v23, 4 }
  0x62   : > { %v317_v11 = vrot.slane %v316_v2, 1  ;;  %v419_v25 = vadd.f32 %v418_v24, %v417_v23 }
  0x64   : > { %v318_v16 = vadd.f32 %v317_v11, %v316_v2  ;;  %v420_v26 = vrot.slane %v419_v25, 2 }
  0x66   : > { %v319_v19 = vadd.f32 %v318_v16, %v248_v8  ;;  %v421_v21 = vadd.f32 %v420_v26, %v419_v25 }
  0x68   : > { %321 = vst.msk [vmem:[%s735_s20] sm:$0x1] %vm320_vm2, %v319_v19  ;;  %v422_v27 = vrot.slane %v421_v21, 1 }
  0x6a   : > { %v423_v31 = vadd.f32 %v422_v27, %v421_v21 }
  0x6c   : > { %v424_v30 = vadd.f32 %v423_v31, %v322_v29 }
  0x6e   : > { %425 = vst.msk [vmem:[%s740_s24] sm:$0x1] %vm320_vm2, %v424_v30 }
  0x6f PF: > { %s13_s13 = sadd.s32 1, %s684_s13   ;;  %s853_s9 = smov %s676_s11 }
  0x70   : > { %p10_p8 = scmp.ge.s32.totalorder %s13_s13, 6   ;;  %s854_s10 = smov %s680_s12 }
  0x71   : > { %s855_s11 = smov %s858_s14  ;;  %s856_s12 = smov %s862_s15 }
  0x72   :  { %12 = sbr.rel (!%p10_p8) target bundleno = 3 (0x3), region = 70 }

// kernel: encoder3d_forward.35
= control target key start
LH: loop header
LB: loop body
LE: loop exit
PB: predicated region body
PF: predicated region fallthrough
CT: control target
= control target key end

     0   :  { %s1062_s12 = smov 0   ;;  %s1064_s13 = smov 0   ;;  %s1214_s0 = inlined_call_operand.vmem [shape: bf16[2,10,80,12], index: 0, kind: input, shape index: {}]   ;;  %s1215_s1 = inlined_call_operand.vmem [shape: bf16[3,3,12,8], index: 1, kind: input, shape index: {}]   ;;  %s1216_s2 = inlined_call_operand.vmem [shape: f32[1,8], index: 2, kind: input, shape index: {}]   ;;  %s1217_s3 = inlined_call_operand.vmem [shape: bf16[2,8,64,8], index: 3, kind: output, shape index: {}]  }
   0x1   :  { %s1066_s14 = smov 0   ;;  %s1068_s15 = smov 0  }
   0x2   :  { %s1070_s16 = smov 0   ;;  %s1072_s17 = smov 0  }
   0x3   :  { %s1074_s18 = smov 0  }
   0x4 LB: > { %s25_s19 = sadd.s32 1, %s1027_s15  ;;  %s28_s20 = sadd.s32 1, %s1031_s16  ;;  %s1039_s18 = sphi %s1074_s18, %s13_s18   ;;  %s1035_s17 = sphi %s1072_s17, %s1223_s17   ;;  %s1031_s16 = sphi %s1070_s16, %s1222_s16   ;;  %s1027_s15 = sphi %s1068_s15, %s1221_s15   ;;  %s1023_s14 = sphi %s1066_s14, %s1220_s14   ;;  %s1019_s13 = sphi %s1064_s13, %s1219_s13   ;;  %s1015_s12 = sphi %s1062_s12, %s1218_s12  }
   0x5   : > { %p26_p0 = scmp.ge.s32.totalorder %s25_s19, 3  ;;  %p801_p1 = scmp.ge.s32.totalorder %s1039_s18, 1 }
   0x6   : > { %p178_p2 = scmp.lt.s32.totalorder %s1039_s18, 49  ;;  %s32_s21 = sadd.s32 1, %s1035_s17 }
   0x7   : > { %s1225_s19 = smov (%p26_p0, %s25_s19), 0  ;;  %s1227_s20 = smov (!%p26_p0, %s28_s20), %s1031_s16 }
   0x8   : > { %p179_p3 = pnand %p801_p1, %p178_p2  ;;  %p30_p4 = scmp.ge.s32.totalorder %s1227_s20, 8 }
   0x9   : > { %s216_s22 = sadd.s32 (!%p179_p3), %s1015_s12, %s1019_s13  ;;  %p217_p6 = scmp.lt.s32.totalorder (!%p179_p3), %s1023_s14, 1 }
   0xa   : > { %s1229_s20 = smov (%p30_p4, %s1227_s20), 0  ;;  %s1231_s21 = smov (!%p30_p4, %s32_s21), %s1035_s17 }
   0xb   : > { %p34_p5 = scmp.ge.s32.totalorder %s1231_s21, 2  ;;  %182 = sbr.rel (%p179_p3) target bundleno = 275 (0x113), region = 32 }
   0xc   : > { %p219_p7 = scmp.lt.s32.totalorder (!%p179_p3), %s216_s22, 9  ;;  %p227_p8 = scmp.lt.s32.totalorder (!%p179_p3), %s1015_s12, 2 }
   0xd   : > { %s1233_s21 = smov (%p34_p5, %s1231_s21), 0  ;;  %p234_p9 = scmp.lt.s32.totalorder (!%p179_p3), %s1019_s13, 7 }
   0xe   : > { %p807_p10 = scmp.ne.s32.totalorder (!%p179_p3), %s1015_s12, 0 }
  0x10   : > { %s1235_s14 = smov (!%p217_p6, %s1023_s14), 1  ;;  %s1237_s22 = smov (!%p219_p7, %s216_s22), 9 }
  0x11   : > { %s911_s23 = smul.u32 100, %s1235_s14  ;;  %s805_s8 = sshll.u32 %s1235_s14, 6 }
  0x12   : > { %s910_s24 = smul.u32 10, %s1237_s22  ;;  %s1239_s13 = smov (!%p234_p9, %s1019_s13), 7 }
  0x13   : > { %s228_s25 = scalar_select %p227_p8, %s1015_s12, 2 }
  0x14   : > { %s223_s26 = sadd.s32 %s911_s23, %s910_s24  ;;  %s804_s9 = sshll.u32 %s1239_s13, 3 }
  0x15   : > { %s802_s27 = sshll.u32 %s223_s26, 2  ;;  %s912_s28 = smul.u32 24, %s228_s25 }
  0x16   : > { %s1116_s4 = scalar_lea.vmem %s1214_s0, %s802_s27  ;;  %s238_s10 = sadd.s32 %s805_s8, %s804_s9 }
  0x17   : > { %s1121_s7 = scalar_lea.vmem %s1215_s1, %s912_s28  ;;  %s806_s11 = sshll.u32 %s238_s10, 2 }
  0x18   : > { %s1127_s24 = scalar_lea.vmem %s1217_s3, %s806_s11  ;;  %245 = sbr.rel (%p807_p10) target bundleno = 34 (0x22), region = 36 }
  0x1d   : > { %vm246_vm0 = vcmask 64512   ;;  %v1041_v0 = vmov 0.0  }
  0x1e   : > { %247 = vst.msk [vmem:[#allocation2] sm:$0xff] %vm246_vm0, %v1041_v0  ;;  %248 = vst.msk [vmem:[#allocation2 + $0x8] sm:$0xff] %vm246_vm0, %v1041_v0 }
  0x1f   : > { %249 = vst.msk [vmem:[#allocation2 + $0x10] sm:$0xff] %vm246_vm0, %v1041_v0  ;;  %250 = vst.msk [vmem:[#allocation2 + $0x18] sm:$0xff] %vm246_vm0, %v1041_v0 }
  0x20   : > { %251 = vst.msk [vmem:[#allocation2 + $0x20] sm:$0xff] %vm246_vm0, %v1041_v0  ;;  %252 = vst.msk [vmem:[#allocation2 + $0x28] sm:$0xff] %vm246_vm0, %v1041_v0 }
  0x21   : > { %253 = vst.msk [vmem:[#allocation2 + $0x30] sm:$0xff] %vm246_vm0, %v1041_v0  ;;  %254 = vst.msk [vmem:[#allocation2 + $0x38] sm:$0xff] %vm246_vm0, %v1041_v0 }
  0x22 PF: > { %v970_v1 = vld [vmem:[%s1121_s7 + $0x8] sm:$0x3f]   ;;  %vm307_vm1 = vcmask 1045504   ;;  %v255_v2 = vld [vmem:[%s1116_s4] sm:$0xf]  ;;  %vm294_vm2 = vcmask 97280  }
  0x23   : > { %v256_v3 = vld [vmem:[%s1116_s4 + $0x4] sm:$0xf]  ;;  %906 = vmatprep.subr.msk.bf16.mxu0 %vm307_vm1, %v970_v1  ;;  %907 = vmatprep.subr.msk.bf16.mxu1 %vm307_vm1, %v970_v1  ;;  %v309_v4 = vsel %vm307_vm1, %v970_v1, 0  ;;  %v257_v5 = vld [vmem:[%s1116_s4 + $0x8] sm:$0xf]  ;;  %v982_v22 = vld [vmem:[%s1116_s4 + $0x10] sm:$0xff]  }
  0x24   : > { %v258_v6 = vld [vmem:[%s1116_s4 + $0xc] sm:$0xf]  ;;  %875 = vmatpush3.bf16.msra.mxu0 %v309_v4  ;;  %905 = vmatpush3.bf16.msra.mxu1 %v309_v4  ;;  %v810_v7 = vcombine.low %v256_v3, %v257_v5  ;;  %v259_v8 = vld [vmem:[%s1116_s4 + $0x10] sm:$0xf]  ;;  %v260_v9 = vld [vmem:[%s1116_s4 + $0x14] sm:$0xf]  ;;  %v819_v16 = vcombine.low %v255_v2, %v256_v3 }
  0x25   : > { %v261_v10 = vld [vmem:[%s1116_s4 + $0x18] sm:$0xf]  ;;  %v262_v11 = vld [vmem:[%s1116_s4 + $0x1c] sm:$0xf]  ;;  %v265_v12 = vld [vmem:[%s1116_s4 + $0x20] sm:$0xf]  ;;  %v811_v13 = vcombine.low %v258_v6, %v259_v8  ;;  %v820_v23 = vcombine.low %v257_v5, %v258_v6  ;;  %v821_v25 = vcombine.low %v259_v8, %v260_v9 }
  0x26   : > { %v812_v14 = vcombine.low %v260_v9, %v261_v10  ;;  %v981_v15 = vld [vmem:[%s1116_s4 + $0x8] sm:$0xff]   ;;  %876 = vmatprep.mubr.msk.bf16.mxu0 %vm294_vm2, %v810_v7  ;;  %v813_v17 = vcombine.low %v262_v11, %v265_v12  ;;  %v979_v18 = vld [vmem:[%s1121_s7] sm:$0x3f]   ;;  %v980_v19 = vld [vmem:[%s1121_s7 + $0x10] sm:$0x3f]   ;;  %v822_v27 = vcombine.low %v261_v10, %v262_v11  ;;  %vm607_vm3 = vcmask 64512  }
  0x27   : > { %877 = vmatmul.mubr.msk.bf16.vlgmr.msra.gmra.mxu0 %vm294_vm2, %v811_v13  ;;  %908 = vmatprep.subr.msk.bf16.mxu1 %vm307_vm1, %v979_v18  ;;  %v400_v20 = vsel %vm307_vm1, %v979_v18, 0  ;;  %v516_v21 = vsel %vm307_vm1, %v980_v19, 0  ;;  %v983_v24 = vld [vmem:[%s1116_s4 + $0x18] sm:$0xff]   ;;  %v984_v26 = vld [vmem:[%s1116_s4 + $0x20] sm:$0xff]   ;;  %v593_v40 = vld [vmem:[#allocation2 + $0x10] sm:$0xff]  ;;  %p839_p11 = scmp.ne.s32.totalorder %s1015_s12, 2 }
  0x28   : > { %880 = vmatprep.mubr.msk.bf16.mxu1 %vm294_vm2, %v812_v14  ;;  %909 = vmatprep.subr.msk.bf16.mxu0 %vm307_vm1, %v980_v19  ;;  %v591_v45 = vld [vmem:[#allocation2] sm:$0xff]  ;;  %v594_v51 = vld [vmem:[#allocation2 + $0x18] sm:$0xff]  ;;  %v592_v57 = vld [vmem:[#allocation2 + $0x8] sm:$0xff] }
  0x29   : > { %881 = vmatmul.mubr.msk.bf16.vlgmr.msra.gmra.mxu1 %vm294_vm2, %v813_v17  ;;  %895 = vmatpush3.bf16.msra.mxu0 %v516_v21  ;;  %v597_v63 = vld [vmem:[#allocation2 + $0x30] sm:$0xff]  ;;  %v595_v4 = vld [vmem:[#allocation2 + $0x20] sm:$0xff]  ;;  %v598_v10 = vld [vmem:[#allocation2 + $0x38] sm:$0xff] }
  0x2a   : > { %885 = vmatpush3.bf16.msra.mxu1 %v400_v20  ;;  %886 = vmatprep.mubr.msk.bf16.mxu1 %vm294_vm2, %v819_v16  ;;  %v596_v16 = vld [vmem:[#allocation2 + $0x28] sm:$0xff] }
  0x2b   : > { %896 = vmatprep.mubr.msk.bf16.mxu0 %vm294_vm2, %v981_v15 }
  0x2f   : > { %897 = vmatmul.mubr.msk.bf16.vlgmr.msra.gmra.mxu0 %vm294_vm2, %v982_v22 }
  0x30   : > { %900 = vmatprep.mubr.msk.bf16.mxu0 %vm294_vm2, %v983_v24 }
  0x31   : > { %887 = vmatmul.mubr.msk.bf16.vlgmr.msra.gmra.mxu1 %vm294_vm2, %v820_v23 }
  0x32   : > { %890 = vmatprep.mubr.msk.bf16.mxu1 %vm294_vm2, %v821_v25 }
  0x37   : > { %901 = vmatmul.mubr.msk.bf16.gmra.mxu0 %vm294_vm2, %v984_v26 }
  0x39   : > { %891 = vmatmul.mubr.msk.bf16.gmra.mxu1 %vm294_vm2, %v822_v27 }
  0xe7   : > { %v878_v28 = vpop.f32.mrf.mxu0 }
  0xe9   : > { %v882_v29 = vpop.f32.mrf.mxu1  ;;  %v345_v30 = vpop.f32.mrf.mxu0 }
  0xeb   : > { %v361_v31 = vpop.f32.mrf.mxu1  ;;  %v879_v32 = vpop.f32.mrf.mxu0 }
  0xed   : > { %v883_v33 = vpop.f32.mrf.mxu1  ;;  %v348_v34 = vpop.f32.mrf.mxu0 }
  0xef   : > { %v364_v35 = vpop.f32.mrf.mxu1  ;;  %v898_v36 = vpop.f32.mrf.mxu0 }
  0xf1   : > { %v888_v37 = vpop.f32.mrf.mxu1  ;;  %v552_v39 = vpop.f32.mrf.mxu0 }
  0xf2   : > { %v445_v38 = vadd.f32 %v888_v37, %v878_v28 }
  0xf3   : > { %v436_v41 = vpop.f32.mrf.mxu1  ;;  %v899_v44 = vpop.f32.mrf.mxu0 }
  0xf4   : > { %v585_v42 = vadd.f32 %v898_v36, %v445_v38  ;;  %v437_v43 = vadd.f32 %v436_v41, %v345_v30 }
  0xf5   : > { %v889_v46 = vpop.f32.mrf.mxu1  ;;  %v555_v50 = vpop.f32.mrf.mxu0 }
  0xf6   : > { %v601_v47 = vadd.f32 %v593_v40, %v585_v42  ;;  %v583_v48 = vadd.f32 %v552_v39, %v437_v43  ;;  %v448_v49 = vadd.f32 %v889_v46, %v879_v32 }
  0xf7   : > { %v439_v52 = vpop.f32.mrf.mxu1  ;;  %v902_v56 = vpop.f32.mrf.mxu0 }
  0xf8   : > { %610 = vst.msk [vmem:[#allocation2 + $0x10] sm:$0xff] %vm607_vm3, %v601_v47  ;;  %v599_v53 = vadd.f32 %v591_v45, %v583_v48  ;;  %v586_v54 = vadd.f32 %v899_v44, %v448_v49  ;;  %v440_v55 = vadd.f32 %v439_v52, %v348_v34 }
  0xf9   : > { %v892_v58 = vpop.f32.mrf.mxu1  ;;  %v568_v62 = vpop.f32.mrf.mxu0 }
  0xfa   : > { %608 = vst.msk [vmem:[#allocation2] sm:$0xff] %vm607_vm3, %v599_v53  ;;  %v602_v59 = vadd.f32 %v594_v51, %v586_v54  ;;  %v584_v60 = vadd.f32 %v555_v50, %v440_v55  ;;  %v461_v61 = vadd.f32 %v892_v58, %v882_v29 }
  0xfb   : > { %v452_v0 = vpop.f32.mrf.mxu1  ;;  %v903_v6 = vpop.f32.mrf.mxu0 }
  0xfc   : > { %611 = vst.msk [vmem:[#allocation2 + $0x18] sm:$0xff] %vm607_vm3, %v602_v59  ;;  %v600_v1 = vadd.f32 %v592_v57, %v584_v60  ;;  %v589_v2 = vadd.f32 %v902_v56, %v461_v61  ;;  %v453_v3 = vadd.f32 %v452_v0, %v361_v31 }
  0xfd   : > { %v893_v5 = vpop.f32.mrf.mxu1  ;;  %v571_v15 = vpop.f32.mrf.mxu0 }
  0xfe   : > { %609 = vst.msk [vmem:[#allocation2 + $0x8] sm:$0xff] %vm607_vm3, %v600_v1  ;;  %v605_v7 = vadd.f32 %v597_v63, %v589_v2  ;;  %v587_v8 = vadd.f32 %v568_v62, %v453_v3  ;;  %v464_v9 = vadd.f32 %v893_v5, %v883_v33 }
  0xff   : > { %v455_v11 = vpop.f32.mrf.mxu1 }
 0x100   : > { %614 = vst.msk [vmem:[#allocation2 + $0x30] sm:$0xff] %vm607_vm3, %v605_v7  ;;  %v603_v12 = vadd.f32 %v595_v4, %v587_v8  ;;  %v590_v13 = vadd.f32 %v903_v6, %v464_v9  ;;  %v456_v14 = vadd.f32 %v455_v11, %v364_v35 }
 0x102   : > { %612 = vst.msk [vmem:[#allocation2 + $0x20] sm:$0xff] %vm607_vm3, %v603_v12  ;;  %v606_v17 = vadd.f32 %v598_v10, %v590_v13  ;;  %v588_v18 = vadd.f32 %v571_v15, %v456_v14  ;;  %619 = sbr.rel (%p839_p11) target bundleno = 275 (0x113), region = 40 }
 0x104   : > { %615 = vst.msk [vmem:[#allocation2 + $0x38] sm:$0xff] %vm607_vm3, %v606_v17  ;;  %v604_v19 = vadd.f32 %v596_v16, %v588_v18 }
 0x106   : > { %613 = vst.msk [vmem:[#allocation2 + $0x28] sm:$0xff] %vm607_vm3, %v604_v19 }
 0x107   : > { %v620_v20 = vld [vmem:[#allocation2] sm:$0xff]  ;;  %v621_v22 = vld [vmem:[#allocation2 + $0x8] sm:$0xff]  ;;  %v622_v25 = vld [vmem:[#allocation2 + $0x10] sm:$0xff]  ;;  %vm675_vm4 = vcmask 60416  }
 0x108   : > { %v840_v21 = vld [vmem:[%s1216_s2] ss:$0 sm:$0xff]  ;;  %v623_v26 = vld [vmem:[#allocation2 + $0x18] sm:$0xff]  ;;  %v626_v32 = vld [vmem:[#allocation2 + $0x30] sm:$0xff] }
 0x109   : > { %v635_v23 = vadd.f32 %v840_v21, %v620_v20  ;;  %v636_v24 = vadd.f32 %v840_v21, %v621_v22  ;;  %v624_v27 = vld [vmem:[#allocation2 + $0x20] sm:$0xff]  ;;  %v637_v28 = vadd.f32 %v840_v21, %v622_v25  ;;  %v638_v29 = vadd.f32 %v840_v21, %v623_v26 }
 0x10a   : > { %v639_v30 = vadd.f32 %v840_v21, %v624_v27  ;;  %v641_v37 = vadd.f32 %v840_v21, %v626_v32 }
 0x10b   : > { %v627_v33 = vld [vmem:[#allocation2 + $0x38] sm:$0xff]  ;;  %v851_v34 = vpack.c.bf16 %v635_v23, %v635_v23  ;;  %v852_v35 = vpack.c.bf16 %v636_v24, %v636_v24  ;;  %v853_v38 = vpack.c.bf16 %v637_v28, %v637_v28  ;;  %v854_v39 = vpack.c.bf16 %v638_v29, %v638_v29 }
 0x10c   : > { %v855_v40 = vpack.c.bf16 %v639_v30, %v639_v30  ;;  %v642_v41 = vadd.f32 %v840_v21, %v627_v33  ;;  %v857_v43 = vpack.c.bf16 %v641_v37, %v641_v37 }
 0x10d   : > { %v625_v31 = vld [vmem:[#allocation2 + $0x28] sm:$0xff]  ;;  %676 = vst.msk [vmem:[%s1127_s24] sm:$0xf] %vm675_vm4, %v851_v34  ;;  %677 = vst.msk [vmem:[%s1127_s24 + $0x4] sm:$0xf] %vm675_vm4, %v852_v35 }
 0x10e   : > { %v640_v36 = vadd.f32 %v840_v21, %v625_v31  ;;  %678 = vst.msk [vmem:[%s1127_s24 + $0x8] sm:$0xf] %vm675_vm4, %v853_v38  ;;  %679 = vst.msk [vmem:[%s1127_s24 + $0xc] sm:$0xf] %vm675_vm4, %v854_v39  ;;  %v858_v44 = vpack.c.bf16 %v642_v41, %v642_v41 }
 0x10f   : > { %680 = vst.msk [vmem:[%s1127_s24 + $0x10] sm:$0xf] %vm675_vm4, %v855_v40  ;;  %682 = vst.msk [vmem:[%s1127_s24 + $0x18] sm:$0xf] %vm675_vm4, %v857_v43 }
 0x110   : > { %v856_v42 = vpack.c.bf16 %v640_v36, %v640_v36  ;;  %683 = vst.msk [vmem:[%s1127_s24 + $0x1c] sm:$0xf] %vm675_vm4, %v858_v44 }
 0x112   : > { %681 = vst.msk [vmem:[%s1127_s24 + $0x14] sm:$0xf] %vm675_vm4, %v856_v42 }
 0x113 PF: > { %s13_s18 = sadd.s32 1, %s1039_s18   ;;  %s1218_s12 = smov %s1027_s15 }
 0x114   : > { %p10_p12 = scmp.ge.s32.totalorder %s13_s18, 50   ;;  %s1219_s13 = smov %s1031_s16 }
 0x115   : > { %s1220_s14 = smov %s1035_s17  ;;  %s1221_s15 = smov %s1225_s19 }
 0x116   : > { %s1222_s16 = smov %s1229_s20  ;;  %s1223_s17 = smov %s1233_s21 }
 0x117   :  { %12 = sbr.rel (!%p10_p12) target bundleno = 4 (0x4), region = 75 }

// kernel: encoder3d_forward.37
= control target key start
LH: loop header
LB: loop body
LE: loop exit
PB: predicated region body
PF: predicated region fallthrough
CT: control target
= control target key end

     0   :  { %s1435_s18 = smov 0   ;;  %s1437_s19 = smov 0   ;;  %s1861_s0 = inlined_call_operand.vmem [shape: bf16[2,512,8], index: 0, kind: input, shape index: {}]   ;;  %s1862_s1 = inlined_call_operand.vmem [shape: f32[2,1,8], index: 1, kind: input, shape index: {}]   ;;  %s1863_s2 = inlined_call_operand.vmem [shape: f32[2,1,8], index: 2, kind: input, shape index: {}]   ;;  %s1864_s3 = inlined_call_operand.vmem [shape: f32[1,1,8], index: 3, kind: input, shape index: {}]   ;;  %s1865_s4 = inlined_call_operand.vmem [shape: f32[1,1,8], index: 4, kind: input, shape index: {}]   ;;  %s1866_s5 = inlined_call_operand.vmem [shape: bf16[2,512,8], index: 5, kind: output, shape index: {}]  }
   0x1   :  { %s1439_s20 = smov 0   ;;  %s1441_s21 = smov 0  }
   0x2   :  { %s1443_s22 = smov 0  }
   0x3 LB: > { %s24_s23 = sadd.s32 1, %s1395_s20  ;;  %s27_s24 = sadd.s32 1, %s1399_s21  ;;  %s1403_s22 = sphi %s1443_s22, %s15_s22   ;;  %s1399_s21 = sphi %s1441_s21, %s1870_s21   ;;  %s1395_s20 = sphi %s1439_s20, %s1869_s20   ;;  %s1391_s19 = sphi %s1437_s19, %s1868_s19   ;;  %s1387_s18 = sphi %s1435_s18, %s1867_s18  }
   0x4   : > { %p25_p0 = scmp.ge.s32.totalorder %s24_s23, 2  ;;  %p1009_p1 = scmp.ge.s32.totalorder %s1403_s22, 1 }
   0x5   : > { %p224_p2 = scmp.lt.s32.totalorder %s1403_s22, 5 }
   0x6   : > { %s1872_s23 = smov (%p25_p0, %s24_s23), 0  ;;  %s1874_s24 = smov (!%p25_p0, %s27_s24), %s1399_s21 }
   0x7   : > { %p225_p3 = pnand %p1009_p1, %p224_p2  ;;  %p29_p4 = scmp.ge.s32.totalorder %s1874_s24, 2 }
   0x8   : > { %s1010_s25 = sshll.u32 (!%p225_p3), %s1387_s18, 5  ;;  %p267_p5 = scmp.lt.s32.totalorder (!%p225_p3), %s1391_s19, 1 }
   0x9   : > { %s1876_s24 = smov (%p29_p4, %s1874_s24), 0  ;;  %228 = sbr.rel (%p225_p3) target bundleno = 135 (0x87), region = 40 }
   0xa   : > { %p269_p6 = scmp.lt.s32.totalorder (!%p225_p3), %s1010_s25, 63 }
   0xe   : > { %s1878_s19 = smov (!%p267_p5, %s1391_s19), 1  ;;  %s1880_s25 = smov (!%p269_p6, %s1010_s25), 63  ;;  %v1496_v18 = vld [vmem:[%s1864_s3] ss:$0 sm:$0xff]  ;;  %vm864_vm0 = vcmask 60416  }
   0xf   : > { %s1011_s26 = sshll.u32 %s1878_s19, 6  ;;  %s278_s29 = scalar_lea.vmem %s1862_s1, %s1878_s19  ;;  %v1509_v27 = vld [vmem:[%s1865_s4] ss:$0 sm:$0xff] }
  0x10   : > { %s1468_s30 = sadd.s32 %s1011_s26, %s1880_s25  ;;  %s281_s12 = scalar_lea.vmem %s1863_s2, %s1878_s19  ;;  %v1481_v0 = vld [vmem:[%s278_s29] ss:$0 sm:$0xff] }
  0x11   : > { %s1012_s6 = sshll.u32 %s1468_s30, 2  ;;  %v1487_v9 = vld [vmem:[%s281_s12] ss:$0 sm:$0xff] }
  0x12   : > { %s1476_s9 = scalar_lea.vmem %s1861_s0, %s1012_s6  ;;  %s1669_s19 = scalar_lea.vmem %s1866_s5, %s1012_s6 }
  0x13   : > { %v1119_v1 = vld [vmem:[%s1476_s9] sm:$0xff]   ;;  %v1182_v2 = vld [vmem:[%s1476_s9 + $0x8] sm:$0xff]   ;;  %v1183_v3 = vld [vmem:[%s1476_s9 + $0x10] sm:$0xff]  }
  0x14   : > { %v1120_v4 = vunpack.c.l.bf16 %v1119_v1  ;;  %v1121_v5 = vunpack.c.h.bf16 %v1119_v1  ;;  %v1124_v6 = vunpack.c.l.bf16 %v1182_v2  ;;  %v1125_v7 = vunpack.c.h.bf16 %v1182_v2  ;;  %v1184_v8 = vld [vmem:[%s1476_s9 + $0x18] sm:$0xff]   ;;  %v1185_v40 = vld [vmem:[%s1476_s9 + $0x20] sm:$0xff]   ;;  %v1186_v49 = vld [vmem:[%s1476_s9 + $0x28] sm:$0xff]  }
  0x15   : > { %v1128_v10 = vunpack.c.l.bf16 %v1183_v3  ;;  %v1129_v11 = vunpack.c.h.bf16 %v1183_v3  ;;  %v1132_v12 = vunpack.c.l.bf16 %v1184_v8  ;;  %v1133_v13 = vunpack.c.h.bf16 %v1184_v8  ;;  %v1187_v50 = vld [vmem:[%s1476_s9 + $0x30] sm:$0xff]  }
  0x16   : > { %v363_v14 = vsub.f32 %v1120_v4, %v1481_v0  ;;  %v364_v15 = vsub.f32 %v1121_v5, %v1481_v0  ;;  %v365_v16 = vsub.f32 %v1124_v6, %v1481_v0  ;;  %v366_v17 = vsub.f32 %v1125_v7, %v1481_v0 }
  0x17   : > { %v367_v19 = vsub.f32 %v1128_v10, %v1481_v0  ;;  %v368_v20 = vsub.f32 %v1129_v11, %v1481_v0  ;;  %v369_v21 = vsub.f32 %v1132_v12, %v1481_v0  ;;  %v370_v22 = vsub.f32 %v1133_v13, %v1481_v0 }
  0x18   : > { %v402_v23 = vmul.f32 %v1487_v9, %v363_v14  ;;  %v403_v24 = vmul.f32 %v1487_v9, %v364_v15  ;;  %v404_v25 = vmul.f32 %v1487_v9, %v365_v16  ;;  %v405_v26 = vmul.f32 %v1487_v9, %v366_v17  ;;  %v1188_v15 = vld [vmem:[%s1476_s9 + $0x38] sm:$0xff]  }
  0x19   : > { %v406_v28 = vmul.f32 %v1487_v9, %v367_v19  ;;  %v407_v29 = vmul.f32 %v1487_v9, %v368_v20  ;;  %v408_v30 = vmul.f32 %v1487_v9, %v369_v21  ;;  %v409_v31 = vmul.f32 %v1487_v9, %v370_v22 }
  0x1a   : > { %v441_v32 = vmul.f32 %v1496_v18, %v402_v23  ;;  %v442_v33 = vmul.f32 %v1496_v18, %v403_v24  ;;  %v443_v34 = vmul.f32 %v1496_v18, %v404_v25  ;;  %v444_v35 = vmul.f32 %v1496_v18, %v405_v26 }
  0x1b   : > { %v445_v36 = vmul.f32 %v1496_v18, %v406_v28  ;;  %v446_v37 = vmul.f32 %v1496_v18, %v407_v29  ;;  %v447_v38 = vmul.f32 %v1496_v18, %v408_v30  ;;  %v448_v39 = vmul.f32 %v1496_v18, %v409_v31 }
  0x1c   : > { %v1525_v41 = vadd.f32 %v1509_v27, %v441_v32  ;;  %v1528_v42 = vadd.f32 %v1509_v27, %v442_v33  ;;  %v1531_v43 = vadd.f32 %v1509_v27, %v443_v34  ;;  %v1534_v44 = vadd.f32 %v1509_v27, %v444_v35  ;;  %v1189_v32 = vld [vmem:[%s1476_s9 + $0x40] sm:$0xff]  }
  0x1d   : > { %v1537_v45 = vadd.f32 %v1509_v27, %v445_v36  ;;  %v1540_v46 = vadd.f32 %v1509_v27, %v446_v37  ;;  %v1543_v47 = vadd.f32 %v1509_v27, %v447_v38  ;;  %v1546_v48 = vadd.f32 %v1509_v27, %v448_v39  ;;  %v1600_v36 = vld [vmem:[%s1476_s9 + $0x48] sm:$0xff]  }
  0x1e   : > { %v1020_v51 = vmul.f32 -1.442695, %v1525_v41  ;;  %v1021_v52 = vmul.f32 -1.442695, %v1528_v42  ;;  %v1022_v53 = vmul.f32 -1.442695, %v1531_v43  ;;  %v1136_v54 = vunpack.c.l.bf16 %v1185_v40 }
  0x1f   : > { %v1023_v55 = vmul.f32 -1.442695, %v1534_v44  ;;  %v1024_v56 = vmul.f32 -1.442695, %v1537_v45  ;;  %v1025_v57 = vmul.f32 -1.442695, %v1540_v46  ;;  %v1137_v58 = vunpack.c.h.bf16 %v1185_v40 }
  0x20   : > { %1237 = vpow2.f32 %v1020_v51  ;;  %v1026_v59 = vmul.f32 -1.442695, %v1543_v47  ;;  %v1027_v60 = vmul.f32 -1.442695, %v1546_v48  ;;  %v371_v61 = vsub.f32 %v1136_v54, %v1481_v0 }
  0x21   : > { %1239 = vpow2.f32 %v1021_v52  ;;  %v372_v62 = vsub.f32 %v1137_v58, %v1481_v0  ;;  %v1140_v63 = vunpack.c.l.bf16 %v1186_v49  ;;  %v1141_v1 = vunpack.c.h.bf16 %v1186_v49 }
  0x22   : > { %1241 = vpow2.f32 %v1022_v53  ;;  %v410_v2 = vmul.f32 %v1487_v9, %v371_v61  ;;  %v1144_v3 = vunpack.c.l.bf16 %v1187_v50  ;;  %v1145_v4 = vunpack.c.h.bf16 %v1187_v50 }
  0x23   : > { %1243 = vpow2.f32 %v1023_v55  ;;  %v411_v5 = vmul.f32 %v1487_v9, %v372_v62  ;;  %v373_v6 = vsub.f32 %v1140_v63, %v1481_v0  ;;  %v374_v7 = vsub.f32 %v1141_v1, %v1481_v0 }
  0x24   : > { %1245 = vpow2.f32 %v1024_v56  ;;  %v449_v8 = vmul.f32 %v1496_v18, %v410_v2  ;;  %v375_v10 = vsub.f32 %v1144_v3, %v1481_v0  ;;  %v376_v11 = vsub.f32 %v1145_v4, %v1481_v0 }
  0x25   : > { %1247 = vpow2.f32 %v1025_v57  ;;  %v450_v12 = vmul.f32 %v1496_v18, %v411_v5  ;;  %v412_v13 = vmul.f32 %v1487_v9, %v373_v6  ;;  %v413_v14 = vmul.f32 %v1487_v9, %v374_v7 }
  0x26   : > { %1249 = vpow2.f32 %v1026_v59  ;;  %v1572_v16 = vadd.f32 %v1509_v27, %v449_v8  ;;  %v414_v17 = vmul.f32 %v1487_v9, %v375_v10  ;;  %v415_v19 = vmul.f32 %v1487_v9, %v376_v11 }
  0x27   : > { %1251 = vpow2.f32 %v1027_v60  ;;  %v1577_v20 = vadd.f32 %v1509_v27, %v450_v12  ;;  %v451_v21 = vmul.f32 %v1496_v18, %v412_v13  ;;  %v452_v22 = vmul.f32 %v1496_v18, %v413_v14 }
  0x28   : > { %v1028_v23 = vmul.f32 -1.442695, %v1572_v16  ;;  %v453_v24 = vmul.f32 %v1496_v18, %v414_v17  ;;  %v454_v25 = vmul.f32 %v1496_v18, %v415_v19  ;;  %v1148_v26 = vunpack.c.l.bf16 %v1188_v15 }
  0x29   : > { %v1029_v28 = vmul.f32 -1.442695, %v1577_v20  ;;  %v1586_v29 = vadd.f32 %v1509_v27, %v451_v21  ;;  %v1589_v30 = vadd.f32 %v1509_v27, %v452_v22  ;;  %v1149_v31 = vunpack.c.h.bf16 %v1188_v15  ;;  %v1191_v21 = vld [vmem:[%s1476_s9 + $0x50] sm:$0xff]  }
  0x2a   : > { %1253 = vpow2.f32 %v1028_v23  ;;  %v1593_v33 = vadd.f32 %v1509_v27, %v453_v24  ;;  %v1596_v34 = vadd.f32 %v1509_v27, %v454_v25  ;;  %v377_v35 = vsub.f32 %v1148_v26, %v1481_v0 }
  0x2b   : > { %1255 = vpow2.f32 %v1029_v28  ;;  %v1030_v37 = vmul.f32 -1.442695, %v1586_v29  ;;  %v1031_v38 = vmul.f32 -1.442695, %v1589_v30  ;;  %v378_v39 = vsub.f32 %v1149_v31, %v1481_v0 }
  0x2c   : > { %v1032_v40 = vmul.f32 -1.442695, %v1593_v33  ;;  %v1033_v49 = vmul.f32 -1.442695, %v1596_v34  ;;  %v416_v50 = vmul.f32 %v1487_v9, %v377_v35  ;;  %v1152_v51 = vunpack.c.l.bf16 %v1189_v32 }
  0x2d   : > { %v1238_v52 = vpop.eup %1237  ;;  %1257 = vpow2.f32 %v1030_v37  ;;  %v417_v53 = vmul.f32 %v1487_v9, %v378_v39  ;;  %v1153_v54 = vunpack.c.h.bf16 %v1189_v32  ;;  %v1156_v55 = vunpack.c.l.bf16 %v1600_v36 }
  0x2e   : > { %v1240_v56 = vpop.eup %1239  ;;  %v608_v57 = vadd.f32 1.0, %v1238_v52  ;;  %1259 = vpow2.f32 %v1031_v38  ;;  %v455_v58 = vmul.f32 %v1496_v18, %v416_v50  ;;  %v379_v59 = vsub.f32 %v1152_v51, %v1481_v0  ;;  %v1640_v51 = vld [vmem:[%s1476_s9 + $0x58] sm:$0xff]  }
  0x2f   : > { %v1242_v60 = vpop.eup %1241  ;;  %v609_v61 = vadd.f32 1.0, %v1240_v56  ;;  %1261 = vpow2.f32 %v1032_v40  ;;  %v456_v62 = vmul.f32 %v1496_v18, %v417_v53  ;;  %v380_v63 = vsub.f32 %v1153_v54, %v1481_v0 }
  0x30   : > { %v1244_v1 = vpop.eup %1243  ;;  %1263 = vrcp.f32 %v608_v57  ;;  %v610_v2 = vadd.f32 1.0, %v1242_v60  ;;  %v1615_v3 = vadd.f32 %v1509_v27, %v455_v58  ;;  %v418_v4 = vmul.f32 %v1487_v9, %v379_v59 }
  0x31   : > { %v1246_v5 = vpop.eup %1245  ;;  %1265 = vrcp.f32 %v609_v61  ;;  %v611_v6 = vadd.f32 1.0, %v1244_v1  ;;  %v1619_v7 = vadd.f32 %v1509_v27, %v456_v62  ;;  %v419_v8 = vmul.f32 %v1487_v9, %v380_v63 }
  0x32   : > { %v1248_v10 = vpop.eup %1247  ;;  %1267 = vrcp.f32 %v610_v2  ;;  %v612_v11 = vadd.f32 1.0, %v1246_v5  ;;  %v1034_v12 = vmul.f32 -1.442695, %v1615_v3  ;;  %v457_v13 = vmul.f32 %v1496_v18, %v418_v4 }
  0x33   : > { %v1250_v14 = vpop.eup %1249  ;;  %1269 = vrcp.f32 %v611_v6  ;;  %v613_v15 = vadd.f32 1.0, %v1248_v10  ;;  %v1035_v17 = vmul.f32 -1.442695, %v1619_v7  ;;  %v458_v19 = vmul.f32 %v1496_v18, %v419_v8 }
  0x34   : > { %v1252_v22 = vpop.eup %1251  ;;  %1271 = vrcp.f32 %v612_v11  ;;  %v614_v23 = vadd.f32 1.0, %v1250_v14  ;;  %v1628_v24 = vadd.f32 %v1509_v27, %v457_v13  ;;  %v381_v25 = vsub.f32 %v1156_v55, %v1481_v0 }
  0x35   : > { %1273 = vrcp.f32 %v613_v15  ;;  %v615_v26 = vadd.f32 1.0, %v1252_v22  ;;  %v1632_v28 = vadd.f32 %v1509_v27, %v458_v19  ;;  %v1157_v31 = vunpack.c.h.bf16 %v1600_v36 }
  0x36   : > { %1275 = vrcp.f32 %v614_v23  ;;  %v1036_v32 = vmul.f32 -1.442695, %v1628_v24  ;;  %v420_v35 = vmul.f32 %v1487_v9, %v381_v25  ;;  %v1160_v37 = vunpack.c.l.bf16 %v1191_v21 }
  0x37   : > { %v1254_v38 = vpop.eup %1253  ;;  %1277 = vrcp.f32 %v615_v26  ;;  %v1037_v39 = vmul.f32 -1.442695, %v1632_v28  ;;  %v382_v40 = vsub.f32 %v1157_v31, %v1481_v0  ;;  %v1161_v50 = vunpack.c.h.bf16 %v1191_v21 }
  0x38   : > { %v1256_v52 = vpop.eup %1255  ;;  %v616_v53 = vadd.f32 1.0, %v1254_v38  ;;  %1279 = vpow2.f32 %v1033_v49  ;;  %v459_v36 = vmul.f32 %v1496_v18, %v420_v35  ;;  %v383_v54 = vsub.f32 %v1160_v37, %v1481_v0 }
  0x39   : > { %v617_v55 = vadd.f32 1.0, %v1256_v52  ;;  %1281 = vpow2.f32 %v1034_v12  ;;  %v421_v56 = vmul.f32 %v1487_v9, %v382_v40  ;;  %v384_v57 = vsub.f32 %v1161_v50, %v1481_v0 }
  0x3a   : > { %v1258_v58 = vpop.eup %1257  ;;  %1283 = vrcp.f32 %v616_v53  ;;  %v1647_v59 = vadd.f32 %v1509_v27, %v459_v36  ;;  %v422_v60 = vmul.f32 %v1487_v9, %v383_v54  ;;  %v1164_v61 = vunpack.c.l.bf16 %v1640_v51  ;;  %v1193_v36 = vld [vmem:[%s1476_s9 + $0x60] sm:$0xff]  }
  0x3b   : > { %v1260_v49 = vpop.eup %1259  ;;  %1285 = vrcp.f32 %v617_v55  ;;  %v618_v62 = vadd.f32 1.0, %v1258_v58  ;;  %v460_v63 = vmul.f32 %v1496_v18, %v421_v56  ;;  %v423_v1 = vmul.f32 %v1487_v9, %v384_v57 }
  0x3c   : > { %v1262_v2 = vpop.eup %1261  ;;  %v619_v4 = vadd.f32 1.0, %v1260_v49  ;;  %1287 = vpow2.f32 %v1035_v17  ;;  %v1038_v5 = vmul.f32 -1.442695, %v1647_v59  ;;  %v461_v6 = vmul.f32 %v1496_v18, %v422_v60 }
  0x3d   : > { %v1264_v8 = vpop.eup %1263  ;;  %1289 = vrcp.f32 %v618_v62  ;;  %v620_v10 = vadd.f32 1.0, %v1262_v2  ;;  %v1656_v11 = vadd.f32 %v1509_v27, %v460_v63  ;;  %v462_v12 = vmul.f32 %v1496_v18, %v423_v1 }
  0x3e   : > { %v1266_v13 = vpop.eup %1265  ;;  %v704_v14 = vmul.f32 %v1264_v8, %v1525_v41  ;;  %1291 = vrcp.f32 %v619_v4  ;;  %v1661_v15 = vadd.f32 %v1509_v27, %v461_v6  ;;  %v385_v17 = vsub.f32 %v1164_v61, %v1481_v0 }
  0x3f   : > { %v1268_v19 = vpop.eup %1267  ;;  %v705_v21 = vmul.f32 %v1266_v13, %v1528_v42  ;;  %1293 = vrcp.f32 %v620_v10  ;;  %v1039_v22 = vmul.f32 -1.442695, %v1656_v11  ;;  %v1674_v41 = vadd.f32 %v1509_v27, %v462_v12 }
  0x40   : > { %v1270_v23 = vpop.eup %1269  ;;  %v1086_v25 = vpack.c.bf16 %v704_v14, %v704_v14  ;;  %v706_v26 = vmul.f32 %v1268_v19, %v1531_v43  ;;  %1295 = vpow2.f32 %v1036_v32  ;;  %v1040_v31 = vmul.f32 -1.442695, %v1661_v15  ;;  %v1194_v19 = vld [vmem:[%s1476_s9 + $0x68] sm:$0xff]  }
  0x41   : > { %v1272_v35 = vpop.eup %1271  ;;  %v1087_v37 = vpack.c.bf16 %v705_v21, %v705_v21  ;;  %v707_v38 = vmul.f32 %v1270_v23, %v1534_v44  ;;  %1297 = vpow2.f32 %v1037_v39  ;;  %v1041_v42 = vmul.f32 -1.442695, %v1674_v41 }
  0x42   : > { %v1274_v40 = vpop.eup %1273  ;;  %865 = vst.msk [vmem:[%s1669_s19] sm:$0xf] %vm864_vm0, %v1086_v25  ;;  %v1088_v50 = vpack.c.bf16 %v706_v26, %v706_v26  ;;  %v708_v52 = vmul.f32 %v1272_v35, %v1537_v45  ;;  %1299 = vpow2.f32 %v1038_v5  ;;  %v424_v43 = vmul.f32 %v1487_v9, %v385_v17 }
  0x43   : > { %v1276_v32 = vpop.eup %1275  ;;  %866 = vst.msk [vmem:[%s1669_s19 + $0x4] sm:$0xf] %vm864_vm0, %v1087_v37  ;;  %v1089_v53 = vpack.c.bf16 %v707_v38, %v707_v38  ;;  %v709_v44 = vmul.f32 %v1274_v40, %v1540_v46  ;;  %1301 = vpow2.f32 %v1039_v22  ;;  %v1165_v39 = vunpack.c.h.bf16 %v1640_v51 }
  0x44   : > { %v1278_v54 = vpop.eup %1277  ;;  %867 = vst.msk [vmem:[%s1669_s19 + $0x8] sm:$0xf] %vm864_vm0, %v1088_v50  ;;  %v1090_v55 = vpack.c.bf16 %v708_v52, %v708_v52  ;;  %v710_v45 = vmul.f32 %v1276_v32, %v1543_v47  ;;  %1303 = vpow2.f32 %v1040_v31  ;;  %v463_v56 = vmul.f32 %v1496_v18, %v424_v43 }
  0x45   : > { %v1280_v57 = vpop.eup %1279  ;;  %868 = vst.msk [vmem:[%s1669_s19 + $0xc] sm:$0xf] %vm864_vm0, %v1089_v53  ;;  %v1091_v58 = vpack.c.bf16 %v709_v44, %v709_v44  ;;  %v711_v46 = vmul.f32 %v1278_v54, %v1546_v48  ;;  %1305 = vpow2.f32 %v1041_v42  ;;  %v386_v51 = vsub.f32 %v1165_v39, %v1481_v0 }
  0x46   : > { %v1282_v60 = vpop.eup %1281  ;;  %869 = vst.msk [vmem:[%s1669_s19 + $0x10] sm:$0xf] %vm864_vm0, %v1090_v55  ;;  %v1092_v61 = vpack.c.bf16 %v710_v45, %v710_v45  ;;  %v621_v49 = vadd.f32 1.0, %v1280_v57  ;;  %v1700_v47 = vadd.f32 %v1509_v27, %v463_v56  ;;  %v1168_v62 = vunpack.c.l.bf16 %v1193_v36  ;;  %v1195_v56 = vld [vmem:[%s1476_s9 + $0x70] sm:$0xff]  }
  0x47   : > { %v1284_v63 = vpop.eup %1283  ;;  %870 = vst.msk [vmem:[%s1669_s19 + $0x14] sm:$0xf] %vm864_vm0, %v1091_v58  ;;  %v1093_v1 = vpack.c.bf16 %v711_v46, %v711_v46  ;;  %v622_v48 = vadd.f32 1.0, %v1282_v60  ;;  %v425_v2 = vmul.f32 %v1487_v9, %v386_v51  ;;  %v1169_v4 = vunpack.c.h.bf16 %v1193_v36 }
  0x48   : > { %v1286_v5 = vpop.eup %1285  ;;  %871 = vst.msk [vmem:[%s1669_s19 + $0x18] sm:$0xf] %vm864_vm0, %v1092_v61  ;;  %v712_v6 = vmul.f32 %v1284_v63, %v1572_v16  ;;  %1307 = vrcp.f32 %v621_v49  ;;  %v1042_v8 = vmul.f32 -1.442695, %v1700_v47  ;;  %v387_v10 = vsub.f32 %v1168_v62, %v1481_v0  ;;  %v1196_v63 = vld [vmem:[%s1476_s9 + $0x78] sm:$0xff]  }
  0x49   : > { %v1288_v12 = vpop.eup %1287  ;;  %872 = vst.msk [vmem:[%s1669_s19 + $0x1c] sm:$0xf] %vm864_vm0, %v1093_v1  ;;  %v713_v13 = vmul.f32 %v1286_v5, %v1577_v20  ;;  %1309 = vrcp.f32 %v622_v48  ;;  %v464_v14 = vmul.f32 %v1496_v18, %v425_v2  ;;  %v388_v17 = vsub.f32 %v1169_v4, %v1481_v0 }
  0x4a   : > { %v1290_v21 = vpop.eup %1289  ;;  %v1094_v22 = vpack.c.bf16 %v712_v6, %v712_v6  ;;  %v623_v16 = vadd.f32 1.0, %v1288_v12  ;;  %1311 = vpow2.f32 %v1042_v8  ;;  %v426_v23 = vmul.f32 %v1487_v9, %v387_v10 }
  0x4b   : > { %v1292_v25 = vpop.eup %1291  ;;  %v1095_v26 = vpack.c.bf16 %v713_v13, %v713_v13  ;;  %v714_v31 = vmul.f32 %v1290_v21, %v1586_v29  ;;  %v1719_v20 = vadd.f32 %v1509_v27, %v464_v14  ;;  %v427_v35 = vmul.f32 %v1487_v9, %v388_v17 }
  0x4c   : > { %v1294_v37 = vpop.eup %1293  ;;  %873 = vst.msk [vmem:[%s1669_s19 + $0x20] sm:$0xf] %vm864_vm0, %v1094_v22  ;;  %v715_v38 = vmul.f32 %v1292_v25, %v1589_v30  ;;  %1313 = vrcp.f32 %v623_v16  ;;  %v465_v42 = vmul.f32 %v1496_v18, %v426_v23  ;;  %v1172_v40 = vunpack.c.l.bf16 %v1194_v19 }
  0x4d   : > { %v1296_v50 = vpop.eup %1295  ;;  %874 = vst.msk [vmem:[%s1669_s19 + $0x24] sm:$0xf] %vm864_vm0, %v1095_v26  ;;  %v1096_v29 = vpack.c.bf16 %v714_v31, %v714_v31  ;;  %v716_v52 = vmul.f32 %v1294_v37, %v1593_v33  ;;  %v1043_v43 = vmul.f32 -1.442695, %v1719_v20  ;;  %v466_v32 = vmul.f32 %v1496_v18, %v427_v35 }
  0x4e   : > { %v1298_v53 = vpop.eup %1297  ;;  %v1097_v44 = vpack.c.bf16 %v715_v38, %v715_v38  ;;  %v624_v30 = vadd.f32 1.0, %v1296_v50  ;;  %v1732_v39 = vadd.f32 %v1509_v27, %v465_v42  ;;  %v389_v36 = vsub.f32 %v1172_v40, %v1481_v0 }
  0x4f   : > { %v1300_v54 = vpop.eup %1299  ;;  %875 = vst.msk [vmem:[%s1669_s19 + $0x28] sm:$0xf] %vm864_vm0, %v1096_v29  ;;  %v1098_v55 = vpack.c.bf16 %v716_v52, %v716_v52  ;;  %v625_v45 = vadd.f32 1.0, %v1298_v53  ;;  %1315 = vpow2.f32 %v1043_v43  ;;  %v1738_v33 = vadd.f32 %v1509_v27, %v466_v32 }
  0x50   : > { %v1302_v57 = vpop.eup %1301  ;;  %876 = vst.msk [vmem:[%s1669_s19 + $0x2c] sm:$0xf] %vm864_vm0, %v1097_v44  ;;  %1317 = vrcp.f32 %v624_v30  ;;  %v626_v58 = vadd.f32 1.0, %v1300_v54  ;;  %v1044_v46 = vmul.f32 -1.442695, %v1732_v39  ;;  %v428_v51 = vmul.f32 %v1487_v9, %v389_v36 }
  0x51   : > { %v1304_v60 = vpop.eup %1303  ;;  %877 = vst.msk [vmem:[%s1669_s19 + $0x30] sm:$0xf] %vm864_vm0, %v1098_v55  ;;  %1319 = vrcp.f32 %v625_v45  ;;  %v627_v61 = vadd.f32 1.0, %v1302_v57  ;;  %v1045_v49 = vmul.f32 -1.442695, %v1738_v33  ;;  %v1173_v62 = vunpack.c.h.bf16 %v1194_v19 }
  0x52   : > { %v1306_v1 = vpop.eup %1305  ;;  %1321 = vrcp.f32 %v626_v58  ;;  %v628_v48 = vadd.f32 1.0, %v1304_v60  ;;  %v467_v2 = vmul.f32 %v1496_v18, %v428_v51  ;;  %v1176_v4 = vunpack.c.l.bf16 %v1195_v56 }
  0x53   : > { %1323 = vrcp.f32 %v627_v61  ;;  %v629_v5 = vadd.f32 1.0, %v1306_v1  ;;  %v390_v6 = vsub.f32 %v1173_v62, %v1481_v0  ;;  %v1177_v8 = vunpack.c.h.bf16 %v1195_v56 }
  0x54   : > { %1325 = vrcp.f32 %v628_v48  ;;  %v1752_v10 = vadd.f32 %v1509_v27, %v467_v2  ;;  %v391_v12 = vsub.f32 %v1176_v4, %v1481_v0  ;;  %v1180_v13 = vunpack.c.l.bf16 %v1196_v63 }
  0x55   : > { %v1308_v14 = vpop.eup %1307  ;;  %1327 = vrcp.f32 %v629_v5  ;;  %v429_v17 = vmul.f32 %v1487_v9, %v390_v6  ;;  %v392_v19 = vsub.f32 %v1177_v8, %v1481_v0  ;;  %v1181_v21 = vunpack.c.h.bf16 %v1196_v63 }
  0x56   : > { %v1310_v22 = vpop.eup %1309  ;;  %v717_v16 = vmul.f32 %v1308_v14, %v1596_v34  ;;  %1329 = vpow2.f32 %v1044_v46  ;;  %v1046_v23 = vmul.f32 -1.442695, %v1752_v10  ;;  %v430_v25 = vmul.f32 %v1487_v9, %v391_v12 }
  0x57   : > { %v1312_v26 = vpop.eup %1311  ;;  %v718_v31 = vmul.f32 %v1310_v22, %v1615_v3  ;;  %1331 = vpow2.f32 %v1045_v49  ;;  %v468_v35 = vmul.f32 %v1496_v18, %v429_v17  ;;  %v431_v37 = vmul.f32 %v1487_v9, %v392_v19 }
  0x58   : > { %v1099_v38 = vpack.c.bf16 %v717_v16, %v717_v16  ;;  %v630_v42 = vadd.f32 1.0, %v1312_v26  ;;  %1333 = vpow2.f32 %v1046_v23  ;;  %v469_v34 = vmul.f32 %v1496_v18, %v430_v25 }
  0x59   : > { %v1314_v40 = vpop.eup %1313  ;;  %v1100_v50 = vpack.c.bf16 %v718_v31, %v718_v31  ;;  %v1765_v29 = vadd.f32 %v1509_v27, %v468_v35  ;;  %v470_v52 = vmul.f32 %v1496_v18, %v431_v37  ;;  %v393_v3 = vsub.f32 %v1180_v13, %v1481_v0 }
  0x5a   : > { %878 = vst.msk [vmem:[%s1669_s19 + $0x34] sm:$0xf] %vm864_vm0, %v1099_v38  ;;  %v719_v43 = vmul.f32 %v1314_v40, %v1619_v7  ;;  %1335 = vrcp.f32 %v630_v42  ;;  %v1773_v32 = vadd.f32 %v1509_v27, %v469_v34  ;;  %v394_v53 = vsub.f32 %v1181_v21, %v1481_v0 }
  0x5b   : > { %879 = vst.msk [vmem:[%s1669_s19 + $0x38] sm:$0xf] %vm864_vm0, %v1100_v50  ;;  %v1047_v44 = vmul.f32 -1.442695, %v1765_v29  ;;  %v1780_v30 = vadd.f32 %v1509_v27, %v470_v52  ;;  %v432_v36 = vmul.f32 %v1487_v9, %v393_v3 }
  0x5c   : > { %v1316_v54 = vpop.eup %1315  ;;  %v1101_v55 = vpack.c.bf16 %v719_v43, %v719_v43  ;;  %v1048_v7 = vmul.f32 -1.442695, %v1773_v32  ;;  %v433_v45 = vmul.f32 %v1487_v9, %v394_v53 }
  0x5d   : > { %v1318_v56 = vpop.eup %1317  ;;  %v631_v57 = vadd.f32 1.0, %v1316_v54  ;;  %1337 = vpow2.f32 %v1047_v44  ;;  %v1049_v0 = vmul.f32 -1.442695, %v1780_v30  ;;  %v471_v58 = vmul.f32 %v1496_v18, %v432_v36 }
  0x5e   : > { %v1320_v46 = vpop.eup %1319  ;;  %880 = vst.msk [vmem:[%s1669_s19 + $0x3c] sm:$0xf] %vm864_vm0, %v1101_v55  ;;  %v720_v51 = vmul.f32 %v1318_v56, %v1628_v24  ;;  %1339 = vpow2.f32 %v1048_v7  ;;  %v472_v60 = vmul.f32 %v1496_v18, %v433_v45 }
  0x5f   : > { %v1322_v61 = vpop.eup %1321  ;;  %v721_v49 = vmul.f32 %v1320_v46, %v1632_v28  ;;  %1341 = vrcp.f32 %v631_v57  ;;  %v1793_v9 = vadd.f32 %v1509_v27, %v471_v58 }
  0x60   : > { %v1324_v62 = vpop.eup %1323  ;;  %v1102_v63 = vpack.c.bf16 %v720_v51, %v720_v51  ;;  %v722_v1 = vmul.f32 %v1322_v61, %v1647_v59  ;;  %1343 = vpow2.f32 %v1049_v0  ;;  %v1797_v48 = vadd.f32 %v1509_v27, %v472_v60 }
  0x61   : > { %v1326_v24 = vpop.eup %1325  ;;  %v1103_v2 = vpack.c.bf16 %v721_v49, %v721_v49  ;;  %v723_v18 = vmul.f32 %v1324_v62, %v1656_v11  ;;  %v1050_v28 = vmul.f32 -1.442695, %v1793_v9 }
  0x62   : > { %v1328_v4 = vpop.eup %1327  ;;  %881 = vst.msk [vmem:[%s1669_s19 + $0x40] sm:$0xf] %vm864_vm0, %v1102_v63  ;;  %v1104_v5 = vpack.c.bf16 %v722_v1, %v722_v1  ;;  %v724_v6 = vmul.f32 %v1326_v24, %v1661_v15  ;;  %v1051_v59 = vmul.f32 -1.442695, %v1797_v48 }
  0x63   : > { %v1330_v8 = vpop.eup %1329  ;;  %882 = vst.msk [vmem:[%s1669_s19 + $0x44] sm:$0xf] %vm864_vm0, %v1103_v2  ;;  %v1105_v27 = vpack.c.bf16 %v723_v18, %v723_v18  ;;  %v725_v12 = vmul.f32 %v1328_v4, %v1674_v41  ;;  %1345 = vpow2.f32 %v1050_v28 }
  0x64   : > { %v1332_v11 = vpop.eup %1331  ;;  %883 = vst.msk [vmem:[%s1669_s19 + $0x48] sm:$0xf] %vm864_vm0, %v1104_v5  ;;  %v1106_v13 = vpack.c.bf16 %v724_v6, %v724_v6  ;;  %v632_v14 = vadd.f32 1.0, %v1330_v8  ;;  %1347 = vpow2.f32 %v1051_v59 }
  0x65   : > { %v1334_v17 = vpop.eup %1333  ;;  %884 = vst.msk [vmem:[%s1669_s19 + $0x4c] sm:$0xf] %vm864_vm0, %v1105_v27  ;;  %v1107_v15 = vpack.c.bf16 %v725_v12, %v725_v12  ;;  %v633_v19 = vadd.f32 1.0, %v1332_v11 }
  0x66   : > { %885 = vst.msk [vmem:[%s1669_s19 + $0x50] sm:$0xf] %vm864_vm0, %v1106_v13  ;;  %1349 = vrcp.f32 %v632_v14  ;;  %v634_v21 = vadd.f32 1.0, %v1334_v17 }
  0x67   : > { %v1336_v22 = vpop.eup %1335  ;;  %886 = vst.msk [vmem:[%s1669_s19 + $0x54] sm:$0xf] %vm864_vm0, %v1107_v15  ;;  %1351 = vrcp.f32 %v633_v19 }
  0x68   : > { %v726_v41 = vmul.f32 %v1336_v22, %v1700_v47  ;;  %1353 = vrcp.f32 %v634_v21 }
  0x6a   : > { %v1338_v16 = vpop.eup %1337  ;;  %v1108_v23 = vpack.c.bf16 %v726_v41, %v726_v41 }
  0x6b   : > { %v1340_v25 = vpop.eup %1339  ;;  %v635_v26 = vadd.f32 1.0, %v1338_v16 }
  0x6c   : > { %v1342_v31 = vpop.eup %1341  ;;  %887 = vst.msk [vmem:[%s1669_s19 + $0x58] sm:$0xf] %vm864_vm0, %v1108_v23  ;;  %v636_v35 = vadd.f32 1.0, %v1340_v25 }
  0x6d   : > { %v1344_v37 = vpop.eup %1343  ;;  %v727_v38 = vmul.f32 %v1342_v31, %v1719_v20  ;;  %1355 = vrcp.f32 %v635_v26 }
  0x6e   : > { %1357 = vrcp.f32 %v636_v35  ;;  %v637_v42 = vadd.f32 1.0, %v1344_v37 }
  0x6f   : > { %v1109_v34 = vpack.c.bf16 %v727_v38, %v727_v38 }
  0x70   : > { %v1346_v40 = vpop.eup %1345  ;;  %1359 = vrcp.f32 %v637_v42 }
  0x71   : > { %v1348_v47 = vpop.eup %1347  ;;  %888 = vst.msk [vmem:[%s1669_s19 + $0x5c] sm:$0xf] %vm864_vm0, %v1109_v34  ;;  %v638_v50 = vadd.f32 1.0, %v1346_v40 }
  0x72   : > { %v639_v52 = vadd.f32 1.0, %v1348_v47 }
  0x73   : > { %v1350_v3 = vpop.eup %1349  ;;  %1361 = vrcp.f32 %v638_v50 }
  0x74   : > { %v1352_v43 = vpop.eup %1351  ;;  %v728_v53 = vmul.f32 %v1350_v3, %v1732_v39  ;;  %1363 = vrcp.f32 %v639_v52 }
  0x75   : > { %v1354_v20 = vpop.eup %1353  ;;  %v729_v44 = vmul.f32 %v1352_v43, %v1738_v33 }
  0x76   : > { %v1110_v36 = vpack.c.bf16 %v728_v53, %v728_v53  ;;  %v730_v54 = vmul.f32 %v1354_v20, %v1752_v10 }
  0x77   : > { %v1111_v55 = vpack.c.bf16 %v729_v44, %v729_v44 }
  0x78   : > { %889 = vst.msk [vmem:[%s1669_s19 + $0x60] sm:$0xf] %vm864_vm0, %v1110_v36  ;;  %v1112_v7 = vpack.c.bf16 %v730_v54, %v730_v54 }
  0x79   : > { %890 = vst.msk [vmem:[%s1669_s19 + $0x64] sm:$0xf] %vm864_vm0, %v1111_v55 }
  0x7a   : > { %v1356_v45 = vpop.eup %1355  ;;  %891 = vst.msk [vmem:[%s1669_s19 + $0x68] sm:$0xf] %vm864_vm0, %v1112_v7 }
  0x7b   : > { %v1358_v39 = vpop.eup %1357  ;;  %v731_v56 = vmul.f32 %v1356_v45, %v1765_v29 }
  0x7c   : > { %v732_v33 = vmul.f32 %v1358_v39, %v1773_v32 }
  0x7d   : > { %v1360_v57 = vpop.eup %1359  ;;  %v1113_v10 = vpack.c.bf16 %v731_v56, %v731_v56 }
  0x7e   : > { %v1114_v0 = vpack.c.bf16 %v732_v33, %v732_v33  ;;  %v733_v58 = vmul.f32 %v1360_v57, %v1780_v30 }
  0x7f   : > { %892 = vst.msk [vmem:[%s1669_s19 + $0x6c] sm:$0xf] %vm864_vm0, %v1113_v10 }
  0x80   : > { %v1362_v46 = vpop.eup %1361  ;;  %893 = vst.msk [vmem:[%s1669_s19 + $0x70] sm:$0xf] %vm864_vm0, %v1114_v0  ;;  %v1115_v51 = vpack.c.bf16 %v733_v58, %v733_v58 }
  0x81   : > { %v1364_v60 = vpop.eup %1363  ;;  %v734_v61 = vmul.f32 %v1362_v46, %v1793_v9 }
  0x82   : > { %894 = vst.msk [vmem:[%s1669_s19 + $0x74] sm:$0xf] %vm864_vm0, %v1115_v51  ;;  %v735_v29 = vmul.f32 %v1364_v60, %v1797_v48 }
  0x83   : > { %v1116_v32 = vpack.c.bf16 %v734_v61, %v734_v61 }
  0x84   : > { %v1117_v49 = vpack.c.bf16 %v735_v29, %v735_v29 }
  0x85   : > { %895 = vst.msk [vmem:[%s1669_s19 + $0x78] sm:$0xf] %vm864_vm0, %v1116_v32 }
  0x86   : > { %896 = vst.msk [vmem:[%s1669_s19 + $0x7c] sm:$0xf] %vm864_vm0, %v1117_v49 }
  0x87 PF: > { %s15_s22 = sadd.s32 1, %s1403_s22   ;;  %s1867_s18 = smov %s1395_s20 }
  0x88   : > { %p12_p7 = scmp.ge.s32.totalorder %s15_s22, 6   ;;  %s1868_s19 = smov %s1399_s21 }
  0x89   : > { %s1869_s20 = smov %s1872_s23  ;;  %s1870_s21 = smov %s1876_s24 }
  0x8a   :  { %14 = sbr.rel (!%p12_p7) target bundleno = 3 (0x3), region = 76 }

// kernel: encoder3d_forward.38
= control target key start
LH: loop header
LB: loop body
LE: loop exit
PB: predicated region body
PF: predicated region fallthrough
CT: control target
= control target key end

     0   :  { %s1096_s12 = smov 0   ;;  %s1098_s13 = smov 0   ;;  %s1251_s0 = inlined_call_operand.vmem [shape: bf16[2,10,80,24], index: 0, kind: input, shape index: {}]   ;;  %s1252_s1 = inlined_call_operand.vmem [shape: bf16[3,3,24,8], index: 1, kind: input, shape index: {}]   ;;  %s1253_s2 = inlined_call_operand.vmem [shape: f32[1,8], index: 2, kind: input, shape index: {}]   ;;  %s1254_s3 = inlined_call_operand.vmem [shape: bf16[2,8,64,8], index: 3, kind: output, shape index: {}]  }
   0x1   :  { %s1100_s14 = smov 0   ;;  %s1102_s15 = smov 0  }
   0x2   :  { %s1104_s16 = smov 0   ;;  %s1106_s17 = smov 0  }
   0x3   :  { %s1108_s18 = smov 0  }
   0x4 LB: > { %s25_s19 = sadd.s32 1, %s1061_s15  ;;  %s28_s20 = sadd.s32 1, %s1065_s16  ;;  %s1073_s18 = sphi %s1108_s18, %s13_s18   ;;  %s1069_s17 = sphi %s1106_s17, %s1260_s17   ;;  %s1065_s16 = sphi %s1104_s16, %s1259_s16   ;;  %s1061_s15 = sphi %s1102_s15, %s1258_s15   ;;  %s1057_s14 = sphi %s1100_s14, %s1257_s14   ;;  %s1053_s13 = sphi %s1098_s13, %s1256_s13   ;;  %s1049_s12 = sphi %s1096_s12, %s1255_s12  }
   0x5   : > { %p26_p0 = scmp.ge.s32.totalorder %s25_s19, 3  ;;  %p816_p1 = scmp.ge.s32.totalorder %s1073_s18, 1 }
   0x6   : > { %p178_p2 = scmp.lt.s32.totalorder %s1073_s18, 49  ;;  %s32_s21 = sadd.s32 1, %s1069_s17 }
   0x7   : > { %s1262_s19 = smov (%p26_p0, %s25_s19), 0  ;;  %s1264_s20 = smov (!%p26_p0, %s28_s20), %s1065_s16 }
   0x8   : > { %p179_p3 = pnand %p816_p1, %p178_p2  ;;  %p30_p4 = scmp.ge.s32.totalorder %s1264_s20, 8 }
   0x9   : > { %s216_s22 = sadd.s32 (!%p179_p3), %s1049_s12, %s1053_s13  ;;  %p217_p6 = scmp.lt.s32.totalorder (!%p179_p3), %s1057_s14, 1 }
   0xa   : > { %s1266_s20 = smov (%p30_p4, %s1264_s20), 0  ;;  %s1268_s21 = smov (!%p30_p4, %s32_s21), %s1069_s17 }
   0xb   : > { %p34_p5 = scmp.ge.s32.totalorder %s1268_s21, 2  ;;  %182 = sbr.rel (%p179_p3) target bundleno = 277 (0x115), region = 32 }
   0xc   : > { %p219_p7 = scmp.lt.s32.totalorder (!%p179_p3), %s216_s22, 9  ;;  %p227_p8 = scmp.lt.s32.totalorder (!%p179_p3), %s1049_s12, 2 }
   0xd   : > { %s1270_s21 = smov (%p34_p5, %s1268_s21), 0  ;;  %p234_p9 = scmp.lt.s32.totalorder (!%p179_p3), %s1053_s13, 7 }
   0xe   : > { %p822_p10 = scmp.ne.s32.totalorder (!%p179_p3), %s1049_s12, 0 }
  0x10   : > { %s1272_s14 = smov (!%p217_p6, %s1057_s14), 1  ;;  %s1274_s22 = smov (!%p219_p7, %s216_s22), 9 }
  0x11   : > { %s942_s23 = smul.u32 100, %s1272_s14  ;;  %s820_s8 = sshll.u32 %s1272_s14, 6 }
  0x12   : > { %s941_s24 = smul.u32 10, %s1274_s22  ;;  %s1276_s13 = smov (!%p234_p9, %s1053_s13), 7 }
  0x13   : > { %s228_s25 = scalar_select %p227_p8, %s1049_s12, 2 }
  0x14   : > { %s223_s26 = sadd.s32 %s942_s23, %s941_s24  ;;  %s819_s9 = sshll.u32 %s1276_s13, 3 }
  0x15   : > { %s817_s27 = sshll.u32 %s223_s26, 2  ;;  %s943_s28 = smul.u32 36, %s228_s25 }
  0x16   : > { %s1150_s4 = scalar_lea.vmem %s1251_s0, %s817_s27  ;;  %s238_s10 = sadd.s32 %s820_s8, %s819_s9 }
  0x17   : > { %s1155_s7 = scalar_lea.vmem %s1252_s1, %s943_s28  ;;  %s821_s11 = sshll.u32 %s238_s10, 2 }
  0x18   : > { %s1161_s24 = scalar_lea.vmem %s1254_s3, %s821_s11  ;;  %245 = sbr.rel (%p822_p10) target bundleno = 34 (0x22), region = 36 }
  0x1d   : > { %vm246_vm0 = vcmask 64512   ;;  %v1075_v0 = vmov 0.0  }
  0x1e   : > { %247 = vst.msk [vmem:[#allocation2] sm:$0xff] %vm246_vm0, %v1075_v0  ;;  %248 = vst.msk [vmem:[#allocation2 + $0x8] sm:$0xff] %vm246_vm0, %v1075_v0 }
  0x1f   : > { %249 = vst.msk [vmem:[#allocation2 + $0x10] sm:$0xff] %vm246_vm0, %v1075_v0  ;;  %250 = vst.msk [vmem:[#allocation2 + $0x18] sm:$0xff] %vm246_vm0, %v1075_v0 }
  0x20   : > { %251 = vst.msk [vmem:[#allocation2 + $0x20] sm:$0xff] %vm246_vm0, %v1075_v0  ;;  %252 = vst.msk [vmem:[#allocation2 + $0x28] sm:$0xff] %vm246_vm0, %v1075_v0 }
  0x21   : > { %253 = vst.msk [vmem:[#allocation2 + $0x30] sm:$0xff] %vm246_vm0, %v1075_v0  ;;  %254 = vst.msk [vmem:[#allocation2 + $0x38] sm:$0xff] %vm246_vm0, %v1075_v0 }
  0x22 PF: > { %v1001_v1 = vld [vmem:[%s1155_s7 + $0x14] ss:$0 sps:$4 sm:$0xff]   ;;  %vm313_vm1 = vcmask 1043456   ;;  %v1002_v2 = vld [vmem:[%s1155_s7 + $0xc] sm:$0xff]   ;;  %v256_v4 = vld [vmem:[%s1150_s4 + $0x4] sm:$0xf] }
  0x23   : > { %937 = vmatprep.subr.msk.bf16.mxu0 %vm313_vm1, %v1001_v1  ;;  %938 = vmatprep.subr.msk.bf16.mxu1 %vm313_vm1, %v1001_v1  ;;  %v315_v3 = vsel %vm313_vm1, %v1001_v1, 0  ;;  %v257_v5 = vld [vmem:[%s1150_s4 + $0x8] sm:$0xf]  ;;  %vm300_vm2 = vcmask 195584   ;;  %v258_v6 = vld [vmem:[%s1150_s4 + $0xc] sm:$0xf] }
  0x24   : > { %898 = vmatpush3.bf16.msra.mxu0 %v315_v3  ;;  %935 = vmatpush3.bf16.msra.mxu1 %v315_v3  ;;  %v826_v7 = vcombine.low %v256_v4, %v257_v5  ;;  %v259_v8 = vld [vmem:[%s1150_s4 + $0x10] sm:$0xf]  ;;  %v260_v9 = vld [vmem:[%s1150_s4 + $0x14] sm:$0xf]  ;;  %v255_v10 = vld [vmem:[%s1150_s4] sm:$0xf]  ;;  %v837_v25 = vcombine.low %v257_v5, %v258_v6 }
  0x25   : > { %899 = vmatprep.subr.bf16.mxu0 %v1002_v2  ;;  %934 = vmatprep.subr.bf16.mxu1 %v1002_v2  ;;  %v261_v11 = vld [vmem:[%s1150_s4 + $0x18] sm:$0xf]  ;;  %v262_v12 = vld [vmem:[%s1150_s4 + $0x1c] sm:$0xf]  ;;  %v266_v13 = vld [vmem:[%s1150_s4 + $0x20] sm:$0xf]  ;;  %v827_v16 = vcombine.low %v258_v6, %v259_v8  ;;  %v836_v23 = vcombine.low %v255_v10, %v256_v4  ;;  %v838_v27 = vcombine.low %v259_v8, %v260_v9 }
  0x26   : > { %901 = vmatprep.mubr.msk.bf16.mxu0 %vm300_vm2, %v826_v7  ;;  %v828_v14 = vcombine.low %v260_v9, %v261_v11  ;;  %v1011_v15 = vld [vmem:[%s1155_s7 + $0x8] ss:$0 sps:$4 sm:$0xff]   ;;  %v829_v17 = vcombine.low %v262_v12, %v266_v13  ;;  %v1012_v18 = vld [vmem:[%s1155_s7 + $0x20] ss:$0 sps:$4 sm:$0xff]   ;;  %v1014_v22 = vld [vmem:[%s1155_s7 + $0x18] sm:$0xff]   ;;  %v839_v29 = vcombine.low %v261_v11, %v262_v12  ;;  %vm622_vm3 = vcmask 64512  }
  0x27   : > { %v410_v19 = vsel %vm313_vm1, %v1011_v15, 0  ;;  %v1013_v20 = vld [vmem:[%s1155_s7] sm:$0xff]   ;;  %v531_v21 = vsel %vm313_vm1, %v1012_v18, 0  ;;  %v1015_v24 = vld [vmem:[%s1150_s4 + $0x8] sm:$0xff]   ;;  %v1016_v26 = vld [vmem:[%s1150_s4 + $0x10] sm:$0xff]   ;;  %p859_p11 = scmp.ne.s32.totalorder %s1049_s12, 2 }
  0x28   : > { %900 = vmatpush3.bf16.msra.mxu0 %v1002_v2  ;;  %936 = vmatpush3.bf16.msra.mxu1 %v1002_v2  ;;  %v1017_v28 = vld [vmem:[%s1150_s4 + $0x18] sm:$0xff]   ;;  %v1018_v30 = vld [vmem:[%s1150_s4 + $0x20] sm:$0xff]   ;;  %v608_v42 = vld [vmem:[#allocation2 + $0x10] sm:$0xff] }
  0x29   : > { %905 = vmatprep.mubr.msk.bf16.mxu1 %vm300_vm2, %v828_v14  ;;  %939 = vmatprep.subr.msk.bf16.mxu1 %vm313_vm1, %v1011_v15  ;;  %v606_v47 = vld [vmem:[#allocation2] sm:$0xff]  ;;  %v609_v53 = vld [vmem:[#allocation2 + $0x18] sm:$0xff]  ;;  %v607_v59 = vld [vmem:[#allocation2 + $0x8] sm:$0xff] }
  0x2a   : > { %940 = vmatprep.subr.msk.bf16.mxu0 %vm313_vm1, %v1012_v18  ;;  %v612_v1 = vld [vmem:[#allocation2 + $0x30] sm:$0xff]  ;;  %v610_v7 = vld [vmem:[#allocation2 + $0x20] sm:$0xff]  ;;  %v613_v13 = vld [vmem:[#allocation2 + $0x38] sm:$0xff] }
  0x2b   : > { %902 = vmatmul.mubr.msk.bf16.vlgmr.msra.gmra.mxu0 %vm300_vm2, %v827_v16  ;;  %906 = vmatmul.mubr.msk.bf16.vlgmr.msra.gmra.mxu1 %vm300_vm2, %v829_v17 }
  0x2c   : > { %910 = vmatpush3.bf16.msra.mxu1 %v410_v19  ;;  %922 = vmatpush3.bf16.msra.mxu0 %v531_v21  ;;  %v611_v19 = vld [vmem:[#allocation2 + $0x28] sm:$0xff] }
  0x2d   : > { %911 = vmatprep.subr.bf16.mxu1 %v1013_v20  ;;  %923 = vmatprep.subr.bf16.mxu0 %v1014_v22 }
  0x2e   : > { %913 = vmatprep.mubr.msk.bf16.mxu1 %vm300_vm2, %v836_v23  ;;  %925 = vmatprep.mubr.msk.bf16.mxu0 %vm300_vm2, %v1015_v24 }
  0x30   : > { %912 = vmatpush3.bf16.msra.mxu1 %v1013_v20  ;;  %924 = vmatpush3.bf16.msra.mxu0 %v1014_v22 }
  0x33   : > { %914 = vmatmul.mubr.msk.bf16.vlgmr.msra.gmra.mxu1 %vm300_vm2, %v837_v25  ;;  %926 = vmatmul.mubr.msk.bf16.vlgmr.msra.gmra.mxu0 %vm300_vm2, %v1016_v26 }
  0x34   : > { %917 = vmatprep.mubr.msk.bf16.mxu1 %vm300_vm2, %v838_v27  ;;  %929 = vmatprep.mubr.msk.bf16.mxu0 %vm300_vm2, %v1017_v28 }
  0x3b   : > { %918 = vmatmul.mubr.msk.bf16.gmra.mxu1 %vm300_vm2, %v839_v29  ;;  %930 = vmatmul.mubr.msk.bf16.gmra.mxu0 %vm300_vm2, %v1018_v30 }
  0xeb   : > { %v903_v31 = vpop.f32.mrf.mxu0  ;;  %v907_v32 = vpop.f32.mrf.mxu1 }
  0xed   : > { %v351_v33 = vpop.f32.mrf.mxu0  ;;  %v367_v34 = vpop.f32.mrf.mxu1 }
  0xef   : > { %v904_v35 = vpop.f32.mrf.mxu0  ;;  %v908_v36 = vpop.f32.mrf.mxu1 }
  0xf1   : > { %v354_v37 = vpop.f32.mrf.mxu0  ;;  %v370_v38 = vpop.f32.mrf.mxu1 }
  0xf3   : > { %v915_v39 = vpop.f32.mrf.mxu1  ;;  %v927_v40 = vpop.f32.mrf.mxu0 }
  0xf4   : > { %v455_v41 = vadd.f32 %v915_v39, %v903_v31 }
  0xf5   : > { %v446_v43 = vpop.f32.mrf.mxu1  ;;  %v567_v44 = vpop.f32.mrf.mxu0 }
  0xf6   : > { %v600_v45 = vadd.f32 %v927_v40, %v455_v41  ;;  %v447_v46 = vadd.f32 %v446_v43, %v351_v33 }
  0xf7   : > { %v916_v48 = vpop.f32.mrf.mxu1  ;;  %v928_v49 = vpop.f32.mrf.mxu0 }
  0xf8   : > { %v616_v50 = vadd.f32 %v608_v42, %v600_v45  ;;  %v598_v51 = vadd.f32 %v567_v44, %v447_v46  ;;  %v458_v52 = vadd.f32 %v916_v48, %v904_v35 }
  0xf9   : > { %v449_v54 = vpop.f32.mrf.mxu1  ;;  %v570_v55 = vpop.f32.mrf.mxu0 }
  0xfa   : > { %625 = vst.msk [vmem:[#allocation2 + $0x10] sm:$0xff] %vm622_vm3, %v616_v50  ;;  %v614_v56 = vadd.f32 %v606_v47, %v598_v51  ;;  %v601_v57 = vadd.f32 %v928_v49, %v458_v52  ;;  %v450_v58 = vadd.f32 %v449_v54, %v354_v37 }
  0xfb   : > { %v919_v60 = vpop.f32.mrf.mxu1  ;;  %v931_v61 = vpop.f32.mrf.mxu0 }
  0xfc   : > { %623 = vst.msk [vmem:[#allocation2] sm:$0xff] %vm622_vm3, %v614_v56  ;;  %v617_v62 = vadd.f32 %v609_v53, %v601_v57  ;;  %v599_v63 = vadd.f32 %v570_v55, %v450_v58  ;;  %v471_v0 = vadd.f32 %v919_v60, %v907_v32 }
  0xfd   : > { %v462_v2 = vpop.f32.mrf.mxu1  ;;  %v583_v3 = vpop.f32.mrf.mxu0 }
  0xfe   : > { %626 = vst.msk [vmem:[#allocation2 + $0x18] sm:$0xff] %vm622_vm3, %v617_v62  ;;  %v615_v4 = vadd.f32 %v607_v59, %v599_v63  ;;  %v604_v5 = vadd.f32 %v931_v61, %v471_v0  ;;  %v463_v6 = vadd.f32 %v462_v2, %v367_v34 }
  0xff   : > { %v920_v8 = vpop.f32.mrf.mxu1  ;;  %v932_v9 = vpop.f32.mrf.mxu0 }
 0x100   : > { %624 = vst.msk [vmem:[#allocation2 + $0x8] sm:$0xff] %vm622_vm3, %v615_v4  ;;  %v620_v10 = vadd.f32 %v612_v1, %v604_v5  ;;  %v602_v11 = vadd.f32 %v583_v3, %v463_v6  ;;  %v474_v12 = vadd.f32 %v920_v8, %v908_v36 }
 0x101   : > { %v465_v14 = vpop.f32.mrf.mxu1  ;;  %v586_v18 = vpop.f32.mrf.mxu0 }
 0x102   : > { %629 = vst.msk [vmem:[#allocation2 + $0x30] sm:$0xff] %vm622_vm3, %v620_v10  ;;  %v618_v15 = vadd.f32 %v610_v7, %v602_v11  ;;  %v605_v16 = vadd.f32 %v932_v9, %v474_v12  ;;  %v466_v17 = vadd.f32 %v465_v14, %v370_v38 }
 0x104   : > { %627 = vst.msk [vmem:[#allocation2 + $0x20] sm:$0xff] %vm622_vm3, %v618_v15  ;;  %v621_v20 = vadd.f32 %v613_v13, %v605_v16  ;;  %v603_v21 = vadd.f32 %v586_v18, %v466_v17  ;;  %634 = sbr.rel (%p859_p11) target bundleno = 277 (0x115), region = 40 }
 0x106   : > { %630 = vst.msk [vmem:[#allocation2 + $0x38] sm:$0xff] %vm622_vm3, %v621_v20  ;;  %v619_v22 = vadd.f32 %v611_v19, %v603_v21 }
 0x108   : > { %628 = vst.msk [vmem:[#allocation2 + $0x28] sm:$0xff] %vm622_vm3, %v619_v22 }
 0x109   : > { %v635_v23 = vld [vmem:[#allocation2] sm:$0xff]  ;;  %v636_v25 = vld [vmem:[#allocation2 + $0x8] sm:$0xff]  ;;  %v637_v28 = vld [vmem:[#allocation2 + $0x10] sm:$0xff]  ;;  %vm690_vm4 = vcmask 60416  }
 0x10a   : > { %v860_v24 = vld [vmem:[%s1253_s2] ss:$0 sm:$0xff]  ;;  %v638_v29 = vld [vmem:[#allocation2 + $0x18] sm:$0xff]  ;;  %v641_v35 = vld [vmem:[#allocation2 + $0x30] sm:$0xff] }
 0x10b   : > { %v650_v26 = vadd.f32 %v860_v24, %v635_v23  ;;  %v651_v27 = vadd.f32 %v860_v24, %v636_v25  ;;  %v639_v30 = vld [vmem:[#allocation2 + $0x20] sm:$0xff]  ;;  %v652_v31 = vadd.f32 %v860_v24, %v637_v28  ;;  %v653_v32 = vadd.f32 %v860_v24, %v638_v29 }
 0x10c   : > { %v654_v33 = vadd.f32 %v860_v24, %v639_v30  ;;  %v656_v40 = vadd.f32 %v860_v24, %v641_v35 }
 0x10d   : > { %v642_v36 = vld [vmem:[#allocation2 + $0x38] sm:$0xff]  ;;  %v871_v37 = vpack.c.bf16 %v650_v26, %v650_v26  ;;  %v872_v38 = vpack.c.bf16 %v651_v27, %v651_v27  ;;  %v873_v41 = vpack.c.bf16 %v652_v31, %v652_v31  ;;  %v874_v42 = vpack.c.bf16 %v653_v32, %v653_v32 }
 0x10e   : > { %v875_v43 = vpack.c.bf16 %v654_v33, %v654_v33  ;;  %v657_v44 = vadd.f32 %v860_v24, %v642_v36  ;;  %v877_v46 = vpack.c.bf16 %v656_v40, %v656_v40 }
 0x10f   : > { %v640_v34 = vld [vmem:[#allocation2 + $0x28] sm:$0xff]  ;;  %691 = vst.msk [vmem:[%s1161_s24] sm:$0xf] %vm690_vm4, %v871_v37  ;;  %692 = vst.msk [vmem:[%s1161_s24 + $0x4] sm:$0xf] %vm690_vm4, %v872_v38 }
 0x110   : > { %v655_v39 = vadd.f32 %v860_v24, %v640_v34  ;;  %693 = vst.msk [vmem:[%s1161_s24 + $0x8] sm:$0xf] %vm690_vm4, %v873_v41  ;;  %694 = vst.msk [vmem:[%s1161_s24 + $0xc] sm:$0xf] %vm690_vm4, %v874_v42  ;;  %v878_v47 = vpack.c.bf16 %v657_v44, %v657_v44 }
 0x111   : > { %695 = vst.msk [vmem:[%s1161_s24 + $0x10] sm:$0xf] %vm690_vm4, %v875_v43  ;;  %697 = vst.msk [vmem:[%s1161_s24 + $0x18] sm:$0xf] %vm690_vm4, %v877_v46 }
 0x112   : > { %v876_v45 = vpack.c.bf16 %v655_v39, %v655_v39  ;;  %698 = vst.msk [vmem:[%s1161_s24 + $0x1c] sm:$0xf] %vm690_vm4, %v878_v47 }
 0x114   : > { %696 = vst.msk [vmem:[%s1161_s24 + $0x14] sm:$0xf] %vm690_vm4, %v876_v45 }
 0x115 PF: > { %s13_s18 = sadd.s32 1, %s1073_s18   ;;  %s1255_s12 = smov %s1061_s15 }
 0x116   : > { %p10_p12 = scmp.ge.s32.totalorder %s13_s18, 50   ;;  %s1256_s13 = smov %s1065_s16 }
 0x117   : > { %s1257_s14 = smov %s1069_s17  ;;  %s1258_s15 = smov %s1262_s19 }
 0x118   : > { %s1259_s16 = smov %s1266_s20  ;;  %s1260_s17 = smov %s1270_s21 }
 0x119   :  { %12 = sbr.rel (!%p10_p12) target bundleno = 4 (0x4), region = 75 }

// kernel: encoder3d_forward.41
= control target key start
LH: loop header
LB: loop body
LE: loop exit
PB: predicated region body
PF: predicated region fallthrough
CT: control target
= control target key end

     0   :  { %s1229_s15 = smov 0   ;;  %s1231_s16 = smov 0   ;;  %s1393_s0 = inlined_call_operand.vmem [shape: bf16[2,10,80,24], index: 0, kind: input, shape index: {}]   ;;  %s1394_s1 = inlined_call_operand.vmem [shape: bf16[3,3,24,8], index: 1, kind: input, shape index: {}]   ;;  %s1395_s2 = inlined_call_operand.vmem [shape: f32[1,8], index: 2, kind: input, shape index: {}]   ;;  %s1396_s3 = inlined_call_operand.vmem [shape: bf16[2,8,64,8], index: 3, kind: input, shape index: {}]   ;;  %s1397_s4 = inlined_call_operand.vmem [shape: bf16[2,8,64,8], index: 4, kind: output, shape index: {}]  }
   0x1   :  { %s1233_s17 = smov 0   ;;  %s1235_s18 = smov 0  }
   0x2   :  { %s1237_s19 = smov 0   ;;  %s1239_s20 = smov 0  }
   0x3   :  { %s1241_s21 = smov 0  }
   0x4 LB: > { %s26_s22 = sadd.s32 1, %s1189_s18  ;;  %s29_s23 = sadd.s32 1, %s1193_s19  ;;  %s1201_s21 = sphi %s1241_s21, %s14_s21   ;;  %s1197_s20 = sphi %s1239_s20, %s1405_s20   ;;  %s1193_s19 = sphi %s1237_s19, %s1404_s19   ;;  %s1189_s18 = sphi %s1235_s18, %s1403_s18   ;;  %s1185_s17 = sphi %s1233_s17, %s1402_s17   ;;  %s1181_s16 = sphi %s1231_s16, %s1401_s16   ;;  %s1177_s15 = sphi %s1229_s15, %s1400_s15  }
   0x5   : > { %p27_p0 = scmp.ge.s32.totalorder %s26_s22, 3  ;;  %p922_p1 = scmp.ge.s32.totalorder %s1201_s21, 1 }
   0x6   : > { %p219_p2 = scmp.lt.s32.totalorder %s1201_s21, 49  ;;  %s33_s24 = sadd.s32 1, %s1197_s20 }
   0x7   : > { %s1407_s22 = smov (%p27_p0, %s26_s22), 0  ;;  %s1409_s23 = smov (!%p27_p0, %s29_s23), %s1193_s19 }
   0x8   : > { %p220_p3 = pnand %p922_p1, %p219_p2  ;;  %p31_p4 = scmp.ge.s32.totalorder %s1409_s23, 8 }
   0x9   : > { %s268_s25 = sadd.s32 (!%p220_p3), %s1177_s15, %s1181_s16  ;;  %p269_p6 = scmp.lt.s32.totalorder (!%p220_p3), %s1185_s17, 1 }
   0xa   : > { %s1411_s23 = smov (%p31_p4, %s1409_s23), 0  ;;  %s1413_s24 = smov (!%p31_p4, %s33_s24), %s1197_s20 }
   0xb   : > { %p35_p5 = scmp.ge.s32.totalorder %s1413_s24, 2  ;;  %223 = sbr.rel (%p220_p3) target bundleno = 281 (0x119), region = 36 }
   0xc   : > { %p271_p7 = scmp.lt.s32.totalorder (!%p220_p3), %s268_s25, 9  ;;  %p279_p8 = scmp.lt.s32.totalorder (!%p220_p3), %s1177_s15, 2 }
   0xd   : > { %s1415_s24 = smov (%p35_p5, %s1413_s24), 0  ;;  %p286_p9 = scmp.lt.s32.totalorder (!%p220_p3), %s1181_s16, 7 }
   0xe   : > { %1398 = sst [smem:[#allocation3_spill]] %s1415_s24  ;;  %p931_p10 = scmp.ne.s32.totalorder (!%p220_p3), %s1177_s15, 0 }
  0x10   : > { %s1417_s17 = smov (!%p269_p6, %s1185_s17), 1  ;;  %s1419_s25 = smov (!%p271_p7, %s268_s25), 9 }
  0x11   : > { %s1070_s26 = smul.u32 100, %s1417_s17  ;;  %s926_s12 = sshll.u32 %s1417_s17, 6 }
  0x12   : > { %s1069_s27 = smul.u32 10, %s1419_s25  ;;  %s1421_s16 = smov (!%p286_p9, %s1181_s16), 7 }
  0x13   : > { %s280_s28 = scalar_select %p279_p8, %s1177_s15, 2 }
  0x14   : > { %s275_s29 = sadd.s32 %s1070_s26, %s1069_s27  ;;  %s925_s13 = sshll.u32 %s1421_s16, 3 }
  0x15   : > { %s923_s30 = sshll.u32 %s275_s29, 2  ;;  %s1071_s5 = smul.u32 36, %s280_s28 }
  0x16   : > { %s1283_s8 = scalar_lea.vmem %s1393_s0, %s923_s30  ;;  %s290_s14 = sadd.s32 %s926_s12, %s925_s13 }
  0x17   : > { %s1288_s11 = scalar_lea.vmem %s1394_s1, %s1071_s5  ;;  %s927_s25 = sshll.u32 %s290_s14, 2 }
  0x18   : > { %s1294_s27 = scalar_lea.vmem %s1396_s3, %s927_s25  ;;  %s1299_s30 = scalar_lea.vmem %s1397_s4, %s927_s25 }
  0x19   : > { %306 = sbr.rel (%p931_p10) target bundleno = 35 (0x23), region = 40 }
  0x1e   : > { %vm307_vm0 = vcmask 64512   ;;  %v1203_v0 = vmov 0.0  }
  0x1f   : > { %308 = vst.msk [vmem:[#allocation2] sm:$0xff] %vm307_vm0, %v1203_v0  ;;  %309 = vst.msk [vmem:[#allocation2 + $0x8] sm:$0xff] %vm307_vm0, %v1203_v0 }
  0x20   : > { %310 = vst.msk [vmem:[#allocation2 + $0x10] sm:$0xff] %vm307_vm0, %v1203_v0  ;;  %311 = vst.msk [vmem:[#allocation2 + $0x18] sm:$0xff] %vm307_vm0, %v1203_v0 }
  0x21   : > { %312 = vst.msk [vmem:[#allocation2 + $0x20] sm:$0xff] %vm307_vm0, %v1203_v0  ;;  %313 = vst.msk [vmem:[#allocation2 + $0x28] sm:$0xff] %vm307_vm0, %v1203_v0 }
  0x22   : > { %314 = vst.msk [vmem:[#allocation2 + $0x30] sm:$0xff] %vm307_vm0, %v1203_v0  ;;  %315 = vst.msk [vmem:[#allocation2 + $0x38] sm:$0xff] %vm307_vm0, %v1203_v0 }
  0x23 PF: > { %v1129_v1 = vld [vmem:[%s1288_s11 + $0x14] ss:$0 sps:$4 sm:$0xff]   ;;  %vm374_vm1 = vcmask 1043456   ;;  %v1130_v2 = vld [vmem:[%s1288_s11 + $0xc] sm:$0xff]   ;;  %v317_v4 = vld [vmem:[%s1283_s8 + $0x4] sm:$0xf] }
  0x24   : > { %1065 = vmatprep.subr.msk.bf16.mxu0 %vm374_vm1, %v1129_v1  ;;  %1066 = vmatprep.subr.msk.bf16.mxu1 %vm374_vm1, %v1129_v1  ;;  %v376_v3 = vsel %vm374_vm1, %v1129_v1, 0  ;;  %v318_v5 = vld [vmem:[%s1283_s8 + $0x8] sm:$0xf]  ;;  %vm361_vm2 = vcmask 195584   ;;  %v319_v6 = vld [vmem:[%s1283_s8 + $0xc] sm:$0xf] }
  0x25   : > { %1026 = vmatpush3.bf16.msra.mxu0 %v376_v3  ;;  %1063 = vmatpush3.bf16.msra.mxu1 %v376_v3  ;;  %v935_v7 = vcombine.low %v317_v4, %v318_v5  ;;  %v320_v8 = vld [vmem:[%s1283_s8 + $0x10] sm:$0xf]  ;;  %v321_v9 = vld [vmem:[%s1283_s8 + $0x14] sm:$0xf]  ;;  %v316_v10 = vld [vmem:[%s1283_s8] sm:$0xf]  ;;  %v946_v25 = vcombine.low %v318_v5, %v319_v6 }
  0x26   : > { %1027 = vmatprep.subr.bf16.mxu0 %v1130_v2  ;;  %1062 = vmatprep.subr.bf16.mxu1 %v1130_v2  ;;  %v322_v11 = vld [vmem:[%s1283_s8 + $0x18] sm:$0xf]  ;;  %v323_v12 = vld [vmem:[%s1283_s8 + $0x1c] sm:$0xf]  ;;  %v327_v13 = vld [vmem:[%s1283_s8 + $0x20] sm:$0xf]  ;;  %v936_v16 = vcombine.low %v319_v6, %v320_v8  ;;  %v945_v23 = vcombine.low %v316_v10, %v317_v4  ;;  %v947_v27 = vcombine.low %v320_v8, %v321_v9 }
  0x27   : > { %1029 = vmatprep.mubr.msk.bf16.mxu0 %vm361_vm2, %v935_v7  ;;  %v937_v14 = vcombine.low %v321_v9, %v322_v11  ;;  %v1139_v15 = vld [vmem:[%s1288_s11 + $0x8] ss:$0 sps:$4 sm:$0xff]   ;;  %v938_v17 = vcombine.low %v323_v12, %v327_v13  ;;  %v1140_v18 = vld [vmem:[%s1288_s11 + $0x20] ss:$0 sps:$4 sm:$0xff]   ;;  %v1142_v22 = vld [vmem:[%s1288_s11 + $0x18] sm:$0xff]   ;;  %v948_v29 = vcombine.low %v322_v11, %v323_v12  ;;  %vm683_vm3 = vcmask 64512  }
  0x28   : > { %v471_v19 = vsel %vm374_vm1, %v1139_v15, 0  ;;  %v1141_v20 = vld [vmem:[%s1288_s11] sm:$0xff]   ;;  %v592_v21 = vsel %vm374_vm1, %v1140_v18, 0  ;;  %v1143_v24 = vld [vmem:[%s1283_s8 + $0x8] sm:$0xff]   ;;  %v1144_v26 = vld [vmem:[%s1283_s8 + $0x10] sm:$0xff]   ;;  %p968_p11 = scmp.ne.s32.totalorder %s1177_s15, 2 }
  0x29   : > { %1028 = vmatpush3.bf16.msra.mxu0 %v1130_v2  ;;  %1064 = vmatpush3.bf16.msra.mxu1 %v1130_v2  ;;  %v1145_v28 = vld [vmem:[%s1283_s8 + $0x18] sm:$0xff]   ;;  %v1146_v30 = vld [vmem:[%s1283_s8 + $0x20] sm:$0xff]   ;;  %v669_v42 = vld [vmem:[#allocation2 + $0x10] sm:$0xff] }
  0x2a   : > { %1033 = vmatprep.mubr.msk.bf16.mxu1 %vm361_vm2, %v937_v14  ;;  %1067 = vmatprep.subr.msk.bf16.mxu1 %vm374_vm1, %v1139_v15  ;;  %v667_v47 = vld [vmem:[#allocation2] sm:$0xff]  ;;  %v670_v53 = vld [vmem:[#allocation2 + $0x18] sm:$0xff]  ;;  %v668_v59 = vld [vmem:[#allocation2 + $0x8] sm:$0xff] }
  0x2b   : > { %1068 = vmatprep.subr.msk.bf16.mxu0 %vm374_vm1, %v1140_v18  ;;  %v673_v1 = vld [vmem:[#allocation2 + $0x30] sm:$0xff]  ;;  %v671_v7 = vld [vmem:[#allocation2 + $0x20] sm:$0xff]  ;;  %v674_v13 = vld [vmem:[#allocation2 + $0x38] sm:$0xff] }
  0x2c   : > { %1030 = vmatmul.mubr.msk.bf16.vlgmr.msra.gmra.mxu0 %vm361_vm2, %v936_v16  ;;  %1034 = vmatmul.mubr.msk.bf16.vlgmr.msra.gmra.mxu1 %vm361_vm2, %v938_v17 }
  0x2d   : > { %1038 = vmatpush3.bf16.msra.mxu1 %v471_v19  ;;  %1050 = vmatpush3.bf16.msra.mxu0 %v592_v21  ;;  %v672_v19 = vld [vmem:[#allocation2 + $0x28] sm:$0xff] }
  0x2e   : > { %1039 = vmatprep.subr.bf16.mxu1 %v1141_v20  ;;  %1051 = vmatprep.subr.bf16.mxu0 %v1142_v22 }
  0x2f   : > { %1041 = vmatprep.mubr.msk.bf16.mxu1 %vm361_vm2, %v945_v23  ;;  %1053 = vmatprep.mubr.msk.bf16.mxu0 %vm361_vm2, %v1143_v24 }
  0x31   : > { %1040 = vmatpush3.bf16.msra.mxu1 %v1141_v20  ;;  %1052 = vmatpush3.bf16.msra.mxu0 %v1142_v22 }
  0x34   : > { %1042 = vmatmul.mubr.msk.bf16.vlgmr.msra.gmra.mxu1 %vm361_vm2, %v946_v25  ;;  %1054 = vmatmul.mubr.msk.bf16.vlgmr.msra.gmra.mxu0 %vm361_vm2, %v1144_v26 }
  0x35   : > { %1045 = vmatprep.mubr.msk.bf16.mxu1 %vm361_vm2, %v947_v27  ;;  %1057 = vmatprep.mubr.msk.bf16.mxu0 %vm361_vm2, %v1145_v28 }
  0x3c   : > { %1046 = vmatmul.mubr.msk.bf16.gmra.mxu1 %vm361_vm2, %v948_v29  ;;  %1058 = vmatmul.mubr.msk.bf16.gmra.mxu0 %vm361_vm2, %v1146_v30 }
  0xec   : > { %v1031_v31 = vpop.f32.mrf.mxu0  ;;  %v1035_v32 = vpop.f32.mrf.mxu1 }
  0xee   : > { %v412_v33 = vpop.f32.mrf.mxu0  ;;  %v428_v34 = vpop.f32.mrf.mxu1 }
  0xf0   : > { %v1032_v35 = vpop.f32.mrf.mxu0  ;;  %v1036_v36 = vpop.f32.mrf.mxu1 }
  0xf2   : > { %v415_v37 = vpop.f32.mrf.mxu0  ;;  %v431_v38 = vpop.f32.mrf.mxu1 }
  0xf4   : > { %v1043_v39 = vpop.f32.mrf.mxu1  ;;  %v1055_v40 = vpop.f32.mrf.mxu0 }
  0xf5   : > { %v516_v41 = vadd.f32 %v1043_v39, %v1031_v31 }
  0xf6   : > { %v507_v43 = vpop.f32.mrf.mxu1  ;;  %v628_v44 = vpop.f32.mrf.mxu0 }
  0xf7   : > { %v661_v45 = vadd.f32 %v1055_v40, %v516_v41  ;;  %v508_v46 = vadd.f32 %v507_v43, %v412_v33 }
  0xf8   : > { %v1044_v48 = vpop.f32.mrf.mxu1  ;;  %v1056_v49 = vpop.f32.mrf.mxu0 }
  0xf9   : > { %v677_v50 = vadd.f32 %v669_v42, %v661_v45  ;;  %v659_v51 = vadd.f32 %v628_v44, %v508_v46  ;;  %v519_v52 = vadd.f32 %v1044_v48, %v1032_v35 }
  0xfa   : > { %v510_v54 = vpop.f32.mrf.mxu1  ;;  %v631_v55 = vpop.f32.mrf.mxu0 }
  0xfb   : > { %686 = vst.msk [vmem:[#allocation2 + $0x10] sm:$0xff] %vm683_vm3, %v677_v50  ;;  %v675_v56 = vadd.f32 %v667_v47, %v659_v51  ;;  %v662_v57 = vadd.f32 %v1056_v49, %v519_v52  ;;  %v511_v58 = vadd.f32 %v510_v54, %v415_v37 }
  0xfc   : > { %v1047_v60 = vpop.f32.mrf.mxu1  ;;  %v1059_v61 = vpop.f32.mrf.mxu0 }
  0xfd   : > { %684 = vst.msk [vmem:[#allocation2] sm:$0xff] %vm683_vm3, %v675_v56  ;;  %v678_v62 = vadd.f32 %v670_v53, %v662_v57  ;;  %v660_v63 = vadd.f32 %v631_v55, %v511_v58  ;;  %v532_v0 = vadd.f32 %v1047_v60, %v1035_v32 }
  0xfe   : > { %v523_v2 = vpop.f32.mrf.mxu1  ;;  %v644_v3 = vpop.f32.mrf.mxu0 }
  0xff   : > { %687 = vst.msk [vmem:[#allocation2 + $0x18] sm:$0xff] %vm683_vm3, %v678_v62  ;;  %v676_v4 = vadd.f32 %v668_v59, %v660_v63  ;;  %v665_v5 = vadd.f32 %v1059_v61, %v532_v0  ;;  %v524_v6 = vadd.f32 %v523_v2, %v428_v34 }
 0x100   : > { %v1048_v8 = vpop.f32.mrf.mxu1  ;;  %v1060_v9 = vpop.f32.mrf.mxu0 }
 0x101   : > { %685 = vst.msk [vmem:[#allocation2 + $0x8] sm:$0xff] %vm683_vm3, %v676_v4  ;;  %v681_v10 = vadd.f32 %v673_v1, %v665_v5  ;;  %v663_v11 = vadd.f32 %v644_v3, %v524_v6  ;;  %v535_v12 = vadd.f32 %v1048_v8, %v1036_v36 }
 0x102   : > { %v526_v14 = vpop.f32.mrf.mxu1  ;;  %v647_v18 = vpop.f32.mrf.mxu0 }
 0x103   : > { %690 = vst.msk [vmem:[#allocation2 + $0x30] sm:$0xff] %vm683_vm3, %v681_v10  ;;  %v679_v15 = vadd.f32 %v671_v7, %v663_v11  ;;  %v666_v16 = vadd.f32 %v1060_v9, %v535_v12  ;;  %v527_v17 = vadd.f32 %v526_v14, %v431_v38 }
 0x105   : > { %688 = vst.msk [vmem:[#allocation2 + $0x20] sm:$0xff] %vm683_vm3, %v679_v15  ;;  %v682_v20 = vadd.f32 %v674_v13, %v666_v16  ;;  %v664_v21 = vadd.f32 %v647_v18, %v527_v17  ;;  %695 = sbr.rel (%p968_p11) target bundleno = 281 (0x119), region = 44 }
 0x107   : > { %691 = vst.msk [vmem:[#allocation2 + $0x38] sm:$0xff] %vm683_vm3, %v682_v20  ;;  %v680_v22 = vadd.f32 %v672_v19, %v664_v21 }
 0x109   : > { %689 = vst.msk [vmem:[#allocation2 + $0x28] sm:$0xff] %vm683_vm3, %v680_v22 }
 0x10a   : > { %v696_v23 = vld [vmem:[#allocation2] sm:$0xff]  ;;  %vm775_vm4 = vcmask 60416   ;;  %v697_v28 = vld [vmem:[#allocation2 + $0x8] sm:$0xff]  ;;  %v698_v30 = vld [vmem:[#allocation2 + $0x10] sm:$0xff] }
 0x10b   : > { %v969_v24 = vld [vmem:[%s1395_s2] ss:$0 sm:$0xff]  ;;  %v1004_v31 = vld [vmem:[%s1294_s27 + $0x8] sm:$0xff]   ;;  %v699_v35 = vld [vmem:[#allocation2 + $0x18] sm:$0xff] }
 0x10c   : > { %v989_v25 = vld [vmem:[%s1294_s27] sm:$0xff]   ;;  %v711_v26 = vadd.f32 %v969_v24, %v696_v23  ;;  %v712_v32 = vadd.f32 %v969_v24, %v697_v28  ;;  %v713_v33 = vadd.f32 %v969_v24, %v698_v30  ;;  %v994_v34 = vunpack.c.l.bf16 %v1004_v31  ;;  %v1005_v38 = vld [vmem:[%s1294_s27 + $0x10] sm:$0xff]   ;;  %v1006_v45 = vld [vmem:[%s1294_s27 + $0x18] sm:$0xff]  }
 0x10d   : > { %v990_v27 = vunpack.c.l.bf16 %v989_v25  ;;  %v991_v29 = vunpack.c.h.bf16 %v989_v25  ;;  %v995_v36 = vunpack.c.h.bf16 %v1004_v31  ;;  %v700_v37 = vld [vmem:[#allocation2 + $0x20] sm:$0xff]  ;;  %v714_v40 = vadd.f32 %v969_v24, %v699_v35  ;;  %v702_v44 = vld [vmem:[#allocation2 + $0x30] sm:$0xff] }
 0x10e   : > { %v715_v41 = vadd.f32 %v969_v24, %v700_v37  ;;  %v998_v42 = vunpack.c.l.bf16 %v1005_v38  ;;  %v737_v47 = vadd.f32 %v994_v34, %v713_v33  ;;  %v999_v49 = vunpack.c.h.bf16 %v1005_v38  ;;  %v703_v50 = vld [vmem:[#allocation2 + $0x38] sm:$0xff] }
 0x10f   : > { %v735_v39 = vadd.f32 %v990_v27, %v711_v26  ;;  %v736_v46 = vadd.f32 %v991_v29, %v712_v32  ;;  %v738_v52 = vadd.f32 %v995_v36, %v714_v40  ;;  %v717_v54 = vadd.f32 %v969_v24, %v702_v44 }
 0x110   : > { %v701_v43 = vld [vmem:[#allocation2 + $0x28] sm:$0xff]  ;;  %v739_v53 = vadd.f32 %v998_v42, %v715_v41  ;;  %v982_v56 = vpack.c.bf16 %v737_v47, %v737_v47  ;;  %v1002_v58 = vunpack.c.l.bf16 %v1006_v45  ;;  %v718_v61 = vadd.f32 %v969_v24, %v703_v50 }
 0x111   : > { %v716_v48 = vadd.f32 %v969_v24, %v701_v43  ;;  %v980_v51 = vpack.c.bf16 %v735_v39, %v735_v39  ;;  %v981_v55 = vpack.c.bf16 %v736_v46, %v736_v46  ;;  %v983_v59 = vpack.c.bf16 %v738_v52, %v738_v52 }
 0x112   : > { %v984_v60 = vpack.c.bf16 %v739_v53, %v739_v53  ;;  %v1003_v62 = vunpack.c.h.bf16 %v1006_v45  ;;  %778 = vst.msk [vmem:[%s1299_s30 + $0x8] sm:$0xf] %vm775_vm4, %v982_v56  ;;  %v741_v0 = vadd.f32 %v1002_v58, %v717_v54 }
 0x113   : > { %v740_v57 = vadd.f32 %v999_v49, %v716_v48  ;;  %776 = vst.msk [vmem:[%s1299_s30] sm:$0xf] %vm775_vm4, %v980_v51  ;;  %777 = vst.msk [vmem:[%s1299_s30 + $0x4] sm:$0xf] %vm775_vm4, %v981_v55 }
 0x114   : > { %779 = vst.msk [vmem:[%s1299_s30 + $0xc] sm:$0xf] %vm775_vm4, %v983_v59  ;;  %780 = vst.msk [vmem:[%s1299_s30 + $0x10] sm:$0xf] %vm775_vm4, %v984_v60  ;;  %v742_v1 = vadd.f32 %v1003_v62, %v718_v61  ;;  %v986_v2 = vpack.c.bf16 %v741_v0, %v741_v0 }
 0x115   : > { %v985_v63 = vpack.c.bf16 %v740_v57, %v740_v57 }
 0x116   : > { %v987_v3 = vpack.c.bf16 %v742_v1, %v742_v1  ;;  %782 = vst.msk [vmem:[%s1299_s30 + $0x18] sm:$0xf] %vm775_vm4, %v986_v2 }
 0x117   : > { %781 = vst.msk [vmem:[%s1299_s30 + $0x14] sm:$0xf] %vm775_vm4, %v985_v63 }
 0x118   : > { %783 = vst.msk [vmem:[%s1299_s30 + $0x1c] sm:$0xf] %vm775_vm4, %v987_v3 }
 0x119 PF: > { %s14_s21 = sadd.s32 1, %s1201_s21   ;;  %s1399_s24 = sld [smem:[#allocation3_spill]] }
 0x11a   : > { %p11_p12 = scmp.ge.s32.totalorder %s14_s21, 50   ;;  %s1400_s15 = smov %s1189_s18 }
 0x11b   : > { %s1401_s16 = smov %s1193_s19  ;;  %s1402_s17 = smov %s1197_s20 }
 0x11c   : > { %s1403_s18 = smov %s1407_s22  ;;  %s1404_s19 = smov %s1411_s23 }
 0x11d   :  { %13 = sbr.rel (!%p11_p12) target bundleno = 4 (0x4), region = 82 }
 0x11f   : > { %s1405_s20 = smov %s1399_s24 }

// kernel: encoder3d_forward.43
= control target key start
LH: loop header
LB: loop body
LE: loop exit
PB: predicated region body
PF: predicated region fallthrough
CT: control target
= control target key end

     0   :  { %s436_s9 = smov 0   ;;  %s438_s10 = smov 0   ;;  %s508_s0 = inlined_call_operand.vmem [shape: bf16[2,64,8], index: 0, kind: input, shape index: {}]   ;;  %s509_s1 = inlined_call_operand.vmem [shape: f32[2,1,8], index: 1, kind: output, shape index: {0}]   ;;  %s510_s2 = inlined_call_operand.vmem [shape: f32[2,1,8], index: 2, kind: output, shape index: {1}]  }
   0x1   :  { %s440_s11 = smov 0   ;;  %s442_s12 = smov 0  }
   0x2   :  { %s444_s13 = smov 0  }
   0x3 LB: > { %s22_s14 = sadd.s32 1, %s410_s11  ;;  %s25_s15 = sadd.s32 1, %s414_s12  ;;  %s418_s13 = sphi %s444_s13, %s13_s13   ;;  %s414_s12 = sphi %s442_s12, %s514_s12   ;;  %s410_s11 = sphi %s440_s11, %s513_s11   ;;  %s406_s10 = sphi %s438_s10, %s512_s10   ;;  %s402_s9 = sphi %s436_s9, %s511_s9  }
   0x4   : > { %p23_p0 = scmp.ge.s32.totalorder %s22_s14, 2  ;;  %p323_p1 = scmp.ge.s32.totalorder %s418_s13, 1 }
   0x5   : > { %p134_p2 = scmp.lt.s32.totalorder %s418_s13, 5 }
   0x6   : > { %s516_s14 = smov (%p23_p0, %s22_s14), 0  ;;  %s518_s15 = smov (!%p23_p0, %s25_s15), %s414_s12 }
   0x7   : > { %p135_p3 = pnand %p323_p1, %p134_p2  ;;  %p27_p4 = scmp.ge.s32.totalorder %s518_s15, 2 }
   0x8   : > { %s324_s16 = sshll.u32 (!%p135_p3), %s402_s9, 2  ;;  %p162_p5 = scmp.lt.s32.totalorder (!%p135_p3), %s406_s10, 1 }
   0x9   : > { %s520_s15 = smov (%p27_p4, %s518_s15), 0  ;;  %138 = sbr.rel (%p135_p3) target bundleno = 52 (0x34), region = 24 }
   0xa   : > { %p164_p6 = scmp.lt.s32.totalorder (!%p135_p3), %s324_s16, 7  ;;  %p327_p7 = scmp.ne.s32.totalorder (!%p135_p3), %s402_s9, 0 }
   0xe   : > { %s522_s10 = smov (!%p162_p5, %s406_s10), 1  ;;  %s524_s16 = smov (!%p164_p6, %s324_s16), 7 }
   0xf   : > { %s325_s17 = sshll.u32 %s522_s10, 3  ;;  %s469_s20 = scalar_lea.vmem %s509_s1, %s522_s10 }
  0x10   : > { %s167_s21 = sadd.s32 %s325_s17, %s524_s16  ;;  %s474_s24 = scalar_lea.vmem %s510_s2, %s522_s10 }
  0x11   : > { %s326_s25 = sshll.u32 %s167_s21, 2  ;;  %180 = sbr.rel (%p327_p7) target bundleno = 24 (0x18), region = 28 }
  0x12   : > { %s169_s28 = scalar_lea.vmem %s508_s0, %s326_s25 }
  0x16   : > { %vm181_vm0 = vcmask 57344   ;;  %v420_v0 = vmov 0.0  }
  0x17   : > { %182 = vst.msk [vmem:[%s469_s20] sm:$0x1] %vm181_vm0, %v420_v0  ;;  %183 = vst.msk [vmem:[%s474_s24] sm:$0x1] %vm181_vm0, %v420_v0 }
  0x18 PF: > { %v331_v1 = vld [vmem:[%s169_s28] sm:$0xff]   ;;  %v338_v2 = vld [vmem:[%s169_s28 + $0x8] sm:$0xff]   ;;  %vm193_vm1 = vcmask 64512   ;;  %vm208_vm2 = vcmask 57344  }
  0x19   : > { %v332_v3 = vunpack.c.l.bf16 %v331_v1  ;;  %v333_v4 = vunpack.c.h.bf16 %v331_v1  ;;  %v336_v5 = vunpack.c.l.bf16 %v338_v2  ;;  %v337_v6 = vunpack.c.h.bf16 %v338_v2 }
  0x1b   : > { %v194_v7 = vsel %vm193_vm1, %v332_v3, 0.0  ;;  %v195_v8 = vsel %vm193_vm1, %v333_v4, 0.0  ;;  %v197_v9 = vsel %vm193_vm1, %v336_v5, 0.0  ;;  %v211_v11 = vmul.f32 %v332_v3, %v332_v3 }
  0x1c   : > { %v196_v10 = vadd.f32 %v195_v8, %v194_v7  ;;  %v212_v12 = vmul.f32 %v333_v4, %v333_v4  ;;  %v213_v13 = vmul.f32 %v336_v5, %v336_v5  ;;  %v199_v14 = vsel %vm193_vm1, %v337_v6, 0.0 }
  0x1d   : > { %v214_v15 = vmul.f32 %v337_v6, %v337_v6  ;;  %v215_v17 = vsel %vm193_vm1, %v211_v11, 0.0 }
  0x1e   : > { %v198_v16 = vadd.f32 %v197_v9, %v196_v10  ;;  %v216_v18 = vsel %vm193_vm1, %v212_v12, 0.0  ;;  %v218_v19 = vsel %vm193_vm1, %v213_v13, 0.0  ;;  %v192_v33 = vld [vmem:[%s469_s20] sm:$0x1] }
  0x1f   : > { %v217_v20 = vadd.f32 %v216_v18, %v215_v17  ;;  %v220_v22 = vsel %vm193_vm1, %v214_v15, 0.0  ;;  %v210_v38 = vld [vmem:[%s474_s24] sm:$0x1] }
  0x20   : > { %v200_v21 = vadd.f32 %v199_v14, %v198_v16 }
  0x21   : > { %v219_v23 = vadd.f32 %v218_v19, %v217_v20 }
  0x22   : > { %v201_v24 = vrot.slane %v200_v21, 4 }
  0x23   : > { %v221_v25 = vadd.f32 %v220_v22, %v219_v23 }
  0x24   : > { %v202_v26 = vadd.f32 %v201_v24, %v200_v21 }
  0x25   : > { %v222_v27 = vrot.slane %v221_v25, 4 }
  0x26   : > { %v203_v28 = vrot.slane %v202_v26, 2 }
  0x27   : > { %v223_v29 = vadd.f32 %v222_v27, %v221_v25 }
  0x28   : > { %v204_v30 = vadd.f32 %v203_v28, %v202_v26 }
  0x29   : > { %v224_v31 = vrot.slane %v223_v29, 2 }
  0x2a   : > { %v205_v32 = vrot.slane %v204_v30, 1 }
  0x2b   : > { %v225_v34 = vadd.f32 %v224_v31, %v223_v29 }
  0x2c   : > { %v206_v35 = vadd.f32 %v205_v32, %v204_v30 }
  0x2d   : > { %v226_v36 = vrot.slane %v225_v34, 1 }
  0x2e   : > { %v207_v37 = vadd.f32 %v206_v35, %v192_v33 }
  0x2f   : > { %v227_v39 = vadd.f32 %v226_v36, %v225_v34 }
  0x30   : > { %209 = vst.msk [vmem:[%s469_s20] sm:$0x1] %vm208_vm2, %v207_v37 }
  0x31   : > { %v228_v40 = vadd.f32 %v227_v39, %v210_v38 }
  0x33   : > { %229 = vst.msk [vmem:[%s474_s24] sm:$0x1] %vm208_vm2, %v228_v40 }
  0x34 PF: > { %s13_s13 = sadd.s32 1, %s418_s13   ;;  %s511_s9 = smov %s410_s11 }
  0x35   : > { %p10_p8 = scmp.ge.s32.totalorder %s13_s13, 6   ;;  %s512_s10 = smov %s414_s12 }
  0x36   : > { %s513_s11 = smov %s516_s14  ;;  %s514_s12 = smov %s520_s15 }
  0x37   :  { %12 = sbr.rel (!%p10_p8) target bundleno = 3 (0x3), region = 70 }

// kernel: encoder3d_forward.42
= control target key start
LH: loop header
LB: loop body
LE: loop exit
PB: predicated region body
PF: predicated region fallthrough
CT: control target
= control target key end

     0   :  { %s690_s12 = smov 0   ;;  %s692_s13 = smov 0   ;;  %s784_s0 = inlined_call_operand.vmem [shape: bf16[2,9,16,72], index: 0, kind: input, shape index: {}]   ;;  %s785_s1 = inlined_call_operand.vmem [shape: bf16[3,1,72,8], index: 1, kind: input, shape index: {}]   ;;  %s786_s2 = inlined_call_operand.vmem [shape: f32[1,8], index: 2, kind: input, shape index: {}]   ;;  %s787_s3 = inlined_call_operand.vmem [shape: bf16[2,4,16,8], index: 3, kind: output, shape index: {}]  }
   0x1   :  { %s694_s14 = smov 0   ;;  %s696_s15 = smov 0  }
   0x2   :  { %s698_s16 = smov 0   ;;  %s700_s17 = smov 0  }
   0x3   :  { %s702_s18 = smov 0  }
   0x4 LB: > { %s25_s19 = sadd.s32 1, %s653_s15  ;;  %s28_s20 = sadd.s32 1, %s657_s16  ;;  %s665_s18 = sphi %s702_s18, %s13_s18   ;;  %s661_s17 = sphi %s700_s17, %s795_s17   ;;  %s657_s16 = sphi %s698_s16, %s794_s16   ;;  %s653_s15 = sphi %s696_s15, %s793_s15   ;;  %s649_s14 = sphi %s694_s14, %s792_s14   ;;  %s645_s13 = sphi %s692_s13, %s791_s13   ;;  %s641_s12 = sphi %s690_s12, %s790_s12  }
   0x5   : > { %p26_p0 = scmp.ge.s32.totalorder %s25_s19, 3  ;;  %p500_p1 = scmp.ge.s32.totalorder %s665_s18, 1 }
   0x6   : > { %p182_p2 = scmp.lt.s32.totalorder %s665_s18, 25  ;;  %s32_s21 = sadd.s32 1, %s661_s17 }
   0x7   : > { %s797_s19 = smov (%p26_p0, %s25_s19), 0  ;;  %s799_s20 = smov (!%p26_p0, %s28_s20), %s657_s16 }
   0x8   : > { %p183_p3 = pnand %p500_p1, %p182_p2  ;;  %p30_p4 = scmp.ge.s32.totalorder %s799_s20, 4 }
   0x9   : > { %s501_s22 = sshll.u32 (!%p183_p3), %s645_s13, 1  ;;  %p223_p6 = scmp.lt.s32.totalorder (!%p183_p3), %s649_s14, 1 }
   0xa   : > { %s801_s20 = smov (%p30_p4, %s799_s20), 0  ;;  %s803_s21 = smov (!%p30_p4, %s32_s21), %s661_s17 }
   0xb   : > { %p34_p5 = scmp.ge.s32.totalorder %s803_s21, 2  ;;  %186 = sbr.rel (%p183_p3) target bundleno = 263 (0x107), region = 32 }
   0xc   : > { %s222_s23 = sadd.s32 (!%p183_p3), %s641_s12, %s501_s22  ;;  %p234_p7 = scmp.lt.s32.totalorder (!%p183_p3), %s641_s12, 2 }
   0xd   : > { %s805_s21 = smov (%p34_p5, %s803_s21), 0  ;;  %p225_p8 = scmp.lt.s32.totalorder (!%p183_p3), %s222_s23, 8 }
   0xe   : > { %788 = sst [smem:[#allocation3_spill]] %s805_s21  ;;  %p241_p9 = scmp.lt.s32.totalorder (!%p183_p3), %s645_s13, 3 }
   0xf   : > { %p508_p10 = scmp.ne.s32.totalorder (!%p183_p3), %s641_s12, 0 }
  0x10   : > { %s807_s14 = smov (!%p223_p6, %s649_s14), 1  ;;  %s809_s23 = smov (!%p225_p8, %s222_s23), 8 }
  0x11   : > { %s544_s24 = smul.u32 18, %s807_s14  ;;  %s502_s26 = sshll.u32 %s809_s23, 1 }
  0x12   : > { %s235_s25 = scalar_select %p234_p7, %s641_s12, 2 }
  0x13   : > { %s229_s27 = sadd.s32 %s544_s24, %s502_s26  ;;  %s506_s30 = sshll.u32 %s807_s14, 3 }
  0x14   : > { %s545_s28 = smul.u32 36, %s235_s25  ;;  %s503_s29 = sshll.u32 %s229_s27, 2 }
  0x15   : > { %s744_s6 = scalar_lea.vmem %s784_s0, %s503_s29  ;;  %s811_s13 = smov (!%p241_p9, %s645_s13), 3 }
  0x16   : > { %s238_s9 = scalar_lea.vmem %s785_s1, %s545_s28  ;;  %s505_s10 = sshll.u32 %s811_s13, 1 }
  0x17   : > { %s245_s11 = sadd.s32 %s506_s30, %s505_s10  ;;  %252 = sbr.rel (%p508_p10) target bundleno = 30 (0x1e), region = 36 }
  0x18   : > { %s507_s22 = sshll.u32 %s245_s11, 2 }
  0x19   : > { %s753_s24 = scalar_lea.vmem %s787_s3, %s507_s22 }
  0x1c   : > { %vm253_vm0 = vcmask 64512   ;;  %v667_v0 = vmov 0.0  }
  0x1d   : > { %254 = vst.msk [vmem:[#allocation2] sm:$0xff] %vm253_vm0, %v667_v0  ;;  %255 = vst.msk [vmem:[#allocation2 + $0x8] sm:$0xff] %vm253_vm0, %v667_v0 }
  0x1e PF: > { %v605_v1 = vld [vmem:[%s238_s9 + $0x20] ss:$0 sps:$4 sm:$0xff]   ;;  %vm303_vm1 = vcmask 1043456   ;;  %v668_v2 = vmov 0.0   ;;  %vm669_vm2 = vmmov 0   ;;  %v606_v4 = vld [vmem:[%s238_s9 + $0x18] sm:$0xff]  }
  0x1f   : > { %530 = vmatprep.subr.bf16.mxu0 %v668_v2  ;;  %v305_v3 = vsel %vm303_vm1, %v605_v1, 0  ;;  %540 = vmatprep.mubr.msk.bf16.mxu0 %vm669_vm2, %v668_v2  ;;  %v607_v5 = vld [vmem:[%s238_s9 + $0x10] sm:$0xff]   ;;  %v608_v6 = vld [vmem:[%s238_s9 + $0x8] sm:$0xff]   ;;  %v609_v7 = vld [vmem:[%s238_s9] sm:$0xff]   ;;  %vm299_vm3 = vcmask 588800   ;;  %vm352_vm4 = vcmask 64512  }
  0x20   : > { %531 = vmatpush3.bf16.msra.mxu0 %v305_v3  ;;  %v610_v8 = vld [vmem:[%s744_s6] sm:$0xff]   ;;  %p516_p11 = scmp.ne.s32.totalorder %s641_s12, 2 }
  0x21   : > { %532 = vmatprep.subr.bf16.mxu0 %v668_v2 }
  0x24   : > { %533 = vmatpush3.bf16.msra.mxu0 %v606_v4  ;;  %v348_v9 = vld [vmem:[#allocation2] sm:$0xff]  ;;  %v349_v13 = vld [vmem:[#allocation2 + $0x8] sm:$0xff] }
  0x25   : > { %534 = vmatprep.subr.bf16.mxu0 %v668_v2 }
  0x28   : > { %535 = vmatpush3.bf16.msra.mxu0 %v607_v5 }
  0x29   : > { %536 = vmatprep.subr.bf16.mxu0 %v668_v2 }
  0x2c   : > { %537 = vmatpush3.bf16.msra.mxu0 %v608_v6 }
  0x2d   : > { %538 = vmatprep.subr.bf16.mxu0 %v668_v2 }
  0x30   : > { %539 = vmatpush3.bf16.msra.mxu0 %v609_v7 }
  0x33   : > { %541 = vmatmul.mubr.msk.bf16.vlgmr.msra.gmra.mxu0 %vm299_vm3, %v610_v8 }
  0xf3   : > { %v341_v10 = vpop.f32.mrf.mxu0 }
  0xf4   : > { %v350_v11 = vadd.f32 %v348_v9, %v341_v10 }
  0xf5   : > { %v542_v12 = vpop.f32.mrf.mxu0 }
  0xf6   : > { %353 = vst.msk [vmem:[#allocation2] sm:$0xff] %vm352_vm4, %v350_v11  ;;  %358 = sbr.rel (%p516_p11) target bundleno = 263 (0x107), region = 40 }
  0xf7   : > { %v344_v14 = vpop.f32.mrf.mxu0 }
  0xf8   : > { %v351_v15 = vadd.f32 %v349_v13, %v344_v14 }
  0xf9   : > { %v543_v16 = vpop.f32.mrf.mxu0 }
  0xfa   : > { %354 = vst.msk [vmem:[#allocation2 + $0x8] sm:$0xff] %vm352_vm4, %v351_v15 }
  0xfb   : > { %v517_v18 = vld [vmem:[%s786_s2] ss:$0 sm:$0xff]  ;;  %vm378_vm5 = vcmask 60416  }
  0xfd   : > { %v359_v17 = vld [vmem:[#allocation2] sm:$0xff] }
  0xfe   : > { %v368_v20 = vadd.f32 %v517_v18, %v359_v17 }
 0x100   : > { %v522_v22 = vpack.c.bf16 %v368_v20, %v368_v20 }
 0x101   : > { %v360_v19 = vld [vmem:[#allocation2 + $0x8] sm:$0xff] }
 0x102   : > { %v369_v21 = vadd.f32 %v517_v18, %v360_v19  ;;  %379 = vst.msk [vmem:[%s753_s24] sm:$0xf] %vm378_vm5, %v522_v22 }
 0x104   : > { %v523_v23 = vpack.c.bf16 %v369_v21, %v369_v21 }
 0x106   : > { %380 = vst.msk [vmem:[%s753_s24 + $0x4] sm:$0xf] %vm378_vm5, %v523_v23 }
 0x107 PF: > { %s13_s18 = sadd.s32 1, %s665_s18   ;;  %s789_s21 = sld [smem:[#allocation3_spill]] }
 0x108   : > { %p10_p12 = scmp.ge.s32.totalorder %s13_s18, 26   ;;  %s790_s12 = smov %s653_s15 }
 0x109   : > { %s791_s13 = smov %s657_s16  ;;  %s792_s14 = smov %s661_s17 }
 0x10a   : > { %s793_s15 = smov %s797_s19  ;;  %s794_s16 = smov %s801_s20 }
 0x10b   :  { %12 = sbr.rel (!%p10_p12) target bundleno = 4 (0x4), region = 73 }
 0x10d   : > { %s795_s17 = smov %s789_s21 }

// kernel: encoder3d_forward.44
= control target key start
LH: loop header
LB: loop body
LE: loop exit
PB: predicated region body
PF: predicated region fallthrough
CT: control target
= control target key end

     0   :  { %s665_s18 = smov 0   ;;  %s667_s19 = smov 0   ;;  %s735_s0 = inlined_call_operand.vmem [shape: bf16[2,64,8], index: 0, kind: input, shape index: {}]   ;;  %s736_s1 = inlined_call_operand.vmem [shape: f32[2,1,8], index: 1, kind: input, shape index: {}]   ;;  %s737_s2 = inlined_call_operand.vmem [shape: f32[2,1,8], index: 2, kind: input, shape index: {}]   ;;  %s738_s3 = inlined_call_operand.vmem [shape: f32[1,1,8], index: 3, kind: input, shape index: {}]   ;;  %s739_s4 = inlined_call_operand.vmem [shape: f32[1,1,8], index: 4, kind: input, shape index: {}]   ;;  %s740_s5 = inlined_call_operand.vmem [shape: bf16[2,64,8], index: 5, kind: output, shape index: {}]  }
   0x1   :  { %s669_s20 = smov 0   ;;  %s671_s21 = smov 0  }
   0x2   :  { %s673_s22 = smov 0  }
   0x3 LB: > { %s24_s23 = sadd.s32 1, %s625_s20  ;;  %s27_s24 = sadd.s32 1, %s629_s21  ;;  %s633_s22 = sphi %s673_s22, %s15_s22   ;;  %s629_s21 = sphi %s671_s21, %s744_s21   ;;  %s625_s20 = sphi %s669_s20, %s743_s20   ;;  %s621_s19 = sphi %s667_s19, %s742_s19   ;;  %s617_s18 = sphi %s665_s18, %s741_s18  }
   0x4   : > { %p25_p0 = scmp.ge.s32.totalorder %s24_s23, 2  ;;  %p505_p1 = scmp.ge.s32.totalorder %s633_s22, 1 }
   0x5   : > { %p224_p2 = scmp.lt.s32.totalorder %s633_s22, 5 }
   0x6   : > { %s746_s23 = smov (%p25_p0, %s24_s23), 0  ;;  %s748_s24 = smov (!%p25_p0, %s27_s24), %s629_s21 }
   0x7   : > { %p225_p3 = pnand %p505_p1, %p224_p2  ;;  %p29_p4 = scmp.ge.s32.totalorder %s748_s24, 2 }
   0x8   : > { %s506_s25 = sshll.u32 (!%p225_p3), %s617_s18, 2  ;;  %p267_p5 = scmp.lt.s32.totalorder (!%p225_p3), %s621_s19, 1 }
   0x9   : > { %s750_s24 = smov (%p29_p4, %s748_s24), 0  ;;  %228 = sbr.rel (%p225_p3) target bundleno = 70 (0x46), region = 40 }
   0xa   : > { %p269_p6 = scmp.lt.s32.totalorder (!%p225_p3), %s506_s25, 7 }
   0xe   : > { %s752_s19 = smov (!%p267_p5, %s621_s19), 1  ;;  %s754_s25 = smov (!%p269_p6, %s506_s25), 7  ;;  %v514_v12 = vld [vmem:[%s738_s3] ss:$0 sm:$0xff]  ;;  %vm388_vm0 = vcmask 60416  }
   0xf   : > { %s507_s26 = sshll.u32 %s752_s19, 3  ;;  %s278_s30 = scalar_lea.vmem %s736_s1, %s752_s19  ;;  %v515_v17 = vld [vmem:[%s739_s4] ss:$0 sm:$0xff] }
  0x10   : > { %s695_s27 = sadd.s32 %s507_s26, %s754_s25  ;;  %s281_s12 = scalar_lea.vmem %s737_s2, %s752_s19  ;;  %v512_v2 = vld [vmem:[%s278_s30] ss:$0 sm:$0xff] }
  0x11   : > { %s508_s6 = sshll.u32 %s695_s27, 2  ;;  %v513_v7 = vld [vmem:[%s281_s12] ss:$0 sm:$0xff] }
  0x12   : > { %s274_s9 = scalar_lea.vmem %s735_s0, %s508_s6  ;;  %s290_s19 = scalar_lea.vmem %s740_s5, %s508_s6 }
  0x13   : > { %v531_v0 = vld [vmem:[%s274_s9] sm:$0xff]   ;;  %v538_v1 = vld [vmem:[%s274_s9 + $0x8] sm:$0xff]  }
  0x14   : > { %v532_v3 = vunpack.c.l.bf16 %v531_v0  ;;  %v533_v4 = vunpack.c.h.bf16 %v531_v0  ;;  %v536_v5 = vunpack.c.l.bf16 %v538_v1  ;;  %v537_v6 = vunpack.c.h.bf16 %v538_v1 }
  0x16   : > { %v307_v8 = vsub.f32 %v532_v3, %v512_v2  ;;  %v308_v9 = vsub.f32 %v533_v4, %v512_v2  ;;  %v309_v10 = vsub.f32 %v536_v5, %v512_v2  ;;  %v310_v11 = vsub.f32 %v537_v6, %v512_v2 }
  0x18   : > { %v318_v13 = vmul.f32 %v513_v7, %v307_v8  ;;  %v319_v14 = vmul.f32 %v513_v7, %v308_v9  ;;  %v320_v15 = vmul.f32 %v513_v7, %v309_v10  ;;  %v321_v16 = vmul.f32 %v513_v7, %v310_v11 }
  0x1a   : > { %v329_v18 = vmul.f32 %v514_v12, %v318_v13  ;;  %v330_v19 = vmul.f32 %v514_v12, %v319_v14  ;;  %v331_v20 = vmul.f32 %v514_v12, %v320_v15  ;;  %v332_v21 = vmul.f32 %v514_v12, %v321_v16 }
  0x1c   : > { %v340_v22 = vadd.f32 %v515_v17, %v329_v18  ;;  %v341_v23 = vadd.f32 %v515_v17, %v330_v19  ;;  %v342_v24 = vadd.f32 %v515_v17, %v331_v20  ;;  %v343_v25 = vadd.f32 %v515_v17, %v332_v21 }
  0x1e   : > { %v516_v26 = vmul.f32 -1.442695, %v340_v22  ;;  %v517_v27 = vmul.f32 -1.442695, %v341_v23  ;;  %v518_v28 = vmul.f32 -1.442695, %v342_v24 }
  0x1f   : > { %v519_v29 = vmul.f32 -1.442695, %v343_v25 }
  0x20   : > { %579 = vpow2.f32 %v516_v26 }
  0x21   : > { %581 = vpow2.f32 %v517_v27 }
  0x22   : > { %583 = vpow2.f32 %v518_v28 }
  0x23   : > { %585 = vpow2.f32 %v519_v29 }
  0x2d   : > { %v580_v30 = vpop.eup %579 }
  0x2e   : > { %v582_v31 = vpop.eup %581  ;;  %v356_v32 = vadd.f32 1.0, %v580_v30 }
  0x2f   : > { %v584_v33 = vpop.eup %583  ;;  %v357_v34 = vadd.f32 1.0, %v582_v31 }
  0x30   : > { %v586_v35 = vpop.eup %585  ;;  %587 = vrcp.f32 %v356_v32  ;;  %v358_v36 = vadd.f32 1.0, %v584_v33 }
  0x31   : > { %589 = vrcp.f32 %v357_v34  ;;  %v359_v37 = vadd.f32 1.0, %v586_v35 }
  0x32   : > { %591 = vrcp.f32 %v358_v36 }
  0x33   : > { %593 = vrcp.f32 %v359_v37 }
  0x3d   : > { %v588_v38 = vpop.eup %587 }
  0x3e   : > { %v590_v39 = vpop.eup %589  ;;  %v368_v40 = vmul.f32 %v588_v38, %v340_v22 }
  0x3f   : > { %v592_v41 = vpop.eup %591  ;;  %v369_v42 = vmul.f32 %v590_v39, %v341_v23 }
  0x40   : > { %v594_v43 = vpop.eup %593  ;;  %v526_v44 = vpack.c.bf16 %v368_v40, %v368_v40  ;;  %v370_v45 = vmul.f32 %v592_v41, %v342_v24 }
  0x41   : > { %v527_v46 = vpack.c.bf16 %v369_v42, %v369_v42  ;;  %v371_v47 = vmul.f32 %v594_v43, %v343_v25 }
  0x42   : > { %389 = vst.msk [vmem:[%s290_s19] sm:$0xf] %vm388_vm0, %v526_v44  ;;  %v528_v48 = vpack.c.bf16 %v370_v45, %v370_v45 }
  0x43   : > { %390 = vst.msk [vmem:[%s290_s19 + $0x4] sm:$0xf] %vm388_vm0, %v527_v46  ;;  %v529_v49 = vpack.c.bf16 %v371_v47, %v371_v47 }
  0x44   : > { %391 = vst.msk [vmem:[%s290_s19 + $0x8] sm:$0xf] %vm388_vm0, %v528_v48 }
  0x45   : > { %392 = vst.msk [vmem:[%s290_s19 + $0xc] sm:$0xf] %vm388_vm0, %v529_v49 }
  0x46 PF: > { %s15_s22 = sadd.s32 1, %s633_s22   ;;  %s741_s18 = smov %s625_s20 }
  0x47   : > { %p12_p7 = scmp.ge.s32.totalorder %s15_s22, 6   ;;  %s742_s19 = smov %s629_s21 }
  0x48   : > { %s743_s20 = smov %s746_s23  ;;  %s744_s21 = smov %s750_s24 }
  0x49   :  { %14 = sbr.rel (!%p12_p7) target bundleno = 3 (0x3), region = 76 }

// kernel: encoder3d_forward.46
= control target key start
LH: loop header
LB: loop body
LE: loop exit
PB: predicated region body
PF: predicated region fallthrough
CT: control target
= control target key end

     0   :  { %s436_s9 = smov 0   ;;  %s438_s10 = smov 0   ;;  %s508_s0 = inlined_call_operand.vmem [shape: bf16[2,64,16], index: 0, kind: input, shape index: {}]   ;;  %s509_s1 = inlined_call_operand.vmem [shape: f32[2,1,16], index: 1, kind: output, shape index: {0}]   ;;  %s510_s2 = inlined_call_operand.vmem [shape: f32[2,1,16], index: 2, kind: output, shape index: {1}]  }
   0x1   :  { %s440_s11 = smov 0   ;;  %s442_s12 = smov 0  }
   0x2   :  { %s444_s13 = smov 0  }
   0x3 LB: > { %s22_s14 = sadd.s32 1, %s410_s11  ;;  %s25_s15 = sadd.s32 1, %s414_s12  ;;  %s418_s13 = sphi %s444_s13, %s13_s13   ;;  %s414_s12 = sphi %s442_s12, %s514_s12   ;;  %s410_s11 = sphi %s440_s11, %s513_s11   ;;  %s406_s10 = sphi %s438_s10, %s512_s10   ;;  %s402_s9 = sphi %s436_s9, %s511_s9  }
   0x4   : > { %p23_p0 = scmp.ge.s32.totalorder %s22_s14, 2  ;;  %p323_p1 = scmp.ge.s32.totalorder %s418_s13, 1 }
   0x5   : > { %p134_p2 = scmp.lt.s32.totalorder %s418_s13, 5 }
   0x6   : > { %s516_s14 = smov (%p23_p0, %s22_s14), 0  ;;  %s518_s15 = smov (!%p23_p0, %s25_s15), %s414_s12 }
   0x7   : > { %p135_p3 = pnand %p323_p1, %p134_p2  ;;  %p27_p4 = scmp.ge.s32.totalorder %s518_s15, 2 }
   0x8   : > { %s324_s16 = sshll.u32 (!%p135_p3), %s402_s9, 2  ;;  %p162_p5 = scmp.lt.s32.totalorder (!%p135_p3), %s406_s10, 1 }
   0x9   : > { %s520_s15 = smov (%p27_p4, %s518_s15), 0  ;;  %138 = sbr.rel (%p135_p3) target bundleno = 52 (0x34), region = 24 }
   0xa   : > { %p164_p6 = scmp.lt.s32.totalorder (!%p135_p3), %s324_s16, 7  ;;  %p327_p7 = scmp.ne.s32.totalorder (!%p135_p3), %s402_s9, 0 }
   0xe   : > { %s522_s10 = smov (!%p162_p5, %s406_s10), 1  ;;  %s524_s16 = smov (!%p164_p6, %s324_s16), 7 }
   0xf   : > { %s325_s17 = sshll.u32 %s522_s10, 3  ;;  %s469_s20 = scalar_lea.vmem %s509_s1, %s522_s10 }
  0x10   : > { %s167_s21 = sadd.s32 %s325_s17, %s524_s16  ;;  %s474_s24 = scalar_lea.vmem %s510_s2, %s522_s10 }
  0x11   : > { %s326_s25 = sshll.u32 %s167_s21, 2  ;;  %180 = sbr.rel (%p327_p7) target bundleno = 24 (0x18), region = 28 }
  0x12   : > { %s169_s28 = scalar_lea.vmem %s508_s0, %s326_s25 }
  0x16   : > { %vm181_vm0 = vcmask 122880   ;;  %v420_v0 = vmov 0.0  }
  0x17   : > { %182 = vst.msk [vmem:[%s469_s20] sm:$0x1] %vm181_vm0, %v420_v0  ;;  %183 = vst.msk [vmem:[%s474_s24] sm:$0x1] %vm181_vm0, %v420_v0 }
  0x18 PF: > { %v331_v1 = vld [vmem:[%s169_s28] sm:$0xff]   ;;  %v338_v2 = vld [vmem:[%s169_s28 + $0x8] sm:$0xff]   ;;  %vm193_vm1 = vcmask 130048   ;;  %vm208_vm2 = vcmask 122880  }
  0x19   : > { %v332_v3 = vunpack.c.l.bf16 %v331_v1  ;;  %v333_v4 = vunpack.c.h.bf16 %v331_v1  ;;  %v336_v5 = vunpack.c.l.bf16 %v338_v2  ;;  %v337_v6 = vunpack.c.h.bf16 %v338_v2 }
  0x1b   : > { %v194_v7 = vsel %vm193_vm1, %v332_v3, 0.0  ;;  %v195_v8 = vsel %vm193_vm1, %v333_v4, 0.0  ;;  %v197_v9 = vsel %vm193_vm1, %v336_v5, 0.0  ;;  %v211_v11 = vmul.f32 %v332_v3, %v332_v3 }
  0x1c   : > { %v196_v10 = vadd.f32 %v195_v8, %v194_v7  ;;  %v212_v12 = vmul.f32 %v333_v4, %v333_v4  ;;  %v213_v13 = vmul.f32 %v336_v5, %v336_v5  ;;  %v199_v14 = vsel %vm193_vm1, %v337_v6, 0.0 }
  0x1d   : > { %v214_v15 = vmul.f32 %v337_v6, %v337_v6  ;;  %v215_v17 = vsel %vm193_vm1, %v211_v11, 0.0 }
  0x1e   : > { %v198_v16 = vadd.f32 %v197_v9, %v196_v10  ;;  %v216_v18 = vsel %vm193_vm1, %v212_v12, 0.0  ;;  %v218_v19 = vsel %vm193_vm1, %v213_v13, 0.0  ;;  %v192_v33 = vld [vmem:[%s469_s20] sm:$0x1] }
  0x1f   : > { %v217_v20 = vadd.f32 %v216_v18, %v215_v17  ;;  %v220_v22 = vsel %vm193_vm1, %v214_v15, 0.0  ;;  %v210_v38 = vld [vmem:[%s474_s24] sm:$0x1] }
  0x20   : > { %v200_v21 = vadd.f32 %v199_v14, %v198_v16 }
  0x21   : > { %v219_v23 = vadd.f32 %v218_v19, %v217_v20 }
  0x22   : > { %v201_v24 = vrot.slane %v200_v21, 4 }
  0x23   : > { %v221_v25 = vadd.f32 %v220_v22, %v219_v23 }
  0x24   : > { %v202_v26 = vadd.f32 %v201_v24, %v200_v21 }
  0x25   : > { %v222_v27 = vrot.slane %v221_v25, 4 }
  0x26   : > { %v203_v28 = vrot.slane %v202_v26, 2 }
  0x27   : > { %v223_v29 = vadd.f32 %v222_v27, %v221_v25 }
  0x28   : > { %v204_v30 = vadd.f32 %v203_v28, %v202_v26 }
  0x29   : > { %v224_v31 = vrot.slane %v223_v29, 2 }
  0x2a   : > { %v205_v32 = vrot.slane %v204_v30, 1 }
  0x2b   : > { %v225_v34 = vadd.f32 %v224_v31, %v223_v29 }
  0x2c   : > { %v206_v35 = vadd.f32 %v205_v32, %v204_v30 }
  0x2d   : > { %v226_v36 = vrot.slane %v225_v34, 1 }
  0x2e   : > { %v207_v37 = vadd.f32 %v206_v35, %v192_v33 }
  0x2f   : > { %v227_v39 = vadd.f32 %v226_v36, %v225_v34 }
  0x30   : > { %209 = vst.msk [vmem:[%s469_s20] sm:$0x1] %vm208_vm2, %v207_v37 }
  0x31   : > { %v228_v40 = vadd.f32 %v227_v39, %v210_v38 }
  0x33   : > { %229 = vst.msk [vmem:[%s474_s24] sm:$0x1] %vm208_vm2, %v228_v40 }
  0x34 PF: > { %s13_s13 = sadd.s32 1, %s418_s13   ;;  %s511_s9 = smov %s410_s11 }
  0x35   : > { %p10_p8 = scmp.ge.s32.totalorder %s13_s13, 6   ;;  %s512_s10 = smov %s414_s12 }
  0x36   : > { %s513_s11 = smov %s516_s14  ;;  %s514_s12 = smov %s520_s15 }
  0x37   :  { %12 = sbr.rel (!%p10_p8) target bundleno = 3 (0x3), region = 70 }

// kernel: encoder3d_forward.45
= control target key start
LH: loop header
LB: loop body
LE: loop exit
PB: predicated region body
PF: predicated region fallthrough
CT: control target
= control target key end

     0   :  { %s903_s12 = smov 0   ;;  %s905_s13 = smov 0   ;;  %s1029_s0 = inlined_call_operand.vmem [shape: bf16[2,6,48,24], index: 0, kind: input, shape index: {}]   ;;  %s1030_s1 = inlined_call_operand.vmem [shape: bf16[3,3,24,16], index: 1, kind: input, shape index: {}]   ;;  %s1031_s2 = inlined_call_operand.vmem [shape: f32[1,16], index: 2, kind: input, shape index: {}]   ;;  %s1032_s3 = inlined_call_operand.vmem [shape: bf16[2,4,32,16], index: 3, kind: output, shape index: {}]  }
   0x1   :  { %s907_s14 = smov 0   ;;  %s909_s15 = smov 0  }
   0x2   :  { %s911_s16 = smov 0   ;;  %s913_s17 = smov 0  }
   0x3   :  { %s915_s18 = smov 0  }
   0x4 LB: > { %s25_s19 = sadd.s32 1, %s868_s15  ;;  %s28_s20 = sadd.s32 1, %s872_s16  ;;  %s880_s18 = sphi %s915_s18, %s13_s18   ;;  %s876_s17 = sphi %s913_s17, %s1038_s17   ;;  %s872_s16 = sphi %s911_s16, %s1037_s16   ;;  %s868_s15 = sphi %s909_s15, %s1036_s15   ;;  %s864_s14 = sphi %s907_s14, %s1035_s14   ;;  %s860_s13 = sphi %s905_s13, %s1034_s13   ;;  %s856_s12 = sphi %s903_s12, %s1033_s12  }
   0x5   : > { %p26_p0 = scmp.ge.s32.totalorder %s25_s19, 3  ;;  %p672_p1 = scmp.ge.s32.totalorder %s880_s18, 1 }
   0x6   : > { %p178_p2 = scmp.lt.s32.totalorder %s880_s18, 25  ;;  %s32_s21 = sadd.s32 1, %s876_s17 }
   0x7   : > { %s1040_s19 = smov (%p26_p0, %s25_s19), 0  ;;  %s1042_s20 = smov (!%p26_p0, %s28_s20), %s872_s16 }
   0x8   : > { %p179_p3 = pnand %p672_p1, %p178_p2  ;;  %p30_p4 = scmp.ge.s32.totalorder %s1042_s20, 4 }
   0x9   : > { %s216_s22 = sadd.s32 (!%p179_p3), %s856_s12, %s860_s13  ;;  %p217_p6 = scmp.lt.s32.totalorder (!%p179_p3), %s864_s14, 1 }
   0xa   : > { %s1044_s20 = smov (%p30_p4, %s1042_s20), 0  ;;  %s1046_s21 = smov (!%p30_p4, %s32_s21), %s876_s17 }
   0xb   : > { %p34_p5 = scmp.ge.s32.totalorder %s1046_s21, 2  ;;  %182 = sbr.rel (%p179_p3) target bundleno = 265 (0x109), region = 32 }
   0xc   : > { %p219_p7 = scmp.lt.s32.totalorder (!%p179_p3), %s216_s22, 5  ;;  %p227_p8 = scmp.lt.s32.totalorder (!%p179_p3), %s856_s12, 2 }
   0xd   : > { %s1048_s21 = smov (%p34_p5, %s1046_s21), 0  ;;  %p234_p9 = scmp.lt.s32.totalorder (!%p179_p3), %s860_s13, 3 }
   0xe   : > { %p678_p10 = scmp.ne.s32.totalorder (!%p179_p3), %s856_s12, 0 }
  0x10   : > { %s1050_s14 = smov (!%p217_p6, %s864_s14), 1  ;;  %s1052_s22 = smov (!%p219_p7, %s216_s22), 5 }
  0x11   : > { %s755_s23 = smul.u32 36, %s1050_s14  ;;  %s676_s8 = sshll.u32 %s1050_s14, 4 }
  0x12   : > { %s754_s24 = smul.u32 6, %s1052_s22  ;;  %s1054_s13 = smov (!%p234_p9, %s860_s13), 3 }
  0x13   : > { %s228_s25 = scalar_select %p227_p8, %s856_s12, 2 }
  0x14   : > { %s223_s26 = sadd.s32 %s755_s23, %s754_s24  ;;  %s675_s9 = sshll.u32 %s1054_s13, 2 }
  0x15   : > { %s673_s27 = sshll.u32 %s223_s26, 2  ;;  %s756_s28 = smul.u32 36, %s228_s25 }
  0x16   : > { %s957_s4 = scalar_lea.vmem %s1029_s0, %s673_s27  ;;  %s238_s10 = sadd.s32 %s676_s8, %s675_s9 }
  0x17   : > { %s962_s7 = scalar_lea.vmem %s1030_s1, %s756_s28  ;;  %s677_s11 = sshll.u32 %s238_s10, 2 }
  0x18   : > { %s968_s24 = scalar_lea.vmem %s1032_s3, %s677_s11  ;;  %245 = sbr.rel (%p678_p10) target bundleno = 32 (0x20), region = 36 }
  0x1d   : > { %vm246_vm0 = vcmask 130048   ;;  %v882_v0 = vmov 0.0  }
  0x1e   : > { %247 = vst.msk [vmem:[#allocation2] sm:$0xff] %vm246_vm0, %v882_v0  ;;  %248 = vst.msk [vmem:[#allocation2 + $0x8] sm:$0xff] %vm246_vm0, %v882_v0 }
  0x1f   : > { %249 = vst.msk [vmem:[#allocation2 + $0x10] sm:$0xff] %vm246_vm0, %v882_v0  ;;  %250 = vst.msk [vmem:[#allocation2 + $0x18] sm:$0xff] %vm246_vm0, %v882_v0 }
  0x20 PF: > { %v814_v1 = vld [vmem:[%s962_s7 + $0x14] ss:$0 sps:$4 sm:$0xff]   ;;  %vm289_vm1 = vcmask 1043456   ;;  %v816_v2 = vld [vmem:[%s962_s7 + $0xc] sm:$0xff]   ;;  %v815_v3 = vld [vmem:[%s962_s7 + $0x8] ss:$0 sps:$4 sm:$0xff]  }
  0x21   : > { %751 = vmatprep.subr.msk.bf16.mxu0 %vm289_vm1, %v814_v1  ;;  %v291_v4 = vsel %vm289_vm1, %v814_v1, 0  ;;  %v817_v5 = vld [vmem:[%s962_s7] sm:$0xff]   ;;  %752 = vmatprep.subr.msk.bf16.mxu1 %vm289_vm1, %v815_v3  ;;  %v362_v6 = vsel %vm289_vm1, %v815_v3, 0  ;;  %vm282_vm2 = vcmask 195584   ;;  %v253_v8 = vld [vmem:[%s957_s4 + $0x8] sm:$0xf] }
  0x22   : > { %728 = vmatpush3.bf16.msra.mxu0 %v291_v4  ;;  %v252_v7 = vld [vmem:[%s957_s4 + $0x4] sm:$0xf]  ;;  %736 = vmatpush3.bf16.msra.mxu1 %v362_v6  ;;  %v254_v9 = vld [vmem:[%s957_s4 + $0xc] sm:$0xf]  ;;  %v258_v10 = vld [vmem:[%s957_s4 + $0x10] sm:$0xf] }
  0x23   : > { %729 = vmatprep.subr.bf16.mxu0 %v816_v2  ;;  %737 = vmatprep.subr.bf16.mxu1 %v817_v5  ;;  %v682_v11 = vcombine.low %v252_v7, %v253_v8  ;;  %v251_v12 = vld [vmem:[%s957_s4] sm:$0xf]  ;;  %v683_v14 = vcombine.low %v254_v9, %v258_v10  ;;  %v689_v16 = vcombine.low %v253_v8, %v254_v9  ;;  %v823_v17 = vld [vmem:[%s962_s7 + $0x18] sm:$0xff]   ;;  %v824_v19 = vld [vmem:[%s957_s4 + $0x8] sm:$0xff]   ;;  %vm510_vm3 = vcmask 130048   ;;  %p703_p11 = scmp.ne.s32.totalorder %s856_s12, 2 }
  0x24   : > { %v822_v13 = vld [vmem:[%s962_s7 + $0x20] ss:$0 sps:$4 sm:$0xff]   ;;  %v688_v15 = vcombine.low %v251_v12, %v252_v7  ;;  %v825_v20 = vld [vmem:[%s957_s4 + $0x10] sm:$0xff]  }
  0x25   : > { %731 = vmatprep.mubr.msk.bf16.mxu0 %vm282_vm2, %v682_v11  ;;  %v447_v18 = vsel %vm289_vm1, %v822_v13, 0  ;;  %v502_v35 = vld [vmem:[#allocation2] sm:$0xff]  ;;  %v503_v45 = vld [vmem:[#allocation2 + $0x8] sm:$0xff] }
  0x26   : > { %730 = vmatpush3.bf16.msra.mxu0 %v816_v2  ;;  %738 = vmatpush3.bf16.msra.mxu1 %v817_v5  ;;  %v504_v30 = vld [vmem:[#allocation2 + $0x10] sm:$0xff]  ;;  %v505_v40 = vld [vmem:[#allocation2 + $0x18] sm:$0xff] }
  0x27   : > { %739 = vmatprep.mubr.msk.bf16.mxu1 %vm282_vm2, %v688_v15  ;;  %753 = vmatprep.subr.msk.bf16.mxu0 %vm289_vm1, %v822_v13 }
  0x29   : > { %732 = vmatmul.mubr.msk.bf16.vlgmr.msra.gmra.mxu0 %vm282_vm2, %v683_v14  ;;  %740 = vmatmul.mubr.msk.bf16.vlgmr.msra.gmra.mxu1 %vm282_vm2, %v689_v16 }
  0x2a   : > { %744 = vmatpush3.bf16.msra.mxu0 %v447_v18  ;;  %747 = vmatprep.mubr.msk.bf16.mxu0 %vm282_vm2, %v824_v19 }
  0x2b   : > { %745 = vmatprep.subr.bf16.mxu0 %v823_v17 }
  0x2e   : > { %746 = vmatpush3.bf16.msra.mxu0 %v823_v17 }
  0x31   : > { %748 = vmatmul.mubr.msk.bf16.vlgmr.msra.gmra.mxu0 %vm282_vm2, %v825_v20 }
  0xe9   : > { %v733_v21 = vpop.f32.mrf.mxu0  ;;  %v741_v22 = vpop.f32.mrf.mxu1 }
  0xea   : > { %v407_v28 = vadd.f32 %v741_v22, %v733_v21 }
  0xeb   : > { %v327_v23 = vpop.f32.mrf.mxu0  ;;  %v398_v24 = vpop.f32.mrf.mxu1 }
  0xec   : > { %v399_v31 = vadd.f32 %v398_v24, %v327_v23 }
  0xed   : > { %v734_v25 = vpop.f32.mrf.mxu0  ;;  %v742_v26 = vpop.f32.mrf.mxu1 }
  0xee   : > { %v410_v36 = vadd.f32 %v742_v26, %v734_v25 }
  0xef   : > { %v330_v27 = vpop.f32.mrf.mxu0  ;;  %v401_v33 = vpop.f32.mrf.mxu1 }
  0xf0   : > { %v402_v41 = vadd.f32 %v401_v33, %v330_v27 }
  0xf1   : > { %v749_v29 = vpop.f32.mrf.mxu0 }
  0xf2   : > { %v500_v32 = vadd.f32 %v749_v29, %v407_v28 }
  0xf3   : > { %v483_v34 = vpop.f32.mrf.mxu0 }
  0xf4   : > { %v508_v37 = vadd.f32 %v504_v30, %v500_v32  ;;  %v498_v38 = vadd.f32 %v483_v34, %v399_v31 }
  0xf5   : > { %v750_v39 = vpop.f32.mrf.mxu0 }
  0xf6   : > { %513 = vst.msk [vmem:[#allocation2 + $0x10] sm:$0xff] %vm510_vm3, %v508_v37  ;;  %v506_v42 = vadd.f32 %v502_v35, %v498_v38  ;;  %v501_v43 = vadd.f32 %v750_v39, %v410_v36 }
  0xf7   : > { %v486_v44 = vpop.f32.mrf.mxu0 }
  0xf8   : > { %511 = vst.msk [vmem:[#allocation2] sm:$0xff] %vm510_vm3, %v506_v42  ;;  %v509_v46 = vadd.f32 %v505_v40, %v501_v43  ;;  %v499_v47 = vadd.f32 %v486_v44, %v402_v41  ;;  %518 = sbr.rel (%p703_p11) target bundleno = 265 (0x109), region = 40 }
  0xfa   : > { %514 = vst.msk [vmem:[#allocation2 + $0x18] sm:$0xff] %vm510_vm3, %v509_v46  ;;  %v507_v48 = vadd.f32 %v503_v45, %v499_v47 }
  0xfc   : > { %512 = vst.msk [vmem:[#allocation2 + $0x8] sm:$0xff] %vm510_vm3, %v507_v48 }
  0xfd   : > { %v704_v50 = vld [vmem:[%s1031_s2] ss:$0 sm:$0xff]  ;;  %v521_v54 = vld [vmem:[#allocation2 + $0x10] sm:$0xff]  ;;  %vm550_vm4 = vcmask 125952  }
  0xfe   : > { %v532_v56 = vadd.f32 %v704_v50, %v521_v54 }
  0xff   : > { %v519_v49 = vld [vmem:[#allocation2] sm:$0xff] }
 0x100   : > { %v530_v52 = vadd.f32 %v704_v50, %v519_v49  ;;  %v713_v60 = vpack.c.bf16 %v532_v56, %v532_v56 }
 0x101   : > { %v522_v55 = vld [vmem:[#allocation2 + $0x18] sm:$0xff] }
 0x102   : > { %v533_v57 = vadd.f32 %v704_v50, %v522_v55  ;;  %v711_v58 = vpack.c.bf16 %v530_v52, %v530_v52  ;;  %553 = vst.msk [vmem:[%s968_s24 + $0x8] sm:$0xf] %vm550_vm4, %v713_v60 }
 0x103   : > { %v520_v51 = vld [vmem:[#allocation2 + $0x8] sm:$0xff] }
 0x104   : > { %v531_v53 = vadd.f32 %v704_v50, %v520_v51  ;;  %v714_v61 = vpack.c.bf16 %v533_v57, %v533_v57  ;;  %551 = vst.msk [vmem:[%s968_s24] sm:$0xf] %vm550_vm4, %v711_v58 }
 0x106   : > { %v712_v59 = vpack.c.bf16 %v531_v53, %v531_v53  ;;  %554 = vst.msk [vmem:[%s968_s24 + $0xc] sm:$0xf] %vm550_vm4, %v714_v61 }
 0x108   : > { %552 = vst.msk [vmem:[%s968_s24 + $0x4] sm:$0xf] %vm550_vm4, %v712_v59 }
 0x109 PF: > { %s13_s18 = sadd.s32 1, %s880_s18   ;;  %s1033_s12 = smov %s868_s15 }
 0x10a   : > { %p10_p12 = scmp.ge.s32.totalorder %s13_s18, 26   ;;  %s1034_s13 = smov %s872_s16 }
 0x10b   : > { %s1035_s14 = smov %s876_s17  ;;  %s1036_s15 = smov %s1040_s19 }
 0x10c   : > { %s1037_s16 = smov %s1044_s20  ;;  %s1038_s17 = smov %s1048_s21 }
 0x10d   :  { %12 = sbr.rel (!%p10_p12) target bundleno = 4 (0x4), region = 75 }

// kernel: encoder3d_forward.47
= control target key start
LH: loop header
LB: loop body
LE: loop exit
PB: predicated region body
PF: predicated region fallthrough
CT: control target
= control target key end

     0   :  { %s665_s18 = smov 0   ;;  %s667_s19 = smov 0   ;;  %s735_s0 = inlined_call_operand.vmem [shape: bf16[2,64,16], index: 0, kind: input, shape index: {}]   ;;  %s736_s1 = inlined_call_operand.vmem [shape: f32[2,1,16], index: 1, kind: input, shape index: {}]   ;;  %s737_s2 = inlined_call_operand.vmem [shape: f32[2,1,16], index: 2, kind: input, shape index: {}]   ;;  %s738_s3 = inlined_call_operand.vmem [shape: f32[1,1,16], index: 3, kind: input, shape index: {}]   ;;  %s739_s4 = inlined_call_operand.vmem [shape: f32[1,1,16], index: 4, kind: input, shape index: {}]   ;;  %s740_s5 = inlined_call_operand.vmem [shape: bf16[2,64,16], index: 5, kind: output, shape index: {}]  }
   0x1   :  { %s669_s20 = smov 0   ;;  %s671_s21 = smov 0  }
   0x2   :  { %s673_s22 = smov 0  }
   0x3 LB: > { %s24_s23 = sadd.s32 1, %s625_s20  ;;  %s27_s24 = sadd.s32 1, %s629_s21  ;;  %s633_s22 = sphi %s673_s22, %s15_s22   ;;  %s629_s21 = sphi %s671_s21, %s744_s21   ;;  %s625_s20 = sphi %s669_s20, %s743_s20   ;;  %s621_s19 = sphi %s667_s19, %s742_s19   ;;  %s617_s18 = sphi %s665_s18, %s741_s18  }
   0x4   : > { %p25_p0 = scmp.ge.s32.totalorder %s24_s23, 2  ;;  %p505_p1 = scmp.ge.s32.totalorder %s633_s22, 1 }
   0x5   : > { %p224_p2 = scmp.lt.s32.totalorder %s633_s22, 5 }
   0x6   : > { %s746_s23 = smov (%p25_p0, %s24_s23), 0  ;;  %s748_s24 = smov (!%p25_p0, %s27_s24), %s629_s21 }
   0x7   : > { %p225_p3 = pnand %p505_p1, %p224_p2  ;;  %p29_p4 = scmp.ge.s32.totalorder %s748_s24, 2 }
   0x8   : > { %s506_s25 = sshll.u32 (!%p225_p3), %s617_s18, 2  ;;  %p267_p5 = scmp.lt.s32.totalorder (!%p225_p3), %s621_s19, 1 }
   0x9   : > { %s750_s24 = smov (%p29_p4, %s748_s24), 0  ;;  %228 = sbr.rel (%p225_p3) target bundleno = 70 (0x46), region = 40 }
   0xa   : > { %p269_p6 = scmp.lt.s32.totalorder (!%p225_p3), %s506_s25, 7 }
   0xe   : > { %s752_s19 = smov (!%p267_p5, %s621_s19), 1  ;;  %s754_s25 = smov (!%p269_p6, %s506_s25), 7  ;;  %v514_v12 = vld [vmem:[%s738_s3] ss:$0 sm:$0xff]  ;;  %vm388_vm0 = vcmask 125952  }
   0xf   : > { %s507_s26 = sshll.u32 %s752_s19, 3  ;;  %s278_s30 = scalar_lea.vmem %s736_s1, %s752_s19  ;;  %v515_v17 = vld [vmem:[%s739_s4] ss:$0 sm:$0xff] }
  0x10   : > { %s695_s27 = sadd.s32 %s507_s26, %s754_s25  ;;  %s281_s12 = scalar_lea.vmem %s737_s2, %s752_s19  ;;  %v512_v2 = vld [vmem:[%s278_s30] ss:$0 sm:$0xff] }
  0x11   : > { %s508_s6 = sshll.u32 %s695_s27, 2  ;;  %v513_v7 = vld [vmem:[%s281_s12] ss:$0 sm:$0xff] }
  0x12   : > { %s274_s9 = scalar_lea.vmem %s735_s0, %s508_s6  ;;  %s290_s19 = scalar_lea.vmem %s740_s5, %s508_s6 }
  0x13   : > { %v531_v0 = vld [vmem:[%s274_s9] sm:$0xff]   ;;  %v538_v1 = vld [vmem:[%s274_s9 + $0x8] sm:$0xff]  }
  0x14   : > { %v532_v3 = vunpack.c.l.bf16 %v531_v0  ;;  %v533_v4 = vunpack.c.h.bf16 %v531_v0  ;;  %v536_v5 = vunpack.c.l.bf16 %v538_v1  ;;  %v537_v6 = vunpack.c.h.bf16 %v538_v1 }
  0x16   : > { %v307_v8 = vsub.f32 %v532_v3, %v512_v2  ;;  %v308_v9 = vsub.f32 %v533_v4, %v512_v2  ;;  %v309_v10 = vsub.f32 %v536_v5, %v512_v2  ;;  %v310_v11 = vsub.f32 %v537_v6, %v512_v2 }
  0x18   : > { %v318_v13 = vmul.f32 %v513_v7, %v307_v8  ;;  %v319_v14 = vmul.f32 %v513_v7, %v308_v9  ;;  %v320_v15 = vmul.f32 %v513_v7, %v309_v10  ;;  %v321_v16 = vmul.f32 %v513_v7, %v310_v11 }
  0x1a   : > { %v329_v18 = vmul.f32 %v514_v12, %v318_v13  ;;  %v330_v19 = vmul.f32 %v514_v12, %v319_v14  ;;  %v331_v20 = vmul.f32 %v514_v12, %v320_v15  ;;  %v332_v21 = vmul.f32 %v514_v12, %v321_v16 }
  0x1c   : > { %v340_v22 = vadd.f32 %v515_v17, %v329_v18  ;;  %v341_v23 = vadd.f32 %v515_v17, %v330_v19  ;;  %v342_v24 = vadd.f32 %v515_v17, %v331_v20  ;;  %v343_v25 = vadd.f32 %v515_v17, %v332_v21 }
  0x1e   : > { %v516_v26 = vmul.f32 -1.442695, %v340_v22  ;;  %v517_v27 = vmul.f32 -1.442695, %v341_v23  ;;  %v518_v28 = vmul.f32 -1.442695, %v342_v24 }
  0x1f   : > { %v519_v29 = vmul.f32 -1.442695, %v343_v25 }
  0x20   : > { %579 = vpow2.f32 %v516_v26 }
  0x21   : > { %581 = vpow2.f32 %v517_v27 }
  0x22   : > { %583 = vpow2.f32 %v518_v28 }
  0x23   : > { %585 = vpow2.f32 %v519_v29 }
  0x2d   : > { %v580_v30 = vpop.eup %579 }
  0x2e   : > { %v582_v31 = vpop.eup %581  ;;  %v356_v32 = vadd.f32 1.0, %v580_v30 }
  0x2f   : > { %v584_v33 = vpop.eup %583  ;;  %v357_v34 = vadd.f32 1.0, %v582_v31 }
  0x30   : > { %v586_v35 = vpop.eup %585  ;;  %587 = vrcp.f32 %v356_v32  ;;  %v358_v36 = vadd.f32 1.0, %v584_v33 }
  0x31   : > { %589 = vrcp.f32 %v357_v34  ;;  %v359_v37 = vadd.f32 1.0, %v586_v35 }
  0x32   : > { %591 = vrcp.f32 %v358_v36 }
  0x33   : > { %593 = vrcp.f32 %v359_v37 }
  0x3d   : > { %v588_v38 = vpop.eup %587 }
  0x3e   : > { %v590_v39 = vpop.eup %589  ;;  %v368_v40 = vmul.f32 %v588_v38, %v340_v22 }
  0x3f   : > { %v592_v41 = vpop.eup %591  ;;  %v369_v42 = vmul.f32 %v590_v39, %v341_v23 }
  0x40   : > { %v594_v43 = vpop.eup %593  ;;  %v526_v44 = vpack.c.bf16 %v368_v40, %v368_v40  ;;  %v370_v45 = vmul.f32 %v592_v41, %v342_v24 }
  0x41   : > { %v527_v46 = vpack.c.bf16 %v369_v42, %v369_v42  ;;  %v371_v47 = vmul.f32 %v594_v43, %v343_v25 }
  0x42   : > { %389 = vst.msk [vmem:[%s290_s19] sm:$0xf] %vm388_vm0, %v526_v44  ;;  %v528_v48 = vpack.c.bf16 %v370_v45, %v370_v45 }
  0x43   : > { %390 = vst.msk [vmem:[%s290_s19 + $0x4] sm:$0xf] %vm388_vm0, %v527_v46  ;;  %v529_v49 = vpack.c.bf16 %v371_v47, %v371_v47 }
  0x44   : > { %391 = vst.msk [vmem:[%s290_s19 + $0x8] sm:$0xf] %vm388_vm0, %v528_v48 }
  0x45   : > { %392 = vst.msk [vmem:[%s290_s19 + $0xc] sm:$0xf] %vm388_vm0, %v529_v49 }
  0x46 PF: > { %s15_s22 = sadd.s32 1, %s633_s22   ;;  %s741_s18 = smov %s625_s20 }
  0x47   : > { %p12_p7 = scmp.ge.s32.totalorder %s15_s22, 6   ;;  %s742_s19 = smov %s629_s21 }
  0x48   : > { %s743_s20 = smov %s746_s23  ;;  %s744_s21 = smov %s750_s24 }
  0x49   :  { %14 = sbr.rel (!%p12_p7) target bundleno = 3 (0x3), region = 76 }

// kernel: encoder3d_forward.48
= control target key start
LH: loop header
LB: loop body
LE: loop exit
PB: predicated region body
PF: predicated region fallthrough
CT: control target
= control target key end

     0   :  { %s485_s12 = smov 0   ;;  %s516_s0 = inlined_call_operand.vmem [shape: bf16[128,8], index: 0, kind: input, shape index: {}]   ;;  %s517_s1 = inlined_call_operand.vmem [shape: bf16[8,16], index: 1, kind: input, shape index: {}]   ;;  %s518_s2 = inlined_call_operand.vmem [shape: f32[1,16], index: 2, kind: input, shape index: {}]   ;;  %s519_s3 = inlined_call_operand.vmem [shape: bf16[128,16], index: 3, kind: output, shape index: {}]  }
   0x1 LB: > { %s390_s13 = sadd.s32 4294967295, %s463_s12   ;;  %p394_p0 = scmp.ge.s32.totalorder %s463_s12, 1  ;;  %s463_s12 = sphi %s485_s12, %s13_s12  }
   0x2   : > { %p138_p1 = scmp.lt.s32.totalorder %s463_s12, 3 }
   0x4   : > { %p139_p2 = pnand %p394_p0, %p138_p1 }
   0x5   : > { %s395_s16 = sshll.u32 (!%p139_p2), %s390_s13, 3 }
   0x6   : > { %142 = sbr.rel (%p139_p2) target bundleno = 220 (0xdc), region = 32  ;;  %p163_p3 = scmp.lt.s32.totalorder (!%p139_p2), %s395_s16, 15 }
   0xb   : > { %v183_v0 = vld [vmem:[%s517_s1] sm:$0xf]  ;;  %vm224_vm0 = vcmask 1043456   ;;  %s521_s16 = smov (!%p163_p3, %s395_s16), 15  ;;  %vm211_vm1 = vcmask 64512   ;;  %vm325_vm2 = vcmask 125952  }
   0xc   : > { %443 = vmatprep.subr.msk.bf16.mxu0 %vm224_vm0, %v183_v0  ;;  %444 = vmatprep.subr.msk.bf16.mxu1 %vm224_vm0, %v183_v0  ;;  %v226_v1 = vsel %vm224_vm0, %v183_v0, 0  ;;  %s396_s17 = sshll.u32 %s521_s16, 2  ;;  %v399_v6 = vld [vmem:[%s518_s2] ss:$0 sm:$0xff] }
   0xd   : > { %432 = vmatpush3.bf16.msra.mxu0 %v226_v1  ;;  %442 = vmatpush3.bf16.msra.mxu1 %v226_v1  ;;  %s166_s20 = scalar_lea.vmem %s516_s0, %s396_s17  ;;  %s172_s25 = scalar_lea.vmem %s519_s3, %s396_s17 }
   0xe   : > { %v453_v2 = vld [vmem:[%s166_s20] sm:$0xff]   ;;  %v454_v3 = vld [vmem:[%s166_s20 + $0x10] sm:$0xff]   ;;  %v455_v4 = vld [vmem:[%s166_s20 + $0x8] sm:$0xff]  }
   0xf   : > { %433 = vmatprep.mubr.msk.bf16.mxu0 %vm211_vm1, %v453_v2  ;;  %437 = vmatprep.mubr.msk.bf16.mxu1 %vm211_vm1, %v454_v3  ;;  %v456_v5 = vld [vmem:[%s166_s20 + $0x18] sm:$0xff]  }
  0x10   : > { %434 = vmatmul.mubr.msk.bf16.vlgmr.msra.gmra.mxu0 %vm211_vm1, %v455_v4  ;;  %438 = vmatmul.mubr.msk.bf16.vlgmr.msra.gmra.mxu1 %vm211_vm1, %v456_v5 }
  0xd0   : > { %v435_v7 = vpop.f32.mrf.mxu0  ;;  %v439_v9 = vpop.f32.mrf.mxu1 }
  0xd1   : > { %v271_v8 = vadd.f32 %v435_v7, %v399_v6  ;;  %v287_v10 = vadd.f32 %v439_v9, %v399_v6 }
  0xd2   : > { %v262_v11 = vpop.f32.mrf.mxu0  ;;  %v278_v14 = vpop.f32.mrf.mxu1 }
  0xd3   : > { %v420_v12 = vpack.c.bf16 %v271_v8, %v271_v8  ;;  %v263_v13 = vadd.f32 %v399_v6, %v262_v11  ;;  %v424_v15 = vpack.c.bf16 %v287_v10, %v287_v10  ;;  %v279_v16 = vadd.f32 %v399_v6, %v278_v14 }
  0xd4   : > { %v436_v17 = vpop.f32.mrf.mxu0  ;;  %v440_v20 = vpop.f32.mrf.mxu1 }
  0xd5   : > { %328 = vst.msk [vmem:[%s172_s25 + $0x8] sm:$0xf] %vm325_vm2, %v420_v12  ;;  %v418_v18 = vpack.c.bf16 %v263_v13, %v263_v13  ;;  %v274_v19 = vadd.f32 %v436_v17, %v399_v6  ;;  %332 = vst.msk [vmem:[%s172_s25 + $0x18] sm:$0xf] %vm325_vm2, %v424_v15  ;;  %v422_v21 = vpack.c.bf16 %v279_v16, %v279_v16 }
  0xd6   : > { %v290_v22 = vadd.f32 %v440_v20, %v399_v6  ;;  %v265_v23 = vpop.f32.mrf.mxu0  ;;  %v281_v26 = vpop.f32.mrf.mxu1 }
  0xd7   : > { %326 = vst.msk [vmem:[%s172_s25] sm:$0xf] %vm325_vm2, %v418_v18  ;;  %v421_v24 = vpack.c.bf16 %v274_v19, %v274_v19  ;;  %v266_v25 = vadd.f32 %v399_v6, %v265_v23  ;;  %330 = vst.msk [vmem:[%s172_s25 + $0x10] sm:$0xf] %vm325_vm2, %v422_v21  ;;  %v282_v28 = vadd.f32 %v399_v6, %v281_v26 }
  0xd8   : > { %v425_v27 = vpack.c.bf16 %v290_v22, %v290_v22 }
  0xd9   : > { %329 = vst.msk [vmem:[%s172_s25 + $0xc] sm:$0xf] %vm325_vm2, %v421_v24  ;;  %v419_v29 = vpack.c.bf16 %v266_v25, %v266_v25  ;;  %v423_v30 = vpack.c.bf16 %v282_v28, %v282_v28 }
  0xda   : > { %333 = vst.msk [vmem:[%s172_s25 + $0x1c] sm:$0xf] %vm325_vm2, %v425_v27 }
  0xdb   : > { %327 = vst.msk [vmem:[%s172_s25 + $0x4] sm:$0xf] %vm325_vm2, %v419_v29  ;;  %331 = vst.msk [vmem:[%s172_s25 + $0x14] sm:$0xf] %vm325_vm2, %v423_v30 }
  0xdc PF: > { %s13_s12 = sadd.s32 1, %s463_s12  }
  0xdd   : > { %p10_p4 = scmp.ge.s32.totalorder %s13_s12, 4  }
  0xdf   :  { %12 = sbr.rel (!%p10_p4) target bundleno = 1 (0x1), region = 62 }

// kernel: encoder3d_forward.52
= control target key start
LH: loop header
LB: loop body
LE: loop exit
PB: predicated region body
PF: predicated region fallthrough
CT: control target
= control target key end

     0   :  { %s947_s12 = smov 0   ;;  %s949_s13 = smov 0   ;;  %s1070_s0 = inlined_call_operand.vmem [shape: bf16[2,6,48,48], index: 0, kind: input, shape index: {}]   ;;  %s1071_s1 = inlined_call_operand.vmem [shape: bf16[3,3,48,16], index: 1, kind: input, shape index: {}]   ;;  %s1072_s2 = inlined_call_operand.vmem [shape: f32[1,16], index: 2, kind: input, shape index: {}]   ;;  %s1073_s3 = inlined_call_operand.vmem [shape: bf16[2,4,32,16], index: 3, kind: output, shape index: {}]  }
   0x1   :  { %s951_s14 = smov 0   ;;  %s953_s15 = smov 0  }
   0x2   :  { %s955_s16 = smov 0   ;;  %s957_s17 = smov 0  }
   0x3   :  { %s959_s18 = smov 0  }
   0x4 LB: > { %s25_s19 = sadd.s32 1, %s912_s15  ;;  %s28_s20 = sadd.s32 1, %s916_s16  ;;  %s924_s18 = sphi %s959_s18, %s13_s18   ;;  %s920_s17 = sphi %s957_s17, %s1079_s17   ;;  %s916_s16 = sphi %s955_s16, %s1078_s16   ;;  %s912_s15 = sphi %s953_s15, %s1077_s15   ;;  %s908_s14 = sphi %s951_s14, %s1076_s14   ;;  %s904_s13 = sphi %s949_s13, %s1075_s13   ;;  %s900_s12 = sphi %s947_s12, %s1074_s12  }
   0x5   : > { %p26_p0 = scmp.ge.s32.totalorder %s25_s19, 3  ;;  %p698_p1 = scmp.ge.s32.totalorder %s924_s18, 1 }
   0x6   : > { %p178_p2 = scmp.lt.s32.totalorder %s924_s18, 25  ;;  %s32_s21 = sadd.s32 1, %s920_s17 }
   0x7   : > { %s1081_s19 = smov (%p26_p0, %s25_s19), 0  ;;  %s1083_s20 = smov (!%p26_p0, %s28_s20), %s916_s16 }
   0x8   : > { %p179_p3 = pnand %p698_p1, %p178_p2  ;;  %p30_p4 = scmp.ge.s32.totalorder %s1083_s20, 4 }
   0x9   : > { %s216_s22 = sadd.s32 (!%p179_p3), %s900_s12, %s904_s13  ;;  %p217_p6 = scmp.lt.s32.totalorder (!%p179_p3), %s908_s14, 1 }
   0xa   : > { %s1085_s20 = smov (%p30_p4, %s1083_s20), 0  ;;  %s1087_s21 = smov (!%p30_p4, %s32_s21), %s920_s17 }
   0xb   : > { %p34_p5 = scmp.ge.s32.totalorder %s1087_s21, 2  ;;  %182 = sbr.rel (%p179_p3) target bundleno = 273 (0x111), region = 32 }
   0xc   : > { %p219_p7 = scmp.lt.s32.totalorder (!%p179_p3), %s216_s22, 5  ;;  %p227_p8 = scmp.lt.s32.totalorder (!%p179_p3), %s900_s12, 2 }
   0xd   : > { %s1089_s21 = smov (%p34_p5, %s1087_s21), 0  ;;  %p234_p9 = scmp.lt.s32.totalorder (!%p179_p3), %s904_s13, 3 }
   0xe   : > { %p704_p10 = scmp.ne.s32.totalorder (!%p179_p3), %s900_s12, 0 }
  0x10   : > { %s1091_s14 = smov (!%p217_p6, %s908_s14), 1  ;;  %s1093_s22 = smov (!%p219_p7, %s216_s22), 5 }
  0x11   : > { %s796_s23 = smul.u32 36, %s1091_s14  ;;  %s702_s8 = sshll.u32 %s1091_s14, 4 }
  0x12   : > { %s795_s24 = smul.u32 6, %s1093_s22  ;;  %s1095_s13 = smov (!%p234_p9, %s904_s13), 3 }
  0x13   : > { %s228_s25 = scalar_select %p227_p8, %s900_s12, 2 }
  0x14   : > { %s223_s26 = sadd.s32 %s796_s23, %s795_s24  ;;  %s701_s9 = sshll.u32 %s1095_s13, 2 }
  0x15   : > { %s699_s27 = sshll.u32 %s223_s26, 2  ;;  %s797_s28 = smul.u32 72, %s228_s25 }
  0x16   : > { %s1001_s4 = scalar_lea.vmem %s1070_s0, %s699_s27  ;;  %s238_s10 = sadd.s32 %s702_s8, %s701_s9 }
  0x17   : > { %s1006_s7 = scalar_lea.vmem %s1071_s1, %s797_s28  ;;  %s703_s11 = sshll.u32 %s238_s10, 2 }
  0x18   : > { %s1012_s24 = scalar_lea.vmem %s1073_s3, %s703_s11  ;;  %245 = sbr.rel (%p704_p10) target bundleno = 32 (0x20), region = 36 }
  0x1d   : > { %vm246_vm0 = vcmask 130048   ;;  %v926_v0 = vmov 0.0  }
  0x1e   : > { %247 = vst.msk [vmem:[#allocation2] sm:$0xff] %vm246_vm0, %v926_v0  ;;  %248 = vst.msk [vmem:[#allocation2 + $0x8] sm:$0xff] %vm246_vm0, %v926_v0 }
  0x1f   : > { %249 = vst.msk [vmem:[#allocation2 + $0x10] sm:$0xff] %vm246_vm0, %v926_v0  ;;  %250 = vst.msk [vmem:[#allocation2 + $0x18] sm:$0xff] %vm246_vm0, %v926_v0 }
  0x20 PF: > { %v855_v1 = vld [vmem:[%s1006_s7 + $0x28] sm:$0xff]   ;;  %v856_v2 = vld [vmem:[%s1006_s7 + $0x10] sm:$0xff]   ;;  %v857_v3 = vld [vmem:[%s1006_s7 + $0x20] sm:$0xff]   ;;  %vm297_vm1 = vcmask 392192   ;;  %vm536_vm2 = vcmask 130048   ;;  %p738_p11 = scmp.ne.s32.totalorder %s900_s12, 2 }
  0x21   : > { %765 = vmatprep.subr.bf16.mxu0 %v855_v1  ;;  %775 = vmatprep.subr.bf16.mxu1 %v856_v2  ;;  %v858_v4 = vld [vmem:[%s1006_s7 + $0x8] sm:$0xff]   ;;  %v859_v5 = vld [vmem:[%s1006_s7 + $0x18] sm:$0xff]   ;;  %v860_v6 = vld [vmem:[%s1006_s7] sm:$0xff]  }
  0x22   : > { %766 = vmatpush3.bf16.msra.mxu0 %v855_v1  ;;  %776 = vmatpush3.bf16.msra.mxu1 %v856_v2  ;;  %v252_v7 = vld [vmem:[%s1001_s4 + $0x4] sm:$0xf]  ;;  %v253_v8 = vld [vmem:[%s1001_s4 + $0x8] sm:$0xf]  ;;  %v254_v9 = vld [vmem:[%s1001_s4 + $0xc] sm:$0xf] }
  0x23   : > { %767 = vmatprep.subr.bf16.mxu0 %v857_v3  ;;  %777 = vmatprep.subr.bf16.mxu1 %v858_v4  ;;  %v261_v10 = vld [vmem:[%s1001_s4 + $0x10] sm:$0xf]  ;;  %v711_v11 = vcombine.low %v252_v7, %v253_v8  ;;  %v251_v12 = vld [vmem:[%s1001_s4] sm:$0xf]  ;;  %v719_v16 = vcombine.low %v253_v8, %v254_v9  ;;  %v866_v17 = vld [vmem:[%s1006_s7 + $0x38] sm:$0xff]  }
  0x24   : > { %v718_v13 = vcombine.low %v251_v12, %v252_v7  ;;  %v865_v14 = vld [vmem:[%s1006_s7 + $0x40] sm:$0xff]   ;;  %v712_v15 = vcombine.low %v254_v9, %v261_v10  ;;  %v868_v18 = vld [vmem:[%s1001_s4 + $0x8] sm:$0xff]   ;;  %v867_v19 = vld [vmem:[%s1006_s7 + $0x30] sm:$0xff]  }
  0x25   : > { %771 = vmatprep.mubr.msk.bf16.mxu0 %vm297_vm1, %v711_v11  ;;  %v869_v20 = vld [vmem:[%s1001_s4 + $0x10] sm:$0xff]   ;;  %v528_v35 = vld [vmem:[#allocation2] sm:$0xff]  ;;  %v529_v45 = vld [vmem:[#allocation2 + $0x8] sm:$0xff] }
  0x26   : > { %768 = vmatpush3.bf16.msra.mxu0 %v857_v3  ;;  %778 = vmatpush3.bf16.msra.mxu1 %v858_v4  ;;  %v530_v30 = vld [vmem:[#allocation2 + $0x10] sm:$0xff]  ;;  %v531_v40 = vld [vmem:[#allocation2 + $0x18] sm:$0xff] }
  0x27   : > { %769 = vmatprep.subr.bf16.mxu0 %v859_v5  ;;  %779 = vmatprep.subr.bf16.mxu1 %v860_v6 }
  0x28   : > { %781 = vmatprep.mubr.msk.bf16.mxu1 %vm297_vm1, %v718_v13 }
  0x2a   : > { %770 = vmatpush3.bf16.msra.mxu0 %v859_v5  ;;  %780 = vmatpush3.bf16.msra.mxu1 %v860_v6 }
  0x2b   : > { %785 = vmatprep.subr.bf16.mxu0 %v865_v14 }
  0x2d   : > { %772 = vmatmul.mubr.msk.bf16.vlgmr.msra.gmra.mxu0 %vm297_vm1, %v712_v15  ;;  %782 = vmatmul.mubr.msk.bf16.vlgmr.msra.gmra.mxu1 %vm297_vm1, %v719_v16 }
  0x2e   : > { %786 = vmatpush3.bf16.msra.mxu0 %v865_v14  ;;  %791 = vmatprep.mubr.msk.bf16.mxu0 %vm297_vm1, %v868_v18 }
  0x2f   : > { %787 = vmatprep.subr.bf16.mxu0 %v866_v17 }
  0x32   : > { %788 = vmatpush3.bf16.msra.mxu0 %v866_v17 }
  0x33   : > { %789 = vmatprep.subr.bf16.mxu0 %v867_v19 }
  0x36   : > { %790 = vmatpush3.bf16.msra.mxu0 %v867_v19 }
  0x39   : > { %792 = vmatmul.mubr.msk.bf16.vlgmr.msra.gmra.mxu0 %vm297_vm1, %v869_v20 }
  0xed   : > { %v773_v21 = vpop.f32.mrf.mxu0  ;;  %v783_v22 = vpop.f32.mrf.mxu1 }
  0xee   : > { %v424_v28 = vadd.f32 %v783_v22, %v773_v21 }
  0xef   : > { %v338_v23 = vpop.f32.mrf.mxu0  ;;  %v415_v24 = vpop.f32.mrf.mxu1 }
  0xf0   : > { %v416_v31 = vadd.f32 %v415_v24, %v338_v23 }
  0xf1   : > { %v774_v25 = vpop.f32.mrf.mxu0  ;;  %v784_v26 = vpop.f32.mrf.mxu1 }
  0xf2   : > { %v427_v36 = vadd.f32 %v784_v26, %v774_v25 }
  0xf3   : > { %v341_v27 = vpop.f32.mrf.mxu0  ;;  %v418_v33 = vpop.f32.mrf.mxu1 }
  0xf4   : > { %v419_v41 = vadd.f32 %v418_v33, %v341_v27 }
  0xf9   : > { %v793_v29 = vpop.f32.mrf.mxu0 }
  0xfa   : > { %v526_v32 = vadd.f32 %v793_v29, %v424_v28 }
  0xfb   : > { %v509_v34 = vpop.f32.mrf.mxu0 }
  0xfc   : > { %v534_v37 = vadd.f32 %v530_v30, %v526_v32  ;;  %v524_v38 = vadd.f32 %v509_v34, %v416_v31 }
  0xfd   : > { %v794_v39 = vpop.f32.mrf.mxu0 }
  0xfe   : > { %539 = vst.msk [vmem:[#allocation2 + $0x10] sm:$0xff] %vm536_vm2, %v534_v37  ;;  %v532_v42 = vadd.f32 %v528_v35, %v524_v38  ;;  %v527_v43 = vadd.f32 %v794_v39, %v427_v36 }
  0xff   : > { %v512_v44 = vpop.f32.mrf.mxu0 }
 0x100   : > { %537 = vst.msk [vmem:[#allocation2] sm:$0xff] %vm536_vm2, %v532_v42  ;;  %v535_v46 = vadd.f32 %v531_v40, %v527_v43  ;;  %v525_v47 = vadd.f32 %v512_v44, %v419_v41  ;;  %544 = sbr.rel (%p738_p11) target bundleno = 273 (0x111), region = 40 }
 0x102   : > { %540 = vst.msk [vmem:[#allocation2 + $0x18] sm:$0xff] %vm536_vm2, %v535_v46  ;;  %v533_v48 = vadd.f32 %v529_v45, %v525_v47 }
 0x104   : > { %538 = vst.msk [vmem:[#allocation2 + $0x8] sm:$0xff] %vm536_vm2, %v533_v48 }
 0x105   : > { %v739_v50 = vld [vmem:[%s1072_s2] ss:$0 sm:$0xff]  ;;  %v547_v54 = vld [vmem:[#allocation2 + $0x10] sm:$0xff]  ;;  %vm576_vm3 = vcmask 125952  }
 0x106   : > { %v558_v56 = vadd.f32 %v739_v50, %v547_v54 }
 0x107   : > { %v545_v49 = vld [vmem:[#allocation2] sm:$0xff] }
 0x108   : > { %v556_v52 = vadd.f32 %v739_v50, %v545_v49  ;;  %v748_v60 = vpack.c.bf16 %v558_v56, %v558_v56 }
 0x109   : > { %v548_v55 = vld [vmem:[#allocation2 + $0x18] sm:$0xff] }
 0x10a   : > { %v559_v57 = vadd.f32 %v739_v50, %v548_v55  ;;  %v746_v58 = vpack.c.bf16 %v556_v52, %v556_v52  ;;  %579 = vst.msk [vmem:[%s1012_s24 + $0x8] sm:$0xf] %vm576_vm3, %v748_v60 }
 0x10b   : > { %v546_v51 = vld [vmem:[#allocation2 + $0x8] sm:$0xff] }
 0x10c   : > { %v557_v53 = vadd.f32 %v739_v50, %v546_v51  ;;  %v749_v61 = vpack.c.bf16 %v559_v57, %v559_v57  ;;  %577 = vst.msk [vmem:[%s1012_s24] sm:$0xf] %vm576_vm3, %v746_v58 }
 0x10e   : > { %v747_v59 = vpack.c.bf16 %v557_v53, %v557_v53  ;;  %580 = vst.msk [vmem:[%s1012_s24 + $0xc] sm:$0xf] %vm576_vm3, %v749_v61 }
 0x110   : > { %578 = vst.msk [vmem:[%s1012_s24 + $0x4] sm:$0xf] %vm576_vm3, %v747_v59 }
 0x111 PF: > { %s13_s18 = sadd.s32 1, %s924_s18   ;;  %s1074_s12 = smov %s912_s15 }
 0x112   : > { %p10_p12 = scmp.ge.s32.totalorder %s13_s18, 26   ;;  %s1075_s13 = smov %s916_s16 }
 0x113   : > { %s1076_s14 = smov %s920_s17  ;;  %s1077_s15 = smov %s1081_s19 }
 0x114   : > { %s1078_s16 = smov %s1085_s20  ;;  %s1079_s17 = smov %s1089_s21 }
 0x115   :  { %12 = sbr.rel (!%p10_p12) target bundleno = 4 (0x4), region = 75 }

// kernel: encoder3d_forward.49
= control target key start
LH: loop header
LB: loop body
LE: loop exit
PB: predicated region body
PF: predicated region fallthrough
CT: control target
= control target key end

     0   :  { %s1058_s15 = smov 0   ;;  %s1060_s16 = smov 0   ;;  %s1188_s0 = inlined_call_operand.vmem [shape: bf16[2,6,48,48], index: 0, kind: input, shape index: {}]   ;;  %s1189_s1 = inlined_call_operand.vmem [shape: bf16[3,3,48,16], index: 1, kind: input, shape index: {}]   ;;  %s1190_s2 = inlined_call_operand.vmem [shape: f32[1,16], index: 2, kind: input, shape index: {}]   ;;  %s1191_s3 = inlined_call_operand.vmem [shape: bf16[2,4,32,16], index: 3, kind: input, shape index: {}]   ;;  %s1192_s4 = inlined_call_operand.vmem [shape: bf16[2,4,32,16], index: 4, kind: output, shape index: {}]  }
   0x1   :  { %s1062_s17 = smov 0   ;;  %s1064_s18 = smov 0  }
   0x2   :  { %s1066_s19 = smov 0   ;;  %s1068_s20 = smov 0  }
   0x3   :  { %s1070_s21 = smov 0  }
   0x4 LB: > { %s26_s22 = sadd.s32 1, %s1018_s18  ;;  %s29_s23 = sadd.s32 1, %s1022_s19  ;;  %s1030_s21 = sphi %s1070_s21, %s14_s21   ;;  %s1026_s20 = sphi %s1068_s20, %s1200_s20   ;;  %s1022_s19 = sphi %s1066_s19, %s1199_s19   ;;  %s1018_s18 = sphi %s1064_s18, %s1198_s18   ;;  %s1014_s17 = sphi %s1062_s17, %s1197_s17   ;;  %s1010_s16 = sphi %s1060_s16, %s1196_s16   ;;  %s1006_s15 = sphi %s1058_s15, %s1195_s15  }
   0x5   : > { %p27_p0 = scmp.ge.s32.totalorder %s26_s22, 3  ;;  %p792_p1 = scmp.ge.s32.totalorder %s1030_s21, 1 }
   0x6   : > { %p219_p2 = scmp.lt.s32.totalorder %s1030_s21, 25  ;;  %s33_s24 = sadd.s32 1, %s1026_s20 }
   0x7   : > { %s1202_s22 = smov (%p27_p0, %s26_s22), 0  ;;  %s1204_s23 = smov (!%p27_p0, %s29_s23), %s1022_s19 }
   0x8   : > { %p220_p3 = pnand %p792_p1, %p219_p2  ;;  %p31_p4 = scmp.ge.s32.totalorder %s1204_s23, 4 }
   0x9   : > { %s268_s25 = sadd.s32 (!%p220_p3), %s1006_s15, %s1010_s16  ;;  %p269_p6 = scmp.lt.s32.totalorder (!%p220_p3), %s1014_s17, 1 }
   0xa   : > { %s1206_s23 = smov (%p31_p4, %s1204_s23), 0  ;;  %s1208_s24 = smov (!%p31_p4, %s33_s24), %s1026_s20 }
   0xb   : > { %p35_p5 = scmp.ge.s32.totalorder %s1208_s24, 2  ;;  %223 = sbr.rel (%p220_p3) target bundleno = 276 (0x114), region = 36 }
   0xc   : > { %p271_p7 = scmp.lt.s32.totalorder (!%p220_p3), %s268_s25, 5  ;;  %p279_p8 = scmp.lt.s32.totalorder (!%p220_p3), %s1006_s15, 2 }
   0xd   : > { %s1210_s24 = smov (%p35_p5, %s1208_s24), 0  ;;  %p286_p9 = scmp.lt.s32.totalorder (!%p220_p3), %s1010_s16, 3 }
   0xe   : > { %1193 = sst [smem:[#allocation3_spill]] %s1210_s24  ;;  %p801_p10 = scmp.ne.s32.totalorder (!%p220_p3), %s1006_s15, 0 }
  0x10   : > { %s1212_s17 = smov (!%p269_p6, %s1014_s17), 1  ;;  %s1214_s25 = smov (!%p271_p7, %s268_s25), 5 }
  0x11   : > { %s902_s26 = smul.u32 36, %s1212_s17  ;;  %s796_s12 = sshll.u32 %s1212_s17, 4 }
  0x12   : > { %s901_s27 = smul.u32 6, %s1214_s25  ;;  %s1216_s16 = smov (!%p286_p9, %s1010_s16), 3 }
  0x13   : > { %s280_s28 = scalar_select %p279_p8, %s1006_s15, 2 }
  0x14   : > { %s275_s29 = sadd.s32 %s902_s26, %s901_s27  ;;  %s795_s13 = sshll.u32 %s1216_s16, 2 }
  0x15   : > { %s793_s30 = sshll.u32 %s275_s29, 2  ;;  %s903_s5 = smul.u32 72, %s280_s28 }
  0x16   : > { %s1112_s8 = scalar_lea.vmem %s1188_s0, %s793_s30  ;;  %s290_s14 = sadd.s32 %s796_s12, %s795_s13 }
  0x17   : > { %s1117_s11 = scalar_lea.vmem %s1189_s1, %s903_s5  ;;  %s797_s25 = sshll.u32 %s290_s14, 2 }
  0x18   : > { %s1123_s27 = scalar_lea.vmem %s1191_s3, %s797_s25  ;;  %s1128_s30 = scalar_lea.vmem %s1192_s4, %s797_s25 }
  0x19   : > { %306 = sbr.rel (%p801_p10) target bundleno = 33 (0x21), region = 40 }
  0x1e   : > { %vm307_vm0 = vcmask 130048   ;;  %v1032_v0 = vmov 0.0  }
  0x1f   : > { %308 = vst.msk [vmem:[#allocation2] sm:$0xff] %vm307_vm0, %v1032_v0  ;;  %309 = vst.msk [vmem:[#allocation2 + $0x8] sm:$0xff] %vm307_vm0, %v1032_v0 }
  0x20   : > { %310 = vst.msk [vmem:[#allocation2 + $0x10] sm:$0xff] %vm307_vm0, %v1032_v0  ;;  %311 = vst.msk [vmem:[#allocation2 + $0x18] sm:$0xff] %vm307_vm0, %v1032_v0 }
  0x21 PF: > { %v961_v1 = vld [vmem:[%s1117_s11 + $0x28] sm:$0xff]   ;;  %v962_v2 = vld [vmem:[%s1117_s11 + $0x10] sm:$0xff]   ;;  %v963_v3 = vld [vmem:[%s1117_s11 + $0x20] sm:$0xff]   ;;  %vm358_vm1 = vcmask 392192   ;;  %vm597_vm2 = vcmask 130048   ;;  %p835_p11 = scmp.ne.s32.totalorder %s1006_s15, 2 }
  0x22   : > { %871 = vmatprep.subr.bf16.mxu0 %v961_v1  ;;  %881 = vmatprep.subr.bf16.mxu1 %v962_v2  ;;  %v964_v4 = vld [vmem:[%s1117_s11 + $0x8] sm:$0xff]   ;;  %v965_v5 = vld [vmem:[%s1117_s11 + $0x18] sm:$0xff]   ;;  %v966_v6 = vld [vmem:[%s1117_s11] sm:$0xff]  }
  0x23   : > { %872 = vmatpush3.bf16.msra.mxu0 %v961_v1  ;;  %882 = vmatpush3.bf16.msra.mxu1 %v962_v2  ;;  %v313_v7 = vld [vmem:[%s1112_s8 + $0x4] sm:$0xf]  ;;  %v314_v8 = vld [vmem:[%s1112_s8 + $0x8] sm:$0xf]  ;;  %v315_v9 = vld [vmem:[%s1112_s8 + $0xc] sm:$0xf] }
  0x24   : > { %873 = vmatprep.subr.bf16.mxu0 %v963_v3  ;;  %883 = vmatprep.subr.bf16.mxu1 %v964_v4  ;;  %v322_v10 = vld [vmem:[%s1112_s8 + $0x10] sm:$0xf]  ;;  %v808_v11 = vcombine.low %v313_v7, %v314_v8  ;;  %v312_v12 = vld [vmem:[%s1112_s8] sm:$0xf]  ;;  %v816_v16 = vcombine.low %v314_v8, %v315_v9  ;;  %v972_v17 = vld [vmem:[%s1117_s11 + $0x38] sm:$0xff]  }
  0x25   : > { %v815_v13 = vcombine.low %v312_v12, %v313_v7  ;;  %v971_v14 = vld [vmem:[%s1117_s11 + $0x40] sm:$0xff]   ;;  %v809_v15 = vcombine.low %v315_v9, %v322_v10  ;;  %v974_v18 = vld [vmem:[%s1112_s8 + $0x8] sm:$0xff]   ;;  %v973_v19 = vld [vmem:[%s1117_s11 + $0x30] sm:$0xff]  }
  0x26   : > { %877 = vmatprep.mubr.msk.bf16.mxu0 %vm358_vm1, %v808_v11  ;;  %v975_v20 = vld [vmem:[%s1112_s8 + $0x10] sm:$0xff]   ;;  %v589_v35 = vld [vmem:[#allocation2] sm:$0xff]  ;;  %v590_v45 = vld [vmem:[#allocation2 + $0x8] sm:$0xff] }
  0x27   : > { %874 = vmatpush3.bf16.msra.mxu0 %v963_v3  ;;  %884 = vmatpush3.bf16.msra.mxu1 %v964_v4  ;;  %v591_v30 = vld [vmem:[#allocation2 + $0x10] sm:$0xff]  ;;  %v592_v40 = vld [vmem:[#allocation2 + $0x18] sm:$0xff] }
  0x28   : > { %875 = vmatprep.subr.bf16.mxu0 %v965_v5  ;;  %885 = vmatprep.subr.bf16.mxu1 %v966_v6 }
  0x29   : > { %887 = vmatprep.mubr.msk.bf16.mxu1 %vm358_vm1, %v815_v13 }
  0x2b   : > { %876 = vmatpush3.bf16.msra.mxu0 %v965_v5  ;;  %886 = vmatpush3.bf16.msra.mxu1 %v966_v6 }
  0x2c   : > { %891 = vmatprep.subr.bf16.mxu0 %v971_v14 }
  0x2e   : > { %878 = vmatmul.mubr.msk.bf16.vlgmr.msra.gmra.mxu0 %vm358_vm1, %v809_v15  ;;  %888 = vmatmul.mubr.msk.bf16.vlgmr.msra.gmra.mxu1 %vm358_vm1, %v816_v16 }
  0x2f   : > { %892 = vmatpush3.bf16.msra.mxu0 %v971_v14  ;;  %897 = vmatprep.mubr.msk.bf16.mxu0 %vm358_vm1, %v974_v18 }
  0x30   : > { %893 = vmatprep.subr.bf16.mxu0 %v972_v17 }
  0x33   : > { %894 = vmatpush3.bf16.msra.mxu0 %v972_v17 }
  0x34   : > { %895 = vmatprep.subr.bf16.mxu0 %v973_v19 }
  0x37   : > { %896 = vmatpush3.bf16.msra.mxu0 %v973_v19 }
  0x3a   : > { %898 = vmatmul.mubr.msk.bf16.vlgmr.msra.gmra.mxu0 %vm358_vm1, %v975_v20 }
  0xee   : > { %v879_v21 = vpop.f32.mrf.mxu0  ;;  %v889_v22 = vpop.f32.mrf.mxu1 }
  0xef   : > { %v485_v28 = vadd.f32 %v889_v22, %v879_v21 }
  0xf0   : > { %v399_v23 = vpop.f32.mrf.mxu0  ;;  %v476_v24 = vpop.f32.mrf.mxu1 }
  0xf1   : > { %v477_v31 = vadd.f32 %v476_v24, %v399_v23 }
  0xf2   : > { %v880_v25 = vpop.f32.mrf.mxu0  ;;  %v890_v26 = vpop.f32.mrf.mxu1 }
  0xf3   : > { %v488_v36 = vadd.f32 %v890_v26, %v880_v25 }
  0xf4   : > { %v402_v27 = vpop.f32.mrf.mxu0  ;;  %v479_v33 = vpop.f32.mrf.mxu1 }
  0xf5   : > { %v480_v41 = vadd.f32 %v479_v33, %v402_v27 }
  0xfa   : > { %v899_v29 = vpop.f32.mrf.mxu0 }
  0xfb   : > { %v587_v32 = vadd.f32 %v899_v29, %v485_v28 }
  0xfc   : > { %v570_v34 = vpop.f32.mrf.mxu0 }
  0xfd   : > { %v595_v37 = vadd.f32 %v591_v30, %v587_v32  ;;  %v585_v38 = vadd.f32 %v570_v34, %v477_v31 }
  0xfe   : > { %v900_v39 = vpop.f32.mrf.mxu0 }
  0xff   : > { %600 = vst.msk [vmem:[#allocation2 + $0x10] sm:$0xff] %vm597_vm2, %v595_v37  ;;  %v593_v42 = vadd.f32 %v589_v35, %v585_v38  ;;  %v588_v43 = vadd.f32 %v900_v39, %v488_v36 }
 0x100   : > { %v573_v44 = vpop.f32.mrf.mxu0 }
 0x101   : > { %598 = vst.msk [vmem:[#allocation2] sm:$0xff] %vm597_vm2, %v593_v42  ;;  %v596_v46 = vadd.f32 %v592_v40, %v588_v43  ;;  %v586_v47 = vadd.f32 %v573_v44, %v480_v41  ;;  %605 = sbr.rel (%p835_p11) target bundleno = 276 (0x114), region = 44 }
 0x103   : > { %601 = vst.msk [vmem:[#allocation2 + $0x18] sm:$0xff] %vm597_vm2, %v596_v46  ;;  %v594_v48 = vadd.f32 %v590_v45, %v586_v47 }
 0x105   : > { %599 = vst.msk [vmem:[#allocation2 + $0x8] sm:$0xff] %vm597_vm2, %v594_v48 }
 0x106   : > { %v836_v50 = vld [vmem:[%s1190_s2] ss:$0 sm:$0xff]  ;;  %v608_v56 = vld [vmem:[#allocation2 + $0x10] sm:$0xff]  ;;  %v855_v57 = vld [vmem:[%s1123_s27 + $0x8] sm:$0xff]   ;;  %vm649_vm3 = vcmask 125952  }
 0x107   : > { %v848_v51 = vld [vmem:[%s1123_s27] sm:$0xff]   ;;  %v619_v59 = vadd.f32 %v836_v50, %v608_v56  ;;  %v853_v60 = vunpack.c.l.bf16 %v855_v57  ;;  %v854_v62 = vunpack.c.h.bf16 %v855_v57 }
 0x108   : > { %v606_v49 = vld [vmem:[#allocation2] sm:$0xff]  ;;  %v849_v53 = vunpack.c.l.bf16 %v848_v51  ;;  %v850_v55 = vunpack.c.h.bf16 %v848_v51 }
 0x109   : > { %v617_v52 = vadd.f32 %v836_v50, %v606_v49  ;;  %v631_v2 = vadd.f32 %v853_v60, %v619_v59 }
 0x10a   : > { %v609_v61 = vld [vmem:[#allocation2 + $0x18] sm:$0xff] }
 0x10b   : > { %v629_v63 = vadd.f32 %v849_v53, %v617_v52  ;;  %v620_v0 = vadd.f32 %v836_v50, %v609_v61  ;;  %v845_v6 = vpack.c.bf16 %v631_v2, %v631_v2 }
 0x10c   : > { %v607_v54 = vld [vmem:[#allocation2 + $0x8] sm:$0xff] }
 0x10d   : > { %v618_v58 = vadd.f32 %v836_v50, %v607_v54  ;;  %v843_v3 = vpack.c.bf16 %v629_v63, %v629_v63  ;;  %v632_v4 = vadd.f32 %v854_v62, %v620_v0  ;;  %652 = vst.msk [vmem:[%s1128_s30 + $0x8] sm:$0xf] %vm649_vm3, %v845_v6 }
 0x10f   : > { %v630_v1 = vadd.f32 %v850_v55, %v618_v58  ;;  %650 = vst.msk [vmem:[%s1128_s30] sm:$0xf] %vm649_vm3, %v843_v3  ;;  %v846_v7 = vpack.c.bf16 %v632_v4, %v632_v4 }
 0x111   : > { %v844_v5 = vpack.c.bf16 %v630_v1, %v630_v1  ;;  %653 = vst.msk [vmem:[%s1128_s30 + $0xc] sm:$0xf] %vm649_vm3, %v846_v7 }
 0x113   : > { %651 = vst.msk [vmem:[%s1128_s30 + $0x4] sm:$0xf] %vm649_vm3, %v844_v5 }
 0x114 PF: > { %s14_s21 = sadd.s32 1, %s1030_s21   ;;  %s1194_s24 = sld [smem:[#allocation3_spill]] }
 0x115   : > { %p11_p12 = scmp.ge.s32.totalorder %s14_s21, 26   ;;  %s1195_s15 = smov %s1018_s18 }
 0x116   : > { %s1196_s16 = smov %s1022_s19  ;;  %s1197_s17 = smov %s1026_s20 }
 0x117   : > { %s1198_s18 = smov %s1202_s22  ;;  %s1199_s19 = smov %s1206_s23 }
 0x118   :  { %13 = sbr.rel (!%p11_p12) target bundleno = 4 (0x4), region = 82 }
 0x11a   : > { %s1200_s20 = smov %s1194_s24 }

// kernel: encoder3d_forward.57
= control target key start
LH: loop header
LB: loop body
LE: loop exit
PB: predicated region body
PF: predicated region fallthrough
CT: control target
= control target key end

     0   :  { %s617_s18 = smov 0   ;;  %s619_s19 = smov 0   ;;  %s687_s0 = inlined_call_operand.vmem [shape: bf16[2,64,16], index: 0, kind: input, shape index: {}]   ;;  %s688_s1 = inlined_call_operand.vmem [shape: f32[2,1,16], index: 1, kind: input, shape index: {}]   ;;  %s689_s2 = inlined_call_operand.vmem [shape: f32[2,1,16], index: 2, kind: input, shape index: {}]   ;;  %s690_s3 = inlined_call_operand.vmem [shape: f32[1,1,16], index: 3, kind: input, shape index: {}]   ;;  %s691_s4 = inlined_call_operand.vmem [shape: f32[1,1,16], index: 4, kind: input, shape index: {}]   ;;  %s692_s5 = inlined_call_operand.vmem [shape: bf16[2,64,16], index: 5, kind: output, shape index: {}]  }
   0x1   :  { %s621_s20 = smov 0   ;;  %s623_s21 = smov 0  }
   0x2   :  { %s625_s22 = smov 0  }
   0x3 LB: > { %s24_s23 = sadd.s32 1, %s577_s20  ;;  %s27_s24 = sadd.s32 1, %s581_s21  ;;  %s585_s22 = sphi %s625_s22, %s15_s22   ;;  %s581_s21 = sphi %s623_s21, %s696_s21   ;;  %s577_s20 = sphi %s621_s20, %s695_s20   ;;  %s573_s19 = sphi %s619_s19, %s694_s19   ;;  %s569_s18 = sphi %s617_s18, %s693_s18  }
   0x4   : > { %p25_p0 = scmp.ge.s32.totalorder %s24_s23, 2  ;;  %p477_p1 = scmp.ge.s32.totalorder %s585_s22, 1 }
   0x5   : > { %p224_p2 = scmp.lt.s32.totalorder %s585_s22, 5 }
   0x6   : > { %s698_s23 = smov (%p25_p0, %s24_s23), 0  ;;  %s700_s24 = smov (!%p25_p0, %s27_s24), %s581_s21 }
   0x7   : > { %p225_p3 = pnand %p477_p1, %p224_p2  ;;  %p29_p4 = scmp.ge.s32.totalorder %s700_s24, 2 }
   0x8   : > { %s478_s25 = sshll.u32 (!%p225_p3), %s569_s18, 2  ;;  %p267_p5 = scmp.lt.s32.totalorder (!%p225_p3), %s573_s19, 1 }
   0x9   : > { %s702_s24 = smov (%p29_p4, %s700_s24), 0  ;;  %228 = sbr.rel (%p225_p3) target bundleno = 34 (0x22), region = 40 }
   0xa   : > { %p269_p6 = scmp.lt.s32.totalorder (!%p225_p3), %s478_s25, 7 }
   0xe   : > { %s704_s19 = smov (!%p267_p5, %s573_s19), 1  ;;  %s706_s25 = smov (!%p269_p6, %s478_s25), 7  ;;  %v486_v12 = vld [vmem:[%s690_s3] ss:$0 sm:$0xff]  ;;  %vm360_vm0 = vcmask 125952  }
   0xf   : > { %s479_s26 = sshll.u32 %s704_s19, 3  ;;  %s278_s30 = scalar_lea.vmem %s688_s1, %s704_s19  ;;  %v487_v17 = vld [vmem:[%s691_s4] ss:$0 sm:$0xff] }
  0x10   : > { %s647_s27 = sadd.s32 %s479_s26, %s706_s25  ;;  %s281_s12 = scalar_lea.vmem %s689_s2, %s704_s19  ;;  %v484_v2 = vld [vmem:[%s278_s30] ss:$0 sm:$0xff] }
  0x11   : > { %s480_s6 = sshll.u32 %s647_s27, 2  ;;  %v485_v7 = vld [vmem:[%s281_s12] ss:$0 sm:$0xff] }
  0x12   : > { %s274_s9 = scalar_lea.vmem %s687_s0, %s480_s6  ;;  %s290_s19 = scalar_lea.vmem %s692_s5, %s480_s6 }
  0x13   : > { %v499_v0 = vld [vmem:[%s274_s9] sm:$0xff]   ;;  %v506_v1 = vld [vmem:[%s274_s9 + $0x8] sm:$0xff]  }
  0x14   : > { %v500_v3 = vunpack.c.l.bf16 %v499_v0  ;;  %v501_v4 = vunpack.c.h.bf16 %v499_v0  ;;  %v504_v5 = vunpack.c.l.bf16 %v506_v1  ;;  %v505_v6 = vunpack.c.h.bf16 %v506_v1 }
  0x16   : > { %v307_v8 = vsub.f32 %v500_v3, %v484_v2  ;;  %v308_v9 = vsub.f32 %v501_v4, %v484_v2  ;;  %v309_v10 = vsub.f32 %v504_v5, %v484_v2  ;;  %v310_v11 = vsub.f32 %v505_v6, %v484_v2 }
  0x18   : > { %v318_v13 = vmul.f32 %v485_v7, %v307_v8  ;;  %v319_v14 = vmul.f32 %v485_v7, %v308_v9  ;;  %v320_v15 = vmul.f32 %v485_v7, %v309_v10  ;;  %v321_v16 = vmul.f32 %v485_v7, %v310_v11 }
  0x1a   : > { %v329_v18 = vmul.f32 %v486_v12, %v318_v13  ;;  %v330_v19 = vmul.f32 %v486_v12, %v319_v14  ;;  %v331_v20 = vmul.f32 %v486_v12, %v320_v15  ;;  %v332_v21 = vmul.f32 %v486_v12, %v321_v16 }
  0x1c   : > { %v340_v22 = vadd.f32 %v487_v17, %v329_v18  ;;  %v341_v23 = vadd.f32 %v487_v17, %v330_v19  ;;  %v342_v24 = vadd.f32 %v487_v17, %v331_v20  ;;  %v343_v25 = vadd.f32 %v487_v17, %v332_v21 }
  0x1e   : > { %v494_v26 = vpack.c.bf16 %v340_v22, %v340_v22  ;;  %v495_v27 = vpack.c.bf16 %v341_v23, %v341_v23  ;;  %v496_v28 = vpack.c.bf16 %v342_v24, %v342_v24  ;;  %v497_v29 = vpack.c.bf16 %v343_v25, %v343_v25 }
  0x20   : > { %361 = vst.msk [vmem:[%s290_s19] sm:$0xf] %vm360_vm0, %v494_v26  ;;  %362 = vst.msk [vmem:[%s290_s19 + $0x4] sm:$0xf] %vm360_vm0, %v495_v27 }
  0x21   : > { %363 = vst.msk [vmem:[%s290_s19 + $0x8] sm:$0xf] %vm360_vm0, %v496_v28  ;;  %364 = vst.msk [vmem:[%s290_s19 + $0xc] sm:$0xf] %vm360_vm0, %v497_v29 }
  0x22 PF: > { %s15_s22 = sadd.s32 1, %s585_s22   ;;  %s693_s18 = smov %s577_s20 }
  0x23   : > { %p12_p7 = scmp.ge.s32.totalorder %s15_s22, 6   ;;  %s694_s19 = smov %s581_s21 }
  0x24   : > { %s695_s20 = smov %s698_s23  ;;  %s696_s21 = smov %s702_s24 }
  0x25   :  { %14 = sbr.rel (!%p12_p7) target bundleno = 3 (0x3), region = 76 }

// kernel: encoder3d_forward.58
= control target key start
LH: loop header
LB: loop body
LE: loop exit
PB: predicated region body
PF: predicated region fallthrough
CT: control target
= control target key end

     0   :  { %s661_s12 = smov 0   ;;  %s663_s13 = smov 0   ;;  %s726_s0 = inlined_call_operand.vmem [shape: bf16[128,16], index: 0, kind: input, shape index: {}]   ;;  %s727_s1 = inlined_call_operand.vmem [shape: bf16[3,16,16], index: 1, kind: input, shape index: {}]   ;;  %s728_s2 = inlined_call_operand.vmem [shape: f32[3,1,16], index: 2, kind: input, shape index: {}]   ;;  %s729_s3 = inlined_call_operand.vmem [shape: bf16[3,128,16], index: 3, kind: output, shape index: {}]  }
   0x1   :  { %s665_s14 = smov 0   ;;  %s667_s15 = smov 0  }
   0x2   :  { %s669_s16 = smov 0  }
   0x3 LB: > { %s22_s17 = sadd.s32 1, %s631_s14  ;;  %s25_s18 = sadd.s32 1, %s635_s15  ;;  %s639_s16 = sphi %s669_s16, %s13_s16   ;;  %s635_s15 = sphi %s667_s15, %s733_s15   ;;  %s631_s14 = sphi %s665_s14, %s732_s14   ;;  %s627_s13 = sphi %s663_s13, %s731_s13   ;;  %s623_s12 = sphi %s661_s12, %s730_s12  }
   0x4   : > { %p23_p0 = scmp.ge.s32.totalorder %s22_s17, 2  ;;  %p502_p1 = scmp.ge.s32.totalorder %s639_s16, 1 }
   0x5   : > { %p170_p2 = scmp.lt.s32.totalorder %s639_s16, 7 }
   0x6   : > { %s735_s17 = smov (%p23_p0, %s22_s17), 0  ;;  %s737_s18 = smov (!%p23_p0, %s25_s18), %s635_s15 }
   0x7   : > { %p171_p3 = pnand %p502_p1, %p170_p2  ;;  %p27_p4 = scmp.ge.s32.totalorder %s737_s18, 3 }
   0x8   : > { %s503_s19 = sshll.u32 (!%p171_p3), %s623_s12, 3  ;;  %p212_p5 = scmp.lt.s32.totalorder (!%p171_p3), %s627_s13, 2 }
   0x9   : > { %s739_s18 = smov (%p27_p4, %s737_s18), 0  ;;  %174 = sbr.rel (%p171_p3) target bundleno = 226 (0xe2), region = 32 }
   0xa   : > { %p207_p6 = scmp.lt.s32.totalorder (!%p171_p3), %s503_s19, 15 }
   0xe   : > { %s741_s13 = smov (!%p212_p5, %s627_s13), 2  ;;  %s743_s19 = smov (!%p207_p6, %s503_s19), 15  ;;  %vm274_vm0 = vcmask 130048   ;;  %vm384_vm1 = vcmask 125952  }
   0xf   : > { %s530_s20 = sshll.u32 %s741_s13, 3  ;;  %s508_s21 = sshll.u32 %s741_s13, 4 }
  0x10   : > { %s216_s24 = scalar_lea.vmem %s727_s1, %s530_s20  ;;  %s226_s25 = sadd.s32 %s508_s21, %s743_s19 }
  0x11   : > { %v596_v0 = vld [vmem:[%s216_s24] sm:$0xff]   ;;  %s504_s26 = sshll.u32 %s743_s19, 2  ;;  %s219_s5 = scalar_lea.vmem %s728_s2, %s741_s13 }
  0x12   : > { %544 = vmatprep.subr.bf16.mxu0 %v596_v0  ;;  %554 = vmatprep.subr.bf16.mxu1 %v596_v0  ;;  %s210_s29 = scalar_lea.vmem %s726_s0, %s504_s26  ;;  %v510_v5 = vld [vmem:[%s219_s5] ss:$0 sm:$0xff]  ;;  %s509_s6 = sshll.u32 %s226_s25, 2 }
  0x13   : > { %545 = vmatpush3.bf16.msra.mxu0 %v596_v0  ;;  %555 = vmatpush3.bf16.msra.mxu1 %v596_v0  ;;  %v597_v1 = vld [vmem:[%s210_s29] sm:$0xff]   ;;  %v598_v2 = vld [vmem:[%s210_s29 + $0x10] sm:$0xff]   ;;  %v599_v3 = vld [vmem:[%s210_s29 + $0x8] sm:$0xff]   ;;  %s228_s9 = scalar_lea.vmem %s729_s3, %s509_s6 }
  0x14   : > { %546 = vmatprep.mubr.msk.bf16.mxu0 %vm274_vm0, %v597_v1  ;;  %550 = vmatprep.mubr.msk.bf16.mxu1 %vm274_vm0, %v598_v2  ;;  %v600_v4 = vld [vmem:[%s210_s29 + $0x18] sm:$0xff]  }
  0x16   : > { %547 = vmatmul.mubr.msk.bf16.vlgmr.msra.gmra.mxu0 %vm274_vm0, %v599_v3  ;;  %551 = vmatmul.mubr.msk.bf16.vlgmr.msra.gmra.mxu1 %vm274_vm0, %v600_v4 }
  0xd6   : > { %v548_v6 = vpop.f32.mrf.mxu0  ;;  %v552_v8 = vpop.f32.mrf.mxu1 }
  0xd7   : > { %v330_v7 = vadd.f32 %v548_v6, %v510_v5  ;;  %v346_v9 = vadd.f32 %v552_v8, %v510_v5 }
  0xd8   : > { %v321_v10 = vpop.f32.mrf.mxu0  ;;  %v337_v13 = vpop.f32.mrf.mxu1 }
  0xd9   : > { %v533_v11 = vpack.c.bf16 %v330_v7, %v330_v7  ;;  %v322_v12 = vadd.f32 %v510_v5, %v321_v10  ;;  %v537_v14 = vpack.c.bf16 %v346_v9, %v346_v9  ;;  %v338_v15 = vadd.f32 %v510_v5, %v337_v13 }
  0xda   : > { %v549_v16 = vpop.f32.mrf.mxu0  ;;  %v553_v19 = vpop.f32.mrf.mxu1 }
  0xdb   : > { %387 = vst.msk [vmem:[%s228_s9 + $0x8] sm:$0xf] %vm384_vm1, %v533_v11  ;;  %v531_v17 = vpack.c.bf16 %v322_v12, %v322_v12  ;;  %v333_v18 = vadd.f32 %v549_v16, %v510_v5  ;;  %391 = vst.msk [vmem:[%s228_s9 + $0x18] sm:$0xf] %vm384_vm1, %v537_v14  ;;  %v535_v20 = vpack.c.bf16 %v338_v15, %v338_v15 }
  0xdc   : > { %v349_v21 = vadd.f32 %v553_v19, %v510_v5  ;;  %v324_v22 = vpop.f32.mrf.mxu0  ;;  %v340_v25 = vpop.f32.mrf.mxu1 }
  0xdd   : > { %385 = vst.msk [vmem:[%s228_s9] sm:$0xf] %vm384_vm1, %v531_v17  ;;  %v534_v23 = vpack.c.bf16 %v333_v18, %v333_v18  ;;  %v325_v24 = vadd.f32 %v510_v5, %v324_v22  ;;  %389 = vst.msk [vmem:[%s228_s9 + $0x10] sm:$0xf] %vm384_vm1, %v535_v20  ;;  %v341_v27 = vadd.f32 %v510_v5, %v340_v25 }
  0xde   : > { %v538_v26 = vpack.c.bf16 %v349_v21, %v349_v21 }
  0xdf   : > { %388 = vst.msk [vmem:[%s228_s9 + $0xc] sm:$0xf] %vm384_vm1, %v534_v23  ;;  %v532_v28 = vpack.c.bf16 %v325_v24, %v325_v24  ;;  %v536_v29 = vpack.c.bf16 %v341_v27, %v341_v27 }
  0xe0   : > { %392 = vst.msk [vmem:[%s228_s9 + $0x1c] sm:$0xf] %vm384_vm1, %v538_v26 }
  0xe1   : > { %386 = vst.msk [vmem:[%s228_s9 + $0x4] sm:$0xf] %vm384_vm1, %v532_v28  ;;  %390 = vst.msk [vmem:[%s228_s9 + $0x14] sm:$0xf] %vm384_vm1, %v536_v29 }
  0xe2 PF: > { %s13_s16 = sadd.s32 1, %s639_s16   ;;  %s730_s12 = smov %s631_s14 }
  0xe3   : > { %p10_p7 = scmp.ge.s32.totalorder %s13_s16, 8   ;;  %s731_s13 = smov %s635_s15 }
  0xe4   : > { %s732_s14 = smov %s735_s17  ;;  %s733_s15 = smov %s739_s18 }
  0xe5   :  { %12 = sbr.rel (!%p10_p7) target bundleno = 3 (0x3), region = 68 }

// kernel: encoder3d_forward.59
= control target key start
LH: loop header
LB: loop body
LE: loop exit
PB: predicated region body
PF: predicated region fallthrough
CT: control target
= control target key end

     0   :  { %s1366_s12 = smov 0   ;;  %s1368_s13 = smov 0   ;;  %s1637_s0 = inlined_call_operand.vmem [shape: bf16[3,2,64,16], index: 0, kind: input, shape index: {}, may-alias: {0,1,2}]   ;;  %s1638_s1 = inlined_call_operand.vmem [shape: bf16[3,2,64,16], index: 1, kind: input, shape index: {}, may-alias: {0,1,2}]   ;;  %s1639_s2 = inlined_call_operand.vmem [shape: bf16[3,2,64,16], index: 2, kind: input, shape index: {}, may-alias: {0,1,2}]   ;;  %s1640_s3 = inlined_call_operand.vmem [shape: bf16[2,64,16], index: 3, kind: output, shape index: {}]  }
   0x1   :  { %s1370_s14 = smov 0  }
   0x2 LB: > { %s32_s15 = sadd.s32 1, %s1337_s13  ;;  %p1111_p0 = scmp.ge.s32.totalorder %s1341_s14, 1  ;;  %s1341_s14 = sphi %s1370_s14, %s13_s14   ;;  %s1337_s13 = sphi %s1368_s13, %s1642_s13   ;;  %s1333_s12 = sphi %s1366_s12, %s1641_s12  }
   0x3   : > { %p34_p1 = scmp.ge.s32.totalorder %s32_s15, 2  ;;  %p201_p2 = scmp.lt.s32.totalorder %s1341_s14, 3 }
   0x5   : > { %s1644_s15 = smov (%p34_p1, %s32_s15), 0  ;;  %p202_p3 = pnand %p1111_p0, %p201_p2 }
   0x6   : > { %p254_p4 = scmp.lt.s32.totalorder (!%p202_p3), %s1333_s12, 1 }
   0x7   : > { %205 = sbr.rel (%p202_p3) target bundleno = 850 (0x352), region = 32 }
   0xc   : > { %s1646_s12 = smov (!%p254_p4, %s1333_s12), 1  ;;  %vm317_vm0 = vcmask 130048   ;;  %vm300_vm1 = vcmask 7168   ;;  %v1343_v12 = vmov -inf   ;;  %vm496_vm2 = vcmask 523264  }
   0xd   : > { %s1384_s16 = sshll.u32 %s1646_s12, 5  ;;  %303 = vst.msk [vmem:[#allocation2 + $0x10] sm:$0xff] %vm300_vm1, %v1343_v12  ;;  %301 = vst.msk [vmem:[#allocation2] sm:$0xff] %vm300_vm1, %v1343_v12  ;;  %v1344_v33 = vmov 0   ;;  %v1345_v38 = vmov 0.0   ;;  %vm966_vm3 = vcmask 125952  }
   0xe   : > { %s1044_s19 = scalar_lea.vmem %s1638_s1, %s1384_s16  ;;  %s261_s22 = scalar_lea.vmem %s1637_s0, %s1384_s16  ;;  %302 = vst.msk [vmem:[#allocation2 + $0x8] sm:$0xff] %vm300_vm1, %v1343_v12  ;;  %304 = vst.msk [vmem:[#allocation2 + $0x18] sm:$0xff] %vm300_vm1, %v1343_v12  ;;  %1258 = vset.pattern.permute.xlu1 %v1344_v33  ;;  %1257 = vset.pattern.permute.xlu0 %v1344_v33 }
   0xf   : > { %v1259_v0 = vld [vmem:[%s1044_s19 + $0x58] sm:$0xff]   ;;  %v1260_v1 = vld [vmem:[%s1044_s19 + $0x50] sm:$0xff]   ;;  %v1263_v3 = vld [vmem:[%s261_s22] sm:$0xff]   ;;  %305 = vst.msk [vmem:[#allocation2 + $0x20] sm:$0xff] %vm300_vm1, %v1343_v12  ;;  %s1049_s25 = scalar_lea.vmem %s1639_s2, %s1384_s16  ;;  %s1608_s28 = scalar_lea.vmem %s1640_s3, %s1384_s16 }
  0x10   : > { %1226 = vmatprep.subr.msk.bf16.mxu0 %vm317_vm0, %v1259_v0  ;;  %v413_v2 = vsel %vm317_vm0, %v1259_v0, 0  ;;  %1202 = vmatprep.mubr.msk.bf16.mxu0 %vm317_vm0, %v1263_v3  ;;  %v410_v4 = vsel %vm317_vm0, %v1260_v1, 0  ;;  %v1261_v5 = vld [vmem:[%s1044_s19 + $0x48] sm:$0xff]   ;;  %v1262_v7 = vld [vmem:[%s1044_s19 + $0x40] sm:$0xff]   ;;  %v1265_v10 = vld [vmem:[%s261_s22 + $0x10] sm:$0xff]   ;;  %306 = vst.msk [vmem:[#allocation2 + $0x28] sm:$0xff] %vm300_vm1, %v1343_v12 }
  0x11   : > { %1195 = vmatpush3.bf16.xpose.msra.mxu0 %v413_v2  ;;  %v407_v6 = vsel %vm317_vm0, %v1261_v5, 0  ;;  %v404_v8 = vsel %vm317_vm0, %v1262_v7, 0  ;;  %v1264_v9 = vld [vmem:[%s261_s22 + $0x8] sm:$0xff]   ;;  %v1266_v11 = vld [vmem:[%s261_s22 + $0x18] sm:$0xff]   ;;  %307 = vst.msk [vmem:[#allocation2 + $0x30] sm:$0xff] %vm300_vm1, %v1343_v12  ;;  %308 = vst.msk [vmem:[#allocation2 + $0x38] sm:$0xff] %vm300_vm1, %v1343_v12 }
  0x12   : > { %1227 = vmatprep.subr.msk.bf16.mxu0 %vm317_vm0, %v1260_v1  ;;  %311 = vst.msk [vmem:[#allocation3 + $0x10] sm:$0xff] %vm300_vm1, %v1345_v38  ;;  %309 = vst.msk [vmem:[#allocation3] sm:$0xff] %vm300_vm1, %v1345_v38  ;;  %v1267_v60 = vld [vmem:[%s1049_s25 + $0x98] sm:$0xff]   ;;  %v1268_v2 = vld [vmem:[%s1049_s25 + $0x90] sm:$0xff]  }
  0x13   : > { %310 = vst.msk [vmem:[#allocation3 + $0x8] sm:$0xff] %vm300_vm1, %v1345_v38  ;;  %312 = vst.msk [vmem:[#allocation3 + $0x18] sm:$0xff] %vm300_vm1, %v1345_v38  ;;  %1210 = vmatprep.subr.bf16.mxu1 %v1267_v60 }
  0x14   : > { %313 = vst.msk [vmem:[#allocation3 + $0x20] sm:$0xff] %vm300_vm1, %v1345_v38  ;;  %314 = vst.msk [vmem:[#allocation3 + $0x28] sm:$0xff] %vm300_vm1, %v1345_v38  ;;  %v1462_v39 = vld [vmem:[#allocation2 + $0x10] sm:$0xff]  ;;  %v1464_v41 = vld [vmem:[#allocation2] sm:$0xff]  ;;  %1211 = vmatpush3.bf16.msra.mxu1 %v1267_v60 }
  0x15   : > { %315 = vst.msk [vmem:[#allocation3 + $0x30] sm:$0xff] %vm300_vm1, %v1345_v38  ;;  %316 = vst.msk [vmem:[#allocation3 + $0x38] sm:$0xff] %vm300_vm1, %v1345_v38  ;;  %v1469_v44 = vld [vmem:[#allocation2 + $0x18] sm:$0xff]  ;;  %v1479_v48 = vld [vmem:[#allocation2 + $0x8] sm:$0xff]  ;;  %1212 = vmatprep.subr.bf16.mxu1 %v1268_v2 }
  0x16   : > { %318 = vst.msk [vmem:[#allocation4] sm:$0xff] %vm317_vm0, %v1345_v38  ;;  %319 = vst.msk [vmem:[#allocation4 + $0x8] sm:$0xff] %vm317_vm0, %v1345_v38  ;;  %v1497_v54 = vld [vmem:[#allocation2 + $0x20] sm:$0xff] }
  0x17   : > { %320 = vst.msk [vmem:[#allocation4 + $0x10] sm:$0xff] %vm317_vm0, %v1345_v38  ;;  %321 = vst.msk [vmem:[#allocation4 + $0x18] sm:$0xff] %vm317_vm0, %v1345_v38  ;;  %v1513_v59 = vld [vmem:[#allocation2 + $0x28] sm:$0xff] }
  0x18   : > { %322 = vst.msk [vmem:[#allocation4 + $0x20] sm:$0xff] %vm317_vm0, %v1345_v38  ;;  %323 = vst.msk [vmem:[#allocation4 + $0x28] sm:$0xff] %vm317_vm0, %v1345_v38  ;;  %v1503_v57 = vld [vmem:[#allocation2 + $0x30] sm:$0xff]  ;;  %v1525_v3 = vld [vmem:[#allocation2 + $0x38] sm:$0xff]  ;;  %1213 = vmatpush3.bf16.msra.mxu1 %v1268_v2 }
  0x19   : > { %1197 = vmatpush3.bf16.xpose.msra.mxu0 %v410_v4  ;;  %324 = vst.msk [vmem:[#allocation4 + $0x30] sm:$0xff] %vm317_vm0, %v1345_v38  ;;  %325 = vst.msk [vmem:[#allocation4 + $0x38] sm:$0xff] %vm317_vm0, %v1345_v38 }
  0x1a   : > { %1228 = vmatprep.subr.msk.bf16.mxu0 %vm317_vm0, %v1261_v5 }
  0x21   : > { %1199 = vmatpush3.bf16.xpose.msra.mxu0 %v407_v6 }
  0x22   : > { %1229 = vmatprep.subr.msk.bf16.mxu0 %vm317_vm0, %v1262_v7 }
  0x29   : > { %1201 = vmatpush3.bf16.xpose.msra.mxu0 %v404_v8  ;;  %v1269_v8 = vld [vmem:[%s1049_s25 + $0x88] sm:$0xff]  }
  0x2a   : > { %1214 = vmatprep.subr.bf16.mxu1 %v1269_v8 }
  0x2b   : > { %1215 = vmatpush3.bf16.msra.mxu1 %v1269_v8 }
  0x30   : > { %1203 = vmatmul.mubr.msk.bf16.vlgmr.msra.gmra.mxu0 %vm317_vm0, %v1264_v9 }
  0x31   : > { %1206 = vmatprep.mubr.msk.bf16.mxu0 %vm317_vm0, %v1265_v10  ;;  %v1270_v10 = vld [vmem:[%s1049_s25 + $0x80] sm:$0xff]  }
  0x32   : > { %1216 = vmatprep.subr.bf16.mxu1 %v1270_v10 }
  0x33   : > { %1217 = vmatpush3.bf16.msra.mxu1 %v1270_v10 }
  0x38   : > { %1207 = vmatmul.mubr.msk.bf16.gmra.mxu0 %vm317_vm0, %v1266_v11 }
  0xf0   : > { %v1204_v13 = vpop.f32.mrf.mxu0 }
  0xf1   : > { %v1414_v14 = vmul.f32 0.25, %v1204_v13 }
  0xf2   : > { %v449_v15 = vpop.f32.mrf.mxu0 }
  0xf3   : > { %v1416_v16 = vmul.f32 0.25, %v449_v15  ;;  %v503_v17 = vsel %vm496_vm2, %v1414_v14, -inf }
  0xf4   : > { %504 = vmax.xlane.f32.xlu1 %v503_v17  ;;  %v1205_v18 = vpop.f32.mrf.mxu0 }
  0xf5   : > { %v1420_v19 = vmul.f32 0.25, %v1205_v18  ;;  %v497_v20 = vsel %vm496_vm2, %v1416_v16, -inf }
  0xf6   : > { %498 = vmax.xlane.f32.xlu0 %v497_v20  ;;  %v452_v21 = vpop.f32.mrf.mxu0 }
  0xf7   : > { %v1424_v22 = vmul.f32 0.25, %v452_v21  ;;  %v506_v23 = vsel %vm496_vm2, %v1420_v19, -inf }
  0xf8   : > { %507 = vmax.xlane.f32.xlu1 %v506_v23  ;;  %v1208_v24 = vpop.f32.mrf.mxu0 }
  0xf9   : > { %v500_v25 = vsel %vm496_vm2, %v1424_v22, -inf  ;;  %v1432_v29 = vmul.f32 0.25, %v1208_v24 }
  0xfa   : > { %501 = vmax.xlane.f32.xlu0 %v500_v25  ;;  %v465_v26 = vpop.f32.mrf.mxu0 }
  0xfb   : > { %v1430_v27 = vmul.f32 0.25, %v465_v26  ;;  %v515_v35 = vsel %vm496_vm2, %v1432_v29, -inf }
  0xfc   : > { %v1209_v28 = vpop.f32.mrf.mxu0 }
  0xfd   : > { %v509_v30 = vsel %vm496_vm2, %v1430_v27, -inf  ;;  %v1438_v34 = vmul.f32 0.25, %v1209_v28 }
  0xfe   : > { %510 = vmax.xlane.f32.xlu0 %v509_v30  ;;  %v468_v31 = vpop.f32.mrf.mxu0 }
  0xff   : > { %v1436_v32 = vmul.f32 0.25, %v468_v31  ;;  %v518_v37 = vsel %vm496_vm2, %v1438_v34, -inf }
 0x101   : > { %v512_v36 = vsel %vm496_vm2, %v1436_v32, -inf }
 0x102   : > { %516 = vmax.xlane.f32.xlu0 %v515_v35  ;;  %513 = vmax.xlane.f32.xlu1 %v512_v36 }
 0x106   : > { %519 = vmax.xlane.f32.xlu1 %v518_v37 }
 0x17d   : > { %v505_v40 = vpop.xlane.xlu1 %504 }
 0x17e   : > { %v1467_v42 = vmax.f32 %v1462_v39, %v505_v40 }
 0x17f   : > { %v499_v43 = vpop.xlane.xlu0 %498 }
 0x180   : > { %v531_v45 = vsub.f32 %v1462_v39, %v1467_v42  ;;  %853 = vst.msk [vmem:[#allocation2 + $0x10] sm:$0xff] %vm300_vm1, %v1467_v42  ;;  %v1476_v46 = vmax.f32 %v1464_v41, %v499_v43  ;;  %565 = vperm.xlu1 %1258, %v1467_v42  }
 0x181   : > { %v508_v47 = vpop.xlane.xlu1 %507 }
 0x182   : > { %v529_v49 = vsub.f32 %v1464_v41, %v1476_v46  ;;  %851 = vst.msk [vmem:[#allocation2] sm:$0xff] %vm300_vm1, %v1476_v46  ;;  %v1486_v50 = vmax.f32 %v1469_v44, %v508_v47  ;;  %555 = vperm.xlu0 %1257, %v1476_v46  }
 0x183   : > { %v502_v51 = vpop.xlane.xlu0 %501 }
 0x184   : > { %v532_v52 = vsub.f32 %v1469_v44, %v1486_v50  ;;  %854 = vst.msk [vmem:[#allocation2 + $0x18] sm:$0xff] %vm300_vm1, %v1486_v50  ;;  %v1494_v53 = vmax.f32 %v1479_v48, %v502_v51  ;;  %570 = vperm.xlu1 %1258, %v1486_v50   ;;  %v619_v44 = vld [vmem:[#allocation3 + $0x10] sm:$0xff]  ;;  %v617_v50 = vld [vmem:[#allocation3] sm:$0xff] }
 0x186   : > { %v530_v55 = vsub.f32 %v1479_v48, %v1494_v53  ;;  %852 = vst.msk [vmem:[#allocation2 + $0x8] sm:$0xff] %vm300_vm1, %v1494_v53  ;;  %v543_v42 = vmul.f32 1.442695, %v532_v52 }
 0x187   : > { %v511_v56 = vpop.xlane.xlu0 %510 }
 0x188   : > { %v1510_v58 = vmax.f32 %v1497_v54, %v511_v56  ;;  %560 = vperm.xlu1 %1258, %v1494_v53   ;;  %v539_v39 = vmul.f32 1.442695, %v530_v55 }
 0x18a   : > { %v533_v61 = vsub.f32 %v1497_v54, %v1510_v58  ;;  %855 = vst.msk [vmem:[#allocation2 + $0x20] sm:$0xff] %vm300_vm1, %v1510_v58 }
 0x18b   : > { %v517_v62 = vpop.xlane.xlu0 %516  ;;  %v514_v63 = vpop.xlane.xlu1 %513 }
 0x18c   : > { %v1520_v0 = vmax.f32 %v1503_v57, %v517_v62  ;;  %v1523_v1 = vmax.f32 %v1513_v59, %v514_v63 }
 0x18e   : > { %v535_v4 = vsub.f32 %v1503_v57, %v1520_v0  ;;  %857 = vst.msk [vmem:[#allocation2 + $0x30] sm:$0xff] %vm300_vm1, %v1520_v0  ;;  %v534_v5 = vsub.f32 %v1513_v59, %v1523_v1  ;;  %856 = vst.msk [vmem:[#allocation2 + $0x28] sm:$0xff] %vm300_vm1, %v1523_v1  ;;  %585 = vperm.xlu1 %1258, %v1520_v0  }
 0x18f   : > { %v520_v6 = vpop.xlane.xlu1 %519 }
 0x190   : > { %v1537_v7 = vmax.f32 %v1525_v3, %v520_v6  ;;  %v547_v41 = vmul.f32 1.442695, %v534_v5  ;;  %v620_v5 = vld [vmem:[#allocation3 + $0x18] sm:$0xff] }
 0x192   : > { %v536_v9 = vsub.f32 %v1525_v3, %v1537_v7  ;;  %858 = vst.msk [vmem:[#allocation2 + $0x38] sm:$0xff] %vm300_vm1, %v1537_v7  ;;  %575 = vperm.xlu1 %1258, %v1510_v58   ;;  %v549_v58 = vmul.f32 1.442695, %v535_v4 }
 0x196   : > { %580 = vperm.xlu1 %1258, %v1523_v1  }
 0x19a   : > { %590 = vperm.xlu1 %1258, %v1537_v7  }
 0x1fb   : > { %v566_v11 = vpop.permute.xlu1 %565 }
 0x1fc   : > { %v595_v12 = vsub.f32 %v1414_v14, %v566_v11 }
 0x1fd   : > { %v556_v13 = vpop.permute.xlu0 %555 }
 0x1fe   : > { %v605_v15 = vmul.f32 1.442695, %v595_v12  ;;  %v593_v17 = vsub.f32 %v1416_v16, %v556_v13  ;;  %v541_v13 = vmul.f32 1.442695, %v531_v45 }
 0x1ff   : > { %v571_v18 = vpop.permute.xlu1 %570 }
 0x200   : > { %1271 = vpow2.f32 %v605_v15  ;;  %v601_v20 = vmul.f32 1.442695, %v593_v17  ;;  %v596_v21 = vsub.f32 %v1420_v19, %v571_v18  ;;  %v537_v18 = vmul.f32 1.442695, %v529_v49 }
 0x202   : > { %1273 = vpow2.f32 %v601_v20  ;;  %v607_v23 = vmul.f32 1.442695, %v596_v21  ;;  %v545_v20 = vmul.f32 1.442695, %v533_v61 }
 0x203   : > { %v561_v24 = vpop.permute.xlu1 %560 }
 0x204   : > { %1275 = vpow2.f32 %v607_v23  ;;  %v594_v25 = vsub.f32 %v1424_v22, %v561_v24  ;;  %v618_v23 = vld [vmem:[#allocation3 + $0x8] sm:$0xff]  ;;  %v551_v24 = vmul.f32 1.442695, %v536_v9 }
 0x206   : > { %v603_v26 = vmul.f32 1.442695, %v594_v25 }
 0x208   : > { %1277 = vpow2.f32 %v603_v26 }
 0x209   : > { %v586_v28 = vpop.permute.xlu1 %585 }
 0x20a   : > { %v599_v14 = vsub.f32 %v1432_v29, %v586_v28 }
 0x20c   : > { %v613_v19 = vmul.f32 1.442695, %v599_v14 }
 0x20d   : > { %v1272_v30 = vpop.eup %1271  ;;  %v576_v31 = vpop.permute.xlu1 %575 }
 0x20e   : > { %v597_v16 = vsub.f32 %v1430_v27, %v576_v31  ;;  %v639_v33 = vsel %vm496_vm2, %v1272_v30, 0.0  ;;  %v621_v31 = vld [vmem:[#allocation3 + $0x20] sm:$0xff] }
 0x20f   : > { %v1274_v35 = vpop.eup %1273  ;;  %640 = vadd.xlane.f32.xlu0 %v639_v33  ;;  %v623_v33 = vld [vmem:[#allocation3 + $0x30] sm:$0xff] }
 0x210   : > { %v609_v36 = vmul.f32 1.442695, %v597_v16  ;;  %v633_v37 = vsel %vm496_vm2, %v1274_v35, 0.0 }
 0x211   : > { %v1276_v38 = vpop.eup %1275  ;;  %634 = vadd.xlane.f32.xlu1 %v633_v37  ;;  %v581_v22 = vpop.permute.xlu1 %580 }
 0x212   : > { %1279 = vpow2.f32 %v609_v36  ;;  %v598_v40 = vsub.f32 %v1436_v32, %v581_v22  ;;  %v642_v43 = vsel %vm496_vm2, %v1276_v38, 0.0  ;;  %v731_v62 = vpack.c.bf16 %v1276_v38, %v1272_v30 }
 0x213   : > { %1281 = vpow2.f32 %v613_v19 }
 0x214   : > { %v611_v29 = vmul.f32 1.442695, %v598_v40 }
 0x215   : > { %v1278_v47 = vpop.eup %1277  ;;  %643 = vadd.xlane.f32.xlu1 %v642_v43  ;;  %v591_v27 = vpop.permute.xlu1 %590  ;;  %v624_v43 = vld [vmem:[#allocation3 + $0x38] sm:$0xff] }
 0x216   : > { %1283 = vpow2.f32 %v611_v29  ;;  %v600_v51 = vsub.f32 %v1438_v34, %v591_v27  ;;  %v636_v56 = vsel %vm496_vm2, %v1278_v47, 0.0  ;;  %v730_v60 = vpack.c.bf16 %v1278_v47, %v1274_v35  ;;  %v622_v35 = vld [vmem:[#allocation3 + $0x28] sm:$0xff] }
 0x217   : > { %637 = vadd.xlane.f32.xlu0 %v636_v56 }
 0x218   : > { %v615_v63 = vmul.f32 1.442695, %v600_v51  ;;  %1218 = vmatprep.mubr.msk.bf16.mxu1 %vm496_vm2, %v730_v60 }
 0x219   : > { %1219 = vmatmul.mubr.msk.bf16.vlgmr.msra.gmra.mxu1 %vm496_vm2, %v731_v62 }
 0x21a   : > { %1285 = vpow2.f32 %v615_v63 }
 0x21b   : > { %1287 = vpow2.f32 %v541_v13  ;;  %v677_v13 = vld [vmem:[#allocation4 + $0x18] sm:$0xff] }
 0x21c   : > { %1289 = vpow2.f32 %v537_v18 }
 0x21d   : > { %1291 = vpow2.f32 %v545_v20 }
 0x21e   : > { %1293 = vpow2.f32 %v539_v39  ;;  %v675_v39 = vld [vmem:[#allocation4 + $0x8] sm:$0xff] }
 0x21f   : > { %v1280_v32 = vpop.eup %1279  ;;  %1295 = vpow2.f32 %v543_v42 }
 0x220   : > { %v645_v2 = vsel %vm496_vm2, %v1280_v32, 0.0  ;;  %v1282_v6 = vpop.eup %1281  ;;  %1297 = vpow2.f32 %v547_v41 }
 0x221   : > { %646 = vadd.xlane.f32.xlu0 %v645_v2  ;;  %v651_v10 = vsel %vm496_vm2, %v1282_v6, 0.0  ;;  %1299 = vpow2.f32 %v549_v58  ;;  %v679_v58 = vld [vmem:[#allocation4 + $0x28] sm:$0xff] }
 0x222   : > { %1301 = vpow2.f32 %v551_v24 }
 0x223   : > { %v1284_v8 = vpop.eup %1283 }
 0x224   : > { %v648_v34 = vsel %vm496_vm2, %v1284_v8, 0.0  ;;  %v732_v11 = vpack.c.bf16 %v1284_v8, %v1280_v32 }
 0x225   : > { %652 = vadd.xlane.f32.xlu0 %v651_v10  ;;  %649 = vadd.xlane.f32.xlu1 %v648_v34  ;;  %v676_v10 = vld [vmem:[#allocation4 + $0x10] sm:$0xff] }
 0x226   : > { %1222 = vmatprep.mubr.msk.bf16.mxu1 %vm496_vm2, %v732_v11  ;;  %v674_v11 = vld [vmem:[#allocation4] sm:$0xff] }
 0x227   : > { %v1286_v12 = vpop.eup %1285 }
 0x228   : > { %v654_v15 = vsel %vm496_vm2, %v1286_v12, 0.0  ;;  %v733_v17 = vpack.c.bf16 %v1286_v12, %v1282_v6  ;;  %v1288_v45 = vpop.eup %1287 }
 0x229   : > { %655 = vadd.xlane.f32.xlu1 %v654_v15  ;;  %v1290_v46 = vpop.eup %1289  ;;  %v627_v52 = vmul.f32 %v1288_v45, %v619_v44  ;;  %v678_v44 = vld [vmem:[#allocation4 + $0x20] sm:$0xff] }
 0x22a   : > { %1223 = vmatmul.mubr.msk.bf16.gmra.mxu1 %vm496_vm2, %v733_v17  ;;  %v1292_v49 = vpop.eup %1291  ;;  %v625_v61 = vmul.f32 %v1290_v46, %v617_v50 }
 0x22b   : > { %v1294_v54 = vpop.eup %1293  ;;  %v629_v7 = vmul.f32 %v1292_v49, %v621_v31 }
 0x22c   : > { %v1296_v48 = vpop.eup %1295  ;;  %v626_v57 = vmul.f32 %v1294_v54, %v618_v23 }
 0x22d   : > { %v1298_v53 = vpop.eup %1297  ;;  %v628_v25 = vmul.f32 %v1296_v48, %v620_v5 }
 0x22e   : > { %v1300_v9 = vpop.eup %1299  ;;  %v630_v38 = vmul.f32 %v1298_v53, %v622_v35 }
 0x22f   : > { %v631_v37 = vmul.f32 %v1300_v9, %v623_v33  ;;  %v1302_v22 = vpop.eup %1301 }
 0x230   : > { %v632_v51 = vmul.f32 %v1302_v22, %v624_v43 }
 0x23a   : > { %694 = vperm.xlu1 %1258, %v1288_v45  }
 0x23b   : > { %684 = vperm.xlu0 %1257, %v1290_v46  }
 0x23e   : > { %704 = vperm.xlu1 %1258, %v1292_v49  }
 0x23f   : > { %689 = vperm.xlu0 %1257, %v1294_v54  }
 0x243   : > { %699 = vperm.xlu0 %1257, %v1296_v48  }
 0x247   : > { %709 = vperm.xlu0 %1257, %v1298_v53  }
 0x298   : > { %v641_v55 = vpop.xlane.xlu0 %640 }
 0x299   : > { %v659_v59 = vadd.f32 %v641_v55, %v627_v52 }
 0x29a   : > { %v635_v1 = vpop.xlane.xlu1 %634 }
 0x29b   : > { %668 = vst.msk [vmem:[#allocation3 + $0x10] sm:$0xff] %vm300_vm1, %v659_v59  ;;  %v657_v21 = vadd.f32 %v635_v1, %v625_v61 }
 0x29d   : > { %666 = vst.msk [vmem:[#allocation3] sm:$0xff] %vm300_vm1, %v657_v21 }
 0x29e   : > { %v644_v26 = vpop.xlane.xlu1 %643 }
 0x29f   : > { %v660_v28 = vadd.f32 %v644_v26, %v628_v25 }
 0x2a0   : > { %v638_v0 = vpop.xlane.xlu0 %637 }
 0x2a1   : > { %669 = vst.msk [vmem:[#allocation3 + $0x18] sm:$0xff] %vm300_vm1, %v660_v28  ;;  %v658_v4 = vadd.f32 %v638_v0, %v626_v57 }
 0x2a2   : > { %v872_v14 = vld [vmem:[#allocation3 + $0x10] sm:$0xff] }
 0x2a3   : > { %667 = vst.msk [vmem:[#allocation3 + $0x8] sm:$0xff] %vm300_vm1, %v658_v4  ;;  %890 = vperm.xlu0 %1257, %v872_v14  }
 0x2a4   : > { %v870_v30 = vld [vmem:[#allocation3] sm:$0xff] }
 0x2a5   : > { %880 = vperm.xlu1 %1258, %v870_v30  }
 0x2a8   : > { %v873_v3 = vld [vmem:[#allocation3 + $0x18] sm:$0xff] }
 0x2a9   : > { %895 = vperm.xlu1 %1258, %v873_v3  }
 0x2aa   : > { %v647_v16 = vpop.xlane.xlu0 %646  ;;  %v871_v36 = vld [vmem:[#allocation3 + $0x8] sm:$0xff] }
 0x2ab   : > { %v661_v19 = vadd.f32 %v647_v16, %v629_v7 }
 0x2ad   : > { %670 = vst.msk [vmem:[#allocation3 + $0x20] sm:$0xff] %vm300_vm1, %v661_v19  ;;  %885 = vperm.xlu1 %1258, %v871_v36  }
 0x2ae   : > { %v653_v40 = vpop.xlane.xlu0 %652  ;;  %v650_v29 = vpop.xlane.xlu1 %649 }
 0x2af   : > { %v663_v47 = vadd.f32 %v653_v40, %v631_v37  ;;  %v662_v27 = vadd.f32 %v650_v29, %v630_v38 }
 0x2b1   : > { %672 = vst.msk [vmem:[#allocation3 + $0x30] sm:$0xff] %vm300_vm1, %v663_v47  ;;  %671 = vst.msk [vmem:[#allocation3 + $0x28] sm:$0xff] %vm300_vm1, %v662_v27  ;;  %v681_v47 = vld [vmem:[#allocation4 + $0x38] sm:$0xff] }
 0x2b2   : > { %v656_v56 = vpop.xlane.xlu1 %655 }
 0x2b3   : > { %v664_v60 = vadd.f32 %v656_v56, %v632_v51 }
 0x2b4   : > { %v874_v63 = vld [vmem:[#allocation3 + $0x20] sm:$0xff] }
 0x2b5   : > { %673 = vst.msk [vmem:[#allocation3 + $0x38] sm:$0xff] %vm300_vm1, %v664_v60  ;;  %v680_v60 = vld [vmem:[#allocation4 + $0x30] sm:$0xff] }
 0x2b6   : > { %v685_v6 = vpop.permute.xlu0 %684  ;;  %v695_v34 = vpop.permute.xlu1 %694 }
 0x2b7   : > { %v724_v12 = vmul.f32 %v695_v34, %v676_v10  ;;  %v722_v18 = vmul.f32 %v685_v6, %v674_v11 }
 0x2b8   : > { %v876_v62 = vld [vmem:[#allocation3 + $0x30] sm:$0xff]  ;;  %v875_v2 = vld [vmem:[#allocation3 + $0x28] sm:$0xff] }
 0x2b9   : > { %910 = vperm.xlu0 %1257, %v876_v62  }
 0x2ba   : > { %v690_v8 = vpop.permute.xlu0 %689  ;;  %v705_v50 = vpop.permute.xlu1 %704 }
 0x2bb   : > { %v723_v49 = vmul.f32 %v690_v8, %v675_v39  ;;  %v726_v55 = vmul.f32 %v705_v50, %v678_v44 }
 0x2bc   : > { %v877_v32 = vld [vmem:[#allocation3 + $0x38] sm:$0xff] }
 0x2bd   : > { %900 = vperm.xlu0 %1257, %v874_v63   ;;  %915 = vperm.xlu1 %1258, %v877_v32  }
 0x2be   : > { %v700_v15 = vpop.permute.xlu0 %699 }
 0x2bf   : > { %v725_v41 = vmul.f32 %v700_v15, %v677_v13 }
 0x2c1   : > { %719 = vperm.xlu0 %1257, %v1302_v22   ;;  %905 = vperm.xlu1 %1258, %v875_v2  }
 0x2c2   : > { %v710_v59 = vpop.permute.xlu0 %709 }
 0x2c3   : > { %v727_v21 = vmul.f32 %v710_v59, %v679_v58 }
 0x2c5   : > { %714 = vperm.xlu1 %1258, %v1300_v9  }
 0x2d9   : > { %v1220_v17 = vpop.f32.mrf.mxu1 }
 0x2da   : > { %v837_v20 = vadd.f32 %v1220_v17, %v724_v12 }
 0x2db   : > { %v804_v42 = vpop.f32.mrf.mxu1 }
 0x2dc   : > { %845 = vst.msk [vmem:[#allocation4 + $0x10] sm:$0xff] %vm317_vm0, %v837_v20  ;;  %v835_v45 = vadd.f32 %v804_v42, %v722_v18 }
 0x2dd   : > { %v1221_v46 = vpop.f32.mrf.mxu1 }
 0x2de   : > { %843 = vst.msk [vmem:[#allocation4] sm:$0xff] %vm317_vm0, %v835_v45  ;;  %v838_v54 = vadd.f32 %v1221_v46, %v725_v41 }
 0x2df   : > { %v807_v48 = vpop.f32.mrf.mxu1 }
 0x2e0   : > { %846 = vst.msk [vmem:[#allocation4 + $0x18] sm:$0xff] %vm317_vm0, %v838_v54  ;;  %v836_v53 = vadd.f32 %v807_v48, %v723_v49 }
 0x2e2   : > { %844 = vst.msk [vmem:[#allocation4 + $0x8] sm:$0xff] %vm317_vm0, %v836_v53 }
 0x2e3   : > { %v864_v4 = vld [vmem:[#allocation4 + $0x10] sm:$0xff] }
 0x2e5   : > { %v862_v31 = vld [vmem:[#allocation4] sm:$0xff] }
 0x2e7   : > { %v865_v33 = vld [vmem:[#allocation4 + $0x18] sm:$0xff] }
 0x2e9   : > { %v863_v38 = vld [vmem:[#allocation4 + $0x8] sm:$0xff] }
 0x2ea   : > { %v1224_v52 = vpop.f32.mrf.mxu1 }
 0x2ec   : > { %v820_v61 = vpop.f32.mrf.mxu1 }
 0x2ed   : > { %v839_v1 = vadd.f32 %v820_v61, %v726_v55 }
 0x2ee   : > { %v1225_v5 = vpop.f32.mrf.mxu1 }
 0x2ef   : > { %847 = vst.msk [vmem:[#allocation4 + $0x20] sm:$0xff] %vm317_vm0, %v839_v1 }
 0x2f0   : > { %v823_v23 = vpop.f32.mrf.mxu1 }
 0x2f1   : > { %v840_v24 = vadd.f32 %v823_v23, %v727_v21 }
 0x2f3   : > { %848 = vst.msk [vmem:[#allocation4 + $0x28] sm:$0xff] %vm317_vm0, %v840_v24 }
 0x2f6   : > { %v866_v8 = vld [vmem:[#allocation4 + $0x20] sm:$0xff] }
 0x2fa   : > { %v867_v17 = vld [vmem:[#allocation4 + $0x28] sm:$0xff] }
 0x31e   : > { %v891_v25 = vpop.permute.xlu0 %890 }
 0x31f   : > { %1303 = vrcp.f32 %v891_v25 }
 0x320   : > { %v881_v26 = vpop.permute.xlu1 %880 }
 0x321   : > { %1305 = vrcp.f32 %v881_v26 }
 0x324   : > { %v896_v28 = vpop.permute.xlu1 %895 }
 0x325   : > { %1307 = vrcp.f32 %v896_v28 }
 0x328   : > { %v886_v57 = vpop.permute.xlu1 %885 }
 0x329   : > { %1309 = vrcp.f32 %v886_v57 }
 0x32c   : > { %v1304_v0 = vpop.eup %1303 }
 0x32d   : > { %v923_v14 = vmul.f32 %v1304_v0, %v864_v4 }
 0x32e   : > { %v1306_v30 = vpop.eup %1305 }
 0x32f   : > { %v1172_v3 = vpack.c.bf16 %v923_v14, %v923_v14  ;;  %v919_v7 = vmul.f32 %v1306_v30, %v862_v31 }
 0x331   : > { %969 = vst.msk [vmem:[%s1608_s28 + $0x8] sm:$0xf] %vm966_vm3, %v1172_v3  ;;  %v1170_v9 = vpack.c.bf16 %v919_v7, %v919_v7 }
 0x332   : > { %v1308_v16 = vpop.eup %1307 }
 0x333   : > { %967 = vst.msk [vmem:[%s1608_s28] sm:$0xf] %vm966_vm3, %v1170_v9  ;;  %v925_v35 = vmul.f32 %v1308_v16, %v865_v33 }
 0x334   : > { %v911_v19 = vpop.permute.xlu0 %910 }
 0x335   : > { %v1173_v36 = vpack.c.bf16 %v925_v35, %v925_v35 }
 0x336   : > { %v1310_v37 = vpop.eup %1309 }
 0x337   : > { %970 = vst.msk [vmem:[%s1608_s28 + $0xc] sm:$0xf] %vm966_vm3, %v1173_v36  ;;  %v921_v22 = vmul.f32 %v1310_v37, %v863_v38 }
 0x338   : > { %v901_v40 = vpop.permute.xlu0 %900  ;;  %v916_v29 = vpop.permute.xlu1 %915 }
 0x339   : > { %v1171_v43 = vpack.c.bf16 %v921_v22, %v921_v22  ;;  %1311 = vrcp.f32 %v901_v40 }
 0x33a   : > { %1313 = vrcp.f32 %v916_v29 }
 0x33b   : > { %968 = vst.msk [vmem:[%s1608_s28 + $0x4] sm:$0xf] %vm966_vm3, %v1171_v43 }
 0x33c   : > { %v720_v27 = vpop.permute.xlu0 %719  ;;  %v906_v51 = vpop.permute.xlu1 %905 }
 0x33d   : > { %v729_v56 = vmul.f32 %v720_v27, %v681_v47  ;;  %1315 = vrcp.f32 %v906_v51 }
 0x33e   : > { %1317 = vrcp.f32 %v911_v19 }
 0x33f   : > { %v842_v62 = vadd.f32 %v1225_v5, %v729_v56 }
 0x340   : > { %v715_v63 = vpop.permute.xlu1 %714 }
 0x341   : > { %850 = vst.msk [vmem:[#allocation4 + $0x38] sm:$0xff] %vm317_vm0, %v842_v62  ;;  %v728_v32 = vmul.f32 %v715_v63, %v680_v60 }
 0x343   : > { %v841_v2 = vadd.f32 %v1224_v52, %v728_v32 }
 0x345   : > { %849 = vst.msk [vmem:[#allocation4 + $0x30] sm:$0xff] %vm317_vm0, %v841_v2 }
 0x346   : > { %v1312_v6 = vpop.eup %1311 }
 0x347   : > { %v927_v10 = vmul.f32 %v1312_v6, %v866_v8  ;;  %v1314_v34 = vpop.eup %1313 }
 0x348   : > { %v869_v11 = vld [vmem:[#allocation4 + $0x38] sm:$0xff] }
 0x349   : > { %v1174_v12 = vpack.c.bf16 %v927_v10, %v927_v10  ;;  %v933_v13 = vmul.f32 %v1314_v34, %v869_v11 }
 0x34a   : > { %v1316_v15 = vpop.eup %1315 }
 0x34b   : > { %971 = vst.msk [vmem:[%s1608_s28 + $0x10] sm:$0xf] %vm966_vm3, %v1174_v12  ;;  %v1177_v18 = vpack.c.bf16 %v933_v13, %v933_v13  ;;  %v929_v20 = vmul.f32 %v1316_v15, %v867_v17  ;;  %v1318_v39 = vpop.eup %1317 }
 0x34c   : > { %v868_v42 = vld [vmem:[#allocation4 + $0x30] sm:$0xff] }
 0x34d   : > { %974 = vst.msk [vmem:[%s1608_s28 + $0x1c] sm:$0xf] %vm966_vm3, %v1177_v18  ;;  %v1175_v41 = vpack.c.bf16 %v929_v20, %v929_v20  ;;  %v931_v45 = vmul.f32 %v1318_v39, %v868_v42 }
 0x34f   : > { %972 = vst.msk [vmem:[%s1608_s28 + $0x14] sm:$0xf] %vm966_vm3, %v1175_v41  ;;  %v1176_v46 = vpack.c.bf16 %v931_v45, %v931_v45 }
 0x351   : > { %973 = vst.msk [vmem:[%s1608_s28 + $0x18] sm:$0xf] %vm966_vm3, %v1176_v46 }
 0x352 PF: > { %s13_s14 = sadd.s32 1, %s1341_s14   ;;  %s1641_s12 = smov %s1337_s13 }
 0x353   : > { %p10_p5 = scmp.ge.s32.totalorder %s13_s14, 4   ;;  %s1642_s13 = smov %s1644_s15 }
 0x355   :  { %12 = sbr.rel (!%p10_p5) target bundleno = 2 (0x2), region = 76 }

// kernel: encoder3d_forward.60
= control target key start
LH: loop header
LB: loop body
LE: loop exit
PB: predicated region body
PF: predicated region fallthrough
CT: control target
= control target key end

     0   :  { %s599_s15 = smov 0   ;;  %s648_s0 = inlined_call_operand.vmem [shape: bf16[128,16], index: 0, kind: input, shape index: {}]   ;;  %s649_s1 = inlined_call_operand.vmem [shape: bf16[16,16], index: 1, kind: input, shape index: {}]   ;;  %s650_s2 = inlined_call_operand.vmem [shape: f32[1,16], index: 2, kind: input, shape index: {}]   ;;  %s651_s3 = inlined_call_operand.vmem [shape: bf16[128,16], index: 3, kind: input, shape index: {}]   ;;  %s652_s4 = inlined_call_operand.vmem [shape: bf16[128,16], index: 4, kind: output, shape index: {}]  }
   0x1 LB: > { %s478_s16 = sadd.s32 4294967295, %s572_s15   ;;  %p482_p0 = scmp.ge.s32.totalorder %s572_s15, 1  ;;  %s572_s15 = sphi %s599_s15, %s14_s15  }
   0x2   : > { %p174_p1 = scmp.lt.s32.totalorder %s572_s15, 3 }
   0x4   : > { %p175_p2 = pnand %p482_p0, %p174_p1 }
   0x5   : > { %s483_s19 = sshll.u32 (!%p175_p2), %s478_s16, 3 }
   0x6   : > { %178 = sbr.rel (%p175_p2) target bundleno = 223 (0xdf), region = 36  ;;  %p206_p3 = scmp.lt.s32.totalorder (!%p175_p2), %s483_s19, 15 }
   0xb   : > { %v561_v0 = vld [vmem:[%s649_s1] sm:$0xff]   ;;  %s654_s19 = smov (!%p206_p3, %s483_s19), 15  ;;  %vm267_vm0 = vcmask 130048   ;;  %vm401_vm1 = vcmask 125952  }
   0xc   : > { %541 = vmatprep.subr.bf16.mxu0 %v561_v0  ;;  %551 = vmatprep.subr.bf16.mxu1 %v561_v0  ;;  %s610_s20 = sshll.u32 %s654_s19, 2  ;;  %v489_v7 = vld [vmem:[%s650_s2] ss:$0 sm:$0xff] }
   0xd   : > { %542 = vmatpush3.bf16.msra.mxu0 %v561_v0  ;;  %552 = vmatpush3.bf16.msra.mxu1 %v561_v0  ;;  %s209_s23 = scalar_lea.vmem %s648_s0, %s610_s20  ;;  %s215_s26 = scalar_lea.vmem %s651_s3, %s610_s20 }
   0xe   : > { %v562_v1 = vld [vmem:[%s209_s23] sm:$0xff]   ;;  %v563_v2 = vld [vmem:[%s209_s23 + $0x10] sm:$0xff]   ;;  %v564_v3 = vld [vmem:[%s209_s23 + $0x8] sm:$0xff]   ;;  %s627_s5 = scalar_lea.vmem %s652_s4, %s610_s20 }
   0xf   : > { %543 = vmatprep.mubr.msk.bf16.mxu0 %vm267_vm0, %v562_v1  ;;  %547 = vmatprep.mubr.msk.bf16.mxu1 %vm267_vm0, %v563_v2  ;;  %v565_v4 = vld [vmem:[%s209_s23 + $0x18] sm:$0xff]   ;;  %v533_v5 = vld [vmem:[%s215_s26 + $0x8] sm:$0xff]   ;;  %v518_v8 = vld [vmem:[%s215_s26] sm:$0xff]  }
  0x10   : > { %544 = vmatmul.mubr.msk.bf16.vlgmr.msra.gmra.mxu0 %vm267_vm0, %v564_v3  ;;  %548 = vmatmul.mubr.msk.bf16.vlgmr.msra.gmra.mxu1 %vm267_vm0, %v565_v4  ;;  %v535_v6 = vld [vmem:[%s215_s26 + $0x18] sm:$0xff]   ;;  %v523_v9 = vunpack.c.l.bf16 %v533_v5  ;;  %v534_v10 = vld [vmem:[%s215_s26 + $0x10] sm:$0xff]   ;;  %v519_v15 = vunpack.c.l.bf16 %v518_v8  ;;  %v524_v22 = vunpack.c.h.bf16 %v533_v5  ;;  %v520_v31 = vunpack.c.h.bf16 %v518_v8 }
  0x11   : > { %v531_v12 = vunpack.c.l.bf16 %v535_v6  ;;  %v527_v18 = vunpack.c.l.bf16 %v534_v10  ;;  %v532_v26 = vunpack.c.h.bf16 %v535_v6  ;;  %v528_v36 = vunpack.c.h.bf16 %v534_v10 }
  0xd0   : > { %v545_v11 = vpop.f32.mrf.mxu0  ;;  %v549_v14 = vpop.f32.mrf.mxu1 }
  0xd1   : > { %v323_v13 = vadd.f32 %v545_v11, %v489_v7  ;;  %v339_v16 = vadd.f32 %v549_v14, %v489_v7 }
  0xd2   : > { %v314_v17 = vpop.f32.mrf.mxu0  ;;  %v330_v21 = vpop.f32.mrf.mxu1 }
  0xd3   : > { %v363_v19 = vadd.f32 %v523_v9, %v323_v13  ;;  %v315_v20 = vadd.f32 %v489_v7, %v314_v17  ;;  %v367_v23 = vadd.f32 %v531_v12, %v339_v16  ;;  %v331_v24 = vadd.f32 %v489_v7, %v330_v21 }
  0xd4   : > { %v546_v25 = vpop.f32.mrf.mxu0  ;;  %v550_v30 = vpop.f32.mrf.mxu1 }
  0xd5   : > { %v511_v27 = vpack.c.bf16 %v363_v19, %v363_v19  ;;  %v361_v28 = vadd.f32 %v519_v15, %v315_v20  ;;  %v326_v29 = vadd.f32 %v546_v25, %v489_v7  ;;  %v515_v32 = vpack.c.bf16 %v367_v23, %v367_v23 }
  0xd6   : > { %v365_v33 = vadd.f32 %v527_v18, %v331_v24  ;;  %v342_v34 = vadd.f32 %v550_v30, %v489_v7  ;;  %v317_v35 = vpop.f32.mrf.mxu0  ;;  %v333_v40 = vpop.f32.mrf.mxu1 }
  0xd7   : > { %404 = vst.msk [vmem:[%s627_s5 + $0x8] sm:$0xf] %vm401_vm1, %v511_v27  ;;  %v509_v37 = vpack.c.bf16 %v361_v28, %v361_v28  ;;  %v364_v38 = vadd.f32 %v524_v22, %v326_v29  ;;  %v318_v39 = vadd.f32 %v489_v7, %v317_v35  ;;  %408 = vst.msk [vmem:[%s627_s5 + $0x18] sm:$0xf] %vm401_vm1, %v515_v32 }
  0xd8   : > { %v513_v41 = vpack.c.bf16 %v365_v33, %v365_v33  ;;  %v368_v42 = vadd.f32 %v532_v26, %v342_v34  ;;  %v334_v43 = vadd.f32 %v489_v7, %v333_v40 }
  0xd9   : > { %402 = vst.msk [vmem:[%s627_s5] sm:$0xf] %vm401_vm1, %v509_v37  ;;  %v512_v44 = vpack.c.bf16 %v364_v38, %v364_v38  ;;  %v362_v45 = vadd.f32 %v520_v31, %v318_v39 }
  0xda   : > { %406 = vst.msk [vmem:[%s627_s5 + $0x10] sm:$0xf] %vm401_vm1, %v513_v41  ;;  %v516_v46 = vpack.c.bf16 %v368_v42, %v368_v42  ;;  %v366_v47 = vadd.f32 %v528_v36, %v334_v43 }
  0xdb   : > { %405 = vst.msk [vmem:[%s627_s5 + $0xc] sm:$0xf] %vm401_vm1, %v512_v44  ;;  %v510_v48 = vpack.c.bf16 %v362_v45, %v362_v45 }
  0xdc   : > { %409 = vst.msk [vmem:[%s627_s5 + $0x1c] sm:$0xf] %vm401_vm1, %v516_v46  ;;  %v514_v49 = vpack.c.bf16 %v366_v47, %v366_v47 }
  0xdd   : > { %403 = vst.msk [vmem:[%s627_s5 + $0x4] sm:$0xf] %vm401_vm1, %v510_v48 }
  0xde   : > { %407 = vst.msk [vmem:[%s627_s5 + $0x14] sm:$0xf] %vm401_vm1, %v514_v49 }
  0xdf PF: > { %s14_s15 = sadd.s32 1, %s572_s15  }
  0xe0   : > { %p11_p4 = scmp.ge.s32.totalorder %s14_s15, 4  }
  0xe2   :  { %13 = sbr.rel (!%p11_p4) target bundleno = 1 (0x1), region = 69 }

// kernel: encoder3d_forward.69
= control target key start
LH: loop header
LB: loop body
LE: loop exit
PB: predicated region body
PF: predicated region fallthrough
CT: control target
= control target key end

     0   :  { %s947_s12 = smov 0   ;;  %s949_s13 = smov 0   ;;  %s1070_s0 = inlined_call_operand.vmem [shape: bf16[2,6,48,48], index: 0, kind: input, shape index: {}]   ;;  %s1071_s1 = inlined_call_operand.vmem [shape: bf16[3,3,48,4], index: 1, kind: input, shape index: {}]   ;;  %s1072_s2 = inlined_call_operand.vmem [shape: f32[1,4], index: 2, kind: input, shape index: {}]   ;;  %s1073_s3 = inlined_call_operand.vmem [shape: bf16[2,4,32,4], index: 3, kind: output, shape index: {}]  }
   0x1   :  { %s951_s14 = smov 0   ;;  %s953_s15 = smov 0  }
   0x2   :  { %s955_s16 = smov 0   ;;  %s957_s17 = smov 0  }
   0x3   :  { %s959_s18 = smov 0  }
   0x4 LB: > { %s25_s19 = sadd.s32 1, %s912_s15  ;;  %s28_s20 = sadd.s32 1, %s916_s16  ;;  %s924_s18 = sphi %s959_s18, %s13_s18   ;;  %s920_s17 = sphi %s957_s17, %s1079_s17   ;;  %s916_s16 = sphi %s955_s16, %s1078_s16   ;;  %s912_s15 = sphi %s953_s15, %s1077_s15   ;;  %s908_s14 = sphi %s951_s14, %s1076_s14   ;;  %s904_s13 = sphi %s949_s13, %s1075_s13   ;;  %s900_s12 = sphi %s947_s12, %s1074_s12  }
   0x5   : > { %p26_p0 = scmp.ge.s32.totalorder %s25_s19, 3  ;;  %p698_p1 = scmp.ge.s32.totalorder %s924_s18, 1 }
   0x6   : > { %p178_p2 = scmp.lt.s32.totalorder %s924_s18, 25  ;;  %s32_s21 = sadd.s32 1, %s920_s17 }
   0x7   : > { %s1081_s19 = smov (%p26_p0, %s25_s19), 0  ;;  %s1083_s20 = smov (!%p26_p0, %s28_s20), %s916_s16 }
   0x8   : > { %p179_p3 = pnand %p698_p1, %p178_p2  ;;  %p30_p4 = scmp.ge.s32.totalorder %s1083_s20, 4 }
   0x9   : > { %s216_s22 = sadd.s32 (!%p179_p3), %s900_s12, %s904_s13  ;;  %p217_p6 = scmp.lt.s32.totalorder (!%p179_p3), %s908_s14, 1 }
   0xa   : > { %s1085_s20 = smov (%p30_p4, %s1083_s20), 0  ;;  %s1087_s21 = smov (!%p30_p4, %s32_s21), %s920_s17 }
   0xb   : > { %p34_p5 = scmp.ge.s32.totalorder %s1087_s21, 2  ;;  %182 = sbr.rel (%p179_p3) target bundleno = 273 (0x111), region = 32 }
   0xc   : > { %p219_p7 = scmp.lt.s32.totalorder (!%p179_p3), %s216_s22, 5  ;;  %p227_p8 = scmp.lt.s32.totalorder (!%p179_p3), %s900_s12, 2 }
   0xd   : > { %s1089_s21 = smov (%p34_p5, %s1087_s21), 0  ;;  %p234_p9 = scmp.lt.s32.totalorder (!%p179_p3), %s904_s13, 3 }
   0xe   : > { %p704_p10 = scmp.ne.s32.totalorder (!%p179_p3), %s900_s12, 0 }
  0x10   : > { %s1091_s14 = smov (!%p217_p6, %s908_s14), 1  ;;  %s1093_s22 = smov (!%p219_p7, %s216_s22), 5 }
  0x11   : > { %s796_s23 = smul.u32 36, %s1091_s14  ;;  %s702_s8 = sshll.u32 %s1091_s14, 4 }
  0x12   : > { %s795_s24 = smul.u32 6, %s1093_s22  ;;  %s1095_s13 = smov (!%p234_p9, %s904_s13), 3 }
  0x13   : > { %s228_s25 = scalar_select %p227_p8, %s900_s12, 2 }
  0x14   : > { %s223_s26 = sadd.s32 %s796_s23, %s795_s24  ;;  %s701_s9 = sshll.u32 %s1095_s13, 2 }
  0x15   : > { %s699_s27 = sshll.u32 %s223_s26, 2  ;;  %s797_s28 = smul.u32 72, %s228_s25 }
  0x16   : > { %s1001_s4 = scalar_lea.vmem %s1070_s0, %s699_s27  ;;  %s238_s10 = sadd.s32 %s702_s8, %s701_s9 }
  0x17   : > { %s1006_s7 = scalar_lea.vmem %s1071_s1, %s797_s28  ;;  %s703_s11 = sshll.u32 %s238_s10, 2 }
  0x18   : > { %s1012_s24 = scalar_lea.vmem %s1073_s3, %s703_s11  ;;  %245 = sbr.rel (%p704_p10) target bundleno = 32 (0x20), region = 36 }
  0x1d   : > { %vm246_vm0 = vcmask 31744   ;;  %v926_v0 = vmov 0.0  }
  0x1e   : > { %247 = vst.msk [vmem:[#allocation2] sm:$0xff] %vm246_vm0, %v926_v0  ;;  %248 = vst.msk [vmem:[#allocation2 + $0x8] sm:$0xff] %vm246_vm0, %v926_v0 }
  0x1f   : > { %249 = vst.msk [vmem:[#allocation2 + $0x10] sm:$0xff] %vm246_vm0, %v926_v0  ;;  %250 = vst.msk [vmem:[#allocation2 + $0x18] sm:$0xff] %vm246_vm0, %v926_v0 }
  0x20 PF: > { %v855_v1 = vld [vmem:[%s1006_s7 + $0x28] sm:$0xff]   ;;  %v856_v2 = vld [vmem:[%s1006_s7 + $0x10] sm:$0xff]   ;;  %v857_v3 = vld [vmem:[%s1006_s7 + $0x20] sm:$0xff]   ;;  %vm297_vm1 = vcmask 392192   ;;  %vm536_vm2 = vcmask 31744   ;;  %p738_p11 = scmp.ne.s32.totalorder %s900_s12, 2 }
  0x21   : > { %765 = vmatprep.subr.bf16.mxu0 %v855_v1  ;;  %775 = vmatprep.subr.bf16.mxu1 %v856_v2  ;;  %v858_v4 = vld [vmem:[%s1006_s7 + $0x8] sm:$0xff]   ;;  %v859_v5 = vld [vmem:[%s1006_s7 + $0x18] sm:$0xff]   ;;  %v860_v6 = vld [vmem:[%s1006_s7] sm:$0xff]  }
  0x22   : > { %766 = vmatpush3.bf16.msra.mxu0 %v855_v1  ;;  %776 = vmatpush3.bf16.msra.mxu1 %v856_v2  ;;  %v252_v7 = vld [vmem:[%s1001_s4 + $0x4] sm:$0xf]  ;;  %v253_v8 = vld [vmem:[%s1001_s4 + $0x8] sm:$0xf]  ;;  %v254_v9 = vld [vmem:[%s1001_s4 + $0xc] sm:$0xf] }
  0x23   : > { %767 = vmatprep.subr.bf16.mxu0 %v857_v3  ;;  %777 = vmatprep.subr.bf16.mxu1 %v858_v4  ;;  %v261_v10 = vld [vmem:[%s1001_s4 + $0x10] sm:$0xf]  ;;  %v711_v11 = vcombine.low %v252_v7, %v253_v8  ;;  %v251_v12 = vld [vmem:[%s1001_s4] sm:$0xf]  ;;  %v719_v16 = vcombine.low %v253_v8, %v254_v9  ;;  %v866_v17 = vld [vmem:[%s1006_s7 + $0x38] sm:$0xff]  }
  0x24   : > { %v718_v13 = vcombine.low %v251_v12, %v252_v7  ;;  %v865_v14 = vld [vmem:[%s1006_s7 + $0x40] sm:$0xff]   ;;  %v712_v15 = vcombine.low %v254_v9, %v261_v10  ;;  %v868_v18 = vld [vmem:[%s1001_s4 + $0x8] sm:$0xff]   ;;  %v867_v19 = vld [vmem:[%s1006_s7 + $0x30] sm:$0xff]  }
  0x25   : > { %771 = vmatprep.mubr.msk.bf16.mxu0 %vm297_vm1, %v711_v11  ;;  %v869_v20 = vld [vmem:[%s1001_s4 + $0x10] sm:$0xff]   ;;  %v528_v35 = vld [vmem:[#allocation2] sm:$0xff]  ;;  %v529_v45 = vld [vmem:[#allocation2 + $0x8] sm:$0xff] }
  0x26   : > { %768 = vmatpush3.bf16.msra.mxu0 %v857_v3  ;;  %778 = vmatpush3.bf16.msra.mxu1 %v858_v4  ;;  %v530_v30 = vld [vmem:[#allocation2 + $0x10] sm:$0xff]  ;;  %v531_v40 = vld [vmem:[#allocation2 + $0x18] sm:$0xff] }
  0x27   : > { %769 = vmatprep.subr.bf16.mxu0 %v859_v5  ;;  %779 = vmatprep.subr.bf16.mxu1 %v860_v6 }
  0x28   : > { %781 = vmatprep.mubr.msk.bf16.mxu1 %vm297_vm1, %v718_v13 }
  0x2a   : > { %770 = vmatpush3.bf16.msra.mxu0 %v859_v5  ;;  %780 = vmatpush3.bf16.msra.mxu1 %v860_v6 }
  0x2b   : > { %785 = vmatprep.subr.bf16.mxu0 %v865_v14 }
  0x2d   : > { %772 = vmatmul.mubr.msk.bf16.vlgmr.msra.gmra.mxu0 %vm297_vm1, %v712_v15  ;;  %782 = vmatmul.mubr.msk.bf16.vlgmr.msra.gmra.mxu1 %vm297_vm1, %v719_v16 }
  0x2e   : > { %786 = vmatpush3.bf16.msra.mxu0 %v865_v14  ;;  %791 = vmatprep.mubr.msk.bf16.mxu0 %vm297_vm1, %v868_v18 }
  0x2f   : > { %787 = vmatprep.subr.bf16.mxu0 %v866_v17 }
  0x32   : > { %788 = vmatpush3.bf16.msra.mxu0 %v866_v17 }
  0x33   : > { %789 = vmatprep.subr.bf16.mxu0 %v867_v19 }
  0x36   : > { %790 = vmatpush3.bf16.msra.mxu0 %v867_v19 }
  0x39   : > { %792 = vmatmul.mubr.msk.bf16.vlgmr.msra.gmra.mxu0 %vm297_vm1, %v869_v20 }
  0xed   : > { %v773_v21 = vpop.f32.mrf.mxu0  ;;  %v783_v22 = vpop.f32.mrf.mxu1 }
  0xee   : > { %v424_v28 = vadd.f32 %v783_v22, %v773_v21 }
  0xef   : > { %v338_v23 = vpop.f32.mrf.mxu0  ;;  %v415_v24 = vpop.f32.mrf.mxu1 }
  0xf0   : > { %v416_v31 = vadd.f32 %v415_v24, %v338_v23 }
  0xf1   : > { %v774_v25 = vpop.f32.mrf.mxu0  ;;  %v784_v26 = vpop.f32.mrf.mxu1 }
  0xf2   : > { %v427_v36 = vadd.f32 %v784_v26, %v774_v25 }
  0xf3   : > { %v341_v27 = vpop.f32.mrf.mxu0  ;;  %v418_v33 = vpop.f32.mrf.mxu1 }
  0xf4   : > { %v419_v41 = vadd.f32 %v418_v33, %v341_v27 }
  0xf9   : > { %v793_v29 = vpop.f32.mrf.mxu0 }
  0xfa   : > { %v526_v32 = vadd.f32 %v793_v29, %v424_v28 }
  0xfb   : > { %v509_v34 = vpop.f32.mrf.mxu0 }
  0xfc   : > { %v534_v37 = vadd.f32 %v530_v30, %v526_v32  ;;  %v524_v38 = vadd.f32 %v509_v34, %v416_v31 }
  0xfd   : > { %v794_v39 = vpop.f32.mrf.mxu0 }
  0xfe   : > { %539 = vst.msk [vmem:[#allocation2 + $0x10] sm:$0xff] %vm536_vm2, %v534_v37  ;;  %v532_v42 = vadd.f32 %v528_v35, %v524_v38  ;;  %v527_v43 = vadd.f32 %v794_v39, %v427_v36 }
  0xff   : > { %v512_v44 = vpop.f32.mrf.mxu0 }
 0x100   : > { %537 = vst.msk [vmem:[#allocation2] sm:$0xff] %vm536_vm2, %v532_v42  ;;  %v535_v46 = vadd.f32 %v531_v40, %v527_v43  ;;  %v525_v47 = vadd.f32 %v512_v44, %v419_v41  ;;  %544 = sbr.rel (%p738_p11) target bundleno = 273 (0x111), region = 40 }
 0x102   : > { %540 = vst.msk [vmem:[#allocation2 + $0x18] sm:$0xff] %vm536_vm2, %v535_v46  ;;  %v533_v48 = vadd.f32 %v529_v45, %v525_v47 }
 0x104   : > { %538 = vst.msk [vmem:[#allocation2 + $0x8] sm:$0xff] %vm536_vm2, %v533_v48 }
 0x105   : > { %v739_v50 = vld [vmem:[%s1072_s2] ss:$0 sm:$0xff]  ;;  %v547_v54 = vld [vmem:[#allocation2 + $0x10] sm:$0xff]  ;;  %vm576_vm3 = vcmask 27648  }
 0x106   : > { %v558_v56 = vadd.f32 %v739_v50, %v547_v54 }
 0x107   : > { %v545_v49 = vld [vmem:[#allocation2] sm:$0xff] }
 0x108   : > { %v556_v52 = vadd.f32 %v739_v50, %v545_v49  ;;  %v748_v60 = vpack.c.bf16 %v558_v56, %v558_v56 }
 0x109   : > { %v548_v55 = vld [vmem:[#allocation2 + $0x18] sm:$0xff] }
 0x10a   : > { %v559_v57 = vadd.f32 %v739_v50, %v548_v55  ;;  %v746_v58 = vpack.c.bf16 %v556_v52, %v556_v52  ;;  %579 = vst.msk [vmem:[%s1012_s24 + $0x8] sm:$0xf] %vm576_vm3, %v748_v60 }
 0x10b   : > { %v546_v51 = vld [vmem:[#allocation2 + $0x8] sm:$0xff] }
 0x10c   : > { %v557_v53 = vadd.f32 %v739_v50, %v546_v51  ;;  %v749_v61 = vpack.c.bf16 %v559_v57, %v559_v57  ;;  %577 = vst.msk [vmem:[%s1012_s24] sm:$0xf] %vm576_vm3, %v746_v58 }
 0x10e   : > { %v747_v59 = vpack.c.bf16 %v557_v53, %v557_v53  ;;  %580 = vst.msk [vmem:[%s1012_s24 + $0xc] sm:$0xf] %vm576_vm3, %v749_v61 }
 0x110   : > { %578 = vst.msk [vmem:[%s1012_s24 + $0x4] sm:$0xf] %vm576_vm3, %v747_v59 }
 0x111 PF: > { %s13_s18 = sadd.s32 1, %s924_s18   ;;  %s1074_s12 = smov %s912_s15 }
 0x112   : > { %p10_p12 = scmp.ge.s32.totalorder %s13_s18, 26   ;;  %s1075_s13 = smov %s916_s16 }
 0x113   : > { %s1076_s14 = smov %s920_s17  ;;  %s1077_s15 = smov %s1081_s19 }
 0x114   : > { %s1078_s16 = smov %s1085_s20  ;;  %s1079_s17 = smov %s1089_s21 }
 0x115   :  { %12 = sbr.rel (!%p10_p12) target bundleno = 4 (0x4), region = 75 }

</bundles_post_ra>
